<compile_context>
chip_gen: v7x
topology: tpu7x:2x2x1
jax: 0.10.0
libtpu: 0.0.40
codegen_flags: <defaults>
</compile_context>

<pallas_src>
import functools

import jax
import jax.numpy as jnp
from jax.experimental import pallas as pl
from jax.experimental.pallas import tpu as pltpu


# Stacked-per-layer packed weight ordering (leading dim = layer index).
_ENC_KEYS = ("wqkv", "bqkv", "wo", "bo",
             "g1", "bn1", "w1", "bf1", "w2", "bf2", "g2", "bn2")
_DEC_KEYS = ("swqkv", "sbqkv", "swo", "sbo", "g1", "bn1",
             "cwq", "cbq", "cwkv", "cbkv", "cwo", "cbo", "g2", "bn2",
             "w1", "bf1", "w2", "bf2", "g3", "bn3")


# ----------------------------------------------------------------------------
# In-kernel building blocks (pure value math, f32 throughout)
# ----------------------------------------------------------------------------

def _mha(q, k, v, bb, lq, lk, wo, bo, heads):
    """Multi-head attention core.

    q: (bb*lq, F) projected queries, k/v: (bb*lk, F) projected keys/values.
    Per-head scores / context use rank-3 (single batch dim) einsums; the
    per-head contexts are lane-concatenated and hit one fused Wo matmul.
    """
    f = q.shape[-1]
    dh = f // heads
    scale = 1.0 / float(dh) ** 0.5
    q3 = q.reshape(bb, lq, f)
    k3 = k.reshape(bb, lk, f)
    v3 = v.reshape(bb, lk, f)
    ctx = []
    for h in range(heads):
        lo = h * dh
        qh = q3[:, :, lo:lo + dh]
        kh = k3[:, :, lo:lo + dh]
        vh = v3[:, :, lo:lo + dh]
        s = jnp.einsum("bqd,bkd->bqk", qh, kh,
                       preferred_element_type=jnp.float32) * scale
        s = s - jnp.max(s, axis=-1, keepdims=True)
        p = jnp.exp(s)
        # EUP approx reciprocal instead of a VPU divide chain.
        p = p * pl.reciprocal(jnp.sum(p, axis=-1, keepdims=True), approx=True)
        oh = jnp.einsum("bqk,bkd->bqd", p, vh,
                        preferred_element_type=jnp.float32)
        ctx.append(oh.reshape(bb * lq, dh))
    # Lane-concat of head contexts + ONE full (rows,F)x(F,F) output projection
    # (replaces 4 contraction-dim-8 matmuls accumulated into a zero buffer).
    ctx = jnp.concatenate(ctx, axis=-1)
    return jnp.dot(ctx, wo, preferred_element_type=jnp.float32) + bo


def _self_attn(x2, bb, l, wqkv, bqkv, wo, bo, heads):
    """Self-attention with a fused (F, 3F) QKV projection."""
    f = x2.shape[-1]
    qkv = jnp.dot(x2, wqkv, preferred_element_type=jnp.float32) + bqkv
    q = qkv[:, :f]
    k = qkv[:, f:2 * f]
    v = qkv[:, 2 * f:]
    return _mha(q, k, v, bb, l, l, wo, bo, heads)


def _cross_attn(x2, m2, bb, lq, lk, wq, bq, wkv, bkv, wo, bo, heads):
    """Cross-attention: Q from x2, fused (F, 2F) K|V projection from memory."""
    f = x2.shape[-1]
    q = jnp.dot(x2, wq, preferred_element_type=jnp.float32) + bq
    kv = jnp.dot(m2, wkv, preferred_element_type=jnp.float32) + bkv
    k = kv[:, :f]
    v = kv[:, f:]
    return _mha(q, k, v, bb, lq, lk, wo, bo, heads)


def _add_ln(x, y, g, b):
    """LayerNorm(x + y), eps = 1e-5 (PyTorch default), f32 math."""
    z = x + y
    mu = jnp.mean(z, axis=-1, keepdims=True)
    d = z - mu
    var = jnp.mean(d * d, axis=-1, keepdims=True)
    return d * jax.lax.rsqrt(var + 1e-5) * g + b


def _ffn(x, w1, b1, w2, b2):
    h = jnp.dot(x, w1, preferred_element_type=jnp.float32) + b1
    h = jnp.maximum(h, 0.0)
    return jnp.dot(h, w2, preferred_element_type=jnp.float32) + b2


# ----------------------------------------------------------------------------
# Single fused kernel: encoder stack + permutation-matmul regroup + decoder
# ----------------------------------------------------------------------------

def _fused_kernel(*refs, n_enc, n_dec, h_enc, h_dec, batch, n_agent, t_q, t_m):
    n_e, n_d = len(_ENC_KEYS), len(_DEC_KEYS)
    perm_ref, q_ref, m_ref = refs[0], refs[1], refs[2]
    enc_refs = refs[3:3 + n_e]
    dec_refs = refs[3 + n_e:3 + n_e + n_d]
    o_ref = refs[3 + n_e + n_d]

    lq = t_q * n_agent                 # joint (time x agent) sequence length
    x = q_ref[...]                     # (batch*lq, F), rows ordered (b, t, a)

    # ---- time_spa_encoder stack: self-attention over the joint sequence ----
    for l in range(n_enc):
        (wqkv, bqkv, wo, bo,
         g1, bn1, w1, bf1, w2, bf2, g2, bn2) = (r[l] for r in enc_refs)
        a = _self_attn(x, batch, lq, wqkv, bqkv, wo, bo, h_enc)
        x = _add_ln(x, a, g1, bn1)
        x = _add_ln(x, _ffn(x, w1, bf1, w2, bf2), g2, bn2)

    # ---- regroup rows (b, t, a) -> (b, a, t): a single matmul with a constant
    #      block-diagonal 0/1 permutation matrix (exact; MXU is idle here) ----
    x = jnp.dot(perm_ref[...], x, preferred_element_type=jnp.float32)

    mem = m_ref[...]                   # (batch*n_agent*t_m, F), rows (b, a, t)
    bn = batch * n_agent

    # ---- decoder stack: self-attention + cross-attention to memory ---------
    for l in range(n_dec):
        (swqkv, sbqkv, swo, sbo, g1, bn1,
         cwq, cbq, cwkv, cbkv, cwo, cbo, g2, bn2,
         w1, bf1, w2, bf2, g3, bn3) = (r[l] for r in dec_refs)
        a = _self_attn(x, bn, t_q, swqkv, sbqkv, swo, sbo, h_dec)
        x = _add_ln(x, a, g1, bn1)
        a = _cross_attn(x, mem, bn, t_q, t_m,
                        cwq, cbq, cwkv, cbkv, cwo, cbo, h_dec)
        x = _add_ln(x, a, g2, bn2)
        x = _add_ln(x, _ffn(x, w1, bf1, w2, bf2), g3, bn3)

    o_ref[...] = x


# ----------------------------------------------------------------------------
# Wrapper
# ----------------------------------------------------------------------------

def _regroup_perm(batch, t_q, n_agent):
    """Constant (rows, rows) permutation matrix: row order (b,t,a) -> (b,a,t)."""
    lq = t_q * n_agent
    rows = batch * lq
    src = jnp.arange(rows)
    b = src // lq
    rem = src % lq
    t = rem // n_agent
    a = rem % n_agent
    dst = b * lq + a * t_q + t
    return jnp.zeros((rows, rows), jnp.float32).at[dst, src].set(1.0)


def _cost_estimate(n_enc, n_dec, h_enc, h_dec, batch, n_agent, t_q, t_m, f_dim,
                   hid, n_bytes):
    lq = t_q * n_agent
    rows = batch * lq                  # == batch * n_agent * t_q
    bn = batch * n_agent
    dh_e, dh_d = f_dim // h_enc, f_dim // h_dec
    flops = n_enc * (4 * 2 * rows * f_dim * f_dim
                     + 2 * 2 * batch * h_enc * lq * lq * dh_e
                     + 2 * 2 * rows * f_dim * hid)
    flops += n_dec * (8 * 2 * rows * f_dim * f_dim
                      + 2 * 2 * bn * h_dec * t_q * t_q * dh_d
                      + 2 * 2 * bn * h_dec * t_q * t_m * dh_d
                      + 2 * 2 * rows * f_dim * hid)
    flops += 2 * rows * rows * f_dim   # permutation matmul
    trans = (n_enc * batch * h_enc * lq * lq
             + n_dec * bn * h_dec * (t_q * t_q + t_q * t_m))
    return pl.CostEstimate(flops=int(flops), transcendentals=int(trans),
                           bytes_accessed=int(n_bytes))


def forward(params, data, tf_in, *, num_agent, h_enc, h_dec):
    """data: (Lm, B, F), tf_in: (Lq, B, F) -- same layout as the PyTorch call."""
    lq, batch, f_dim = tf_in.shape
    lm = data.shape[0]
    t_q, t_m = lq // num_agent, lm // num_agent

    # (L, B, F) -> (B, L, F).  The memory is regrouped per agent here in plain
    # JAX (free layout plumbing on an input), matching
    # memory.view(B, -1, N, F).transpose(1, 2) in the PyTorch forward.
    query = jnp.transpose(tf_in, (1, 0, 2)).reshape(batch * lq, f_dim)
    memory = jnp.transpose(data, (1, 0, 2)).reshape(batch, t_m, num_agent,
                                                    f_dim)
    memory = jnp.transpose(memory, (0, 2, 1, 3)).reshape(
        batch * num_agent * t_m, f_dim)

    enc, dec = params["enc"], params["dec"]
    n_enc, n_dec = enc["wq"].shape[0], dec["swq"].shape[0]
    hid = enc["w1"].shape[-1]

    # Wrapper-side weight packing (free): fused QKV / KV projections.
    enc_p = dict(
        wqkv=jnp.concatenate([enc["wq"], enc["wk"], enc["wv"]], axis=-1),
        bqkv=jnp.concatenate([enc["bq"], enc["bk"], enc["bv"]], axis=-1),
        wo=enc["wo"], bo=enc["bo"], g1=enc["g1"], bn1=enc["bn1"],
        w1=enc["w1"], bf1=enc["bf1"], w2=enc["w2"], bf2=enc["bf2"],
        g2=enc["g2"], bn2=enc["bn2"],
    )
    dec_p = dict(
        swqkv=jnp.concatenate([dec["swq"], dec["swk"], dec["swv"]], axis=-1),
        sbqkv=jnp.concatenate([dec["sbq"], dec["sbk"], dec["sbv"]], axis=-1),
        swo=dec["swo"], sbo=dec["sbo"], g1=dec["g1"], bn1=dec["bn1"],
        cwq=dec["cwq"], cbq=dec["cbq"],
        cwkv=jnp.concatenate([dec["cwk"], dec["cwv"]], axis=-1),
        cbkv=jnp.concatenate([dec["cbk"], dec["cbv"]], axis=-1),
        cwo=dec["cwo"], cbo=dec["cbo"], g2=dec["g2"], bn2=dec["bn2"],
        w1=dec["w1"], bf1=dec["bf1"], w2=dec["w2"], bf2=dec["bf2"],
        g3=dec["g3"], bn3=dec["bn3"],
    )
    flat = [enc_p[k] for k in _ENC_KEYS] + [dec_p[k] for k in _DEC_KEYS]

    perm = _regroup_perm(batch, t_q, num_agent)
    out_rows = batch * num_agent * t_q
    n_bytes = 4 * (perm.size + query.size + memory.size + out_rows * f_dim
                   + sum(int(w.size) for w in flat))

    kern = functools.partial(
        _fused_kernel, n_enc=n_enc, n_dec=n_dec, h_enc=h_enc, h_dec=h_dec,
        batch=batch, n_agent=num_agent, t_q=t_q, t_m=t_m)

    out = pl.pallas_call(
        kern,
        out_shape=jax.ShapeDtypeStruct((out_rows, f_dim), jnp.float32),
        cost_estimate=_cost_estimate(n_enc, n_dec, h_enc, h_dec, batch,
                                     num_agent, t_q, t_m, f_dim, hid, n_bytes),
        compiler_params=pltpu.CompilerParams(
            vmem_limit_bytes=8 * 1024 * 1024),
    )(perm, query, memory, *flat)

    # output.view(B, N, Tq, F).permute(2, 1, 0, 3).view(Tq*N, B, F)
    out = out.reshape(batch, num_agent, t_q, f_dim)
    return jnp.transpose(out, (2, 1, 0, 3)).reshape(
        t_q * num_agent, batch, f_dim)


# ----------------------------------------------------------------------------
# Deterministic parameter init (synthetic; shapes follow the module config)
# ----------------------------------------------------------------------------

def init_params(key, f_dim, hidden, n_enc, n_dec):
    keys = iter(jax.random.split(key, 32))
    s = 0.1

    def w(shape):
        return s * jax.random.normal(next(keys), shape, jnp.float32)

    def z(shape):
        return jnp.zeros(shape, jnp.float32)

    def o(shape):
        return jnp.ones(shape, jnp.float32)

    enc = dict(
        wq=w((n_enc, f_dim, f_dim)), bq=z((n_enc, 1, f_dim)),
        wk=w((n_enc, f_dim, f_dim)), bk=z((n_enc, 1, f_dim)),
        wv=w((n_enc, f_dim, f_dim)), bv=z((n_enc, 1, f_dim)),
        wo=w((n_enc, f_dim, f_dim)), bo=z((n_enc, 1, f_dim)),
        g1=o((n_enc, 1, f_dim)), bn1=z((n_enc, 1, f_dim)),
        w1=w((n_enc, f_dim, hidden)), bf1=z((n_enc, 1, hidden)),
        w2=w((n_enc, hidden, f_dim)), bf2=z((n_enc, 1, f_dim)),
        g2=o((n_enc, 1, f_dim)), bn2=z((n_enc, 1, f_dim)),
    )
    dec = dict(
        swq=w((n_dec, f_dim, f_dim)), sbq=z((n_dec, 1, f_dim)),
        swk=w((n_dec, f_dim, f_dim)), sbk=z((n_dec, 1, f_dim)),
        swv=w((n_dec, f_dim, f_dim)), sbv=z((n_dec, 1, f_dim)),
        swo=w((n_dec, f_dim, f_dim)), sbo=z((n_dec, 1, f_dim)),
        g1=o((n_dec, 1, f_dim)), bn1=z((n_dec, 1, f_dim)),
        cwq=w((n_dec, f_dim, f_dim)), cbq=z((n_dec, 1, f_dim)),
        cwk=w((n_dec, f_dim, f_dim)), cbk=z((n_dec, 1, f_dim)),
        cwv=w((n_dec, f_dim, f_dim)), cbv=z((n_dec, 1, f_dim)),
        cwo=w((n_dec, f_dim, f_dim)), cbo=z((n_dec, 1, f_dim)),
        g2=o((n_dec, 1, f_dim)), bn2=z((n_dec, 1, f_dim)),
        w1=w((n_dec, f_dim, hidden)), bf1=z((n_dec, 1, hidden)),
        w2=w((n_dec, hidden, f_dim)), bf2=z((n_dec, 1, f_dim)),
        g3=o((n_dec, 1, f_dim)), bn3=z((n_dec, 1, f_dim)),
    )
    return dict(enc=enc, dec=dec)


# ----------------------------------------------------------------------------
# Pure-JAX reference (for a correctness cross-check of the fused kernel)
# ----------------------------------------------------------------------------

def _reference_forward(params, data, tf_in, num_agent, h_enc, h_dec):
    def attn(x, m, wq, bq, wk, bk, wv, bv, wo, bo, heads):
        bb, lq, f = x.shape
        lk = m.shape[1]
        dh = f // heads
        q = (x @ wq + bq).reshape(bb, lq, heads, dh)
        k = (m @ wk + bk).reshape(bb, lk, heads, dh)
        v = (m @ wv + bv).reshape(bb, lk, heads, dh)
        s = jnp.einsum("bqhd,bkhd->bhqk", q, k) * (1.0 / float(dh) ** 0.5)
        p = jax.nn.softmax(s, axis=-1)
        out = jnp.einsum("bhqk,bkhd->bqhd", p, v).reshape(bb, lq, f)
        return out @ wo + bo

    def ln(x, g, b):
        mu = x.mean(-1, keepdims=True)
        var = ((x - mu) ** 2).mean(-1, keepdims=True)
        return (x - mu) * jax.lax.rsqrt(var + 1e-5) * g + b

    def ffn(x, w1, b1, w2, b2):
        return jnp.maximum(x @ w1 + b1, 0.0) @ w2 + b2

    lq, batch, f = tf_in.shape
    lm = data.shape[0]
    n = num_agent
    t_q, t_m = lq // n, lm // n
    enc, dec = params["enc"], params["dec"]

    q = jnp.transpose(tf_in, (1, 0, 2))
    mem = jnp.transpose(data, (1, 0, 2))
    for l in range(enc["wq"].shape[0]):
        a = attn(q, q, enc["wq"][l], enc["bq"][l], enc["wk"][l], enc["bk"][l],
                 enc["wv"][l], enc["bv"][l], enc["wo"][l], enc["bo"][l], h_enc)
        q = ln(q + a, enc["g1"][l], enc["bn1"][l])
        q = ln(q + ffn(q, enc["w1"][l], enc["bf1"][l], enc["w2"][l],
                       enc["bf2"][l]), enc["g2"][l], enc["bn2"][l])

    q = q.reshape(batch, t_q, n, f).transpose(0, 2, 1, 3).reshape(
        batch * n, t_q, f)
    mem = mem.reshape(batch, t_m, n, f).transpose(0, 2, 1, 3).reshape(
        batch * n, t_m, f)

    x = q
    for l in range(dec["swq"].shape[0]):
        a = attn(x, x, dec["swq"][l], dec["sbq"][l], dec["swk"][l],
                 dec["sbk"][l], dec["swv"][l], dec["sbv"][l], dec["swo"][l],
                 dec["sbo"][l], h_dec)
        x = ln(x + a, dec["g1"][l], dec["bn1"][l])
        a = attn(x, mem, dec["cwq"][l], dec["cbq"][l], dec["cwk"][l],
                 dec["cbk"][l], dec["cwv"][l], dec["cbv"][l], dec["cwo"][l],
                 dec["cbo"][l], h_dec)
        x = ln(x + a, dec["g2"][l], dec["bn2"][l])
        x = ln(x + ffn(x, dec["w1"][l], dec["bf1"][l], dec["w2"][l],
                       dec["bf2"][l]), dec["g3"][l], dec["bn3"][l])

    out = x.reshape(batch, n, t_q, f).transpose(2, 1, 0, 3)
    return out.reshape(t_q * n, batch, f)


# ----------------------------------------------------------------------------
# Demo
# ----------------------------------------------------------------------------

if __name__ == "__main__":
    # cfg.network.* (small synthetic config).  T_fut/T_obs chosen as 8 so every
    # per-agent sequence length is a multiple of the 8-row sublane tile.
    feature_dim = 32      # feature_dim
    hidden_dim = 64       # hidden_dim
    future_layer = 2      # future_layer
    future_head = 4       # future_head
    decode_num = 2        # decode_num
    decode_head = 4       # decode_head
    num_agent = 2
    t_fut, t_obs = 8, 8
    batch = 2
    lq = t_fut * num_agent     # query sequence length (time x agents, joint)
    lm = t_obs * num_agent     # memory sequence length

    key = jax.random.PRNGKey(0)
    kp, kd, kt = jax.random.split(key, 3)
    params = init_params(kp, feature_dim, hidden_dim, future_layer, decode_num)
    data = jax.random.normal(kd, (lm, batch, feature_dim), jnp.float32)
    tf_in = jax.random.normal(kt, (lq, batch, feature_dim), jnp.float32)

    fwd = jax.jit(functools.partial(forward, num_agent=num_agent,
                                    h_enc=future_head, h_dec=decode_head))
    out = fwd(params, data, tf_in)
    jax.block_until_ready(out)

    assert out.shape == (lq, batch, feature_dim), out.shape
    assert bool(jnp.all(jnp.isfinite(out)))

    ref = _reference_forward(params, data, tf_in, num_agent,
                             future_head, decode_head)
    assert bool(jnp.allclose(out, ref, rtol=5e-2, atol=5e-2)), \
        float(jnp.max(jnp.abs(out - ref)))

    print("KERNEL_OK")
</pallas_src>

<mosaic_0001>
module attributes {stable_mosaic.version = 11 : i64} {
  func.func @_fused_kernel(%arg0: memref<32x32xf32, #tpu.memory_space<vmem>>, %arg1: memref<32x32xf32, #tpu.memory_space<vmem>>, %arg2: memref<32x32xf32, #tpu.memory_space<vmem>>, %arg3: memref<2x32x96xf32, #tpu.memory_space<vmem>>, %arg4: memref<2x1x96xf32, #tpu.memory_space<vmem>>, %arg5: memref<2x32x32xf32, #tpu.memory_space<vmem>>, %arg6: memref<2x1x32xf32, #tpu.memory_space<vmem>>, %arg7: memref<2x1x32xf32, #tpu.memory_space<vmem>>, %arg8: memref<2x1x32xf32, #tpu.memory_space<vmem>>, %arg9: memref<2x32x64xf32, #tpu.memory_space<vmem>>, %arg10: memref<2x1x64xf32, #tpu.memory_space<vmem>>, %arg11: memref<2x64x32xf32, #tpu.memory_space<vmem>>, %arg12: memref<2x1x32xf32, #tpu.memory_space<vmem>>, %arg13: memref<2x1x32xf32, #tpu.memory_space<vmem>>, %arg14: memref<2x1x32xf32, #tpu.memory_space<vmem>>, %arg15: memref<2x32x96xf32, #tpu.memory_space<vmem>>, %arg16: memref<2x1x96xf32, #tpu.memory_space<vmem>>, %arg17: memref<2x32x32xf32, #tpu.memory_space<vmem>>, %arg18: memref<2x1x32xf32, #tpu.memory_space<vmem>>, %arg19: memref<2x1x32xf32, #tpu.memory_space<vmem>>, %arg20: memref<2x1x32xf32, #tpu.memory_space<vmem>>, %arg21: memref<2x32x32xf32, #tpu.memory_space<vmem>>, %arg22: memref<2x1x32xf32, #tpu.memory_space<vmem>>, %arg23: memref<2x32x64xf32, #tpu.memory_space<vmem>>, %arg24: memref<2x1x64xf32, #tpu.memory_space<vmem>>, %arg25: memref<2x32x32xf32, #tpu.memory_space<vmem>>, %arg26: memref<2x1x32xf32, #tpu.memory_space<vmem>>, %arg27: memref<2x1x32xf32, #tpu.memory_space<vmem>>, %arg28: memref<2x1x32xf32, #tpu.memory_space<vmem>>, %arg29: memref<2x32x64xf32, #tpu.memory_space<vmem>>, %arg30: memref<2x1x64xf32, #tpu.memory_space<vmem>>, %arg31: memref<2x64x32xf32, #tpu.memory_space<vmem>>, %arg32: memref<2x1x32xf32, #tpu.memory_space<vmem>>, %arg33: memref<2x1x32xf32, #tpu.memory_space<vmem>>, %arg34: memref<2x1x32xf32, #tpu.memory_space<vmem>>, %arg35: memref<32x32xf32, #tpu.memory_space<vmem>>) attributes {dimension_semantics = [], scalar_prefetch = 0 : i64, scratch_operands = 0 : i64, tpu.core_type = #tpu.core_type<tc>} {
    %c0 = arith.constant 0 : index
    %c0_0 = arith.constant 0 : index
    %0 = vector.load %arg1[%c0, %c0_0] : memref<32x32xf32, #tpu.memory_space<vmem>>, vector<32x32xf32>
    %c0_1 = arith.constant 0 : index
    %c0_2 = arith.constant 0 : index
    %c0_3 = arith.constant 0 : index
    %1 = vector.load %arg3[%c0_1, %c0_2, %c0_3] : memref<2x32x96xf32, #tpu.memory_space<vmem>>, vector<1x32x96xf32>
    %2 = vector.shape_cast %1 : vector<1x32x96xf32> to vector<32x96xf32>
    %c0_4 = arith.constant 0 : index
    %c0_5 = arith.constant 0 : index
    %c0_6 = arith.constant 0 : index
    %3 = vector.load %arg4[%c0_4, %c0_5, %c0_6] : memref<2x1x96xf32, #tpu.memory_space<vmem>>, vector<1x1x96xf32>
    %4 = vector.shape_cast %3 : vector<1x1x96xf32> to vector<1x96xf32>
    %c0_7 = arith.constant 0 : index
    %c0_8 = arith.constant 0 : index
    %c0_9 = arith.constant 0 : index
    %5 = vector.load %arg5[%c0_7, %c0_8, %c0_9] : memref<2x32x32xf32, #tpu.memory_space<vmem>>, vector<1x32x32xf32>
    %6 = vector.shape_cast %5 : vector<1x32x32xf32> to vector<32x32xf32>
    %c0_10 = arith.constant 0 : index
    %c0_11 = arith.constant 0 : index
    %c0_12 = arith.constant 0 : index
    %7 = vector.load %arg6[%c0_10, %c0_11, %c0_12] : memref<2x1x32xf32, #tpu.memory_space<vmem>>, vector<1x1x32xf32>
    %8 = vector.shape_cast %7 : vector<1x1x32xf32> to vector<1x32xf32>
    %c0_13 = arith.constant 0 : index
    %c0_14 = arith.constant 0 : index
    %c0_15 = arith.constant 0 : index
    %9 = vector.load %arg7[%c0_13, %c0_14, %c0_15] : memref<2x1x32xf32, #tpu.memory_space<vmem>>, vector<1x1x32xf32>
    %10 = vector.shape_cast %9 : vector<1x1x32xf32> to vector<1x32xf32>
    %c0_16 = arith.constant 0 : index
    %c0_17 = arith.constant 0 : index
    %c0_18 = arith.constant 0 : index
    %11 = vector.load %arg8[%c0_16, %c0_17, %c0_18] : memref<2x1x32xf32, #tpu.memory_space<vmem>>, vector<1x1x32xf32>
    %12 = vector.shape_cast %11 : vector<1x1x32xf32> to vector<1x32xf32>
    %c0_19 = arith.constant 0 : index
    %c0_20 = arith.constant 0 : index
    %c0_21 = arith.constant 0 : index
    %13 = vector.load %arg9[%c0_19, %c0_20, %c0_21] : memref<2x32x64xf32, #tpu.memory_space<vmem>>, vector<1x32x64xf32>
    %14 = vector.shape_cast %13 : vector<1x32x64xf32> to vector<32x64xf32>
    %c0_22 = arith.constant 0 : index
    %c0_23 = arith.constant 0 : index
    %c0_24 = arith.constant 0 : index
    %15 = vector.load %arg10[%c0_22, %c0_23, %c0_24] : memref<2x1x64xf32, #tpu.memory_space<vmem>>, vector<1x1x64xf32>
    %16 = vector.shape_cast %15 : vector<1x1x64xf32> to vector<1x64xf32>
    %c0_25 = arith.constant 0 : index
    %c0_26 = arith.constant 0 : index
    %c0_27 = arith.constant 0 : index
    %17 = vector.load %arg11[%c0_25, %c0_26, %c0_27] : memref<2x64x32xf32, #tpu.memory_space<vmem>>, vector<1x64x32xf32>
    %18 = vector.shape_cast %17 : vector<1x64x32xf32> to vector<64x32xf32>
    %c0_28 = arith.constant 0 : index
    %c0_29 = arith.constant 0 : index
    %c0_30 = arith.constant 0 : index
    %19 = vector.load %arg12[%c0_28, %c0_29, %c0_30] : memref<2x1x32xf32, #tpu.memory_space<vmem>>, vector<1x1x32xf32>
    %20 = vector.shape_cast %19 : vector<1x1x32xf32> to vector<1x32xf32>
    %c0_31 = arith.constant 0 : index
    %c0_32 = arith.constant 0 : index
    %c0_33 = arith.constant 0 : index
    %21 = vector.load %arg13[%c0_31, %c0_32, %c0_33] : memref<2x1x32xf32, #tpu.memory_space<vmem>>, vector<1x1x32xf32>
    %22 = vector.shape_cast %21 : vector<1x1x32xf32> to vector<1x32xf32>
    %c0_34 = arith.constant 0 : index
    %c0_35 = arith.constant 0 : index
    %c0_36 = arith.constant 0 : index
    %23 = vector.load %arg14[%c0_34, %c0_35, %c0_36] : memref<2x1x32xf32, #tpu.memory_space<vmem>>, vector<1x1x32xf32>
    %24 = vector.shape_cast %23 : vector<1x1x32xf32> to vector<1x32xf32>
    %cst = arith.constant dense<0.000000e+00> : vector<32x96xf32>
    %25 = tpu.matmul %0, %2, %cst {dimension_numbers = #tpu.dot_dimension_numbers<[1], [0], [0], [1], [0, 0, 1, 1], [], []>} : vector<32x32xf32>, vector<32x96xf32>, vector<32x96xf32> -> vector<32x96xf32>
    %26 = vector.broadcast %4 : vector<1x96xf32> to vector<32x96xf32>
    %27 = arith.addf %25, %26 : vector<32x96xf32>
    %28 = vector.extract_strided_slice %27 {offsets = [0, 0], sizes = [32, 32], strides = [1, 1]} : vector<32x96xf32> to vector<32x32xf32>
    %29 = vector.extract_strided_slice %27 {offsets = [0, 32], sizes = [32, 32], strides = [1, 1]} : vector<32x96xf32> to vector<32x32xf32>
    %30 = vector.extract_strided_slice %27 {offsets = [0, 64], sizes = [32, 32], strides = [1, 1]} : vector<32x96xf32> to vector<32x32xf32>
    %31 = vector.shape_cast %28 : vector<32x32xf32> to vector<2x16x32xf32>
    %32 = vector.shape_cast %29 : vector<32x32xf32> to vector<2x16x32xf32>
    %33 = vector.shape_cast %30 : vector<32x32xf32> to vector<2x16x32xf32>
    %34 = vector.extract_strided_slice %31 {offsets = [0, 0, 0], sizes = [2, 16, 8], strides = [1, 1, 1]} : vector<2x16x32xf32> to vector<2x16x8xf32>
    %35 = vector.extract_strided_slice %32 {offsets = [0, 0, 0], sizes = [2, 16, 8], strides = [1, 1, 1]} : vector<2x16x32xf32> to vector<2x16x8xf32>
    %36 = vector.extract_strided_slice %33 {offsets = [0, 0, 0], sizes = [2, 16, 8], strides = [1, 1, 1]} : vector<2x16x32xf32> to vector<2x16x8xf32>
    "tpu.trace_start"() <{level = 10 : i32, message = "bqd,bkd->bqk"}> : () -> ()
    %cst_37 = arith.constant dense<0.000000e+00> : vector<2x16x16xf32>
    %37 = tpu.matmul %34, %35, %cst_37 {dimension_numbers = #tpu.dot_dimension_numbers<[2], [2], [1], [1], [0, 0, 0, 1, 1, 1], [0], [0]>} : vector<2x16x8xf32>, vector<2x16x8xf32>, vector<2x16x16xf32> -> vector<2x16x16xf32>
    "tpu.trace_stop"() : () -> ()
    %cst_38 = arith.constant 0.353553385 : f32
    %38 = vector.broadcast %cst_38 : f32 to vector<2x16x16xf32>
    %39 = arith.mulf %37, %38 : vector<2x16x16xf32>
    %cst_39 = arith.constant dense<0xFF800000> : vector<2x16xf32>
    %40 = vector.multi_reduction <maximumf>, %39, %cst_39 [2] : vector<2x16x16xf32> to vector<2x16xf32>
    %41 = vector.shape_cast %40 : vector<2x16xf32> to vector<2x16x1xf32>
    %42 = vector.broadcast %41 : vector<2x16x1xf32> to vector<2x16x16xf32>
    %43 = arith.subf %39, %42 : vector<2x16x16xf32>
    %44 = math.exp %43 : vector<2x16x16xf32>
    %cst_40 = arith.constant dense<0.000000e+00> : vector<2x16xf32>
    %45 = vector.multi_reduction <add>, %44, %cst_40 [2] : vector<2x16x16xf32> to vector<2x16xf32>
    %46 = vector.shape_cast %45 : vector<2x16xf32> to vector<2x16x1xf32>
    %47 = tpu.reciprocal %46 {approx = true} : vector<2x16x1xf32> -> vector<2x16x1xf32>
    %48 = vector.broadcast %47 : vector<2x16x1xf32> to vector<2x16x16xf32>
    %49 = arith.mulf %44, %48 : vector<2x16x16xf32>
    "tpu.trace_start"() <{level = 10 : i32, message = "bqk,bkd->bqd"}> : () -> ()
    %cst_41 = arith.constant dense<0.000000e+00> : vector<2x16x8xf32>
    %50 = tpu.matmul %49, %36, %cst_41 {dimension_numbers = #tpu.dot_dimension_numbers<[2], [1], [1], [2], [0, 0, 0, 1, 1, 2], [0], [0]>} : vector<2x16x16xf32>, vector<2x16x8xf32>, vector<2x16x8xf32> -> vector<2x16x8xf32>
    "tpu.trace_stop"() : () -> ()
    %51 = vector.shape_cast %50 : vector<2x16x8xf32> to vector<32x8xf32>
    %52 = vector.extract_strided_slice %31 {offsets = [0, 0, 8], sizes = [2, 16, 8], strides = [1, 1, 1]} : vector<2x16x32xf32> to vector<2x16x8xf32>
    %53 = vector.extract_strided_slice %32 {offsets = [0, 0, 8], sizes = [2, 16, 8], strides = [1, 1, 1]} : vector<2x16x32xf32> to vector<2x16x8xf32>
    %54 = vector.extract_strided_slice %33 {offsets = [0, 0, 8], sizes = [2, 16, 8], strides = [1, 1, 1]} : vector<2x16x32xf32> to vector<2x16x8xf32>
    "tpu.trace_start"() <{level = 10 : i32, message = "bqd,bkd->bqk"}> : () -> ()
    %cst_42 = arith.constant dense<0.000000e+00> : vector<2x16x16xf32>
    %55 = tpu.matmul %52, %53, %cst_42 {dimension_numbers = #tpu.dot_dimension_numbers<[2], [2], [1], [1], [0, 0, 0, 1, 1, 1], [0], [0]>} : vector<2x16x8xf32>, vector<2x16x8xf32>, vector<2x16x16xf32> -> vector<2x16x16xf32>
    "tpu.trace_stop"() : () -> ()
    %cst_43 = arith.constant 0.353553385 : f32
    %56 = vector.broadcast %cst_43 : f32 to vector<2x16x16xf32>
    %57 = arith.mulf %55, %56 : vector<2x16x16xf32>
    %cst_44 = arith.constant dense<0xFF800000> : vector<2x16xf32>
    %58 = vector.multi_reduction <maximumf>, %57, %cst_44 [2] : vector<2x16x16xf32> to vector<2x16xf32>
    %59 = vector.shape_cast %58 : vector<2x16xf32> to vector<2x16x1xf32>
    %60 = vector.broadcast %59 : vector<2x16x1xf32> to vector<2x16x16xf32>
    %61 = arith.subf %57, %60 : vector<2x16x16xf32>
    %62 = math.exp %61 : vector<2x16x16xf32>
    %cst_45 = arith.constant dense<0.000000e+00> : vector<2x16xf32>
    %63 = vector.multi_reduction <add>, %62, %cst_45 [2] : vector<2x16x16xf32> to vector<2x16xf32>
    %64 = vector.shape_cast %63 : vector<2x16xf32> to vector<2x16x1xf32>
    %65 = tpu.reciprocal %64 {approx = true} : vector<2x16x1xf32> -> vector<2x16x1xf32>
    %66 = vector.broadcast %65 : vector<2x16x1xf32> to vector<2x16x16xf32>
    %67 = arith.mulf %62, %66 : vector<2x16x16xf32>
    "tpu.trace_start"() <{level = 10 : i32, message = "bqk,bkd->bqd"}> : () -> ()
    %cst_46 = arith.constant dense<0.000000e+00> : vector<2x16x8xf32>
    %68 = tpu.matmul %67, %54, %cst_46 {dimension_numbers = #tpu.dot_dimension_numbers<[2], [1], [1], [2], [0, 0, 0, 1, 1, 2], [0], [0]>} : vector<2x16x16xf32>, vector<2x16x8xf32>, vector<2x16x8xf32> -> vector<2x16x8xf32>
    "tpu.trace_stop"() : () -> ()
    %69 = vector.shape_cast %68 : vector<2x16x8xf32> to vector<32x8xf32>
    %70 = vector.extract_strided_slice %31 {offsets = [0, 0, 16], sizes = [2, 16, 8], strides = [1, 1, 1]} : vector<2x16x32xf32> to vector<2x16x8xf32>
    %71 = vector.extract_strided_slice %32 {offsets = [0, 0, 16], sizes = [2, 16, 8], strides = [1, 1, 1]} : vector<2x16x32xf32> to vector<2x16x8xf32>
    %72 = vector.extract_strided_slice %33 {offsets = [0, 0, 16], sizes = [2, 16, 8], strides = [1, 1, 1]} : vector<2x16x32xf32> to vector<2x16x8xf32>
    "tpu.trace_start"() <{level = 10 : i32, message = "bqd,bkd->bqk"}> : () -> ()
    %cst_47 = arith.constant dense<0.000000e+00> : vector<2x16x16xf32>
    %73 = tpu.matmul %70, %71, %cst_47 {dimension_numbers = #tpu.dot_dimension_numbers<[2], [2], [1], [1], [0, 0, 0, 1, 1, 1], [0], [0]>} : vector<2x16x8xf32>, vector<2x16x8xf32>, vector<2x16x16xf32> -> vector<2x16x16xf32>
    "tpu.trace_stop"() : () -> ()
    %cst_48 = arith.constant 0.353553385 : f32
    %74 = vector.broadcast %cst_48 : f32 to vector<2x16x16xf32>
    %75 = arith.mulf %73, %74 : vector<2x16x16xf32>
    %cst_49 = arith.constant dense<0xFF800000> : vector<2x16xf32>
    %76 = vector.multi_reduction <maximumf>, %75, %cst_49 [2] : vector<2x16x16xf32> to vector<2x16xf32>
    %77 = vector.shape_cast %76 : vector<2x16xf32> to vector<2x16x1xf32>
    %78 = vector.broadcast %77 : vector<2x16x1xf32> to vector<2x16x16xf32>
    %79 = arith.subf %75, %78 : vector<2x16x16xf32>
    %80 = math.exp %79 : vector<2x16x16xf32>
    %cst_50 = arith.constant dense<0.000000e+00> : vector<2x16xf32>
    %81 = vector.multi_reduction <add>, %80, %cst_50 [2] : vector<2x16x16xf32> to vector<2x16xf32>
    %82 = vector.shape_cast %81 : vector<2x16xf32> to vector<2x16x1xf32>
    %83 = tpu.reciprocal %82 {approx = true} : vector<2x16x1xf32> -> vector<2x16x1xf32>
    %84 = vector.broadcast %83 : vector<2x16x1xf32> to vector<2x16x16xf32>
    %85 = arith.mulf %80, %84 : vector<2x16x16xf32>
    "tpu.trace_start"() <{level = 10 : i32, message = "bqk,bkd->bqd"}> : () -> ()
    %cst_51 = arith.constant dense<0.000000e+00> : vector<2x16x8xf32>
    %86 = tpu.matmul %85, %72, %cst_51 {dimension_numbers = #tpu.dot_dimension_numbers<[2], [1], [1], [2], [0, 0, 0, 1, 1, 2], [0], [0]>} : vector<2x16x16xf32>, vector<2x16x8xf32>, vector<2x16x8xf32> -> vector<2x16x8xf32>
    "tpu.trace_stop"() : () -> ()
    %87 = vector.shape_cast %86 : vector<2x16x8xf32> to vector<32x8xf32>
    %88 = vector.extract_strided_slice %31 {offsets = [0, 0, 24], sizes = [2, 16, 8], strides = [1, 1, 1]} : vector<2x16x32xf32> to vector<2x16x8xf32>
    %89 = vector.extract_strided_slice %32 {offsets = [0, 0, 24], sizes = [2, 16, 8], strides = [1, 1, 1]} : vector<2x16x32xf32> to vector<2x16x8xf32>
    %90 = vector.extract_strided_slice %33 {offsets = [0, 0, 24], sizes = [2, 16, 8], strides = [1, 1, 1]} : vector<2x16x32xf32> to vector<2x16x8xf32>
    "tpu.trace_start"() <{level = 10 : i32, message = "bqd,bkd->bqk"}> : () -> ()
    %cst_52 = arith.constant dense<0.000000e+00> : vector<2x16x16xf32>
    %91 = tpu.matmul %88, %89, %cst_52 {dimension_numbers = #tpu.dot_dimension_numbers<[2], [2], [1], [1], [0, 0, 0, 1, 1, 1], [0], [0]>} : vector<2x16x8xf32>, vector<2x16x8xf32>, vector<2x16x16xf32> -> vector<2x16x16xf32>
    "tpu.trace_stop"() : () -> ()
    %cst_53 = arith.constant 0.353553385 : f32
    %92 = vector.broadcast %cst_53 : f32 to vector<2x16x16xf32>
    %93 = arith.mulf %91, %92 : vector<2x16x16xf32>
    %cst_54 = arith.constant dense<0xFF800000> : vector<2x16xf32>
    %94 = vector.multi_reduction <maximumf>, %93, %cst_54 [2] : vector<2x16x16xf32> to vector<2x16xf32>
    %95 = vector.shape_cast %94 : vector<2x16xf32> to vector<2x16x1xf32>
    %96 = vector.broadcast %95 : vector<2x16x1xf32> to vector<2x16x16xf32>
    %97 = arith.subf %93, %96 : vector<2x16x16xf32>
    %98 = math.exp %97 : vector<2x16x16xf32>
    %cst_55 = arith.constant dense<0.000000e+00> : vector<2x16xf32>
    %99 = vector.multi_reduction <add>, %98, %cst_55 [2] : vector<2x16x16xf32> to vector<2x16xf32>
    %100 = vector.shape_cast %99 : vector<2x16xf32> to vector<2x16x1xf32>
    %101 = tpu.reciprocal %100 {approx = true} : vector<2x16x1xf32> -> vector<2x16x1xf32>
    %102 = vector.broadcast %101 : vector<2x16x1xf32> to vector<2x16x16xf32>
    %103 = arith.mulf %98, %102 : vector<2x16x16xf32>
    "tpu.trace_start"() <{level = 10 : i32, message = "bqk,bkd->bqd"}> : () -> ()
    %cst_56 = arith.constant dense<0.000000e+00> : vector<2x16x8xf32>
    %104 = tpu.matmul %103, %90, %cst_56 {dimension_numbers = #tpu.dot_dimension_numbers<[2], [1], [1], [2], [0, 0, 0, 1, 1, 2], [0], [0]>} : vector<2x16x16xf32>, vector<2x16x8xf32>, vector<2x16x8xf32> -> vector<2x16x8xf32>
    "tpu.trace_stop"() : () -> ()
    %105 = vector.shape_cast %104 : vector<2x16x8xf32> to vector<32x8xf32>
    %106 = tpu.concatenate %51, %69, %87, %105 in 1 : vector<32x8xf32>, vector<32x8xf32>, vector<32x8xf32>, vector<32x8xf32> -> vector<32x32xf32>
    %cst_57 = arith.constant dense<0.000000e+00> : vector<32x32xf32>
    %107 = tpu.matmul %106, %6, %cst_57 {dimension_numbers = #tpu.dot_dimension_numbers<[1], [0], [0], [1], [0, 0, 1, 1], [], []>} : vector<32x32xf32>, vector<32x32xf32>, vector<32x32xf32> -> vector<32x32xf32>
    %108 = vector.broadcast %8 : vector<1x32xf32> to vector<32x32xf32>
    %109 = arith.addf %107, %108 : vector<32x32xf32>
    %110 = arith.addf %0, %109 : vector<32x32xf32>
    %cst_58 = arith.constant dense<0.000000e+00> : vector<32xf32>
    %111 = vector.multi_reduction <add>, %110, %cst_58 [1] : vector<32x32xf32> to vector<32xf32>
    %112 = vector.shape_cast %111 : vector<32xf32> to vector<32x1xf32>
    %cst_59 = arith.constant 3.200000e+01 : f32
    %113 = vector.broadcast %cst_59 : f32 to vector<32x1xf32>
    %114 = arith.divf %112, %113 : vector<32x1xf32>
    %115 = vector.broadcast %114 : vector<32x1xf32> to vector<32x32xf32>
    %116 = arith.subf %110, %115 : vector<32x32xf32>
    %117 = arith.mulf %116, %116 : vector<32x32xf32>
    %cst_60 = arith.constant dense<0.000000e+00> : vector<32xf32>
    %118 = vector.multi_reduction <add>, %117, %cst_60 [1] : vector<32x32xf32> to vector<32xf32>
    %119 = vector.shape_cast %118 : vector<32xf32> to vector<32x1xf32>
    %cst_61 = arith.constant 3.200000e+01 : f32
    %120 = vector.broadcast %cst_61 : f32 to vector<32x1xf32>
    %121 = arith.divf %119, %120 : vector<32x1xf32>
    %cst_62 = arith.constant 9.99999974E-6 : f32
    %122 = vector.broadcast %cst_62 : f32 to vector<32x1xf32>
    %123 = arith.addf %121, %122 : vector<32x1xf32>
    %124 = math.rsqrt %123 : vector<32x1xf32>
    %125 = vector.broadcast %124 : vector<32x1xf32> to vector<32x32xf32>
    %126 = arith.mulf %116, %125 : vector<32x32xf32>
    %127 = vector.broadcast %10 : vector<1x32xf32> to vector<32x32xf32>
    %128 = arith.mulf %126, %127 : vector<32x32xf32>
    %129 = vector.broadcast %12 : vector<1x32xf32> to vector<32x32xf32>
    %130 = arith.addf %128, %129 : vector<32x32xf32>
    %cst_63 = arith.constant dense<0.000000e+00> : vector<32x64xf32>
    %131 = tpu.matmul %130, %14, %cst_63 {dimension_numbers = #tpu.dot_dimension_numbers<[1], [0], [0], [1], [0, 0, 1, 1], [], []>} : vector<32x32xf32>, vector<32x64xf32>, vector<32x64xf32> -> vector<32x64xf32>
    %132 = vector.broadcast %16 : vector<1x64xf32> to vector<32x64xf32>
    %133 = arith.addf %131, %132 : vector<32x64xf32>
    %cst_64 = arith.constant 0.000000e+00 : f32
    %134 = vector.broadcast %cst_64 : f32 to vector<32x64xf32>
    %135 = arith.maximumf %133, %134 : vector<32x64xf32>
    %cst_65 = arith.constant dense<0.000000e+00> : vector<32x32xf32>
    %136 = tpu.matmul %135, %18, %cst_65 {dimension_numbers = #tpu.dot_dimension_numbers<[1], [0], [0], [1], [0, 0, 1, 1], [], []>} : vector<32x64xf32>, vector<64x32xf32>, vector<32x32xf32> -> vector<32x32xf32>
    %137 = vector.broadcast %20 : vector<1x32xf32> to vector<32x32xf32>
    %138 = arith.addf %136, %137 : vector<32x32xf32>
    %139 = arith.addf %130, %138 : vector<32x32xf32>
    %cst_66 = arith.constant dense<0.000000e+00> : vector<32xf32>
    %140 = vector.multi_reduction <add>, %139, %cst_66 [1] : vector<32x32xf32> to vector<32xf32>
    %141 = vector.shape_cast %140 : vector<32xf32> to vector<32x1xf32>
    %cst_67 = arith.constant 3.200000e+01 : f32
    %142 = vector.broadcast %cst_67 : f32 to vector<32x1xf32>
    %143 = arith.divf %141, %142 : vector<32x1xf32>
    %144 = vector.broadcast %143 : vector<32x1xf32> to vector<32x32xf32>
    %145 = arith.subf %139, %144 : vector<32x32xf32>
    %146 = arith.mulf %145, %145 : vector<32x32xf32>
    %cst_68 = arith.constant dense<0.000000e+00> : vector<32xf32>
    %147 = vector.multi_reduction <add>, %146, %cst_68 [1] : vector<32x32xf32> to vector<32xf32>
    %148 = vector.shape_cast %147 : vector<32xf32> to vector<32x1xf32>
    %cst_69 = arith.constant 3.200000e+01 : f32
    %149 = vector.broadcast %cst_69 : f32 to vector<32x1xf32>
    %150 = arith.divf %148, %149 : vector<32x1xf32>
    %cst_70 = arith.constant 9.99999974E-6 : f32
    %151 = vector.broadcast %cst_70 : f32 to vector<32x1xf32>
    %152 = arith.addf %150, %151 : vector<32x1xf32>
    %153 = math.rsqrt %152 : vector<32x1xf32>
    %154 = vector.broadcast %153 : vector<32x1xf32> to vector<32x32xf32>
    %155 = arith.mulf %145, %154 : vector<32x32xf32>
    %156 = vector.broadcast %22 : vector<1x32xf32> to vector<32x32xf32>
    %157 = arith.mulf %155, %156 : vector<32x32xf32>
    %158 = vector.broadcast %24 : vector<1x32xf32> to vector<32x32xf32>
    %159 = arith.addf %157, %158 : vector<32x32xf32>
    %c1 = arith.constant 1 : index
    %c0_71 = arith.constant 0 : index
    %c0_72 = arith.constant 0 : index
    %160 = vector.load %arg3[%c1, %c0_71, %c0_72] : memref<2x32x96xf32, #tpu.memory_space<vmem>>, vector<1x32x96xf32>
    %161 = vector.shape_cast %160 : vector<1x32x96xf32> to vector<32x96xf32>
    %c1_73 = arith.constant 1 : index
    %c0_74 = arith.constant 0 : index
    %c0_75 = arith.constant 0 : index
    %162 = vector.load %arg4[%c1_73, %c0_74, %c0_75] : memref<2x1x96xf32, #tpu.memory_space<vmem>>, vector<1x1x96xf32>
    %163 = vector.shape_cast %162 : vector<1x1x96xf32> to vector<1x96xf32>
    %c1_76 = arith.constant 1 : index
    %c0_77 = arith.constant 0 : index
    %c0_78 = arith.constant 0 : index
    %164 = vector.load %arg5[%c1_76, %c0_77, %c0_78] : memref<2x32x32xf32, #tpu.memory_space<vmem>>, vector<1x32x32xf32>
    %165 = vector.shape_cast %164 : vector<1x32x32xf32> to vector<32x32xf32>
    %c1_79 = arith.constant 1 : index
    %c0_80 = arith.constant 0 : index
    %c0_81 = arith.constant 0 : index
    %166 = vector.load %arg6[%c1_79, %c0_80, %c0_81] : memref<2x1x32xf32, #tpu.memory_space<vmem>>, vector<1x1x32xf32>
    %167 = vector.shape_cast %166 : vector<1x1x32xf32> to vector<1x32xf32>
    %c1_82 = arith.constant 1 : index
    %c0_83 = arith.constant 0 : index
    %c0_84 = arith.constant 0 : index
    %168 = vector.load %arg7[%c1_82, %c0_83, %c0_84] : memref<2x1x32xf32, #tpu.memory_space<vmem>>, vector<1x1x32xf32>
    %169 = vector.shape_cast %168 : vector<1x1x32xf32> to vector<1x32xf32>
    %c1_85 = arith.constant 1 : index
    %c0_86 = arith.constant 0 : index
    %c0_87 = arith.constant 0 : index
    %170 = vector.load %arg8[%c1_85, %c0_86, %c0_87] : memref<2x1x32xf32, #tpu.memory_space<vmem>>, vector<1x1x32xf32>
    %171 = vector.shape_cast %170 : vector<1x1x32xf32> to vector<1x32xf32>
    %c1_88 = arith.constant 1 : index
    %c0_89 = arith.constant 0 : index
    %c0_90 = arith.constant 0 : index
    %172 = vector.load %arg9[%c1_88, %c0_89, %c0_90] : memref<2x32x64xf32, #tpu.memory_space<vmem>>, vector<1x32x64xf32>
    %173 = vector.shape_cast %172 : vector<1x32x64xf32> to vector<32x64xf32>
    %c1_91 = arith.constant 1 : index
    %c0_92 = arith.constant 0 : index
    %c0_93 = arith.constant 0 : index
    %174 = vector.load %arg10[%c1_91, %c0_92, %c0_93] : memref<2x1x64xf32, #tpu.memory_space<vmem>>, vector<1x1x64xf32>
    %175 = vector.shape_cast %174 : vector<1x1x64xf32> to vector<1x64xf32>
    %c1_94 = arith.constant 1 : index
    %c0_95 = arith.constant 0 : index
    %c0_96 = arith.constant 0 : index
    %176 = vector.load %arg11[%c1_94, %c0_95, %c0_96] : memref<2x64x32xf32, #tpu.memory_space<vmem>>, vector<1x64x32xf32>
    %177 = vector.shape_cast %176 : vector<1x64x32xf32> to vector<64x32xf32>
    %c1_97 = arith.constant 1 : index
    %c0_98 = arith.constant 0 : index
    %c0_99 = arith.constant 0 : index
    %178 = vector.load %arg12[%c1_97, %c0_98, %c0_99] : memref<2x1x32xf32, #tpu.memory_space<vmem>>, vector<1x1x32xf32>
    %179 = vector.shape_cast %178 : vector<1x1x32xf32> to vector<1x32xf32>
    %c1_100 = arith.constant 1 : index
    %c0_101 = arith.constant 0 : index
    %c0_102 = arith.constant 0 : index
    %180 = vector.load %arg13[%c1_100, %c0_101, %c0_102] : memref<2x1x32xf32, #tpu.memory_space<vmem>>, vector<1x1x32xf32>
    %181 = vector.shape_cast %180 : vector<1x1x32xf32> to vector<1x32xf32>
    %c1_103 = arith.constant 1 : index
    %c0_104 = arith.constant 0 : index
    %c0_105 = arith.constant 0 : index
    %182 = vector.load %arg14[%c1_103, %c0_104, %c0_105] : memref<2x1x32xf32, #tpu.memory_space<vmem>>, vector<1x1x32xf32>
    %183 = vector.shape_cast %182 : vector<1x1x32xf32> to vector<1x32xf32>
    %cst_106 = arith.constant dense<0.000000e+00> : vector<32x96xf32>
    %184 = tpu.matmul %159, %161, %cst_106 {dimension_numbers = #tpu.dot_dimension_numbers<[1], [0], [0], [1], [0, 0, 1, 1], [], []>} : vector<32x32xf32>, vector<32x96xf32>, vector<32x96xf32> -> vector<32x96xf32>
    %185 = vector.broadcast %163 : vector<1x96xf32> to vector<32x96xf32>
    %186 = arith.addf %184, %185 : vector<32x96xf32>
    %187 = vector.extract_strided_slice %186 {offsets = [0, 0], sizes = [32, 32], strides = [1, 1]} : vector<32x96xf32> to vector<32x32xf32>
    %188 = vector.extract_strided_slice %186 {offsets = [0, 32], sizes = [32, 32], strides = [1, 1]} : vector<32x96xf32> to vector<32x32xf32>
    %189 = vector.extract_strided_slice %186 {offsets = [0, 64], sizes = [32, 32], strides = [1, 1]} : vector<32x96xf32> to vector<32x32xf32>
    %190 = vector.shape_cast %187 : vector<32x32xf32> to vector<2x16x32xf32>
    %191 = vector.shape_cast %188 : vector<32x32xf32> to vector<2x16x32xf32>
    %192 = vector.shape_cast %189 : vector<32x32xf32> to vector<2x16x32xf32>
    %193 = vector.extract_strided_slice %190 {offsets = [0, 0, 0], sizes = [2, 16, 8], strides = [1, 1, 1]} : vector<2x16x32xf32> to vector<2x16x8xf32>
    %194 = vector.extract_strided_slice %191 {offsets = [0, 0, 0], sizes = [2, 16, 8], strides = [1, 1, 1]} : vector<2x16x32xf32> to vector<2x16x8xf32>
    %195 = vector.extract_strided_slice %192 {offsets = [0, 0, 0], sizes = [2, 16, 8], strides = [1, 1, 1]} : vector<2x16x32xf32> to vector<2x16x8xf32>
    "tpu.trace_start"() <{level = 10 : i32, message = "bqd,bkd->bqk"}> : () -> ()
    %cst_107 = arith.constant dense<0.000000e+00> : vector<2x16x16xf32>
    %196 = tpu.matmul %193, %194, %cst_107 {dimension_numbers = #tpu.dot_dimension_numbers<[2], [2], [1], [1], [0, 0, 0, 1, 1, 1], [0], [0]>} : vector<2x16x8xf32>, vector<2x16x8xf32>, vector<2x16x16xf32> -> vector<2x16x16xf32>
    "tpu.trace_stop"() : () -> ()
    %cst_108 = arith.constant 0.353553385 : f32
    %197 = vector.broadcast %cst_108 : f32 to vector<2x16x16xf32>
    %198 = arith.mulf %196, %197 : vector<2x16x16xf32>
    %cst_109 = arith.constant dense<0xFF800000> : vector<2x16xf32>
    %199 = vector.multi_reduction <maximumf>, %198, %cst_109 [2] : vector<2x16x16xf32> to vector<2x16xf32>
    %200 = vector.shape_cast %199 : vector<2x16xf32> to vector<2x16x1xf32>
    %201 = vector.broadcast %200 : vector<2x16x1xf32> to vector<2x16x16xf32>
    %202 = arith.subf %198, %201 : vector<2x16x16xf32>
    %203 = math.exp %202 : vector<2x16x16xf32>
    %cst_110 = arith.constant dense<0.000000e+00> : vector<2x16xf32>
    %204 = vector.multi_reduction <add>, %203, %cst_110 [2] : vector<2x16x16xf32> to vector<2x16xf32>
    %205 = vector.shape_cast %204 : vector<2x16xf32> to vector<2x16x1xf32>
    %206 = tpu.reciprocal %205 {approx = true} : vector<2x16x1xf32> -> vector<2x16x1xf32>
    %207 = vector.broadcast %206 : vector<2x16x1xf32> to vector<2x16x16xf32>
    %208 = arith.mulf %203, %207 : vector<2x16x16xf32>
    "tpu.trace_start"() <{level = 10 : i32, message = "bqk,bkd->bqd"}> : () -> ()
    %cst_111 = arith.constant dense<0.000000e+00> : vector<2x16x8xf32>
    %209 = tpu.matmul %208, %195, %cst_111 {dimension_numbers = #tpu.dot_dimension_numbers<[2], [1], [1], [2], [0, 0, 0, 1, 1, 2], [0], [0]>} : vector<2x16x16xf32>, vector<2x16x8xf32>, vector<2x16x8xf32> -> vector<2x16x8xf32>
    "tpu.trace_stop"() : () -> ()
    %210 = vector.shape_cast %209 : vector<2x16x8xf32> to vector<32x8xf32>
    %211 = vector.extract_strided_slice %190 {offsets = [0, 0, 8], sizes = [2, 16, 8], strides = [1, 1, 1]} : vector<2x16x32xf32> to vector<2x16x8xf32>
    %212 = vector.extract_strided_slice %191 {offsets = [0, 0, 8], sizes = [2, 16, 8], strides = [1, 1, 1]} : vector<2x16x32xf32> to vector<2x16x8xf32>
    %213 = vector.extract_strided_slice %192 {offsets = [0, 0, 8], sizes = [2, 16, 8], strides = [1, 1, 1]} : vector<2x16x32xf32> to vector<2x16x8xf32>
    "tpu.trace_start"() <{level = 10 : i32, message = "bqd,bkd->bqk"}> : () -> ()
    %cst_112 = arith.constant dense<0.000000e+00> : vector<2x16x16xf32>
    %214 = tpu.matmul %211, %212, %cst_112 {dimension_numbers = #tpu.dot_dimension_numbers<[2], [2], [1], [1], [0, 0, 0, 1, 1, 1], [0], [0]>} : vector<2x16x8xf32>, vector<2x16x8xf32>, vector<2x16x16xf32> -> vector<2x16x16xf32>
    "tpu.trace_stop"() : () -> ()
    %cst_113 = arith.constant 0.353553385 : f32
    %215 = vector.broadcast %cst_113 : f32 to vector<2x16x16xf32>
    %216 = arith.mulf %214, %215 : vector<2x16x16xf32>
    %cst_114 = arith.constant dense<0xFF800000> : vector<2x16xf32>
    %217 = vector.multi_reduction <maximumf>, %216, %cst_114 [2] : vector<2x16x16xf32> to vector<2x16xf32>
    %218 = vector.shape_cast %217 : vector<2x16xf32> to vector<2x16x1xf32>
    %219 = vector.broadcast %218 : vector<2x16x1xf32> to vector<2x16x16xf32>
    %220 = arith.subf %216, %219 : vector<2x16x16xf32>
    %221 = math.exp %220 : vector<2x16x16xf32>
    %cst_115 = arith.constant dense<0.000000e+00> : vector<2x16xf32>
    %222 = vector.multi_reduction <add>, %221, %cst_115 [2] : vector<2x16x16xf32> to vector<2x16xf32>
    %223 = vector.shape_cast %222 : vector<2x16xf32> to vector<2x16x1xf32>
    %224 = tpu.reciprocal %223 {approx = true} : vector<2x16x1xf32> -> vector<2x16x1xf32>
    %225 = vector.broadcast %224 : vector<2x16x1xf32> to vector<2x16x16xf32>
    %226 = arith.mulf %221, %225 : vector<2x16x16xf32>
    "tpu.trace_start"() <{level = 10 : i32, message = "bqk,bkd->bqd"}> : () -> ()
    %cst_116 = arith.constant dense<0.000000e+00> : vector<2x16x8xf32>
    %227 = tpu.matmul %226, %213, %cst_116 {dimension_numbers = #tpu.dot_dimension_numbers<[2], [1], [1], [2], [0, 0, 0, 1, 1, 2], [0], [0]>} : vector<2x16x16xf32>, vector<2x16x8xf32>, vector<2x16x8xf32> -> vector<2x16x8xf32>
    "tpu.trace_stop"() : () -> ()
    %228 = vector.shape_cast %227 : vector<2x16x8xf32> to vector<32x8xf32>
    %229 = vector.extract_strided_slice %190 {offsets = [0, 0, 16], sizes = [2, 16, 8], strides = [1, 1, 1]} : vector<2x16x32xf32> to vector<2x16x8xf32>
    %230 = vector.extract_strided_slice %191 {offsets = [0, 0, 16], sizes = [2, 16, 8], strides = [1, 1, 1]} : vector<2x16x32xf32> to vector<2x16x8xf32>
    %231 = vector.extract_strided_slice %192 {offsets = [0, 0, 16], sizes = [2, 16, 8], strides = [1, 1, 1]} : vector<2x16x32xf32> to vector<2x16x8xf32>
    "tpu.trace_start"() <{level = 10 : i32, message = "bqd,bkd->bqk"}> : () -> ()
    %cst_117 = arith.constant dense<0.000000e+00> : vector<2x16x16xf32>
    %232 = tpu.matmul %229, %230, %cst_117 {dimension_numbers = #tpu.dot_dimension_numbers<[2], [2], [1], [1], [0, 0, 0, 1, 1, 1], [0], [0]>} : vector<2x16x8xf32>, vector<2x16x8xf32>, vector<2x16x16xf32> -> vector<2x16x16xf32>
    "tpu.trace_stop"() : () -> ()
    %cst_118 = arith.constant 0.353553385 : f32
    %233 = vector.broadcast %cst_118 : f32 to vector<2x16x16xf32>
    %234 = arith.mulf %232, %233 : vector<2x16x16xf32>
    %cst_119 = arith.constant dense<0xFF800000> : vector<2x16xf32>
    %235 = vector.multi_reduction <maximumf>, %234, %cst_119 [2] : vector<2x16x16xf32> to vector<2x16xf32>
    %236 = vector.shape_cast %235 : vector<2x16xf32> to vector<2x16x1xf32>
    %237 = vector.broadcast %236 : vector<2x16x1xf32> to vector<2x16x16xf32>
    %238 = arith.subf %234, %237 : vector<2x16x16xf32>
    %239 = math.exp %238 : vector<2x16x16xf32>
    %cst_120 = arith.constant dense<0.000000e+00> : vector<2x16xf32>
    %240 = vector.multi_reduction <add>, %239, %cst_120 [2] : vector<2x16x16xf32> to vector<2x16xf32>
    %241 = vector.shape_cast %240 : vector<2x16xf32> to vector<2x16x1xf32>
    %242 = tpu.reciprocal %241 {approx = true} : vector<2x16x1xf32> -> vector<2x16x1xf32>
    %243 = vector.broadcast %242 : vector<2x16x1xf32> to vector<2x16x16xf32>
    %244 = arith.mulf %239, %243 : vector<2x16x16xf32>
    "tpu.trace_start"() <{level = 10 : i32, message = "bqk,bkd->bqd"}> : () -> ()
    %cst_121 = arith.constant dense<0.000000e+00> : vector<2x16x8xf32>
    %245 = tpu.matmul %244, %231, %cst_121 {dimension_numbers = #tpu.dot_dimension_numbers<[2], [1], [1], [2], [0, 0, 0, 1, 1, 2], [0], [0]>} : vector<2x16x16xf32>, vector<2x16x8xf32>, vector<2x16x8xf32> -> vector<2x16x8xf32>
    "tpu.trace_stop"() : () -> ()
    %246 = vector.shape_cast %245 : vector<2x16x8xf32> to vector<32x8xf32>
    %247 = vector.extract_strided_slice %190 {offsets = [0, 0, 24], sizes = [2, 16, 8], strides = [1, 1, 1]} : vector<2x16x32xf32> to vector<2x16x8xf32>
    %248 = vector.extract_strided_slice %191 {offsets = [0, 0, 24], sizes = [2, 16, 8], strides = [1, 1, 1]} : vector<2x16x32xf32> to vector<2x16x8xf32>
    %249 = vector.extract_strided_slice %192 {offsets = [0, 0, 24], sizes = [2, 16, 8], strides = [1, 1, 1]} : vector<2x16x32xf32> to vector<2x16x8xf32>
    "tpu.trace_start"() <{level = 10 : i32, message = "bqd,bkd->bqk"}> : () -> ()
    %cst_122 = arith.constant dense<0.000000e+00> : vector<2x16x16xf32>
    %250 = tpu.matmul %247, %248, %cst_122 {dimension_numbers = #tpu.dot_dimension_numbers<[2], [2], [1], [1], [0, 0, 0, 1, 1, 1], [0], [0]>} : vector<2x16x8xf32>, vector<2x16x8xf32>, vector<2x16x16xf32> -> vector<2x16x16xf32>
    "tpu.trace_stop"() : () -> ()
    %cst_123 = arith.constant 0.353553385 : f32
    %251 = vector.broadcast %cst_123 : f32 to vector<2x16x16xf32>
    %252 = arith.mulf %250, %251 : vector<2x16x16xf32>
    %cst_124 = arith.constant dense<0xFF800000> : vector<2x16xf32>
    %253 = vector.multi_reduction <maximumf>, %252, %cst_124 [2] : vector<2x16x16xf32> to vector<2x16xf32>
    %254 = vector.shape_cast %253 : vector<2x16xf32> to vector<2x16x1xf32>
    %255 = vector.broadcast %254 : vector<2x16x1xf32> to vector<2x16x16xf32>
    %256 = arith.subf %252, %255 : vector<2x16x16xf32>
    %257 = math.exp %256 : vector<2x16x16xf32>
    %cst_125 = arith.constant dense<0.000000e+00> : vector<2x16xf32>
    %258 = vector.multi_reduction <add>, %257, %cst_125 [2] : vector<2x16x16xf32> to vector<2x16xf32>
    %259 = vector.shape_cast %258 : vector<2x16xf32> to vector<2x16x1xf32>
    %260 = tpu.reciprocal %259 {approx = true} : vector<2x16x1xf32> -> vector<2x16x1xf32>
    %261 = vector.broadcast %260 : vector<2x16x1xf32> to vector<2x16x16xf32>
    %262 = arith.mulf %257, %261 : vector<2x16x16xf32>
    "tpu.trace_start"() <{level = 10 : i32, message = "bqk,bkd->bqd"}> : () -> ()
    %cst_126 = arith.constant dense<0.000000e+00> : vector<2x16x8xf32>
    %263 = tpu.matmul %262, %249, %cst_126 {dimension_numbers = #tpu.dot_dimension_numbers<[2], [1], [1], [2], [0, 0, 0, 1, 1, 2], [0], [0]>} : vector<2x16x16xf32>, vector<2x16x8xf32>, vector<2x16x8xf32> -> vector<2x16x8xf32>
    "tpu.trace_stop"() : () -> ()
    %264 = vector.shape_cast %263 : vector<2x16x8xf32> to vector<32x8xf32>
    %265 = tpu.concatenate %210, %228, %246, %264 in 1 : vector<32x8xf32>, vector<32x8xf32>, vector<32x8xf32>, vector<32x8xf32> -> vector<32x32xf32>
    %cst_127 = arith.constant dense<0.000000e+00> : vector<32x32xf32>
    %266 = tpu.matmul %265, %165, %cst_127 {dimension_numbers = #tpu.dot_dimension_numbers<[1], [0], [0], [1], [0, 0, 1, 1], [], []>} : vector<32x32xf32>, vector<32x32xf32>, vector<32x32xf32> -> vector<32x32xf32>
    %267 = vector.broadcast %167 : vector<1x32xf32> to vector<32x32xf32>
    %268 = arith.addf %266, %267 : vector<32x32xf32>
    %269 = arith.addf %159, %268 : vector<32x32xf32>
    %cst_128 = arith.constant dense<0.000000e+00> : vector<32xf32>
    %270 = vector.multi_reduction <add>, %269, %cst_128 [1] : vector<32x32xf32> to vector<32xf32>
    %271 = vector.shape_cast %270 : vector<32xf32> to vector<32x1xf32>
    %cst_129 = arith.constant 3.200000e+01 : f32
    %272 = vector.broadcast %cst_129 : f32 to vector<32x1xf32>
    %273 = arith.divf %271, %272 : vector<32x1xf32>
    %274 = vector.broadcast %273 : vector<32x1xf32> to vector<32x32xf32>
    %275 = arith.subf %269, %274 : vector<32x32xf32>
    %276 = arith.mulf %275, %275 : vector<32x32xf32>
    %cst_130 = arith.constant dense<0.000000e+00> : vector<32xf32>
    %277 = vector.multi_reduction <add>, %276, %cst_130 [1] : vector<32x32xf32> to vector<32xf32>
    %278 = vector.shape_cast %277 : vector<32xf32> to vector<32x1xf32>
    %cst_131 = arith.constant 3.200000e+01 : f32
    %279 = vector.broadcast %cst_131 : f32 to vector<32x1xf32>
    %280 = arith.divf %278, %279 : vector<32x1xf32>
    %cst_132 = arith.constant 9.99999974E-6 : f32
    %281 = vector.broadcast %cst_132 : f32 to vector<32x1xf32>
    %282 = arith.addf %280, %281 : vector<32x1xf32>
    %283 = math.rsqrt %282 : vector<32x1xf32>
    %284 = vector.broadcast %283 : vector<32x1xf32> to vector<32x32xf32>
    %285 = arith.mulf %275, %284 : vector<32x32xf32>
    %286 = vector.broadcast %169 : vector<1x32xf32> to vector<32x32xf32>
    %287 = arith.mulf %285, %286 : vector<32x32xf32>
    %288 = vector.broadcast %171 : vector<1x32xf32> to vector<32x32xf32>
    %289 = arith.addf %287, %288 : vector<32x32xf32>
    %cst_133 = arith.constant dense<0.000000e+00> : vector<32x64xf32>
    %290 = tpu.matmul %289, %173, %cst_133 {dimension_numbers = #tpu.dot_dimension_numbers<[1], [0], [0], [1], [0, 0, 1, 1], [], []>} : vector<32x32xf32>, vector<32x64xf32>, vector<32x64xf32> -> vector<32x64xf32>
    %291 = vector.broadcast %175 : vector<1x64xf32> to vector<32x64xf32>
    %292 = arith.addf %290, %291 : vector<32x64xf32>
    %cst_134 = arith.constant 0.000000e+00 : f32
    %293 = vector.broadcast %cst_134 : f32 to vector<32x64xf32>
    %294 = arith.maximumf %292, %293 : vector<32x64xf32>
    %cst_135 = arith.constant dense<0.000000e+00> : vector<32x32xf32>
    %295 = tpu.matmul %294, %177, %cst_135 {dimension_numbers = #tpu.dot_dimension_numbers<[1], [0], [0], [1], [0, 0, 1, 1], [], []>} : vector<32x64xf32>, vector<64x32xf32>, vector<32x32xf32> -> vector<32x32xf32>
    %296 = vector.broadcast %179 : vector<1x32xf32> to vector<32x32xf32>
    %297 = arith.addf %295, %296 : vector<32x32xf32>
    %298 = arith.addf %289, %297 : vector<32x32xf32>
    %cst_136 = arith.constant dense<0.000000e+00> : vector<32xf32>
    %299 = vector.multi_reduction <add>, %298, %cst_136 [1] : vector<32x32xf32> to vector<32xf32>
    %300 = vector.shape_cast %299 : vector<32xf32> to vector<32x1xf32>
    %cst_137 = arith.constant 3.200000e+01 : f32
    %301 = vector.broadcast %cst_137 : f32 to vector<32x1xf32>
    %302 = arith.divf %300, %301 : vector<32x1xf32>
    %303 = vector.broadcast %302 : vector<32x1xf32> to vector<32x32xf32>
    %304 = arith.subf %298, %303 : vector<32x32xf32>
    %305 = arith.mulf %304, %304 : vector<32x32xf32>
    %cst_138 = arith.constant dense<0.000000e+00> : vector<32xf32>
    %306 = vector.multi_reduction <add>, %305, %cst_138 [1] : vector<32x32xf32> to vector<32xf32>
    %307 = vector.shape_cast %306 : vector<32xf32> to vector<32x1xf32>
    %cst_139 = arith.constant 3.200000e+01 : f32
    %308 = vector.broadcast %cst_139 : f32 to vector<32x1xf32>
    %309 = arith.divf %307, %308 : vector<32x1xf32>
    %cst_140 = arith.constant 9.99999974E-6 : f32
    %310 = vector.broadcast %cst_140 : f32 to vector<32x1xf32>
    %311 = arith.addf %309, %310 : vector<32x1xf32>
    %312 = math.rsqrt %311 : vector<32x1xf32>
    %313 = vector.broadcast %312 : vector<32x1xf32> to vector<32x32xf32>
    %314 = arith.mulf %304, %313 : vector<32x32xf32>
    %315 = vector.broadcast %181 : vector<1x32xf32> to vector<32x32xf32>
    %316 = arith.mulf %314, %315 : vector<32x32xf32>
    %317 = vector.broadcast %183 : vector<1x32xf32> to vector<32x32xf32>
    %318 = arith.addf %316, %317 : vector<32x32xf32>
    %c0_141 = arith.constant 0 : index
    %c0_142 = arith.constant 0 : index
    %319 = vector.load %arg0[%c0_141, %c0_142] : memref<32x32xf32, #tpu.memory_space<vmem>>, vector<32x32xf32>
    %cst_143 = arith.constant dense<0.000000e+00> : vector<32x32xf32>
    %320 = tpu.matmul %319, %318, %cst_143 {dimension_numbers = #tpu.dot_dimension_numbers<[1], [0], [0], [1], [0, 0, 1, 1], [], []>} : vector<32x32xf32>, vector<32x32xf32>, vector<32x32xf32> -> vector<32x32xf32>
    %c0_144 = arith.constant 0 : index
    %c0_145 = arith.constant 0 : index
    %321 = vector.load %arg2[%c0_144, %c0_145] : memref<32x32xf32, #tpu.memory_space<vmem>>, vector<32x32xf32>
    %c0_146 = arith.constant 0 : index
    %c0_147 = arith.constant 0 : index
    %c0_148 = arith.constant 0 : index
    %322 = vector.load %arg15[%c0_146, %c0_147, %c0_148] : memref<2x32x96xf32, #tpu.memory_space<vmem>>, vector<1x32x96xf32>
    %323 = vector.shape_cast %322 : vector<1x32x96xf32> to vector<32x96xf32>
    %c0_149 = arith.constant 0 : index
    %c0_150 = arith.constant 0 : index
    %c0_151 = arith.constant 0 : index
    %324 = vector.load %arg16[%c0_149, %c0_150, %c0_151] : memref<2x1x96xf32, #tpu.memory_space<vmem>>, vector<1x1x96xf32>
    %325 = vector.shape_cast %324 : vector<1x1x96xf32> to vector<1x96xf32>
    %c0_152 = arith.constant 0 : index
    %c0_153 = arith.constant 0 : index
    %c0_154 = arith.constant 0 : index
    %326 = vector.load %arg17[%c0_152, %c0_153, %c0_154] : memref<2x32x32xf32, #tpu.memory_space<vmem>>, vector<1x32x32xf32>
    %327 = vector.shape_cast %326 : vector<1x32x32xf32> to vector<32x32xf32>
    %c0_155 = arith.constant 0 : index
    %c0_156 = arith.constant 0 : index
    %c0_157 = arith.constant 0 : index
    %328 = vector.load %arg18[%c0_155, %c0_156, %c0_157] : memref<2x1x32xf32, #tpu.memory_space<vmem>>, vector<1x1x32xf32>
    %329 = vector.shape_cast %328 : vector<1x1x32xf32> to vector<1x32xf32>
    %c0_158 = arith.constant 0 : index
    %c0_159 = arith.constant 0 : index
    %c0_160 = arith.constant 0 : index
    %330 = vector.load %arg19[%c0_158, %c0_159, %c0_160] : memref<2x1x32xf32, #tpu.memory_space<vmem>>, vector<1x1x32xf32>
    %331 = vector.shape_cast %330 : vector<1x1x32xf32> to vector<1x32xf32>
    %c0_161 = arith.constant 0 : index
    %c0_162 = arith.constant 0 : index
    %c0_163 = arith.constant 0 : index
    %332 = vector.load %arg20[%c0_161, %c0_162, %c0_163] : memref<2x1x32xf32, #tpu.memory_space<vmem>>, vector<1x1x32xf32>
    %333 = vector.shape_cast %332 : vector<1x1x32xf32> to vector<1x32xf32>
    %c0_164 = arith.constant 0 : index
    %c0_165 = arith.constant 0 : index
    %c0_166 = arith.constant 0 : index
    %334 = vector.load %arg21[%c0_164, %c0_165, %c0_166] : memref<2x32x32xf32, #tpu.memory_space<vmem>>, vector<1x32x32xf32>
    %335 = vector.shape_cast %334 : vector<1x32x32xf32> to vector<32x32xf32>
    %c0_167 = arith.constant 0 : index
    %c0_168 = arith.constant 0 : index
    %c0_169 = arith.constant 0 : index
    %336 = vector.load %arg22[%c0_167, %c0_168, %c0_169] : memref<2x1x32xf32, #tpu.memory_space<vmem>>, vector<1x1x32xf32>
    %337 = vector.shape_cast %336 : vector<1x1x32xf32> to vector<1x32xf32>
    %c0_170 = arith.constant 0 : index
    %c0_171 = arith.constant 0 : index
    %c0_172 = arith.constant 0 : index
    %338 = vector.load %arg23[%c0_170, %c0_171, %c0_172] : memref<2x32x64xf32, #tpu.memory_space<vmem>>, vector<1x32x64xf32>
    %339 = vector.shape_cast %338 : vector<1x32x64xf32> to vector<32x64xf32>
    %c0_173 = arith.constant 0 : index
    %c0_174 = arith.constant 0 : index
    %c0_175 = arith.constant 0 : index
    %340 = vector.load %arg24[%c0_173, %c0_174, %c0_175] : memref<2x1x64xf32, #tpu.memory_space<vmem>>, vector<1x1x64xf32>
    %341 = vector.shape_cast %340 : vector<1x1x64xf32> to vector<1x64xf32>
    %c0_176 = arith.constant 0 : index
    %c0_177 = arith.constant 0 : index
    %c0_178 = arith.constant 0 : index
    %342 = vector.load %arg25[%c0_176, %c0_177, %c0_178] : memref<2x32x32xf32, #tpu.memory_space<vmem>>, vector<1x32x32xf32>
    %343 = vector.shape_cast %342 : vector<1x32x32xf32> to vector<32x32xf32>
    %c0_179 = arith.constant 0 : index
    %c0_180 = arith.constant 0 : index
    %c0_181 = arith.constant 0 : index
    %344 = vector.load %arg26[%c0_179, %c0_180, %c0_181] : memref<2x1x32xf32, #tpu.memory_space<vmem>>, vector<1x1x32xf32>
    %345 = vector.shape_cast %344 : vector<1x1x32xf32> to vector<1x32xf32>
    %c0_182 = arith.constant 0 : index
    %c0_183 = arith.constant 0 : index
    %c0_184 = arith.constant 0 : index
    %346 = vector.load %arg27[%c0_182, %c0_183, %c0_184] : memref<2x1x32xf32, #tpu.memory_space<vmem>>, vector<1x1x32xf32>
    %347 = vector.shape_cast %346 : vector<1x1x32xf32> to vector<1x32xf32>
    %c0_185 = arith.constant 0 : index
    %c0_186 = arith.constant 0 : index
    %c0_187 = arith.constant 0 : index
    %348 = vector.load %arg28[%c0_185, %c0_186, %c0_187] : memref<2x1x32xf32, #tpu.memory_space<vmem>>, vector<1x1x32xf32>
    %349 = vector.shape_cast %348 : vector<1x1x32xf32> to vector<1x32xf32>
    %c0_188 = arith.constant 0 : index
    %c0_189 = arith.constant 0 : index
    %c0_190 = arith.constant 0 : index
    %350 = vector.load %arg29[%c0_188, %c0_189, %c0_190] : memref<2x32x64xf32, #tpu.memory_space<vmem>>, vector<1x32x64xf32>
    %351 = vector.shape_cast %350 : vector<1x32x64xf32> to vector<32x64xf32>
    %c0_191 = arith.constant 0 : index
    %c0_192 = arith.constant 0 : index
    %c0_193 = arith.constant 0 : index
    %352 = vector.load %arg30[%c0_191, %c0_192, %c0_193] : memref<2x1x64xf32, #tpu.memory_space<vmem>>, vector<1x1x64xf32>
    %353 = vector.shape_cast %352 : vector<1x1x64xf32> to vector<1x64xf32>
    %c0_194 = arith.constant 0 : index
    %c0_195 = arith.constant 0 : index
    %c0_196 = arith.constant 0 : index
    %354 = vector.load %arg31[%c0_194, %c0_195, %c0_196] : memref<2x64x32xf32, #tpu.memory_space<vmem>>, vector<1x64x32xf32>
    %355 = vector.shape_cast %354 : vector<1x64x32xf32> to vector<64x32xf32>
    %c0_197 = arith.constant 0 : index
    %c0_198 = arith.constant 0 : index
    %c0_199 = arith.constant 0 : index
    %356 = vector.load %arg32[%c0_197, %c0_198, %c0_199] : memref<2x1x32xf32, #tpu.memory_space<vmem>>, vector<1x1x32xf32>
    %357 = vector.shape_cast %356 : vector<1x1x32xf32> to vector<1x32xf32>
    %c0_200 = arith.constant 0 : index
    %c0_201 = arith.constant 0 : index
    %c0_202 = arith.constant 0 : index
    %358 = vector.load %arg33[%c0_200, %c0_201, %c0_202] : memref<2x1x32xf32, #tpu.memory_space<vmem>>, vector<1x1x32xf32>
    %359 = vector.shape_cast %358 : vector<1x1x32xf32> to vector<1x32xf32>
    %c0_203 = arith.constant 0 : index
    %c0_204 = arith.constant 0 : index
    %c0_205 = arith.constant 0 : index
    %360 = vector.load %arg34[%c0_203, %c0_204, %c0_205] : memref<2x1x32xf32, #tpu.memory_space<vmem>>, vector<1x1x32xf32>
    %361 = vector.shape_cast %360 : vector<1x1x32xf32> to vector<1x32xf32>
    %cst_206 = arith.constant dense<0.000000e+00> : vector<32x96xf32>
    %362 = tpu.matmul %320, %323, %cst_206 {dimension_numbers = #tpu.dot_dimension_numbers<[1], [0], [0], [1], [0, 0, 1, 1], [], []>} : vector<32x32xf32>, vector<32x96xf32>, vector<32x96xf32> -> vector<32x96xf32>
    %363 = vector.broadcast %325 : vector<1x96xf32> to vector<32x96xf32>
    %364 = arith.addf %362, %363 : vector<32x96xf32>
    %365 = vector.extract_strided_slice %364 {offsets = [0, 0], sizes = [32, 32], strides = [1, 1]} : vector<32x96xf32> to vector<32x32xf32>
    %366 = vector.extract_strided_slice %364 {offsets = [0, 32], sizes = [32, 32], strides = [1, 1]} : vector<32x96xf32> to vector<32x32xf32>
    %367 = vector.extract_strided_slice %364 {offsets = [0, 64], sizes = [32, 32], strides = [1, 1]} : vector<32x96xf32> to vector<32x32xf32>
    %368 = vector.shape_cast %365 : vector<32x32xf32> to vector<4x8x32xf32>
    %369 = vector.shape_cast %366 : vector<32x32xf32> to vector<4x8x32xf32>
    %370 = vector.shape_cast %367 : vector<32x32xf32> to vector<4x8x32xf32>
    %371 = vector.extract_strided_slice %368 {offsets = [0, 0, 0], sizes = [4, 8, 8], strides = [1, 1, 1]} : vector<4x8x32xf32> to vector<4x8x8xf32>
    %372 = vector.extract_strided_slice %369 {offsets = [0, 0, 0], sizes = [4, 8, 8], strides = [1, 1, 1]} : vector<4x8x32xf32> to vector<4x8x8xf32>
    %373 = vector.extract_strided_slice %370 {offsets = [0, 0, 0], sizes = [4, 8, 8], strides = [1, 1, 1]} : vector<4x8x32xf32> to vector<4x8x8xf32>
    "tpu.trace_start"() <{level = 10 : i32, message = "bqd,bkd->bqk"}> : () -> ()
    %cst_207 = arith.constant dense<0.000000e+00> : vector<4x8x8xf32>
    %374 = tpu.matmul %371, %372, %cst_207 {dimension_numbers = #tpu.dot_dimension_numbers<[2], [2], [1], [1], [0, 0, 0, 1, 1, 1], [0], [0]>} : vector<4x8x8xf32>, vector<4x8x8xf32>, vector<4x8x8xf32> -> vector<4x8x8xf32>
    "tpu.trace_stop"() : () -> ()
    %cst_208 = arith.constant 0.353553385 : f32
    %375 = vector.broadcast %cst_208 : f32 to vector<4x8x8xf32>
    %376 = arith.mulf %374, %375 : vector<4x8x8xf32>
    %cst_209 = arith.constant dense<0xFF800000> : vector<4x8xf32>
    %377 = vector.multi_reduction <maximumf>, %376, %cst_209 [2] : vector<4x8x8xf32> to vector<4x8xf32>
    %378 = vector.shape_cast %377 : vector<4x8xf32> to vector<4x8x1xf32>
    %379 = vector.broadcast %378 : vector<4x8x1xf32> to vector<4x8x8xf32>
    %380 = arith.subf %376, %379 : vector<4x8x8xf32>
    %381 = math.exp %380 : vector<4x8x8xf32>
    %cst_210 = arith.constant dense<0.000000e+00> : vector<4x8xf32>
    %382 = vector.multi_reduction <add>, %381, %cst_210 [2] : vector<4x8x8xf32> to vector<4x8xf32>
    %383 = vector.shape_cast %382 : vector<4x8xf32> to vector<4x8x1xf32>
    %384 = tpu.reciprocal %383 {approx = true} : vector<4x8x1xf32> -> vector<4x8x1xf32>
    %385 = vector.broadcast %384 : vector<4x8x1xf32> to vector<4x8x8xf32>
    %386 = arith.mulf %381, %385 : vector<4x8x8xf32>
    "tpu.trace_start"() <{level = 10 : i32, message = "bqk,bkd->bqd"}> : () -> ()
    %cst_211 = arith.constant dense<0.000000e+00> : vector<4x8x8xf32>
    %387 = tpu.matmul %386, %373, %cst_211 {dimension_numbers = #tpu.dot_dimension_numbers<[2], [1], [1], [2], [0, 0, 0, 1, 1, 2], [0], [0]>} : vector<4x8x8xf32>, vector<4x8x8xf32>, vector<4x8x8xf32> -> vector<4x8x8xf32>
    "tpu.trace_stop"() : () -> ()
    %388 = vector.shape_cast %387 : vector<4x8x8xf32> to vector<32x8xf32>
    %389 = vector.extract_strided_slice %368 {offsets = [0, 0, 8], sizes = [4, 8, 8], strides = [1, 1, 1]} : vector<4x8x32xf32> to vector<4x8x8xf32>
    %390 = vector.extract_strided_slice %369 {offsets = [0, 0, 8], sizes = [4, 8, 8], strides = [1, 1, 1]} : vector<4x8x32xf32> to vector<4x8x8xf32>
    %391 = vector.extract_strided_slice %370 {offsets = [0, 0, 8], sizes = [4, 8, 8], strides = [1, 1, 1]} : vector<4x8x32xf32> to vector<4x8x8xf32>
    "tpu.trace_start"() <{level = 10 : i32, message = "bqd,bkd->bqk"}> : () -> ()
    %cst_212 = arith.constant dense<0.000000e+00> : vector<4x8x8xf32>
    %392 = tpu.matmul %389, %390, %cst_212 {dimension_numbers = #tpu.dot_dimension_numbers<[2], [2], [1], [1], [0, 0, 0, 1, 1, 1], [0], [0]>} : vector<4x8x8xf32>, vector<4x8x8xf32>, vector<4x8x8xf32> -> vector<4x8x8xf32>
    "tpu.trace_stop"() : () -> ()
    %cst_213 = arith.constant 0.353553385 : f32
    %393 = vector.broadcast %cst_213 : f32 to vector<4x8x8xf32>
    %394 = arith.mulf %392, %393 : vector<4x8x8xf32>
    %cst_214 = arith.constant dense<0xFF800000> : vector<4x8xf32>
    %395 = vector.multi_reduction <maximumf>, %394, %cst_214 [2] : vector<4x8x8xf32> to vector<4x8xf32>
    %396 = vector.shape_cast %395 : vector<4x8xf32> to vector<4x8x1xf32>
    %397 = vector.broadcast %396 : vector<4x8x1xf32> to vector<4x8x8xf32>
    %398 = arith.subf %394, %397 : vector<4x8x8xf32>
    %399 = math.exp %398 : vector<4x8x8xf32>
    %cst_215 = arith.constant dense<0.000000e+00> : vector<4x8xf32>
    %400 = vector.multi_reduction <add>, %399, %cst_215 [2] : vector<4x8x8xf32> to vector<4x8xf32>
    %401 = vector.shape_cast %400 : vector<4x8xf32> to vector<4x8x1xf32>
    %402 = tpu.reciprocal %401 {approx = true} : vector<4x8x1xf32> -> vector<4x8x1xf32>
    %403 = vector.broadcast %402 : vector<4x8x1xf32> to vector<4x8x8xf32>
    %404 = arith.mulf %399, %403 : vector<4x8x8xf32>
    "tpu.trace_start"() <{level = 10 : i32, message = "bqk,bkd->bqd"}> : () -> ()
    %cst_216 = arith.constant dense<0.000000e+00> : vector<4x8x8xf32>
    %405 = tpu.matmul %404, %391, %cst_216 {dimension_numbers = #tpu.dot_dimension_numbers<[2], [1], [1], [2], [0, 0, 0, 1, 1, 2], [0], [0]>} : vector<4x8x8xf32>, vector<4x8x8xf32>, vector<4x8x8xf32> -> vector<4x8x8xf32>
    "tpu.trace_stop"() : () -> ()
    %406 = vector.shape_cast %405 : vector<4x8x8xf32> to vector<32x8xf32>
    %407 = vector.extract_strided_slice %368 {offsets = [0, 0, 16], sizes = [4, 8, 8], strides = [1, 1, 1]} : vector<4x8x32xf32> to vector<4x8x8xf32>
    %408 = vector.extract_strided_slice %369 {offsets = [0, 0, 16], sizes = [4, 8, 8], strides = [1, 1, 1]} : vector<4x8x32xf32> to vector<4x8x8xf32>
    %409 = vector.extract_strided_slice %370 {offsets = [0, 0, 16], sizes = [4, 8, 8], strides = [1, 1, 1]} : vector<4x8x32xf32> to vector<4x8x8xf32>
    "tpu.trace_start"() <{level = 10 : i32, message = "bqd,bkd->bqk"}> : () -> ()
    %cst_217 = arith.constant dense<0.000000e+00> : vector<4x8x8xf32>
    %410 = tpu.matmul %407, %408, %cst_217 {dimension_numbers = #tpu.dot_dimension_numbers<[2], [2], [1], [1], [0, 0, 0, 1, 1, 1], [0], [0]>} : vector<4x8x8xf32>, vector<4x8x8xf32>, vector<4x8x8xf32> -> vector<4x8x8xf32>
    "tpu.trace_stop"() : () -> ()
    %cst_218 = arith.constant 0.353553385 : f32
    %411 = vector.broadcast %cst_218 : f32 to vector<4x8x8xf32>
    %412 = arith.mulf %410, %411 : vector<4x8x8xf32>
    %cst_219 = arith.constant dense<0xFF800000> : vector<4x8xf32>
    %413 = vector.multi_reduction <maximumf>, %412, %cst_219 [2] : vector<4x8x8xf32> to vector<4x8xf32>
    %414 = vector.shape_cast %413 : vector<4x8xf32> to vector<4x8x1xf32>
    %415 = vector.broadcast %414 : vector<4x8x1xf32> to vector<4x8x8xf32>
    %416 = arith.subf %412, %415 : vector<4x8x8xf32>
    %417 = math.exp %416 : vector<4x8x8xf32>
    %cst_220 = arith.constant dense<0.000000e+00> : vector<4x8xf32>
    %418 = vector.multi_reduction <add>, %417, %cst_220 [2] : vector<4x8x8xf32> to vector<4x8xf32>
    %419 = vector.shape_cast %418 : vector<4x8xf32> to vector<4x8x1xf32>
    %420 = tpu.reciprocal %419 {approx = true} : vector<4x8x1xf32> -> vector<4x8x1xf32>
    %421 = vector.broadcast %420 : vector<4x8x1xf32> to vector<4x8x8xf32>
    %422 = arith.mulf %417, %421 : vector<4x8x8xf32>
    "tpu.trace_start"() <{level = 10 : i32, message = "bqk,bkd->bqd"}> : () -> ()
    %cst_221 = arith.constant dense<0.000000e+00> : vector<4x8x8xf32>
    %423 = tpu.matmul %422, %409, %cst_221 {dimension_numbers = #tpu.dot_dimension_numbers<[2], [1], [1], [2], [0, 0, 0, 1, 1, 2], [0], [0]>} : vector<4x8x8xf32>, vector<4x8x8xf32>, vector<4x8x8xf32> -> vector<4x8x8xf32>
    "tpu.trace_stop"() : () -> ()
    %424 = vector.shape_cast %423 : vector<4x8x8xf32> to vector<32x8xf32>
    %425 = vector.extract_strided_slice %368 {offsets = [0, 0, 24], sizes = [4, 8, 8], strides = [1, 1, 1]} : vector<4x8x32xf32> to vector<4x8x8xf32>
    %426 = vector.extract_strided_slice %369 {offsets = [0, 0, 24], sizes = [4, 8, 8], strides = [1, 1, 1]} : vector<4x8x32xf32> to vector<4x8x8xf32>
    %427 = vector.extract_strided_slice %370 {offsets = [0, 0, 24], sizes = [4, 8, 8], strides = [1, 1, 1]} : vector<4x8x32xf32> to vector<4x8x8xf32>
    "tpu.trace_start"() <{level = 10 : i32, message = "bqd,bkd->bqk"}> : () -> ()
    %cst_222 = arith.constant dense<0.000000e+00> : vector<4x8x8xf32>
    %428 = tpu.matmul %425, %426, %cst_222 {dimension_numbers = #tpu.dot_dimension_numbers<[2], [2], [1], [1], [0, 0, 0, 1, 1, 1], [0], [0]>} : vector<4x8x8xf32>, vector<4x8x8xf32>, vector<4x8x8xf32> -> vector<4x8x8xf32>
    "tpu.trace_stop"() : () -> ()
    %cst_223 = arith.constant 0.353553385 : f32
    %429 = vector.broadcast %cst_223 : f32 to vector<4x8x8xf32>
    %430 = arith.mulf %428, %429 : vector<4x8x8xf32>
    %cst_224 = arith.constant dense<0xFF800000> : vector<4x8xf32>
    %431 = vector.multi_reduction <maximumf>, %430, %cst_224 [2] : vector<4x8x8xf32> to vector<4x8xf32>
    %432 = vector.shape_cast %431 : vector<4x8xf32> to vector<4x8x1xf32>
    %433 = vector.broadcast %432 : vector<4x8x1xf32> to vector<4x8x8xf32>
    %434 = arith.subf %430, %433 : vector<4x8x8xf32>
    %435 = math.exp %434 : vector<4x8x8xf32>
    %cst_225 = arith.constant dense<0.000000e+00> : vector<4x8xf32>
    %436 = vector.multi_reduction <add>, %435, %cst_225 [2] : vector<4x8x8xf32> to vector<4x8xf32>
    %437 = vector.shape_cast %436 : vector<4x8xf32> to vector<4x8x1xf32>
    %438 = tpu.reciprocal %437 {approx = true} : vector<4x8x1xf32> -> vector<4x8x1xf32>
    %439 = vector.broadcast %438 : vector<4x8x1xf32> to vector<4x8x8xf32>
    %440 = arith.mulf %435, %439 : vector<4x8x8xf32>
    "tpu.trace_start"() <{level = 10 : i32, message = "bqk,bkd->bqd"}> : () -> ()
    %cst_226 = arith.constant dense<0.000000e+00> : vector<4x8x8xf32>
    %441 = tpu.matmul %440, %427, %cst_226 {dimension_numbers = #tpu.dot_dimension_numbers<[2], [1], [1], [2], [0, 0, 0, 1, 1, 2], [0], [0]>} : vector<4x8x8xf32>, vector<4x8x8xf32>, vector<4x8x8xf32> -> vector<4x8x8xf32>
    "tpu.trace_stop"() : () -> ()
    %442 = vector.shape_cast %441 : vector<4x8x8xf32> to vector<32x8xf32>
    %443 = tpu.concatenate %388, %406, %424, %442 in 1 : vector<32x8xf32>, vector<32x8xf32>, vector<32x8xf32>, vector<32x8xf32> -> vector<32x32xf32>
    %cst_227 = arith.constant dense<0.000000e+00> : vector<32x32xf32>
    %444 = tpu.matmul %443, %327, %cst_227 {dimension_numbers = #tpu.dot_dimension_numbers<[1], [0], [0], [1], [0, 0, 1, 1], [], []>} : vector<32x32xf32>, vector<32x32xf32>, vector<32x32xf32> -> vector<32x32xf32>
    %445 = vector.broadcast %329 : vector<1x32xf32> to vector<32x32xf32>
    %446 = arith.addf %444, %445 : vector<32x32xf32>
    %447 = arith.addf %320, %446 : vector<32x32xf32>
    %cst_228 = arith.constant dense<0.000000e+00> : vector<32xf32>
    %448 = vector.multi_reduction <add>, %447, %cst_228 [1] : vector<32x32xf32> to vector<32xf32>
    %449 = vector.shape_cast %448 : vector<32xf32> to vector<32x1xf32>
    %cst_229 = arith.constant 3.200000e+01 : f32
    %450 = vector.broadcast %cst_229 : f32 to vector<32x1xf32>
    %451 = arith.divf %449, %450 : vector<32x1xf32>
    %452 = vector.broadcast %451 : vector<32x1xf32> to vector<32x32xf32>
    %453 = arith.subf %447, %452 : vector<32x32xf32>
    %454 = arith.mulf %453, %453 : vector<32x32xf32>
    %cst_230 = arith.constant dense<0.000000e+00> : vector<32xf32>
    %455 = vector.multi_reduction <add>, %454, %cst_230 [1] : vector<32x32xf32> to vector<32xf32>
    %456 = vector.shape_cast %455 : vector<32xf32> to vector<32x1xf32>
    %cst_231 = arith.constant 3.200000e+01 : f32
    %457 = vector.broadcast %cst_231 : f32 to vector<32x1xf32>
    %458 = arith.divf %456, %457 : vector<32x1xf32>
    %cst_232 = arith.constant 9.99999974E-6 : f32
    %459 = vector.broadcast %cst_232 : f32 to vector<32x1xf32>
    %460 = arith.addf %458, %459 : vector<32x1xf32>
    %461 = math.rsqrt %460 : vector<32x1xf32>
    %462 = vector.broadcast %461 : vector<32x1xf32> to vector<32x32xf32>
    %463 = arith.mulf %453, %462 : vector<32x32xf32>
    %464 = vector.broadcast %331 : vector<1x32xf32> to vector<32x32xf32>
    %465 = arith.mulf %463, %464 : vector<32x32xf32>
    %466 = vector.broadcast %333 : vector<1x32xf32> to vector<32x32xf32>
    %467 = arith.addf %465, %466 : vector<32x32xf32>
    %cst_233 = arith.constant dense<0.000000e+00> : vector<32x32xf32>
    %468 = tpu.matmul %467, %335, %cst_233 {dimension_numbers = #tpu.dot_dimension_numbers<[1], [0], [0], [1], [0, 0, 1, 1], [], []>} : vector<32x32xf32>, vector<32x32xf32>, vector<32x32xf32> -> vector<32x32xf32>
    %469 = vector.broadcast %337 : vector<1x32xf32> to vector<32x32xf32>
    %470 = arith.addf %468, %469 : vector<32x32xf32>
    %cst_234 = arith.constant dense<0.000000e+00> : vector<32x64xf32>
    %471 = tpu.matmul %321, %339, %cst_234 {dimension_numbers = #tpu.dot_dimension_numbers<[1], [0], [0], [1], [0, 0, 1, 1], [], []>} : vector<32x32xf32>, vector<32x64xf32>, vector<32x64xf32> -> vector<32x64xf32>
    %472 = vector.broadcast %341 : vector<1x64xf32> to vector<32x64xf32>
    %473 = arith.addf %471, %472 : vector<32x64xf32>
    %474 = vector.extract_strided_slice %473 {offsets = [0, 0], sizes = [32, 32], strides = [1, 1]} : vector<32x64xf32> to vector<32x32xf32>
    %475 = vector.extract_strided_slice %473 {offsets = [0, 32], sizes = [32, 32], strides = [1, 1]} : vector<32x64xf32> to vector<32x32xf32>
    %476 = vector.shape_cast %470 : vector<32x32xf32> to vector<4x8x32xf32>
    %477 = vector.shape_cast %474 : vector<32x32xf32> to vector<4x8x32xf32>
    %478 = vector.shape_cast %475 : vector<32x32xf32> to vector<4x8x32xf32>
    %479 = vector.extract_strided_slice %476 {offsets = [0, 0, 0], sizes = [4, 8, 8], strides = [1, 1, 1]} : vector<4x8x32xf32> to vector<4x8x8xf32>
    %480 = vector.extract_strided_slice %477 {offsets = [0, 0, 0], sizes = [4, 8, 8], strides = [1, 1, 1]} : vector<4x8x32xf32> to vector<4x8x8xf32>
    %481 = vector.extract_strided_slice %478 {offsets = [0, 0, 0], sizes = [4, 8, 8], strides = [1, 1, 1]} : vector<4x8x32xf32> to vector<4x8x8xf32>
    "tpu.trace_start"() <{level = 10 : i32, message = "bqd,bkd->bqk"}> : () -> ()
    %cst_235 = arith.constant dense<0.000000e+00> : vector<4x8x8xf32>
    %482 = tpu.matmul %479, %480, %cst_235 {dimension_numbers = #tpu.dot_dimension_numbers<[2], [2], [1], [1], [0, 0, 0, 1, 1, 1], [0], [0]>} : vector<4x8x8xf32>, vector<4x8x8xf32>, vector<4x8x8xf32> -> vector<4x8x8xf32>
    "tpu.trace_stop"() : () -> ()
    %cst_236 = arith.constant 0.353553385 : f32
    %483 = vector.broadcast %cst_236 : f32 to vector<4x8x8xf32>
    %484 = arith.mulf %482, %483 : vector<4x8x8xf32>
    %cst_237 = arith.constant dense<0xFF800000> : vector<4x8xf32>
    %485 = vector.multi_reduction <maximumf>, %484, %cst_237 [2] : vector<4x8x8xf32> to vector<4x8xf32>
    %486 = vector.shape_cast %485 : vector<4x8xf32> to vector<4x8x1xf32>
    %487 = vector.broadcast %486 : vector<4x8x1xf32> to vector<4x8x8xf32>
    %488 = arith.subf %484, %487 : vector<4x8x8xf32>
    %489 = math.exp %488 : vector<4x8x8xf32>
    %cst_238 = arith.constant dense<0.000000e+00> : vector<4x8xf32>
    %490 = vector.multi_reduction <add>, %489, %cst_238 [2] : vector<4x8x8xf32> to vector<4x8xf32>
    %491 = vector.shape_cast %490 : vector<4x8xf32> to vector<4x8x1xf32>
    %492 = tpu.reciprocal %491 {approx = true} : vector<4x8x1xf32> -> vector<4x8x1xf32>
    %493 = vector.broadcast %492 : vector<4x8x1xf32> to vector<4x8x8xf32>
    %494 = arith.mulf %489, %493 : vector<4x8x8xf32>
    "tpu.trace_start"() <{level = 10 : i32, message = "bqk,bkd->bqd"}> : () -> ()
    %cst_239 = arith.constant dense<0.000000e+00> : vector<4x8x8xf32>
    %495 = tpu.matmul %494, %481, %cst_239 {dimension_numbers = #tpu.dot_dimension_numbers<[2], [1], [1], [2], [0, 0, 0, 1, 1, 2], [0], [0]>} : vector<4x8x8xf32>, vector<4x8x8xf32>, vector<4x8x8xf32> -> vector<4x8x8xf32>
    "tpu.trace_stop"() : () -> ()
    %496 = vector.shape_cast %495 : vector<4x8x8xf32> to vector<32x8xf32>
    %497 = vector.extract_strided_slice %476 {offsets = [0, 0, 8], sizes = [4, 8, 8], strides = [1, 1, 1]} : vector<4x8x32xf32> to vector<4x8x8xf32>
    %498 = vector.extract_strided_slice %477 {offsets = [0, 0, 8], sizes = [4, 8, 8], strides = [1, 1, 1]} : vector<4x8x32xf32> to vector<4x8x8xf32>
    %499 = vector.extract_strided_slice %478 {offsets = [0, 0, 8], sizes = [4, 8, 8], strides = [1, 1, 1]} : vector<4x8x32xf32> to vector<4x8x8xf32>
    "tpu.trace_start"() <{level = 10 : i32, message = "bqd,bkd->bqk"}> : () -> ()
    %cst_240 = arith.constant dense<0.000000e+00> : vector<4x8x8xf32>
    %500 = tpu.matmul %497, %498, %cst_240 {dimension_numbers = #tpu.dot_dimension_numbers<[2], [2], [1], [1], [0, 0, 0, 1, 1, 1], [0], [0]>} : vector<4x8x8xf32>, vector<4x8x8xf32>, vector<4x8x8xf32> -> vector<4x8x8xf32>
    "tpu.trace_stop"() : () -> ()
    %cst_241 = arith.constant 0.353553385 : f32
    %501 = vector.broadcast %cst_241 : f32 to vector<4x8x8xf32>
    %502 = arith.mulf %500, %501 : vector<4x8x8xf32>
    %cst_242 = arith.constant dense<0xFF800000> : vector<4x8xf32>
    %503 = vector.multi_reduction <maximumf>, %502, %cst_242 [2] : vector<4x8x8xf32> to vector<4x8xf32>
    %504 = vector.shape_cast %503 : vector<4x8xf32> to vector<4x8x1xf32>
    %505 = vector.broadcast %504 : vector<4x8x1xf32> to vector<4x8x8xf32>
    %506 = arith.subf %502, %505 : vector<4x8x8xf32>
    %507 = math.exp %506 : vector<4x8x8xf32>
    %cst_243 = arith.constant dense<0.000000e+00> : vector<4x8xf32>
    %508 = vector.multi_reduction <add>, %507, %cst_243 [2] : vector<4x8x8xf32> to vector<4x8xf32>
    %509 = vector.shape_cast %508 : vector<4x8xf32> to vector<4x8x1xf32>
    %510 = tpu.reciprocal %509 {approx = true} : vector<4x8x1xf32> -> vector<4x8x1xf32>
    %511 = vector.broadcast %510 : vector<4x8x1xf32> to vector<4x8x8xf32>
    %512 = arith.mulf %507, %511 : vector<4x8x8xf32>
    "tpu.trace_start"() <{level = 10 : i32, message = "bqk,bkd->bqd"}> : () -> ()
    %cst_244 = arith.constant dense<0.000000e+00> : vector<4x8x8xf32>
    %513 = tpu.matmul %512, %499, %cst_244 {dimension_numbers = #tpu.dot_dimension_numbers<[2], [1], [1], [2], [0, 0, 0, 1, 1, 2], [0], [0]>} : vector<4x8x8xf32>, vector<4x8x8xf32>, vector<4x8x8xf32> -> vector<4x8x8xf32>
    "tpu.trace_stop"() : () -> ()
    %514 = vector.shape_cast %513 : vector<4x8x8xf32> to vector<32x8xf32>
    %515 = vector.extract_strided_slice %476 {offsets = [0, 0, 16], sizes = [4, 8, 8], strides = [1, 1, 1]} : vector<4x8x32xf32> to vector<4x8x8xf32>
    %516 = vector.extract_strided_slice %477 {offsets = [0, 0, 16], sizes = [4, 8, 8], strides = [1, 1, 1]} : vector<4x8x32xf32> to vector<4x8x8xf32>
    %517 = vector.extract_strided_slice %478 {offsets = [0, 0, 16], sizes = [4, 8, 8], strides = [1, 1, 1]} : vector<4x8x32xf32> to vector<4x8x8xf32>
    "tpu.trace_start"() <{level = 10 : i32, message = "bqd,bkd->bqk"}> : () -> ()
    %cst_245 = arith.constant dense<0.000000e+00> : vector<4x8x8xf32>
    %518 = tpu.matmul %515, %516, %cst_245 {dimension_numbers = #tpu.dot_dimension_numbers<[2], [2], [1], [1], [0, 0, 0, 1, 1, 1], [0], [0]>} : vector<4x8x8xf32>, vector<4x8x8xf32>, vector<4x8x8xf32> -> vector<4x8x8xf32>
    "tpu.trace_stop"() : () -> ()
    %cst_246 = arith.constant 0.353553385 : f32
    %519 = vector.broadcast %cst_246 : f32 to vector<4x8x8xf32>
    %520 = arith.mulf %518, %519 : vector<4x8x8xf32>
    %cst_247 = arith.constant dense<0xFF800000> : vector<4x8xf32>
    %521 = vector.multi_reduction <maximumf>, %520, %cst_247 [2] : vector<4x8x8xf32> to vector<4x8xf32>
    %522 = vector.shape_cast %521 : vector<4x8xf32> to vector<4x8x1xf32>
    %523 = vector.broadcast %522 : vector<4x8x1xf32> to vector<4x8x8xf32>
    %524 = arith.subf %520, %523 : vector<4x8x8xf32>
    %525 = math.exp %524 : vector<4x8x8xf32>
    %cst_248 = arith.constant dense<0.000000e+00> : vector<4x8xf32>
    %526 = vector.multi_reduction <add>, %525, %cst_248 [2] : vector<4x8x8xf32> to vector<4x8xf32>
    %527 = vector.shape_cast %526 : vector<4x8xf32> to vector<4x8x1xf32>
    %528 = tpu.reciprocal %527 {approx = true} : vector<4x8x1xf32> -> vector<4x8x1xf32>
    %529 = vector.broadcast %528 : vector<4x8x1xf32> to vector<4x8x8xf32>
    %530 = arith.mulf %525, %529 : vector<4x8x8xf32>
    "tpu.trace_start"() <{level = 10 : i32, message = "bqk,bkd->bqd"}> : () -> ()
    %cst_249 = arith.constant dense<0.000000e+00> : vector<4x8x8xf32>
    %531 = tpu.matmul %530, %517, %cst_249 {dimension_numbers = #tpu.dot_dimension_numbers<[2], [1], [1], [2], [0, 0, 0, 1, 1, 2], [0], [0]>} : vector<4x8x8xf32>, vector<4x8x8xf32>, vector<4x8x8xf32> -> vector<4x8x8xf32>
    "tpu.trace_stop"() : () -> ()
    %532 = vector.shape_cast %531 : vector<4x8x8xf32> to vector<32x8xf32>
    %533 = vector.extract_strided_slice %476 {offsets = [0, 0, 24], sizes = [4, 8, 8], strides = [1, 1, 1]} : vector<4x8x32xf32> to vector<4x8x8xf32>
    %534 = vector.extract_strided_slice %477 {offsets = [0, 0, 24], sizes = [4, 8, 8], strides = [1, 1, 1]} : vector<4x8x32xf32> to vector<4x8x8xf32>
    %535 = vector.extract_strided_slice %478 {offsets = [0, 0, 24], sizes = [4, 8, 8], strides = [1, 1, 1]} : vector<4x8x32xf32> to vector<4x8x8xf32>
    "tpu.trace_start"() <{level = 10 : i32, message = "bqd,bkd->bqk"}> : () -> ()
    %cst_250 = arith.constant dense<0.000000e+00> : vector<4x8x8xf32>
    %536 = tpu.matmul %533, %534, %cst_250 {dimension_numbers = #tpu.dot_dimension_numbers<[2], [2], [1], [1], [0, 0, 0, 1, 1, 1], [0], [0]>} : vector<4x8x8xf32>, vector<4x8x8xf32>, vector<4x8x8xf32> -> vector<4x8x8xf32>
    "tpu.trace_stop"() : () -> ()
    %cst_251 = arith.constant 0.353553385 : f32
    %537 = vector.broadcast %cst_251 : f32 to vector<4x8x8xf32>
    %538 = arith.mulf %536, %537 : vector<4x8x8xf32>
    %cst_252 = arith.constant dense<0xFF800000> : vector<4x8xf32>
    %539 = vector.multi_reduction <maximumf>, %538, %cst_252 [2] : vector<4x8x8xf32> to vector<4x8xf32>
    %540 = vector.shape_cast %539 : vector<4x8xf32> to vector<4x8x1xf32>
    %541 = vector.broadcast %540 : vector<4x8x1xf32> to vector<4x8x8xf32>
    %542 = arith.subf %538, %541 : vector<4x8x8xf32>
    %543 = math.exp %542 : vector<4x8x8xf32>
    %cst_253 = arith.constant dense<0.000000e+00> : vector<4x8xf32>
    %544 = vector.multi_reduction <add>, %543, %cst_253 [2] : vector<4x8x8xf32> to vector<4x8xf32>
    %545 = vector.shape_cast %544 : vector<4x8xf32> to vector<4x8x1xf32>
    %546 = tpu.reciprocal %545 {approx = true} : vector<4x8x1xf32> -> vector<4x8x1xf32>
    %547 = vector.broadcast %546 : vector<4x8x1xf32> to vector<4x8x8xf32>
    %548 = arith.mulf %543, %547 : vector<4x8x8xf32>
    "tpu.trace_start"() <{level = 10 : i32, message = "bqk,bkd->bqd"}> : () -> ()
    %cst_254 = arith.constant dense<0.000000e+00> : vector<4x8x8xf32>
    %549 = tpu.matmul %548, %535, %cst_254 {dimension_numbers = #tpu.dot_dimension_numbers<[2], [1], [1], [2], [0, 0, 0, 1, 1, 2], [0], [0]>} : vector<4x8x8xf32>, vector<4x8x8xf32>, vector<4x8x8xf32> -> vector<4x8x8xf32>
    "tpu.trace_stop"() : () -> ()
    %550 = vector.shape_cast %549 : vector<4x8x8xf32> to vector<32x8xf32>
    %551 = tpu.concatenate %496, %514, %532, %550 in 1 : vector<32x8xf32>, vector<32x8xf32>, vector<32x8xf32>, vector<32x8xf32> -> vector<32x32xf32>
    %cst_255 = arith.constant dense<0.000000e+00> : vector<32x32xf32>
    %552 = tpu.matmul %551, %343, %cst_255 {dimension_numbers = #tpu.dot_dimension_numbers<[1], [0], [0], [1], [0, 0, 1, 1], [], []>} : vector<32x32xf32>, vector<32x32xf32>, vector<32x32xf32> -> vector<32x32xf32>
    %553 = vector.broadcast %345 : vector<1x32xf32> to vector<32x32xf32>
    %554 = arith.addf %552, %553 : vector<32x32xf32>
    %555 = arith.addf %467, %554 : vector<32x32xf32>
    %cst_256 = arith.constant dense<0.000000e+00> : vector<32xf32>
    %556 = vector.multi_reduction <add>, %555, %cst_256 [1] : vector<32x32xf32> to vector<32xf32>
    %557 = vector.shape_cast %556 : vector<32xf32> to vector<32x1xf32>
    %cst_257 = arith.constant 3.200000e+01 : f32
    %558 = vector.broadcast %cst_257 : f32 to vector<32x1xf32>
    %559 = arith.divf %557, %558 : vector<32x1xf32>
    %560 = vector.broadcast %559 : vector<32x1xf32> to vector<32x32xf32>
    %561 = arith.subf %555, %560 : vector<32x32xf32>
    %562 = arith.mulf %561, %561 : vector<32x32xf32>
    %cst_258 = arith.constant dense<0.000000e+00> : vector<32xf32>
    %563 = vector.multi_reduction <add>, %562, %cst_258 [1] : vector<32x32xf32> to vector<32xf32>
    %564 = vector.shape_cast %563 : vector<32xf32> to vector<32x1xf32>
    %cst_259 = arith.constant 3.200000e+01 : f32
    %565 = vector.broadcast %cst_259 : f32 to vector<32x1xf32>
    %566 = arith.divf %564, %565 : vector<32x1xf32>
    %cst_260 = arith.constant 9.99999974E-6 : f32
    %567 = vector.broadcast %cst_260 : f32 to vector<32x1xf32>
    %568 = arith.addf %566, %567 : vector<32x1xf32>
    %569 = math.rsqrt %568 : vector<32x1xf32>
    %570 = vector.broadcast %569 : vector<32x1xf32> to vector<32x32xf32>
    %571 = arith.mulf %561, %570 : vector<32x32xf32>
    %572 = vector.broadcast %347 : vector<1x32xf32> to vector<32x32xf32>
    %573 = arith.mulf %571, %572 : vector<32x32xf32>
    %574 = vector.broadcast %349 : vector<1x32xf32> to vector<32x32xf32>
    %575 = arith.addf %573, %574 : vector<32x32xf32>
    %cst_261 = arith.constant dense<0.000000e+00> : vector<32x64xf32>
    %576 = tpu.matmul %575, %351, %cst_261 {dimension_numbers = #tpu.dot_dimension_numbers<[1], [0], [0], [1], [0, 0, 1, 1], [], []>} : vector<32x32xf32>, vector<32x64xf32>, vector<32x64xf32> -> vector<32x64xf32>
    %577 = vector.broadcast %353 : vector<1x64xf32> to vector<32x64xf32>
    %578 = arith.addf %576, %577 : vector<32x64xf32>
    %cst_262 = arith.constant 0.000000e+00 : f32
    %579 = vector.broadcast %cst_262 : f32 to vector<32x64xf32>
    %580 = arith.maximumf %578, %579 : vector<32x64xf32>
    %cst_263 = arith.constant dense<0.000000e+00> : vector<32x32xf32>
    %581 = tpu.matmul %580, %355, %cst_263 {dimension_numbers = #tpu.dot_dimension_numbers<[1], [0], [0], [1], [0, 0, 1, 1], [], []>} : vector<32x64xf32>, vector<64x32xf32>, vector<32x32xf32> -> vector<32x32xf32>
    %582 = vector.broadcast %357 : vector<1x32xf32> to vector<32x32xf32>
    %583 = arith.addf %581, %582 : vector<32x32xf32>
    %584 = arith.addf %575, %583 : vector<32x32xf32>
    %cst_264 = arith.constant dense<0.000000e+00> : vector<32xf32>
    %585 = vector.multi_reduction <add>, %584, %cst_264 [1] : vector<32x32xf32> to vector<32xf32>
    %586 = vector.shape_cast %585 : vector<32xf32> to vector<32x1xf32>
    %cst_265 = arith.constant 3.200000e+01 : f32
    %587 = vector.broadcast %cst_265 : f32 to vector<32x1xf32>
    %588 = arith.divf %586, %587 : vector<32x1xf32>
    %589 = vector.broadcast %588 : vector<32x1xf32> to vector<32x32xf32>
    %590 = arith.subf %584, %589 : vector<32x32xf32>
    %591 = arith.mulf %590, %590 : vector<32x32xf32>
    %cst_266 = arith.constant dense<0.000000e+00> : vector<32xf32>
    %592 = vector.multi_reduction <add>, %591, %cst_266 [1] : vector<32x32xf32> to vector<32xf32>
    %593 = vector.shape_cast %592 : vector<32xf32> to vector<32x1xf32>
    %cst_267 = arith.constant 3.200000e+01 : f32
    %594 = vector.broadcast %cst_267 : f32 to vector<32x1xf32>
    %595 = arith.divf %593, %594 : vector<32x1xf32>
    %cst_268 = arith.constant 9.99999974E-6 : f32
    %596 = vector.broadcast %cst_268 : f32 to vector<32x1xf32>
    %597 = arith.addf %595, %596 : vector<32x1xf32>
    %598 = math.rsqrt %597 : vector<32x1xf32>
    %599 = vector.broadcast %598 : vector<32x1xf32> to vector<32x32xf32>
    %600 = arith.mulf %590, %599 : vector<32x32xf32>
    %601 = vector.broadcast %359 : vector<1x32xf32> to vector<32x32xf32>
    %602 = arith.mulf %600, %601 : vector<32x32xf32>
    %603 = vector.broadcast %361 : vector<1x32xf32> to vector<32x32xf32>
    %604 = arith.addf %602, %603 : vector<32x32xf32>
    %c1_269 = arith.constant 1 : index
    %c0_270 = arith.constant 0 : index
    %c0_271 = arith.constant 0 : index
    %605 = vector.load %arg15[%c1_269, %c0_270, %c0_271] : memref<2x32x96xf32, #tpu.memory_space<vmem>>, vector<1x32x96xf32>
    %606 = vector.shape_cast %605 : vector<1x32x96xf32> to vector<32x96xf32>
    %c1_272 = arith.constant 1 : index
    %c0_273 = arith.constant 0 : index
    %c0_274 = arith.constant 0 : index
    %607 = vector.load %arg16[%c1_272, %c0_273, %c0_274] : memref<2x1x96xf32, #tpu.memory_space<vmem>>, vector<1x1x96xf32>
    %608 = vector.shape_cast %607 : vector<1x1x96xf32> to vector<1x96xf32>
    %c1_275 = arith.constant 1 : index
    %c0_276 = arith.constant 0 : index
    %c0_277 = arith.constant 0 : index
    %609 = vector.load %arg17[%c1_275, %c0_276, %c0_277] : memref<2x32x32xf32, #tpu.memory_space<vmem>>, vector<1x32x32xf32>
    %610 = vector.shape_cast %609 : vector<1x32x32xf32> to vector<32x32xf32>
    %c1_278 = arith.constant 1 : index
    %c0_279 = arith.constant 0 : index
    %c0_280 = arith.constant 0 : index
    %611 = vector.load %arg18[%c1_278, %c0_279, %c0_280] : memref<2x1x32xf32, #tpu.memory_space<vmem>>, vector<1x1x32xf32>
    %612 = vector.shape_cast %611 : vector<1x1x32xf32> to vector<1x32xf32>
    %c1_281 = arith.constant 1 : index
    %c0_282 = arith.constant 0 : index
    %c0_283 = arith.constant 0 : index
    %613 = vector.load %arg19[%c1_281, %c0_282, %c0_283] : memref<2x1x32xf32, #tpu.memory_space<vmem>>, vector<1x1x32xf32>
    %614 = vector.shape_cast %613 : vector<1x1x32xf32> to vector<1x32xf32>
    %c1_284 = arith.constant 1 : index
    %c0_285 = arith.constant 0 : index
    %c0_286 = arith.constant 0 : index
    %615 = vector.load %arg20[%c1_284, %c0_285, %c0_286] : memref<2x1x32xf32, #tpu.memory_space<vmem>>, vector<1x1x32xf32>
    %616 = vector.shape_cast %615 : vector<1x1x32xf32> to vector<1x32xf32>
    %c1_287 = arith.constant 1 : index
    %c0_288 = arith.constant 0 : index
    %c0_289 = arith.constant 0 : index
    %617 = vector.load %arg21[%c1_287, %c0_288, %c0_289] : memref<2x32x32xf32, #tpu.memory_space<vmem>>, vector<1x32x32xf32>
    %618 = vector.shape_cast %617 : vector<1x32x32xf32> to vector<32x32xf32>
    %c1_290 = arith.constant 1 : index
    %c0_291 = arith.constant 0 : index
    %c0_292 = arith.constant 0 : index
    %619 = vector.load %arg22[%c1_290, %c0_291, %c0_292] : memref<2x1x32xf32, #tpu.memory_space<vmem>>, vector<1x1x32xf32>
    %620 = vector.shape_cast %619 : vector<1x1x32xf32> to vector<1x32xf32>
    %c1_293 = arith.constant 1 : index
    %c0_294 = arith.constant 0 : index
    %c0_295 = arith.constant 0 : index
    %621 = vector.load %arg23[%c1_293, %c0_294, %c0_295] : memref<2x32x64xf32, #tpu.memory_space<vmem>>, vector<1x32x64xf32>
    %622 = vector.shape_cast %621 : vector<1x32x64xf32> to vector<32x64xf32>
    %c1_296 = arith.constant 1 : index
    %c0_297 = arith.constant 0 : index
    %c0_298 = arith.constant 0 : index
    %623 = vector.load %arg24[%c1_296, %c0_297, %c0_298] : memref<2x1x64xf32, #tpu.memory_space<vmem>>, vector<1x1x64xf32>
    %624 = vector.shape_cast %623 : vector<1x1x64xf32> to vector<1x64xf32>
    %c1_299 = arith.constant 1 : index
    %c0_300 = arith.constant 0 : index
    %c0_301 = arith.constant 0 : index
    %625 = vector.load %arg25[%c1_299, %c0_300, %c0_301] : memref<2x32x32xf32, #tpu.memory_space<vmem>>, vector<1x32x32xf32>
    %626 = vector.shape_cast %625 : vector<1x32x32xf32> to vector<32x32xf32>
    %c1_302 = arith.constant 1 : index
    %c0_303 = arith.constant 0 : index
    %c0_304 = arith.constant 0 : index
    %627 = vector.load %arg26[%c1_302, %c0_303, %c0_304] : memref<2x1x32xf32, #tpu.memory_space<vmem>>, vector<1x1x32xf32>
    %628 = vector.shape_cast %627 : vector<1x1x32xf32> to vector<1x32xf32>
    %c1_305 = arith.constant 1 : index
    %c0_306 = arith.constant 0 : index
    %c0_307 = arith.constant 0 : index
    %629 = vector.load %arg27[%c1_305, %c0_306, %c0_307] : memref<2x1x32xf32, #tpu.memory_space<vmem>>, vector<1x1x32xf32>
    %630 = vector.shape_cast %629 : vector<1x1x32xf32> to vector<1x32xf32>
    %c1_308 = arith.constant 1 : index
    %c0_309 = arith.constant 0 : index
    %c0_310 = arith.constant 0 : index
    %631 = vector.load %arg28[%c1_308, %c0_309, %c0_310] : memref<2x1x32xf32, #tpu.memory_space<vmem>>, vector<1x1x32xf32>
    %632 = vector.shape_cast %631 : vector<1x1x32xf32> to vector<1x32xf32>
    %c1_311 = arith.constant 1 : index
    %c0_312 = arith.constant 0 : index
    %c0_313 = arith.constant 0 : index
    %633 = vector.load %arg29[%c1_311, %c0_312, %c0_313] : memref<2x32x64xf32, #tpu.memory_space<vmem>>, vector<1x32x64xf32>
    %634 = vector.shape_cast %633 : vector<1x32x64xf32> to vector<32x64xf32>
    %c1_314 = arith.constant 1 : index
    %c0_315 = arith.constant 0 : index
    %c0_316 = arith.constant 0 : index
    %635 = vector.load %arg30[%c1_314, %c0_315, %c0_316] : memref<2x1x64xf32, #tpu.memory_space<vmem>>, vector<1x1x64xf32>
    %636 = vector.shape_cast %635 : vector<1x1x64xf32> to vector<1x64xf32>
    %c1_317 = arith.constant 1 : index
    %c0_318 = arith.constant 0 : index
    %c0_319 = arith.constant 0 : index
    %637 = vector.load %arg31[%c1_317, %c0_318, %c0_319] : memref<2x64x32xf32, #tpu.memory_space<vmem>>, vector<1x64x32xf32>
    %638 = vector.shape_cast %637 : vector<1x64x32xf32> to vector<64x32xf32>
    %c1_320 = arith.constant 1 : index
    %c0_321 = arith.constant 0 : index
    %c0_322 = arith.constant 0 : index
    %639 = vector.load %arg32[%c1_320, %c0_321, %c0_322] : memref<2x1x32xf32, #tpu.memory_space<vmem>>, vector<1x1x32xf32>
    %640 = vector.shape_cast %639 : vector<1x1x32xf32> to vector<1x32xf32>
    %c1_323 = arith.constant 1 : index
    %c0_324 = arith.constant 0 : index
    %c0_325 = arith.constant 0 : index
    %641 = vector.load %arg33[%c1_323, %c0_324, %c0_325] : memref<2x1x32xf32, #tpu.memory_space<vmem>>, vector<1x1x32xf32>
    %642 = vector.shape_cast %641 : vector<1x1x32xf32> to vector<1x32xf32>
    %c1_326 = arith.constant 1 : index
    %c0_327 = arith.constant 0 : index
    %c0_328 = arith.constant 0 : index
    %643 = vector.load %arg34[%c1_326, %c0_327, %c0_328] : memref<2x1x32xf32, #tpu.memory_space<vmem>>, vector<1x1x32xf32>
    %644 = vector.shape_cast %643 : vector<1x1x32xf32> to vector<1x32xf32>
    %cst_329 = arith.constant dense<0.000000e+00> : vector<32x96xf32>
    %645 = tpu.matmul %604, %606, %cst_329 {dimension_numbers = #tpu.dot_dimension_numbers<[1], [0], [0], [1], [0, 0, 1, 1], [], []>} : vector<32x32xf32>, vector<32x96xf32>, vector<32x96xf32> -> vector<32x96xf32>
    %646 = vector.broadcast %608 : vector<1x96xf32> to vector<32x96xf32>
    %647 = arith.addf %645, %646 : vector<32x96xf32>
    %648 = vector.extract_strided_slice %647 {offsets = [0, 0], sizes = [32, 32], strides = [1, 1]} : vector<32x96xf32> to vector<32x32xf32>
    %649 = vector.extract_strided_slice %647 {offsets = [0, 32], sizes = [32, 32], strides = [1, 1]} : vector<32x96xf32> to vector<32x32xf32>
    %650 = vector.extract_strided_slice %647 {offsets = [0, 64], sizes = [32, 32], strides = [1, 1]} : vector<32x96xf32> to vector<32x32xf32>
    %651 = vector.shape_cast %648 : vector<32x32xf32> to vector<4x8x32xf32>
    %652 = vector.shape_cast %649 : vector<32x32xf32> to vector<4x8x32xf32>
    %653 = vector.shape_cast %650 : vector<32x32xf32> to vector<4x8x32xf32>
    %654 = vector.extract_strided_slice %651 {offsets = [0, 0, 0], sizes = [4, 8, 8], strides = [1, 1, 1]} : vector<4x8x32xf32> to vector<4x8x8xf32>
    %655 = vector.extract_strided_slice %652 {offsets = [0, 0, 0], sizes = [4, 8, 8], strides = [1, 1, 1]} : vector<4x8x32xf32> to vector<4x8x8xf32>
    %656 = vector.extract_strided_slice %653 {offsets = [0, 0, 0], sizes = [4, 8, 8], strides = [1, 1, 1]} : vector<4x8x32xf32> to vector<4x8x8xf32>
    "tpu.trace_start"() <{level = 10 : i32, message = "bqd,bkd->bqk"}> : () -> ()
    %cst_330 = arith.constant dense<0.000000e+00> : vector<4x8x8xf32>
    %657 = tpu.matmul %654, %655, %cst_330 {dimension_numbers = #tpu.dot_dimension_numbers<[2], [2], [1], [1], [0, 0, 0, 1, 1, 1], [0], [0]>} : vector<4x8x8xf32>, vector<4x8x8xf32>, vector<4x8x8xf32> -> vector<4x8x8xf32>
    "tpu.trace_stop"() : () -> ()
    %cst_331 = arith.constant 0.353553385 : f32
    %658 = vector.broadcast %cst_331 : f32 to vector<4x8x8xf32>
    %659 = arith.mulf %657, %658 : vector<4x8x8xf32>
    %cst_332 = arith.constant dense<0xFF800000> : vector<4x8xf32>
    %660 = vector.multi_reduction <maximumf>, %659, %cst_332 [2] : vector<4x8x8xf32> to vector<4x8xf32>
    %661 = vector.shape_cast %660 : vector<4x8xf32> to vector<4x8x1xf32>
    %662 = vector.broadcast %661 : vector<4x8x1xf32> to vector<4x8x8xf32>
    %663 = arith.subf %659, %662 : vector<4x8x8xf32>
    %664 = math.exp %663 : vector<4x8x8xf32>
    %cst_333 = arith.constant dense<0.000000e+00> : vector<4x8xf32>
    %665 = vector.multi_reduction <add>, %664, %cst_333 [2] : vector<4x8x8xf32> to vector<4x8xf32>
    %666 = vector.shape_cast %665 : vector<4x8xf32> to vector<4x8x1xf32>
    %667 = tpu.reciprocal %666 {approx = true} : vector<4x8x1xf32> -> vector<4x8x1xf32>
    %668 = vector.broadcast %667 : vector<4x8x1xf32> to vector<4x8x8xf32>
    %669 = arith.mulf %664, %668 : vector<4x8x8xf32>
    "tpu.trace_start"() <{level = 10 : i32, message = "bqk,bkd->bqd"}> : () -> ()
    %cst_334 = arith.constant dense<0.000000e+00> : vector<4x8x8xf32>
    %670 = tpu.matmul %669, %656, %cst_334 {dimension_numbers = #tpu.dot_dimension_numbers<[2], [1], [1], [2], [0, 0, 0, 1, 1, 2], [0], [0]>} : vector<4x8x8xf32>, vector<4x8x8xf32>, vector<4x8x8xf32> -> vector<4x8x8xf32>
    "tpu.trace_stop"() : () -> ()
    %671 = vector.shape_cast %670 : vector<4x8x8xf32> to vector<32x8xf32>
    %672 = vector.extract_strided_slice %651 {offsets = [0, 0, 8], sizes = [4, 8, 8], strides = [1, 1, 1]} : vector<4x8x32xf32> to vector<4x8x8xf32>
    %673 = vector.extract_strided_slice %652 {offsets = [0, 0, 8], sizes = [4, 8, 8], strides = [1, 1, 1]} : vector<4x8x32xf32> to vector<4x8x8xf32>
    %674 = vector.extract_strided_slice %653 {offsets = [0, 0, 8], sizes = [4, 8, 8], strides = [1, 1, 1]} : vector<4x8x32xf32> to vector<4x8x8xf32>
    "tpu.trace_start"() <{level = 10 : i32, message = "bqd,bkd->bqk"}> : () -> ()
    %cst_335 = arith.constant dense<0.000000e+00> : vector<4x8x8xf32>
    %675 = tpu.matmul %672, %673, %cst_335 {dimension_numbers = #tpu.dot_dimension_numbers<[2], [2], [1], [1], [0, 0, 0, 1, 1, 1], [0], [0]>} : vector<4x8x8xf32>, vector<4x8x8xf32>, vector<4x8x8xf32> -> vector<4x8x8xf32>
    "tpu.trace_stop"() : () -> ()
    %cst_336 = arith.constant 0.353553385 : f32
    %676 = vector.broadcast %cst_336 : f32 to vector<4x8x8xf32>
    %677 = arith.mulf %675, %676 : vector<4x8x8xf32>
    %cst_337 = arith.constant dense<0xFF800000> : vector<4x8xf32>
    %678 = vector.multi_reduction <maximumf>, %677, %cst_337 [2] : vector<4x8x8xf32> to vector<4x8xf32>
    %679 = vector.shape_cast %678 : vector<4x8xf32> to vector<4x8x1xf32>
    %680 = vector.broadcast %679 : vector<4x8x1xf32> to vector<4x8x8xf32>
    %681 = arith.subf %677, %680 : vector<4x8x8xf32>
    %682 = math.exp %681 : vector<4x8x8xf32>
    %cst_338 = arith.constant dense<0.000000e+00> : vector<4x8xf32>
    %683 = vector.multi_reduction <add>, %682, %cst_338 [2] : vector<4x8x8xf32> to vector<4x8xf32>
    %684 = vector.shape_cast %683 : vector<4x8xf32> to vector<4x8x1xf32>
    %685 = tpu.reciprocal %684 {approx = true} : vector<4x8x1xf32> -> vector<4x8x1xf32>
    %686 = vector.broadcast %685 : vector<4x8x1xf32> to vector<4x8x8xf32>
    %687 = arith.mulf %682, %686 : vector<4x8x8xf32>
    "tpu.trace_start"() <{level = 10 : i32, message = "bqk,bkd->bqd"}> : () -> ()
    %cst_339 = arith.constant dense<0.000000e+00> : vector<4x8x8xf32>
    %688 = tpu.matmul %687, %674, %cst_339 {dimension_numbers = #tpu.dot_dimension_numbers<[2], [1], [1], [2], [0, 0, 0, 1, 1, 2], [0], [0]>} : vector<4x8x8xf32>, vector<4x8x8xf32>, vector<4x8x8xf32> -> vector<4x8x8xf32>
    "tpu.trace_stop"() : () -> ()
    %689 = vector.shape_cast %688 : vector<4x8x8xf32> to vector<32x8xf32>
    %690 = vector.extract_strided_slice %651 {offsets = [0, 0, 16], sizes = [4, 8, 8], strides = [1, 1, 1]} : vector<4x8x32xf32> to vector<4x8x8xf32>
    %691 = vector.extract_strided_slice %652 {offsets = [0, 0, 16], sizes = [4, 8, 8], strides = [1, 1, 1]} : vector<4x8x32xf32> to vector<4x8x8xf32>
    %692 = vector.extract_strided_slice %653 {offsets = [0, 0, 16], sizes = [4, 8, 8], strides = [1, 1, 1]} : vector<4x8x32xf32> to vector<4x8x8xf32>
    "tpu.trace_start"() <{level = 10 : i32, message = "bqd,bkd->bqk"}> : () -> ()
    %cst_340 = arith.constant dense<0.000000e+00> : vector<4x8x8xf32>
    %693 = tpu.matmul %690, %691, %cst_340 {dimension_numbers = #tpu.dot_dimension_numbers<[2], [2], [1], [1], [0, 0, 0, 1, 1, 1], [0], [0]>} : vector<4x8x8xf32>, vector<4x8x8xf32>, vector<4x8x8xf32> -> vector<4x8x8xf32>
    "tpu.trace_stop"() : () -> ()
    %cst_341 = arith.constant 0.353553385 : f32
    %694 = vector.broadcast %cst_341 : f32 to vector<4x8x8xf32>
    %695 = arith.mulf %693, %694 : vector<4x8x8xf32>
    %cst_342 = arith.constant dense<0xFF800000> : vector<4x8xf32>
    %696 = vector.multi_reduction <maximumf>, %695, %cst_342 [2] : vector<4x8x8xf32> to vector<4x8xf32>
    %697 = vector.shape_cast %696 : vector<4x8xf32> to vector<4x8x1xf32>
    %698 = vector.broadcast %697 : vector<4x8x1xf32> to vector<4x8x8xf32>
    %699 = arith.subf %695, %698 : vector<4x8x8xf32>
    %700 = math.exp %699 : vector<4x8x8xf32>
    %cst_343 = arith.constant dense<0.000000e+00> : vector<4x8xf32>
    %701 = vector.multi_reduction <add>, %700, %cst_343 [2] : vector<4x8x8xf32> to vector<4x8xf32>
    %702 = vector.shape_cast %701 : vector<4x8xf32> to vector<4x8x1xf32>
    %703 = tpu.reciprocal %702 {approx = true} : vector<4x8x1xf32> -> vector<4x8x1xf32>
    %704 = vector.broadcast %703 : vector<4x8x1xf32> to vector<4x8x8xf32>
    %705 = arith.mulf %700, %704 : vector<4x8x8xf32>
    "tpu.trace_start"() <{level = 10 : i32, message = "bqk,bkd->bqd"}> : () -> ()
    %cst_344 = arith.constant dense<0.000000e+00> : vector<4x8x8xf32>
    %706 = tpu.matmul %705, %692, %cst_344 {dimension_numbers = #tpu.dot_dimension_numbers<[2], [1], [1], [2], [0, 0, 0, 1, 1, 2], [0], [0]>} : vector<4x8x8xf32>, vector<4x8x8xf32>, vector<4x8x8xf32> -> vector<4x8x8xf32>
    "tpu.trace_stop"() : () -> ()
    %707 = vector.shape_cast %706 : vector<4x8x8xf32> to vector<32x8xf32>
    %708 = vector.extract_strided_slice %651 {offsets = [0, 0, 24], sizes = [4, 8, 8], strides = [1, 1, 1]} : vector<4x8x32xf32> to vector<4x8x8xf32>
    %709 = vector.extract_strided_slice %652 {offsets = [0, 0, 24], sizes = [4, 8, 8], strides = [1, 1, 1]} : vector<4x8x32xf32> to vector<4x8x8xf32>
    %710 = vector.extract_strided_slice %653 {offsets = [0, 0, 24], sizes = [4, 8, 8], strides = [1, 1, 1]} : vector<4x8x32xf32> to vector<4x8x8xf32>
    "tpu.trace_start"() <{level = 10 : i32, message = "bqd,bkd->bqk"}> : () -> ()
    %cst_345 = arith.constant dense<0.000000e+00> : vector<4x8x8xf32>
    %711 = tpu.matmul %708, %709, %cst_345 {dimension_numbers = #tpu.dot_dimension_numbers<[2], [2], [1], [1], [0, 0, 0, 1, 1, 1], [0], [0]>} : vector<4x8x8xf32>, vector<4x8x8xf32>, vector<4x8x8xf32> -> vector<4x8x8xf32>
    "tpu.trace_stop"() : () -> ()
    %cst_346 = arith.constant 0.353553385 : f32
    %712 = vector.broadcast %cst_346 : f32 to vector<4x8x8xf32>
    %713 = arith.mulf %711, %712 : vector<4x8x8xf32>
    %cst_347 = arith.constant dense<0xFF800000> : vector<4x8xf32>
    %714 = vector.multi_reduction <maximumf>, %713, %cst_347 [2] : vector<4x8x8xf32> to vector<4x8xf32>
    %715 = vector.shape_cast %714 : vector<4x8xf32> to vector<4x8x1xf32>
    %716 = vector.broadcast %715 : vector<4x8x1xf32> to vector<4x8x8xf32>
    %717 = arith.subf %713, %716 : vector<4x8x8xf32>
    %718 = math.exp %717 : vector<4x8x8xf32>
    %cst_348 = arith.constant dense<0.000000e+00> : vector<4x8xf32>
    %719 = vector.multi_reduction <add>, %718, %cst_348 [2] : vector<4x8x8xf32> to vector<4x8xf32>
    %720 = vector.shape_cast %719 : vector<4x8xf32> to vector<4x8x1xf32>
    %721 = tpu.reciprocal %720 {approx = true} : vector<4x8x1xf32> -> vector<4x8x1xf32>
    %722 = vector.broadcast %721 : vector<4x8x1xf32> to vector<4x8x8xf32>
    %723 = arith.mulf %718, %722 : vector<4x8x8xf32>
    "tpu.trace_start"() <{level = 10 : i32, message = "bqk,bkd->bqd"}> : () -> ()
    %cst_349 = arith.constant dense<0.000000e+00> : vector<4x8x8xf32>
    %724 = tpu.matmul %723, %710, %cst_349 {dimension_numbers = #tpu.dot_dimension_numbers<[2], [1], [1], [2], [0, 0, 0, 1, 1, 2], [0], [0]>} : vector<4x8x8xf32>, vector<4x8x8xf32>, vector<4x8x8xf32> -> vector<4x8x8xf32>
    "tpu.trace_stop"() : () -> ()
    %725 = vector.shape_cast %724 : vector<4x8x8xf32> to vector<32x8xf32>
    %726 = tpu.concatenate %671, %689, %707, %725 in 1 : vector<32x8xf32>, vector<32x8xf32>, vector<32x8xf32>, vector<32x8xf32> -> vector<32x32xf32>
    %cst_350 = arith.constant dense<0.000000e+00> : vector<32x32xf32>
    %727 = tpu.matmul %726, %610, %cst_350 {dimension_numbers = #tpu.dot_dimension_numbers<[1], [0], [0], [1], [0, 0, 1, 1], [], []>} : vector<32x32xf32>, vector<32x32xf32>, vector<32x32xf32> -> vector<32x32xf32>
    %728 = vector.broadcast %612 : vector<1x32xf32> to vector<32x32xf32>
    %729 = arith.addf %727, %728 : vector<32x32xf32>
    %730 = arith.addf %604, %729 : vector<32x32xf32>
    %cst_351 = arith.constant dense<0.000000e+00> : vector<32xf32>
    %731 = vector.multi_reduction <add>, %730, %cst_351 [1] : vector<32x32xf32> to vector<32xf32>
    %732 = vector.shape_cast %731 : vector<32xf32> to vector<32x1xf32>
    %cst_352 = arith.constant 3.200000e+01 : f32
    %733 = vector.broadcast %cst_352 : f32 to vector<32x1xf32>
    %734 = arith.divf %732, %733 : vector<32x1xf32>
    %735 = vector.broadcast %734 : vector<32x1xf32> to vector<32x32xf32>
    %736 = arith.subf %730, %735 : vector<32x32xf32>
    %737 = arith.mulf %736, %736 : vector<32x32xf32>
    %cst_353 = arith.constant dense<0.000000e+00> : vector<32xf32>
    %738 = vector.multi_reduction <add>, %737, %cst_353 [1] : vector<32x32xf32> to vector<32xf32>
    %739 = vector.shape_cast %738 : vector<32xf32> to vector<32x1xf32>
    %cst_354 = arith.constant 3.200000e+01 : f32
    %740 = vector.broadcast %cst_354 : f32 to vector<32x1xf32>
    %741 = arith.divf %739, %740 : vector<32x1xf32>
    %cst_355 = arith.constant 9.99999974E-6 : f32
    %742 = vector.broadcast %cst_355 : f32 to vector<32x1xf32>
    %743 = arith.addf %741, %742 : vector<32x1xf32>
    %744 = math.rsqrt %743 : vector<32x1xf32>
    %745 = vector.broadcast %744 : vector<32x1xf32> to vector<32x32xf32>
    %746 = arith.mulf %736, %745 : vector<32x32xf32>
    %747 = vector.broadcast %614 : vector<1x32xf32> to vector<32x32xf32>
    %748 = arith.mulf %746, %747 : vector<32x32xf32>
    %749 = vector.broadcast %616 : vector<1x32xf32> to vector<32x32xf32>
    %750 = arith.addf %748, %749 : vector<32x32xf32>
    %cst_356 = arith.constant dense<0.000000e+00> : vector<32x32xf32>
    %751 = tpu.matmul %750, %618, %cst_356 {dimension_numbers = #tpu.dot_dimension_numbers<[1], [0], [0], [1], [0, 0, 1, 1], [], []>} : vector<32x32xf32>, vector<32x32xf32>, vector<32x32xf32> -> vector<32x32xf32>
    %752 = vector.broadcast %620 : vector<1x32xf32> to vector<32x32xf32>
    %753 = arith.addf %751, %752 : vector<32x32xf32>
    %cst_357 = arith.constant dense<0.000000e+00> : vector<32x64xf32>
    %754 = tpu.matmul %321, %622, %cst_357 {dimension_numbers = #tpu.dot_dimension_numbers<[1], [0], [0], [1], [0, 0, 1, 1], [], []>} : vector<32x32xf32>, vector<32x64xf32>, vector<32x64xf32> -> vector<32x64xf32>
    %755 = vector.broadcast %624 : vector<1x64xf32> to vector<32x64xf32>
    %756 = arith.addf %754, %755 : vector<32x64xf32>
    %757 = vector.extract_strided_slice %756 {offsets = [0, 0], sizes = [32, 32], strides = [1, 1]} : vector<32x64xf32> to vector<32x32xf32>
    %758 = vector.extract_strided_slice %756 {offsets = [0, 32], sizes = [32, 32], strides = [1, 1]} : vector<32x64xf32> to vector<32x32xf32>
    %759 = vector.shape_cast %753 : vector<32x32xf32> to vector<4x8x32xf32>
    %760 = vector.shape_cast %757 : vector<32x32xf32> to vector<4x8x32xf32>
    %761 = vector.shape_cast %758 : vector<32x32xf32> to vector<4x8x32xf32>
    %762 = vector.extract_strided_slice %759 {offsets = [0, 0, 0], sizes = [4, 8, 8], strides = [1, 1, 1]} : vector<4x8x32xf32> to vector<4x8x8xf32>
    %763 = vector.extract_strided_slice %760 {offsets = [0, 0, 0], sizes = [4, 8, 8], strides = [1, 1, 1]} : vector<4x8x32xf32> to vector<4x8x8xf32>
    %764 = vector.extract_strided_slice %761 {offsets = [0, 0, 0], sizes = [4, 8, 8], strides = [1, 1, 1]} : vector<4x8x32xf32> to vector<4x8x8xf32>
    "tpu.trace_start"() <{level = 10 : i32, message = "bqd,bkd->bqk"}> : () -> ()
    %cst_358 = arith.constant dense<0.000000e+00> : vector<4x8x8xf32>
    %765 = tpu.matmul %762, %763, %cst_358 {dimension_numbers = #tpu.dot_dimension_numbers<[2], [2], [1], [1], [0, 0, 0, 1, 1, 1], [0], [0]>} : vector<4x8x8xf32>, vector<4x8x8xf32>, vector<4x8x8xf32> -> vector<4x8x8xf32>
    "tpu.trace_stop"() : () -> ()
    %cst_359 = arith.constant 0.353553385 : f32
    %766 = vector.broadcast %cst_359 : f32 to vector<4x8x8xf32>
    %767 = arith.mulf %765, %766 : vector<4x8x8xf32>
    %cst_360 = arith.constant dense<0xFF800000> : vector<4x8xf32>
    %768 = vector.multi_reduction <maximumf>, %767, %cst_360 [2] : vector<4x8x8xf32> to vector<4x8xf32>
    %769 = vector.shape_cast %768 : vector<4x8xf32> to vector<4x8x1xf32>
    %770 = vector.broadcast %769 : vector<4x8x1xf32> to vector<4x8x8xf32>
    %771 = arith.subf %767, %770 : vector<4x8x8xf32>
    %772 = math.exp %771 : vector<4x8x8xf32>
    %cst_361 = arith.constant dense<0.000000e+00> : vector<4x8xf32>
    %773 = vector.multi_reduction <add>, %772, %cst_361 [2] : vector<4x8x8xf32> to vector<4x8xf32>
    %774 = vector.shape_cast %773 : vector<4x8xf32> to vector<4x8x1xf32>
    %775 = tpu.reciprocal %774 {approx = true} : vector<4x8x1xf32> -> vector<4x8x1xf32>
    %776 = vector.broadcast %775 : vector<4x8x1xf32> to vector<4x8x8xf32>
    %777 = arith.mulf %772, %776 : vector<4x8x8xf32>
    "tpu.trace_start"() <{level = 10 : i32, message = "bqk,bkd->bqd"}> : () -> ()
    %cst_362 = arith.constant dense<0.000000e+00> : vector<4x8x8xf32>
    %778 = tpu.matmul %777, %764, %cst_362 {dimension_numbers = #tpu.dot_dimension_numbers<[2], [1], [1], [2], [0, 0, 0, 1, 1, 2], [0], [0]>} : vector<4x8x8xf32>, vector<4x8x8xf32>, vector<4x8x8xf32> -> vector<4x8x8xf32>
    "tpu.trace_stop"() : () -> ()
    %779 = vector.shape_cast %778 : vector<4x8x8xf32> to vector<32x8xf32>
    %780 = vector.extract_strided_slice %759 {offsets = [0, 0, 8], sizes = [4, 8, 8], strides = [1, 1, 1]} : vector<4x8x32xf32> to vector<4x8x8xf32>
    %781 = vector.extract_strided_slice %760 {offsets = [0, 0, 8], sizes = [4, 8, 8], strides = [1, 1, 1]} : vector<4x8x32xf32> to vector<4x8x8xf32>
    %782 = vector.extract_strided_slice %761 {offsets = [0, 0, 8], sizes = [4, 8, 8], strides = [1, 1, 1]} : vector<4x8x32xf32> to vector<4x8x8xf32>
    "tpu.trace_start"() <{level = 10 : i32, message = "bqd,bkd->bqk"}> : () -> ()
    %cst_363 = arith.constant dense<0.000000e+00> : vector<4x8x8xf32>
    %783 = tpu.matmul %780, %781, %cst_363 {dimension_numbers = #tpu.dot_dimension_numbers<[2], [2], [1], [1], [0, 0, 0, 1, 1, 1], [0], [0]>} : vector<4x8x8xf32>, vector<4x8x8xf32>, vector<4x8x8xf32> -> vector<4x8x8xf32>
    "tpu.trace_stop"() : () -> ()
    %cst_364 = arith.constant 0.353553385 : f32
    %784 = vector.broadcast %cst_364 : f32 to vector<4x8x8xf32>
    %785 = arith.mulf %783, %784 : vector<4x8x8xf32>
    %cst_365 = arith.constant dense<0xFF800000> : vector<4x8xf32>
    %786 = vector.multi_reduction <maximumf>, %785, %cst_365 [2] : vector<4x8x8xf32> to vector<4x8xf32>
    %787 = vector.shape_cast %786 : vector<4x8xf32> to vector<4x8x1xf32>
    %788 = vector.broadcast %787 : vector<4x8x1xf32> to vector<4x8x8xf32>
    %789 = arith.subf %785, %788 : vector<4x8x8xf32>
    %790 = math.exp %789 : vector<4x8x8xf32>
    %cst_366 = arith.constant dense<0.000000e+00> : vector<4x8xf32>
    %791 = vector.multi_reduction <add>, %790, %cst_366 [2] : vector<4x8x8xf32> to vector<4x8xf32>
    %792 = vector.shape_cast %791 : vector<4x8xf32> to vector<4x8x1xf32>
    %793 = tpu.reciprocal %792 {approx = true} : vector<4x8x1xf32> -> vector<4x8x1xf32>
    %794 = vector.broadcast %793 : vector<4x8x1xf32> to vector<4x8x8xf32>
    %795 = arith.mulf %790, %794 : vector<4x8x8xf32>
    "tpu.trace_start"() <{level = 10 : i32, message = "bqk,bkd->bqd"}> : () -> ()
    %cst_367 = arith.constant dense<0.000000e+00> : vector<4x8x8xf32>
    %796 = tpu.matmul %795, %782, %cst_367 {dimension_numbers = #tpu.dot_dimension_numbers<[2], [1], [1], [2], [0, 0, 0, 1, 1, 2], [0], [0]>} : vector<4x8x8xf32>, vector<4x8x8xf32>, vector<4x8x8xf32> -> vector<4x8x8xf32>
    "tpu.trace_stop"() : () -> ()
    %797 = vector.shape_cast %796 : vector<4x8x8xf32> to vector<32x8xf32>
    %798 = vector.extract_strided_slice %759 {offsets = [0, 0, 16], sizes = [4, 8, 8], strides = [1, 1, 1]} : vector<4x8x32xf32> to vector<4x8x8xf32>
    %799 = vector.extract_strided_slice %760 {offsets = [0, 0, 16], sizes = [4, 8, 8], strides = [1, 1, 1]} : vector<4x8x32xf32> to vector<4x8x8xf32>
    %800 = vector.extract_strided_slice %761 {offsets = [0, 0, 16], sizes = [4, 8, 8], strides = [1, 1, 1]} : vector<4x8x32xf32> to vector<4x8x8xf32>
    "tpu.trace_start"() <{level = 10 : i32, message = "bqd,bkd->bqk"}> : () -> ()
    %cst_368 = arith.constant dense<0.000000e+00> : vector<4x8x8xf32>
    %801 = tpu.matmul %798, %799, %cst_368 {dimension_numbers = #tpu.dot_dimension_numbers<[2], [2], [1], [1], [0, 0, 0, 1, 1, 1], [0], [0]>} : vector<4x8x8xf32>, vector<4x8x8xf32>, vector<4x8x8xf32> -> vector<4x8x8xf32>
    "tpu.trace_stop"() : () -> ()
    %cst_369 = arith.constant 0.353553385 : f32
    %802 = vector.broadcast %cst_369 : f32 to vector<4x8x8xf32>
    %803 = arith.mulf %801, %802 : vector<4x8x8xf32>
    %cst_370 = arith.constant dense<0xFF800000> : vector<4x8xf32>
    %804 = vector.multi_reduction <maximumf>, %803, %cst_370 [2] : vector<4x8x8xf32> to vector<4x8xf32>
    %805 = vector.shape_cast %804 : vector<4x8xf32> to vector<4x8x1xf32>
    %806 = vector.broadcast %805 : vector<4x8x1xf32> to vector<4x8x8xf32>
    %807 = arith.subf %803, %806 : vector<4x8x8xf32>
    %808 = math.exp %807 : vector<4x8x8xf32>
    %cst_371 = arith.constant dense<0.000000e+00> : vector<4x8xf32>
    %809 = vector.multi_reduction <add>, %808, %cst_371 [2] : vector<4x8x8xf32> to vector<4x8xf32>
    %810 = vector.shape_cast %809 : vector<4x8xf32> to vector<4x8x1xf32>
    %811 = tpu.reciprocal %810 {approx = true} : vector<4x8x1xf32> -> vector<4x8x1xf32>
    %812 = vector.broadcast %811 : vector<4x8x1xf32> to vector<4x8x8xf32>
    %813 = arith.mulf %808, %812 : vector<4x8x8xf32>
    "tpu.trace_start"() <{level = 10 : i32, message = "bqk,bkd->bqd"}> : () -> ()
    %cst_372 = arith.constant dense<0.000000e+00> : vector<4x8x8xf32>
    %814 = tpu.matmul %813, %800, %cst_372 {dimension_numbers = #tpu.dot_dimension_numbers<[2], [1], [1], [2], [0, 0, 0, 1, 1, 2], [0], [0]>} : vector<4x8x8xf32>, vector<4x8x8xf32>, vector<4x8x8xf32> -> vector<4x8x8xf32>
    "tpu.trace_stop"() : () -> ()
    %815 = vector.shape_cast %814 : vector<4x8x8xf32> to vector<32x8xf32>
    %816 = vector.extract_strided_slice %759 {offsets = [0, 0, 24], sizes = [4, 8, 8], strides = [1, 1, 1]} : vector<4x8x32xf32> to vector<4x8x8xf32>
    %817 = vector.extract_strided_slice %760 {offsets = [0, 0, 24], sizes = [4, 8, 8], strides = [1, 1, 1]} : vector<4x8x32xf32> to vector<4x8x8xf32>
    %818 = vector.extract_strided_slice %761 {offsets = [0, 0, 24], sizes = [4, 8, 8], strides = [1, 1, 1]} : vector<4x8x32xf32> to vector<4x8x8xf32>
    "tpu.trace_start"() <{level = 10 : i32, message = "bqd,bkd->bqk"}> : () -> ()
    %cst_373 = arith.constant dense<0.000000e+00> : vector<4x8x8xf32>
    %819 = tpu.matmul %816, %817, %cst_373 {dimension_numbers = #tpu.dot_dimension_numbers<[2], [2], [1], [1], [0, 0, 0, 1, 1, 1], [0], [0]>} : vector<4x8x8xf32>, vector<4x8x8xf32>, vector<4x8x8xf32> -> vector<4x8x8xf32>
    "tpu.trace_stop"() : () -> ()
    %cst_374 = arith.constant 0.353553385 : f32
    %820 = vector.broadcast %cst_374 : f32 to vector<4x8x8xf32>
    %821 = arith.mulf %819, %820 : vector<4x8x8xf32>
    %cst_375 = arith.constant dense<0xFF800000> : vector<4x8xf32>
    %822 = vector.multi_reduction <maximumf>, %821, %cst_375 [2] : vector<4x8x8xf32> to vector<4x8xf32>
    %823 = vector.shape_cast %822 : vector<4x8xf32> to vector<4x8x1xf32>
    %824 = vector.broadcast %823 : vector<4x8x1xf32> to vector<4x8x8xf32>
    %825 = arith.subf %821, %824 : vector<4x8x8xf32>
    %826 = math.exp %825 : vector<4x8x8xf32>
    %cst_376 = arith.constant dense<0.000000e+00> : vector<4x8xf32>
    %827 = vector.multi_reduction <add>, %826, %cst_376 [2] : vector<4x8x8xf32> to vector<4x8xf32>
    %828 = vector.shape_cast %827 : vector<4x8xf32> to vector<4x8x1xf32>
    %829 = tpu.reciprocal %828 {approx = true} : vector<4x8x1xf32> -> vector<4x8x1xf32>
    %830 = vector.broadcast %829 : vector<4x8x1xf32> to vector<4x8x8xf32>
    %831 = arith.mulf %826, %830 : vector<4x8x8xf32>
    "tpu.trace_start"() <{level = 10 : i32, message = "bqk,bkd->bqd"}> : () -> ()
    %cst_377 = arith.constant dense<0.000000e+00> : vector<4x8x8xf32>
    %832 = tpu.matmul %831, %818, %cst_377 {dimension_numbers = #tpu.dot_dimension_numbers<[2], [1], [1], [2], [0, 0, 0, 1, 1, 2], [0], [0]>} : vector<4x8x8xf32>, vector<4x8x8xf32>, vector<4x8x8xf32> -> vector<4x8x8xf32>
    "tpu.trace_stop"() : () -> ()
    %833 = vector.shape_cast %832 : vector<4x8x8xf32> to vector<32x8xf32>
    %834 = tpu.concatenate %779, %797, %815, %833 in 1 : vector<32x8xf32>, vector<32x8xf32>, vector<32x8xf32>, vector<32x8xf32> -> vector<32x32xf32>
    %cst_378 = arith.constant dense<0.000000e+00> : vector<32x32xf32>
    %835 = tpu.matmul %834, %626, %cst_378 {dimension_numbers = #tpu.dot_dimension_numbers<[1], [0], [0], [1], [0, 0, 1, 1], [], []>} : vector<32x32xf32>, vector<32x32xf32>, vector<32x32xf32> -> vector<32x32xf32>
    %836 = vector.broadcast %628 : vector<1x32xf32> to vector<32x32xf32>
    %837 = arith.addf %835, %836 : vector<32x32xf32>
    %838 = arith.addf %750, %837 : vector<32x32xf32>
    %cst_379 = arith.constant dense<0.000000e+00> : vector<32xf32>
    %839 = vector.multi_reduction <add>, %838, %cst_379 [1] : vector<32x32xf32> to vector<32xf32>
    %840 = vector.shape_cast %839 : vector<32xf32> to vector<32x1xf32>
    %cst_380 = arith.constant 3.200000e+01 : f32
    %841 = vector.broadcast %cst_380 : f32 to vector<32x1xf32>
    %842 = arith.divf %840, %841 : vector<32x1xf32>
    %843 = vector.broadcast %842 : vector<32x1xf32> to vector<32x32xf32>
    %844 = arith.subf %838, %843 : vector<32x32xf32>
    %845 = arith.mulf %844, %844 : vector<32x32xf32>
    %cst_381 = arith.constant dense<0.000000e+00> : vector<32xf32>
    %846 = vector.multi_reduction <add>, %845, %cst_381 [1] : vector<32x32xf32> to vector<32xf32>
    %847 = vector.shape_cast %846 : vector<32xf32> to vector<32x1xf32>
    %cst_382 = arith.constant 3.200000e+01 : f32
    %848 = vector.broadcast %cst_382 : f32 to vector<32x1xf32>
    %849 = arith.divf %847, %848 : vector<32x1xf32>
    %cst_383 = arith.constant 9.99999974E-6 : f32
    %850 = vector.broadcast %cst_383 : f32 to vector<32x1xf32>
    %851 = arith.addf %849, %850 : vector<32x1xf32>
    %852 = math.rsqrt %851 : vector<32x1xf32>
    %853 = vector.broadcast %852 : vector<32x1xf32> to vector<32x32xf32>
    %854 = arith.mulf %844, %853 : vector<32x32xf32>
    %855 = vector.broadcast %630 : vector<1x32xf32> to vector<32x32xf32>
    %856 = arith.mulf %854, %855 : vector<32x32xf32>
    %857 = vector.broadcast %632 : vector<1x32xf32> to vector<32x32xf32>
    %858 = arith.addf %856, %857 : vector<32x32xf32>
    %cst_384 = arith.constant dense<0.000000e+00> : vector<32x64xf32>
    %859 = tpu.matmul %858, %634, %cst_384 {dimension_numbers = #tpu.dot_dimension_numbers<[1], [0], [0], [1], [0, 0, 1, 1], [], []>} : vector<32x32xf32>, vector<32x64xf32>, vector<32x64xf32> -> vector<32x64xf32>
    %860 = vector.broadcast %636 : vector<1x64xf32> to vector<32x64xf32>
    %861 = arith.addf %859, %860 : vector<32x64xf32>
    %cst_385 = arith.constant 0.000000e+00 : f32
    %862 = vector.broadcast %cst_385 : f32 to vector<32x64xf32>
    %863 = arith.maximumf %861, %862 : vector<32x64xf32>
    %cst_386 = arith.constant dense<0.000000e+00> : vector<32x32xf32>
    %864 = tpu.matmul %863, %638, %cst_386 {dimension_numbers = #tpu.dot_dimension_numbers<[1], [0], [0], [1], [0, 0, 1, 1], [], []>} : vector<32x64xf32>, vector<64x32xf32>, vector<32x32xf32> -> vector<32x32xf32>
    %865 = vector.broadcast %640 : vector<1x32xf32> to vector<32x32xf32>
    %866 = arith.addf %864, %865 : vector<32x32xf32>
    %867 = arith.addf %858, %866 : vector<32x32xf32>
    %cst_387 = arith.constant dense<0.000000e+00> : vector<32xf32>
    %868 = vector.multi_reduction <add>, %867, %cst_387 [1] : vector<32x32xf32> to vector<32xf32>
    %869 = vector.shape_cast %868 : vector<32xf32> to vector<32x1xf32>
    %cst_388 = arith.constant 3.200000e+01 : f32
    %870 = vector.broadcast %cst_388 : f32 to vector<32x1xf32>
    %871 = arith.divf %869, %870 : vector<32x1xf32>
    %872 = vector.broadcast %871 : vector<32x1xf32> to vector<32x32xf32>
    %873 = arith.subf %867, %872 : vector<32x32xf32>
    %874 = arith.mulf %873, %873 : vector<32x32xf32>
    %cst_389 = arith.constant dense<0.000000e+00> : vector<32xf32>
    %875 = vector.multi_reduction <add>, %874, %cst_389 [1] : vector<32x32xf32> to vector<32xf32>
    %876 = vector.shape_cast %875 : vector<32xf32> to vector<32x1xf32>
    %cst_390 = arith.constant 3.200000e+01 : f32
    %877 = vector.broadcast %cst_390 : f32 to vector<32x1xf32>
    %878 = arith.divf %876, %877 : vector<32x1xf32>
    %cst_391 = arith.constant 9.99999974E-6 : f32
    %879 = vector.broadcast %cst_391 : f32 to vector<32x1xf32>
    %880 = arith.addf %878, %879 : vector<32x1xf32>
    %881 = math.rsqrt %880 : vector<32x1xf32>
    %882 = vector.broadcast %881 : vector<32x1xf32> to vector<32x32xf32>
    %883 = arith.mulf %873, %882 : vector<32x32xf32>
    %884 = vector.broadcast %642 : vector<1x32xf32> to vector<32x32xf32>
    %885 = arith.mulf %883, %884 : vector<32x32xf32>
    %886 = vector.broadcast %644 : vector<1x32xf32> to vector<32x32xf32>
    %887 = arith.addf %885, %886 : vector<32x32xf32>
    %c0_392 = arith.constant 0 : index
    %c0_393 = arith.constant 0 : index
    %888 = vector.load %arg35[%c0_392, %c0_393] : memref<32x32xf32, #tpu.memory_space<vmem>>, vector<32x32xf32>
    tpu.vector_store %arg35[%c0_392, %c0_393], %887 {strides = array<i32>} : memref<32x32xf32, #tpu.memory_space<vmem>>, vector<32x32xf32>,
    return
  }
}

</mosaic_0001>

<bundles_post_ra>
// kernel: forward.1
= control target key start
LH: loop header
LB: loop body
LE: loop exit
PB: predicated region body
PF: predicated region fallthrough
CT: control target
= control target key end

     0   :  { %s21049_s3 = smov 3   ;;  %s21050_s7 = smov 1   ;;  %vm184_vm0 = vcmask 261120   ;;  %vm288_vm1 = vcmask 64512   ;;  %vm465_vm3 = vcmask 130048   ;;  %vm1952_vm4 = vcmask 195584   ;;  %s23595_s0 = inlined_call_operand.smem [shape: u32[36], index: -1, kind: input, shape index: {}] }
   0x1   :  { %s21105_s6 = sld [smem:[%s23595_s0 + %s21049_s3]]   ;;  %s21051_s11 = smov 4   ;;  %vm21156_vm2 = vmpackc.low %vm288_vm1, %vm288_vm1  ;;  %vm2250_vm5 = vcmask 523264   ;;  %vm21077_vm6 = vmmov 0  }
   0x2   :  { %s21110_s10 = sld [smem:[%s23595_s0 + %s21050_s7]]   ;;  %s21052_s15 = smov 96  }
   0x3   :  { %s21127_s14 = sld [smem:[%s23595_s0 + %s21051_s11]]   ;;  %s21053_s16 = smov 64  }
   0x4   :  { %s21054_s17 = smov 88   ;;  %s23616_s18 = smov 120  }
   0x5   :  { %s23614_s19 = smov 56   ;;  %s23612_s20 = smov 80  }
   0x6   :  { %s23610_s21 = smov 112   ;;  %s23608_s22 = smov 48  }
   0x7   :  { %v150_v0 = vld [vmem:[%s21105_s6] sm:$0xff]  ;;  %v151_v1 = vld [vmem:[%s21105_s6 + $0x8] sm:$0xff]  ;;  %v152_v2 = vld [vmem:[%s21105_s6 + $0x10] sm:$0xff]  ;;  %s23606_s23 = smov 72   ;;  %s23604_s24 = smov 104  }
   0x8   :  { %v19993_v3 = vpack.c.bf16 %v151_v1, %v150_v0  ;;  %v153_v4 = vld [vmem:[%s21105_s6 + $0x18] sm:$0xff]  ;;  %v146_v5 = vld [vmem:[%s21110_s10] sm:$0xff]  ;;  %v147_v7 = vld [vmem:[%s21110_s10 + $0x8] sm:$0xff]  ;;  %s23602_s25 = smov 40   ;;  %s23600_s26 = smov 8  }
   0x9   :  { %v19997_v6 = vpack.c.bf16 %v153_v4, %v152_v2  ;;  %18783 = vmatprep.mubr.msk.f32.mxu1 %vm184_vm0, %v146_v5  ;;  %v148_v8 = vld [vmem:[%s21110_s10 + $0x10] sm:$0xff]  ;;  %v149_v9 = vld [vmem:[%s21110_s10 + $0x18] sm:$0xff]  ;;  %v17696_v10 = vld [vmem:[%s21127_s14] ss:$0 sm:$0xff]  ;;  %s23598_s27 = smov 16   ;;  %s21065_s28 = smov 5  }
   0xa   :  { %19994 = vmatprep.subr.bf16.mxu1 %v19993_v3  ;;  %s21337_s1 = sld [smem:[%s23595_s0 + %s21065_s28]]   ;;  %s23596_s2 = smov 24  }
   0xb   :  { %19996 = vmatpush3.bf16.msra.mxu1 %v19993_v3  ;;  %s21067_s3 = smov 6   ;;  %s21068_s8 = smov 9  }
   0xc   :  { %19998 = vmatprep.subr.bf16.mxu1 %v19997_v6  ;;  %s21378_s7 = sld [smem:[%s23595_s0 + %s21067_s3]]   ;;  %s21069_s12 = smov 11  }
   0xd   :  { %s21412_s11 = sld [smem:[%s23595_s0 + %s21068_s8]]   ;;  %s21070_s30 = smov 7  }
   0xe   :  { %s21421_s29 = sld [smem:[%s23595_s0 + %s21069_s12]]   ;;  %s21071_s12 = smov 10  }
   0xf   :  { %20000 = vmatpush3.bf16.msra.mxu1 %v19997_v6  ;;  %s21432_s5 = sld [smem:[%s23595_s0 + %s21070_s30]]   ;;  %s21072_s3 = smov 12  }
  0x10   :  { %s21455_s30 = sld [smem:[%s23595_s0 + %s21071_s12]]   ;;  %s21073_s12 = smov 13  }
  0x11   :  { %s21465_s9 = sld [smem:[%s23595_s0 + %s21072_s3]]   ;;  %s21074_s4 = smov 14  }
  0x12   :  { %18784 = vmatmul.mubr.msk.f32.vlgmr.msra.gmra.mrb[0].mxu1 %vm184_vm0, %v147_v7  ;;  %s21483_s3 = sld [smem:[%s23595_s0 + %s21073_s12]]   ;;  %s21078_s13 = smov 17  }
  0x13   :  { %18786 = vmatprep.mubr.msk.f32.mxu1 %vm184_vm0, %v148_v8  ;;  %s21844_s12 = sld [smem:[%s23595_s0 + %s23598_s27]]   ;;  %s21086_s8 = smov 25  }
  0x16   :  { %18787 = vmatmul.mubr.msk.f32.gmra.mrb[2].mxu1 %vm184_vm0, %v149_v9 }
  0xe5   :  { %v18785_v11 = vpop.f32.mrb[0].mxu1 }
  0xe6   :  { %v21130_v12 = vadd.f32 %v18785_v11, %v17696_v10  ;;  %v263_v13 = vpop.f32.mrb[1].mxu1 }
  0xe7   :  { %v21132_v14 = vadd.f32 %v17696_v10, %v263_v13 }
  0xe9   :  { %v18788_v15 = vpop.f32.mrb[2].mxu1  ;;  %18793 = vmatprep.mubr.msk.f32.mxu1 %vm288_vm1, %v21132_v14  ;;  %v21138_v16 = vpack.i.bf16 %v21130_v12, %v21132_v14 }
  0xea   :  { %v21140_v17 = vadd.f32 %v18788_v15, %v17696_v10  ;;  %v273_v18 = vpop.f32.mrb[3].mxu1 }
  0xeb   :  { %v21142_v19 = vadd.f32 %v17696_v10, %v273_v18  ;;  %20418 = vrot.lane.b32.xlu0 %v21138_v16, %s21052_s15 }
  0xed   :  { %v21148_v20 = vpack.i.bf16 %v21140_v17, %v21142_v19  ;;  %18800 = vmatprep.mubr.msk.f32.mxu0 %vm288_vm1, %v21142_v19 }
  0xef   :  { %20423 = vrot.lane.b32.xlu0 %v21148_v20, %s21052_s15 }
 0x15d   :  { %v20419_v21 = vpop.permute.xlu0 %20418 }
 0x15e   :  { %v20421_v22 = vunpack.i.h.bf16 %v20419_v21  ;;  %v20420_v23 = vunpack.i.l.bf16 %v20419_v21 }
 0x160   :  { %v20001_v25 = vpack.c.bf16 %v20421_v22, %v20420_v23 }
 0x161   :  { %v20424_v26 = vpop.permute.xlu0 %20423 }
 0x162   :  { %20003 = vmatprep.subr.msk.bf16.mxu1 %vm21156_vm2, %v20001_v25  ;;  %v20426_v27 = vunpack.i.h.bf16 %v20424_v26  ;;  %v20425_v28 = vunpack.i.l.bf16 %v20424_v26 }
 0x163   :  { %20006 = vmatpush3.bf16.xpose.msk.msra.mxu1 %vm21156_vm2, %v20001_v25 }
 0x164   :  { %v20007_v29 = vpack.c.bf16 %v20426_v27, %v20425_v28 }
 0x166   :  { %20009 = vmatprep.subr.msk.bf16.mxu0 %vm21156_vm2, %v20007_v29 }
 0x167   :  { %20012 = vmatpush3.bf16.xpose.msk.msra.mxu0 %vm21156_vm2, %v20007_v29 }
 0x16a   :  { %18794 = vmatmul.mubr.msk.f32.vlgmr.msra.gmra.mrb[4].mxu1 %vm288_vm1, %v21130_v12 }
 0x16e   :  { %18801 = vmatmul.mubr.msk.f32.vlgmr.msra.gmra.mrb[0].mxu0 %vm288_vm1, %v21140_v17 }
 0x23d   :  { %v18795_v30 = vpop.f32.mrb[4].mxu1 }
 0x23e   :  { %v363_v31 = vpop.f32.mrb[5].mxu1  ;;  %v462_v33 = vmul.f32 0.35355338, %v18795_v30 }
 0x23f   :  { %v461_v32 = vmul.f32 0.35355338, %v363_v31 }
 0x240   :  { %v469_v40 = vsel %vm465_vm3, %v462_v33, -inf }
 0x241   :  { %v18802_v34 = vpop.f32.mrb[0].mxu0  ;;  %v466_v35 = vsel %vm465_vm3, %v461_v32, -inf }
 0x242   :  { %v452_v36 = vpop.f32.mrb[1].mxu0  ;;  %467 = vmax.xlane.f32.xlu1 %v466_v35  ;;  %v464_v38 = vmul.f32 0.35355338, %v18802_v34 }
 0x243   :  { %v463_v37 = vmul.f32 0.35355338, %v452_v36 }
 0x244   :  { %v475_v41 = vsel %vm465_vm3, %v464_v38, -inf }
 0x245   :  { %v472_v39 = vsel %vm465_vm3, %v463_v37, -inf }
 0x246   :  { %473 = vmax.xlane.f32.xlu0 %v472_v39  ;;  %470 = vmax.xlane.f32.xlu1 %v469_v40 }
 0x24a   :  { %476 = vmax.xlane.f32.xlu1 %v475_v41 }
 0x25b   :  { %20428 = vrot.lane.b32.xlu1 %v21138_v16, %s21053_s16 }
 0x25c   :  { %20433 = vrot.lane.b32.xlu0 %v21148_v20, %s21053_s16 }
 0x25f   :  { %20438 = vrot.lane.b32.xlu1 %v21138_v16, %s21054_s17 }
 0x260   :  { %775 = vrot.lane.b32.xlu0 %v21142_v19, %s23616_s18 }
 0x263   :  { %684 = vrot.lane.b32.xlu1 %v21132_v14, %s23616_s18 }
 0x267   :  { %20443 = vrot.lane.b32.xlu1 %v21148_v20, %s21054_s17 }
 0x26b   :  { %686 = vrot.lane.b32.xlu1 %v21130_v12, %s23616_s18 }
 0x2cf   :  { %v468_v42 = vpop.xlane.xlu1 %467 }
 0x2d0   :  { %v478_v43 = vsub.f32 %v461_v32, %v468_v42 }
 0x2d2   :  { %v482_v48 = vmul.f32 1.442695, %v478_v43 }
 0x2d3   :  { %v474_v44 = vpop.xlane.xlu0 %473  ;;  %v471_v45 = vpop.xlane.xlu1 %470 }
 0x2d4   :  { %v479_v46 = vsub.f32 %v462_v33, %v471_v45  ;;  %v480_v52 = vsub.f32 %v463_v37, %v474_v44 }
 0x2d6   :  { %v484_v47 = vmul.f32 1.442695, %v479_v46  ;;  %v486_v60 = vmul.f32 1.442695, %v480_v52 }
 0x2d7   :  { %v477_v49 = vpop.xlane.xlu1 %476  ;;  %v20434_v51 = vpop.permute.xlu0 %20433 }
 0x2d8   :  { %v481_v50 = vsub.f32 %v464_v38, %v477_v49  ;;  %20577 = vpow2.f32 %v484_v47  ;;  %v20436_v55 = vunpack.i.h.bf16 %v20434_v51  ;;  %v20435_v56 = vunpack.i.l.bf16 %v20434_v51 }
 0x2d9   :  { %20579 = vpow2.f32 %v482_v48 }
 0x2da   :  { %v488_v53 = vmul.f32 1.442695, %v481_v50  ;;  %v20017_v0 = vpack.c.bf16 %v20436_v55, %v20435_v56 }
 0x2db   :  { %v20429_v54 = vpop.permute.xlu1 %20428  ;;  %v776_v35 = vpop.permute.xlu0 %775 }
 0x2dc   :  { %v20431_v57 = vunpack.i.h.bf16 %v20429_v54  ;;  %v20430_v58 = vunpack.i.l.bf16 %v20429_v54  ;;  %20581 = vpow2.f32 %v488_v53 }
 0x2dd   :  { %20583 = vpow2.f32 %v486_v60 }
 0x2de   :  { %v20013_v59 = vpack.c.bf16 %v20431_v57, %v20430_v58 }
 0x2df   :  { %v20439_v61 = vpop.permute.xlu1 %20438 }
 0x2e0   :  { %v20441_v62 = vunpack.i.h.bf16 %v20439_v61  ;;  %v20440_v63 = vunpack.i.l.bf16 %v20439_v61  ;;  %20014 = vmatprep.subr.bf16.mxu1 %v20013_v59 }
 0x2e1   :  { %20016 = vmatpush3.bf16.msra.mxu1 %v20013_v59 }
 0x2e2   :  { %v20021_v1 = vpack.c.bf16 %v20441_v62, %v20440_v63  ;;  %20018 = vmatprep.subr.bf16.mxu1 %v20017_v0  ;;  %v20578_v2 = vpop.eup %20577 }
 0x2e3   :  { %v685_v3 = vpop.permute.xlu1 %684  ;;  %v493_v4 = vsel %vm465_vm3, %v20578_v2, 0.0  ;;  %v20580_v5 = vpop.eup %20579 }
 0x2e4   :  { %20023 = vmatprep.subr.msk.bf16.mxu0 %vm21156_vm2, %v20021_v1  ;;  %18821 = vmatprep.mubr.msk.f32.mxu0 %vm288_vm1, %v685_v3  ;;  %v490_v7 = vsel %vm465_vm3, %v20580_v5, 0.0 }
 0x2e5   :  { %494 = vadd.xlane.f32.xlu1 %v493_v4  ;;  %20026 = vmatpush3.bf16.xpose.msk.msra.mxu0 %vm21156_vm2, %v20021_v1 }
 0x2e6   :  { %v20582_v8 = vpop.eup %20581 }
 0x2e7   :  { %v20444_v6 = vpop.permute.xlu1 %20443  ;;  %v499_v10 = vsel %vm465_vm3, %v20582_v8, 0.0  ;;  %v20584_v11 = vpop.eup %20583 }
 0x2e8   :  { %v496_v13 = vsel %vm465_vm3, %v20584_v11, 0.0  ;;  %v20446_v26 = vunpack.i.h.bf16 %v20444_v6  ;;  %v20445_v27 = vunpack.i.l.bf16 %v20444_v6 }
 0x2e9   :  { %491 = vadd.xlane.f32.xlu1 %v490_v7 }
 0x2ea   :  { %v20027_v30 = vpack.c.bf16 %v20446_v26, %v20445_v27 }
 0x2eb   :  { %v687_v9 = vpop.permute.xlu1 %686 }
 0x2ec   :  { %18822 = vmatmul.mubr.msk.f32.vlgmr.msra.gmra.mrb[2].mxu0 %vm288_vm1, %v687_v9 }
 0x2ed   :  { %500 = vadd.xlane.f32.xlu1 %v499_v10 }
 0x2f1   :  { %497 = vadd.xlane.f32.xlu1 %v496_v13 }
 0x302   :  { %777 = vrot.lane.b32.xlu1 %v21140_v17, %s23616_s18 }
 0x372   :  { %v495_v15 = vpop.xlane.xlu1 %494 }
 0x373   :  { %20585 = vrcp.f32 %v495_v15 }
 0x376   :  { %v492_v18 = vpop.xlane.xlu1 %491 }
 0x377   :  { %20587 = vrcp.f32 %v492_v18 }
 0x37a   :  { %v501_v21 = vpop.xlane.xlu1 %500 }
 0x37b   :  { %20589 = vrcp.f32 %v501_v21 }
 0x37d   :  { %v20586_v23 = vpop.eup %20585 }
 0x37e   :  { %v498_v22 = vpop.xlane.xlu1 %497  ;;  %v507_v29 = vmul.f32 %v20586_v23, %v20578_v2 }
 0x37f   :  { %20591 = vrcp.f32 %v498_v22 }
 0x381   :  { %v20588_v25 = vpop.eup %20587 }
 0x382   :  { %v506_v28 = vmul.f32 %v20588_v25, %v20580_v5  ;;  %v778_v36 = vpop.permute.xlu1 %777 }
 0x384   :  { %18807 = vmatprep.mubr.msk.f32.mxu1 %vm465_vm3, %v506_v28 }
 0x385   :  { %18808 = vmatmul.mubr.msk.f32.vlgmr.msra.gmra.mrb[6].mxu1 %vm465_vm3, %v507_v29  ;;  %v20590_v31 = vpop.eup %20589 }
 0x386   :  { %20020 = vmatpush3.bf16.msra.mxu1 %v20017_v0  ;;  %v509_v34 = vmul.f32 %v20590_v31, %v20582_v8 }
 0x387   :  { %20029 = vmatprep.subr.msk.bf16.mxu1 %vm21156_vm2, %v20027_v30 }
 0x389   :  { %v20592_v32 = vpop.eup %20591 }
 0x38a   :  { %v508_v33 = vmul.f32 %v20592_v32, %v20584_v11 }
 0x38c   :  { %18814 = vmatprep.mubr.msk.f32.mxu1 %vm465_vm3, %v508_v33 }
 0x38d   :  { %18815 = vmatmul.mubr.msk.f32.vlgmr.msra.gmra.mrb[8].mxu1 %vm465_vm3, %v509_v34 }
 0x38e   :  { %18828 = vmatprep.mubr.msk.f32.mxu1 %vm288_vm1, %v776_v35 }
 0x38f   :  { %20032 = vmatpush3.bf16.xpose.msk.msra.mxu1 %vm21156_vm2, %v20027_v30 }
 0x396   :  { %18829 = vmatmul.mubr.msk.f32.vlgmr.msra.gmra.mrb[10].mxu1 %vm288_vm1, %v778_v36 }
 0x3bf   :  { %v18823_v37 = vpop.f32.mrb[2].mxu0 }
 0x3c0   :  { %v867_v38 = vmul.f32 0.35355338, %v18823_v37  ;;  %v766_v39 = vpop.f32.mrb[3].mxu0 }
 0x3c1   :  { %v866_v40 = vmul.f32 0.35355338, %v766_v39 }
 0x3c2   :  { %v873_v41 = vsel %vm465_vm3, %v867_v38, -inf }
 0x3c3   :  { %874 = vmax.xlane.f32.xlu1 %v873_v41  ;;  %v870_v42 = vsel %vm465_vm3, %v866_v40, -inf }
 0x3c4   :  { %871 = vmax.xlane.f32.xlu0 %v870_v42 }
 0x450   :  { %v875_v48 = vpop.xlane.xlu1 %874 }
 0x451   :  { %v872_v43 = vpop.xlane.xlu0 %871  ;;  %v883_v50 = vsub.f32 %v867_v38, %v875_v48 }
 0x452   :  { %v882_v44 = vsub.f32 %v866_v40, %v872_v43 }
 0x453   :  { %v888_v54 = vmul.f32 1.442695, %v883_v50 }
 0x454   :  { %v886_v45 = vmul.f32 1.442695, %v882_v44 }
 0x456   :  { %20593 = vpow2.f32 %v886_v45 }
 0x457   :  { %20595 = vpow2.f32 %v888_v54 }
 0x458   :  { %v21214_v46 = vpop.f32.mrb[6].mxu1 }
 0x459   :  { %v21216_v47 = vpop.f32.mrb[7].mxu1 }
 0x460   :  { %v20594_v49 = vpop.eup %20593  ;;  %v21218_v51 = vpop.f32.mrb[8].mxu1 }
 0x461   :  { %v21220_v52 = vpop.f32.mrb[9].mxu1  ;;  %v894_v53 = vsel %vm465_vm3, %v20594_v49, 0.0  ;;  %v20596_v61 = vpop.eup %20595 }
 0x462   :  { %895 = vadd.xlane.f32.xlu1 %v894_v53  ;;  %v897_v62 = vsel %vm465_vm3, %v20596_v61, 0.0 }
 0x469   :  { %v18830_v55 = vpop.f32.mrb[10].mxu1 }
 0x46a   :  { %v857_v56 = vpop.f32.mrb[11].mxu1  ;;  %v869_v58 = vmul.f32 0.35355338, %v18830_v55 }
 0x46b   :  { %v868_v57 = vmul.f32 0.35355338, %v857_v56 }
 0x46c   :  { %v879_v60 = vsel %vm465_vm3, %v869_v58, -inf }
 0x46d   :  { %v876_v59 = vsel %vm465_vm3, %v868_v57, -inf }
 0x46e   :  { %877 = vmax.xlane.f32.xlu0 %v876_v59 }
 0x472   :  { %880 = vmax.xlane.f32.xlu0 %v879_v60 }
 0x473   :  { %20448 = vrot.lane.b32.xlu1 %v21138_v16, %s23614_s19 }
 0x476   :  { %898 = vadd.xlane.f32.xlu0 %v897_v62 }
 0x477   :  { %20458 = vrot.lane.b32.xlu1 %v21138_v16, %s23612_s20 }
 0x47b   :  { %1088 = vrot.lane.b32.xlu1 %v21132_v14, %s23610_s21 }
 0x47f   :  { %1090 = vrot.lane.b32.xlu1 %v21130_v12, %s23610_s21 }
 0x48c   :  { %20453 = vrot.lane.b32.xlu0 %v21148_v20, %s23614_s19 }
 0x4ef   :  { %v896_v63 = vpop.xlane.xlu1 %895 }
 0x4f0   :  { %20597 = vrcp.f32 %v896_v63 }
 0x4f3   :  { %v20449_v0 = vpop.permute.xlu1 %20448 }
 0x4f4   :  { %v20451_v1 = vunpack.i.h.bf16 %v20449_v0  ;;  %v20450_v2 = vunpack.i.l.bf16 %v20449_v0 }
 0x4f6   :  { %v20033_v3 = vpack.c.bf16 %v20451_v1, %v20450_v2 }
 0x4f7   :  { %v20459_v4 = vpop.permute.xlu1 %20458 }
 0x4f8   :  { %v20461_v5 = vunpack.i.h.bf16 %v20459_v4  ;;  %v20460_v6 = vunpack.i.l.bf16 %v20459_v4  ;;  %20034 = vmatprep.subr.bf16.mxu0 %v20033_v3 }
 0x4f9   :  { %20036 = vmatpush3.bf16.msra.mxu0 %v20033_v3 }
 0x4fa   :  { %v20598_v7 = vpop.eup %20597  ;;  %v20041_v8 = vpack.c.bf16 %v20461_v5, %v20460_v6 }
 0x4fb   :  { %v878_v9 = vpop.xlane.xlu0 %877  ;;  %v910_v10 = vmul.f32 %v20598_v7, %v20594_v49  ;;  %v1089_v34 = vpop.permute.xlu1 %1088 }
 0x4fc   :  { %v884_v11 = vsub.f32 %v868_v57, %v878_v9  ;;  %20043 = vmatprep.subr.msk.bf16.mxu0 %vm21156_vm2, %v20041_v8 }
 0x4fd   :  { %18835 = vmatprep.mubr.msk.f32.mxu0 %vm465_vm3, %v910_v10 }
 0x4fe   :  { %v890_v13 = vmul.f32 1.442695, %v884_v11 }
 0x4ff   :  { %v881_v15 = vpop.xlane.xlu0 %880  ;;  %v1091_v35 = vpop.permute.xlu1 %1090 }
 0x500   :  { %20599 = vpow2.f32 %v890_v13  ;;  %v885_v18 = vsub.f32 %v869_v58, %v881_v15 }
 0x502   :  { %v892_v21 = vmul.f32 1.442695, %v885_v18 }
 0x503   :  { %v899_v22 = vpop.xlane.xlu0 %898 }
 0x504   :  { %20601 = vpow2.f32 %v892_v21 }
 0x505   :  { %20603 = vrcp.f32 %v899_v22 }
 0x507   :  { %v20454_v23 = vpop.permute.xlu0 %20453 }
 0x508   :  { %v20456_v25 = vunpack.i.h.bf16 %v20454_v23  ;;  %v20455_v26 = vunpack.i.l.bf16 %v20454_v23 }
 0x50a   :  { %v20600_v27 = vpop.eup %20599  ;;  %v20037_v28 = vpack.c.bf16 %v20456_v25, %v20455_v26 }
 0x50b   :  { %v900_v29 = vsel %vm465_vm3, %v20600_v27, 0.0 }
 0x50c   :  { %901 = vadd.xlane.f32.xlu1 %v900_v29  ;;  %20038 = vmatprep.subr.bf16.mxu1 %v20037_v28 }
 0x50d   :  { %20040 = vmatpush3.bf16.msra.mxu1 %v20037_v28 }
 0x50e   :  { %v20602_v30 = vpop.eup %20601 }
 0x50f   :  { %v20604_v31 = vpop.eup %20603  ;;  %v903_v32 = vsel %vm465_vm3, %v20602_v30, 0.0 }
 0x510   :  { %904 = vadd.xlane.f32.xlu0 %v903_v32  ;;  %v911_v33 = vmul.f32 %v20604_v31, %v20596_v61 }
 0x512   :  { %18836 = vmatmul.mubr.msk.f32.vlgmr.msra.gmra.mrb[4].mxu0 %vm465_vm3, %v911_v33 }
 0x513   :  { %20046 = vmatpush3.bf16.xpose.msk.msra.mxu0 %vm21156_vm2, %v20041_v8  ;;  %18849 = vmatprep.mubr.msk.f32.mxu0 %vm288_vm1, %v1089_v34 }
 0x51a   :  { %18850 = vmatmul.mubr.msk.f32.vlgmr.msra.gmra.mrb[6].mxu0 %vm288_vm1, %v1091_v35 }
 0x51d   :  { %1181 = vrot.lane.b32.xlu1 %v21140_v17, %s23610_s21 }
 0x526   :  { %20463 = vrot.lane.b32.xlu0 %v21148_v20, %s23612_s20 }
 0x52a   :  { %1179 = vrot.lane.b32.xlu0 %v21142_v19, %s23610_s21 }
 0x599   :  { %v902_v36 = vpop.xlane.xlu1 %901 }
 0x59a   :  { %20605 = vrcp.f32 %v902_v36 }
 0x59d   :  { %v905_v37 = vpop.xlane.xlu0 %904  ;;  %v1182_v49 = vpop.permute.xlu1 %1181 }
 0x59e   :  { %20607 = vrcp.f32 %v905_v37 }
 0x5a1   :  { %v20464_v38 = vpop.permute.xlu0 %20463 }
 0x5a2   :  { %v20466_v39 = vunpack.i.h.bf16 %v20464_v38  ;;  %v20465_v40 = vunpack.i.l.bf16 %v20464_v38 }
 0x5a4   :  { %v20606_v41 = vpop.eup %20605  ;;  %v20047_v42 = vpack.c.bf16 %v20466_v39, %v20465_v40 }
 0x5a5   :  { %v912_v43 = vmul.f32 %v20606_v41, %v20600_v27  ;;  %v1180_v48 = vpop.permute.xlu0 %1179 }
 0x5a6   :  { %20049 = vmatprep.subr.msk.bf16.mxu1 %vm21156_vm2, %v20047_v42 }
 0x5a7   :  { %18842 = vmatprep.mubr.msk.f32.mxu1 %vm465_vm3, %v912_v43 }
 0x5a8   :  { %v20608_v44 = vpop.eup %20607 }
 0x5a9   :  { %v913_v45 = vmul.f32 %v20608_v44, %v20602_v30 }
 0x5ab   :  { %18843 = vmatmul.mubr.msk.f32.vlgmr.msra.gmra.mrb[12].mxu1 %vm465_vm3, %v913_v45 }
 0x5ac   :  { %20052 = vmatpush3.bf16.xpose.msk.msra.mxu1 %vm21156_vm2, %v20047_v42  ;;  %18856 = vmatprep.mubr.msk.f32.mxu1 %vm288_vm1, %v1180_v48 }
 0x5b3   :  { %18857 = vmatmul.mubr.msk.f32.vlgmr.msra.gmra.mrb[14].mxu1 %vm288_vm1, %v1182_v49 }
 0x5e5   :  { %v21260_v50 = vpop.f32.mrb[4].mxu0 }
 0x5e6   :  { %v21262_v53 = vpop.f32.mrb[5].mxu0 }
 0x5ed   :  { %v18851_v54 = vpop.f32.mrb[6].mxu0 }
 0x5ee   :  { %v1271_v55 = vmul.f32 0.35355338, %v18851_v54  ;;  %v1170_v56 = vpop.f32.mrb[7].mxu0 }
 0x5ef   :  { %v1270_v57 = vmul.f32 0.35355338, %v1170_v56 }
 0x5f0   :  { %v1277_v58 = vsel %vm465_vm3, %v1271_v55, -inf }
 0x5f1   :  { %1278 = vmax.xlane.f32.xlu1 %v1277_v58  ;;  %v1274_v59 = vsel %vm465_vm3, %v1270_v57, -inf }
 0x5f2   :  { %1275 = vmax.xlane.f32.xlu0 %v1274_v59 }
 0x67e   :  { %v1279_v60 = vpop.xlane.xlu1 %1278  ;;  %v21266_v61 = vpop.f32.mrb[12].mxu1 }
 0x67f   :  { %v1287_v62 = vsub.f32 %v1271_v55, %v1279_v60  ;;  %v1276_v63 = vpop.xlane.xlu0 %1275  ;;  %v21268_v0 = vpop.f32.mrb[13].mxu1 }
 0x680   :  { %v1286_v1 = vsub.f32 %v1270_v57, %v1276_v63 }
 0x681   :  { %v1292_v2 = vmul.f32 1.442695, %v1287_v62 }
 0x682   :  { %v1290_v3 = vmul.f32 1.442695, %v1286_v1 }
 0x684   :  { %20609 = vpow2.f32 %v1290_v3 }
 0x685   :  { %20611 = vpow2.f32 %v1292_v2 }
 0x686   :  { %v18858_v4 = vpop.f32.mrb[14].mxu1 }
 0x687   :  { %v1261_v5 = vpop.f32.mrb[15].mxu1  ;;  %v1273_v7 = vmul.f32 0.35355338, %v18858_v4 }
 0x688   :  { %v1272_v6 = vmul.f32 0.35355338, %v1261_v5 }
 0x689   :  { %v1283_v10 = vsel %vm465_vm3, %v1273_v7, -inf }
 0x68a   :  { %v1280_v8 = vsel %vm465_vm3, %v1272_v6, -inf }
 0x68b   :  { %1281 = vmax.xlane.f32.xlu0 %v1280_v8 }
 0x68e   :  { %v20610_v9 = vpop.eup %20609 }
 0x68f   :  { %v20612_v11 = vpop.eup %20611  ;;  %v1298_v13 = vsel %vm465_vm3, %v20610_v9, 0.0  ;;  %1284 = vmax.xlane.f32.xlu0 %v1283_v10 }
 0x690   :  { %1299 = vadd.xlane.f32.xlu1 %v1298_v13  ;;  %v1301_v15 = vsel %vm465_vm3, %v20612_v11, 0.0 }
 0x693   :  { %1302 = vadd.xlane.f32.xlu0 %v1301_v15 }
 0x6a1   :  { %20468 = vrot.lane.b32.xlu1 %v21138_v16, %s23608_s22 }
 0x6a5   :  { %20478 = vrot.lane.b32.xlu1 %v21138_v16, %s23606_s23 }
 0x6a9   :  { %1492 = vrot.lane.b32.xlu1 %v21132_v14, %s23604_s24  ;;  %20473 = vrot.lane.b32.xlu0 %v21148_v20, %s23608_s22 }
 0x6ad   :  { %1494 = vrot.lane.b32.xlu1 %v21130_v12, %s23604_s24 }
 0x718   :  { %v1282_v18 = vpop.xlane.xlu0 %1281 }
 0x719   :  { %v1288_v21 = vsub.f32 %v1272_v6, %v1282_v18 }
 0x71b   :  { %v1294_v22 = vmul.f32 1.442695, %v1288_v21 }
 0x71c   :  { %v1285_v23 = vpop.xlane.xlu0 %1284 }
 0x71d   :  { %20613 = vpow2.f32 %v1294_v22  ;;  %v1300_v25 = vpop.xlane.xlu1 %1299  ;;  %v1289_v26 = vsub.f32 %v1273_v7, %v1285_v23 }
 0x71e   :  { %20615 = vrcp.f32 %v1300_v25 }
 0x71f   :  { %v1296_v27 = vmul.f32 1.442695, %v1289_v26 }
 0x720   :  { %v1303_v28 = vpop.xlane.xlu0 %1302 }
 0x721   :  { %20617 = vpow2.f32 %v1296_v27  ;;  %v20469_v29 = vpop.permute.xlu1 %20468 }
 0x722   :  { %v20471_v30 = vunpack.i.h.bf16 %v20469_v29  ;;  %v20470_v14 = vunpack.i.l.bf16 %v20469_v29  ;;  %20619 = vrcp.f32 %v1303_v28 }
 0x724   :  { %v20474_v31 = vpop.permute.xlu0 %20473  ;;  %v20053_v32 = vpack.c.bf16 %v20471_v30, %v20470_v14 }
 0x725   :  { %v20479_v33 = vpop.permute.xlu1 %20478  ;;  %v20476_v34 = vunpack.i.h.bf16 %v20474_v31  ;;  %v20475_v12 = vunpack.i.l.bf16 %v20474_v31 }
 0x726   :  { %v20481_v35 = vunpack.i.h.bf16 %v20479_v33  ;;  %v20480_v36 = vunpack.i.l.bf16 %v20479_v33  ;;  %20054 = vmatprep.subr.bf16.mxu0 %v20053_v32 }
 0x727   :  { %v20614_v37 = vpop.eup %20613  ;;  %20056 = vmatpush3.bf16.msra.mxu0 %v20053_v32  ;;  %v20057_v38 = vpack.c.bf16 %v20476_v34, %v20475_v12 }
 0x728   :  { %v20616_v39 = vpop.eup %20615  ;;  %v20061_v40 = vpack.c.bf16 %v20481_v35, %v20480_v36  ;;  %v1304_v41 = vsel %vm465_vm3, %v20614_v37, 0.0 }
 0x729   :  { %1305 = vadd.xlane.f32.xlu1 %v1304_v41  ;;  %20058 = vmatprep.subr.bf16.mxu1 %v20057_v38  ;;  %v1314_v42 = vmul.f32 %v20616_v39, %v20610_v9  ;;  %v1493_v49 = vpop.permute.xlu1 %1492 }
 0x72a   :  { %20063 = vmatprep.subr.msk.bf16.mxu0 %vm21156_vm2, %v20061_v40  ;;  %20060 = vmatpush3.bf16.msra.mxu1 %v20057_v38 }
 0x72b   :  { %v20618_v43 = vpop.eup %20617  ;;  %18863 = vmatprep.mubr.msk.f32.mxu0 %vm465_vm3, %v1314_v42 }
 0x72c   :  { %v20620_v44 = vpop.eup %20619  ;;  %v1307_v45 = vsel %vm465_vm3, %v20618_v43, 0.0 }
 0x72d   :  { %1308 = vadd.xlane.f32.xlu0 %v1307_v45  ;;  %v1315_v48 = vmul.f32 %v20620_v44, %v20612_v11  ;;  %v1495_v54 = vpop.permute.xlu1 %1494 }
 0x72f   :  { %18864 = vmatmul.mubr.msk.f32.vlgmr.msra.gmra.mrb[8].mxu0 %vm465_vm3, %v1315_v48 }
 0x730   :  { %20066 = vmatpush3.bf16.xpose.msk.msra.mxu0 %vm21156_vm2, %v20061_v40  ;;  %18877 = vmatprep.mubr.msk.f32.mxu0 %vm288_vm1, %v1493_v49 }
 0x737   :  { %18878 = vmatmul.mubr.msk.f32.vlgmr.msra.gmra.mrb[10].mxu0 %vm288_vm1, %v1495_v54 }
 0x73a   :  { %1585 = vrot.lane.b32.xlu1 %v21140_v17, %s23604_s24 }
 0x743   :  { %20483 = vrot.lane.b32.xlu0 %v21148_v20, %s23606_s23 }
 0x747   :  { %1583 = vrot.lane.b32.xlu0 %v21142_v19, %s23604_s24 }
 0x7b6   :  { %v1306_v55 = vpop.xlane.xlu1 %1305 }
 0x7b7   :  { %20621 = vrcp.f32 %v1306_v55 }
 0x7ba   :  { %v1309_v56 = vpop.xlane.xlu0 %1308  ;;  %v1586_v19 = vpop.permute.xlu1 %1585 }
 0x7bb   :  { %20623 = vrcp.f32 %v1309_v56 }
 0x7be   :  { %v20484_v57 = vpop.permute.xlu0 %20483 }
 0x7bf   :  { %v20486_v58 = vunpack.i.h.bf16 %v20484_v57  ;;  %v20485_v59 = vunpack.i.l.bf16 %v20484_v57 }
 0x7c1   :  { %v20622_v60 = vpop.eup %20621  ;;  %v20067_v62 = vpack.c.bf16 %v20486_v58, %v20485_v59 }
 0x7c2   :  { %v1316_v63 = vmul.f32 %v20622_v60, %v20614_v37  ;;  %v1584_v2 = vpop.permute.xlu0 %1583 }
 0x7c3   :  { %20069 = vmatprep.subr.msk.bf16.mxu1 %vm21156_vm2, %v20067_v62 }
 0x7c4   :  { %18870 = vmatprep.mubr.msk.f32.mxu1 %vm465_vm3, %v1316_v63 }
 0x7c5   :  { %v20624_v17 = vpop.eup %20623 }
 0x7c6   :  { %v1317_v1 = vmul.f32 %v20624_v17, %v20618_v43 }
 0x7c8   :  { %18871 = vmatmul.mubr.msk.f32.vlgmr.msra.gmra.mrb[16].mxu1 %vm465_vm3, %v1317_v1 }
 0x7c9   :  { %20072 = vmatpush3.bf16.xpose.msk.msra.mxu1 %vm21156_vm2, %v20067_v62  ;;  %18884 = vmatprep.mubr.msk.f32.mxu1 %vm288_vm1, %v1584_v2 }
 0x7d0   :  { %18885 = vmatmul.mubr.msk.f32.vlgmr.msra.gmra.mrb[18].mxu1 %vm288_vm1, %v1586_v19  ;;  %v155_v19 = vld [vmem:[%s21337_s1] sm:$0xff] }
 0x802   :  { %v18865_v3 = vpop.f32.mrb[8].mxu0 }
 0x803   :  { %v1396_v4 = vpop.f32.mrb[9].mxu0 }
 0x80a   :  { %v18879_v5 = vpop.f32.mrb[10].mxu0 }
 0x80b   :  { %v1675_v6 = vmul.f32 0.35355338, %v18879_v5  ;;  %v1574_v7 = vpop.f32.mrb[11].mxu0 }
 0x80c   :  { %v1674_v8 = vmul.f32 0.35355338, %v1574_v7 }
 0x80d   :  { %v1681_v9 = vsel %vm465_vm3, %v1675_v6, -inf }
 0x80e   :  { %1682 = vmax.xlane.f32.xlu1 %v1681_v9  ;;  %v1678_v10 = vsel %vm465_vm3, %v1674_v8, -inf }
 0x80f   :  { %1679 = vmax.xlane.f32.xlu0 %v1678_v10 }
 0x89b   :  { %v1683_v11 = vpop.xlane.xlu1 %1682  ;;  %v21310_v13 = vpop.f32.mrb[16].mxu1 }
 0x89c   :  { %v1691_v15 = vsub.f32 %v1675_v6, %v1683_v11  ;;  %v1680_v18 = vpop.xlane.xlu0 %1679  ;;  %v21312_v21 = vpop.f32.mrb[17].mxu1  ;;  %v158_v6 = vld [vmem:[%s21337_s1 + $0x18] sm:$0xff] }
 0x89d   :  { %v1690_v22 = vsub.f32 %v1674_v8, %v1680_v18 }
 0x89e   :  { %v1696_v23 = vmul.f32 1.442695, %v1691_v15 }
 0x89f   :  { %v1694_v25 = vmul.f32 1.442695, %v1690_v22 }
 0x8a1   :  { %20625 = vpow2.f32 %v1694_v25 }
 0x8a2   :  { %20627 = vpow2.f32 %v1696_v23 }
 0x8a3   :  { %v18886_v26 = vpop.f32.mrb[18].mxu1 }
 0x8a4   :  { %v1665_v27 = vpop.f32.mrb[19].mxu1  ;;  %v1677_v29 = vmul.f32 0.35355338, %v18886_v26 }
 0x8a5   :  { %v1676_v28 = vmul.f32 0.35355338, %v1665_v27 }
 0x8a6   :  { %v1687_v31 = vsel %vm465_vm3, %v1677_v29, -inf }
 0x8a7   :  { %v1684_v30 = vsel %vm465_vm3, %v1676_v28, -inf }
 0x8a8   :  { %1685 = vmax.xlane.f32.xlu0 %v1684_v30 }
 0x8ab   :  { %v20626_v14 = vpop.eup %20625 }
 0x8ac   :  { %v20628_v32 = vpop.eup %20627  ;;  %1688 = vmax.xlane.f32.xlu0 %v1687_v31  ;;  %v1702_v33 = vsel %vm465_vm3, %v20626_v14, 0.0 }
 0x8ad   :  { %1703 = vadd.xlane.f32.xlu1 %v1702_v33  ;;  %v1705_v34 = vsel %vm465_vm3, %v20628_v32, 0.0 }
 0x8b0   :  { %1706 = vadd.xlane.f32.xlu0 %v1705_v34 }
 0x935   :  { %v1686_v12 = vpop.xlane.xlu0 %1685 }
 0x936   :  { %v1692_v35 = vsub.f32 %v1676_v28, %v1686_v12 }
 0x938   :  { %v1698_v36 = vmul.f32 1.442695, %v1692_v35 }
 0x939   :  { %v1689_v37 = vpop.xlane.xlu0 %1688 }
 0x93a   :  { %20629 = vpow2.f32 %v1698_v36  ;;  %v1693_v38 = vsub.f32 %v1677_v29, %v1689_v37  ;;  %v1704_v39 = vpop.xlane.xlu1 %1703 }
 0x93b   :  { %20631 = vrcp.f32 %v1704_v39 }
 0x93c   :  { %v1700_v40 = vmul.f32 1.442695, %v1693_v38 }
 0x93d   :  { %v1707_v49 = vpop.xlane.xlu0 %1706 }
 0x93e   :  { %20633 = vpow2.f32 %v1700_v40  ;;  %v21041_v40 = vld [vmem:[%s21110_s10 + $0x8] sm:$0xff] }
 0x93f   :  { %20635 = vrcp.f32 %v1707_v49 }
 0x944   :  { %v20630_v41 = vpop.eup %20629 }
 0x945   :  { %v20632_v42 = vpop.eup %20631  ;;  %v1708_v43 = vsel %vm465_vm3, %v20630_v41, 0.0 }
 0x946   :  { %1709 = vadd.xlane.f32.xlu1 %v1708_v43  ;;  %v1718_v44 = vmul.f32 %v20632_v42, %v20626_v14  ;;  %v21042_v42 = vld [vmem:[%s21110_s10] sm:$0xff] }
 0x948   :  { %v20634_v45 = vpop.eup %20633  ;;  %18891 = vmatprep.mubr.msk.f32.mxu0 %vm465_vm3, %v1718_v44 }
 0x949   :  { %v1711_v48 = vsel %vm465_vm3, %v20634_v45, 0.0  ;;  %v20636_v58 = vpop.eup %20635 }
 0x94a   :  { %1712 = vadd.xlane.f32.xlu0 %v1711_v48  ;;  %v1719_v62 = vmul.f32 %v20636_v58, %v20628_v32 }
 0x957   :  { %20488 = vrot.lane.b32.xlu1 %v21138_v16, %s23602_s25 }
 0x95b   :  { %1900 = vrot.lane.b32.xlu1 %v21262_v53, %s23600_s26 }
 0x95f   :  { %1902 = vrot.lane.b32.xlu1 %v21260_v50, %s23600_s26 }
 0x960   :  { %20493 = vrot.lane.b32.xlu0 %v21148_v20, %s23602_s25 }
 0x963   :  { %1918 = vrot.lane.b32.xlu1 %v18865_v3, %s23598_s27  ;;  %v156_v3 = vld [vmem:[%s21337_s1 + $0x8] sm:$0xff] }
 0x964   :  { %1916 = vrot.lane.b32.xlu0 %v1396_v4, %s23598_s27  ;;  %v157_v4 = vld [vmem:[%s21337_s1 + $0x10] sm:$0xff]  ;;  %v20081_v5 = vpack.c.bf16 %v156_v3, %v155_v19 }
 0x965   :  { %v20085_v7 = vpack.c.bf16 %v158_v6, %v157_v4 }
 0x9d3   :  { %v1710_v54 = vpop.xlane.xlu1 %1709 }
 0x9d4   :  { %20637 = vrcp.f32 %v1710_v54 }
 0x9d7   :  { %v20489_v16 = vpop.permute.xlu1 %20488  ;;  %v1713_v55 = vpop.xlane.xlu0 %1712 }
 0x9d8   :  { %v20491_v56 = vunpack.i.h.bf16 %v20489_v16  ;;  %v20490_v57 = vunpack.i.l.bf16 %v20489_v16  ;;  %20639 = vrcp.f32 %v1713_v55  ;;  %v21043_v55 = vld [vmem:[%s21110_s10 + $0x10] sm:$0xff] }
 0x9da   :  { %v20073_v53 = vpack.c.bf16 %v20491_v56, %v20490_v57 }
 0x9db   :  { %v20494_v50 = vpop.permute.xlu0 %20493  ;;  %v1901_v15 = vpop.permute.xlu1 %1900 }
 0x9dc   :  { %v20496_v59 = vunpack.i.h.bf16 %v20494_v50  ;;  %v20495_v60 = vunpack.i.l.bf16 %v20494_v50  ;;  %20074 = vmatprep.subr.bf16.mxu0 %v20073_v53 }
 0x9dd   :  { %20076 = vmatpush3.bf16.msra.mxu0 %v20073_v53  ;;  %v21044_v53 = vld [vmem:[%s21110_s10 + $0x18] sm:$0xff]  ;;  %s21438_s10 = sld [smem:[%s23595_s0 + %s23600_s26]]  }
 0x9de   :  { %v20638_v20 = vpop.eup %20637  ;;  %v20077_v63 = vpack.c.bf16 %v20496_v59, %v20495_v60  ;;  %20082 = vmatprep.subr.bf16.mxu0 %v20081_v5 }
 0x9df   :  { %v1720_v17 = vmul.f32 %v20638_v20, %v20630_v41  ;;  %v1903_v18 = vpop.permute.xlu1 %1902  ;;  %v1917_v23 = vpop.permute.xlu0 %1916 }
 0x9e0   :  { %18892 = vmatmul.mubr.msk.f32.vlgmr.msra.gmra.mrb[12].mxu0 %vm465_vm3, %v1719_v62  ;;  %20078 = vmatprep.subr.bf16.mxu1 %v20077_v63  ;;  %v1945_v25 = vsel %vm288_vm1, %v21214_v46, %v1903_v18 }
 0x9e1   :  { %20080 = vmatpush3.bf16.msra.mxu1 %v20077_v63  ;;  %18898 = vmatprep.mubr.msk.f32.mxu1 %vm465_vm3, %v1720_v17 }
 0x9e2   :  { %v20640_v1 = vpop.eup %20639  ;;  %20084 = vmatpush3.bf16.msra.mxu0 %v20081_v5 }
 0x9e3   :  { %v1721_v2 = vmul.f32 %v20640_v1, %v20634_v45  ;;  %20086 = vmatprep.subr.bf16.mxu0 %v20085_v7  ;;  %v1919_v22 = vpop.permute.xlu1 %1918 }
 0x9e5   :  { %18899 = vmatmul.mubr.msk.f32.vlgmr.msra.gmra.mrb[20].mxu1 %vm465_vm3, %v1721_v2 }
 0x9e6   :  { %20088 = vmatpush3.bf16.msra.mxu0 %v20085_v7 }
 0xab3   :  { %v18893_v8 = vpop.f32.mrb[12].mxu0 }
 0xab4   :  { %1934 = vrot.lane.b32.xlu1 %v18893_v8, %s23596_s2  ;;  %v1800_v9 = vpop.f32.mrb[13].mxu0 }
 0xab5   :  { %1932 = vrot.lane.b32.xlu0 %v1800_v9, %s23596_s2 }
 0xab8   :  { %1906 = vrot.lane.b32.xlu1 %v21266_v61, %s23600_s26  ;;  %v18900_v10 = vpop.f32.mrb[20].mxu1  ;;  %v1944_v61 = vsel %vm288_vm1, %v21216_v47, %v1901_v15 }
 0xab9   :  { %1904 = vrot.lane.b32.xlu0 %v21268_v0, %s23600_s26  ;;  %v1887_v11 = vpop.f32.mrb[21].mxu1 }
 0xabc   :  { %1922 = vrot.lane.b32.xlu1 %v21310_v13, %s23598_s27  ;;  %v1948_v13 = vsel %vm465_vm3, %v1944_v61, %v1917_v23  ;;  %v163_v23 = vld [vmem:[%s21412_s11 + $0x8] sm:$0xff] }
 0xabd   :  { %1920 = vrot.lane.b32.xlu0 %v21312_v21, %s23598_s27  ;;  %v1949_v21 = vsel %vm465_vm3, %v1945_v25, %v1919_v22  ;;  %v162_v22 = vld [vmem:[%s21412_s11] sm:$0xff]  ;;  %v165_v25 = vld [vmem:[%s21412_s11 + $0x18] sm:$0xff] }
 0xabe   :  { %v20089_v61 = vpack.c.bf16 %v163_v23, %v162_v22 }
 0xac0   :  { %1938 = vrot.lane.b32.xlu1 %v18900_v10, %s23596_s2  ;;  %20090 = vmatprep.subr.bf16.mxu1 %v20089_v61 }
 0xac1   :  { %1936 = vrot.lane.b32.xlu0 %v1887_v11, %s23596_s2  ;;  %20092 = vmatpush3.bf16.msra.mxu1 %v20089_v61  ;;  %s21488_s2 = sld [smem:[%s23595_s0 + %s21074_s4]]  }
 0xac2   :  { %s22153_s4 = sld [smem:[%s23595_s0 + %s21078_s13]]   ;;  %s21087_s13 = smov 26  }
 0xb26   :  { %v1935_v0 = vpop.permute.xlu1 %1934 }
 0xb27   :  { %v1933_v26 = vpop.permute.xlu0 %1932  ;;  %v1954_v28 = vsel %vm1952_vm4, %v1949_v21, %v1935_v0  ;;  %v164_v0 = vld [vmem:[%s21412_s11 + $0x10] sm:$0xff]  ;;  %v168_v21 = vld [vmem:[%s21421_s29 + $0x8] sm:$0xff] }
 0xb28   :  { %v1953_v27 = vsel %vm1952_vm4, %v1948_v13, %v1933_v26  ;;  %v20093_v13 = vpack.c.bf16 %v165_v25, %v164_v0  ;;  %v167_v26 = vld [vmem:[%s21421_s29] sm:$0xff] }
 0xb29   :  { %18909 = vmatprep.mubr.msk.f32.mxu0 %vm184_vm0, %v1953_v27  ;;  %v169_v27 = vld [vmem:[%s21421_s29 + $0x10] sm:$0xff] }
 0xb2a   :  { %v1907_v29 = vpop.permute.xlu1 %1906  ;;  %18910 = vmatmul.mubr.msk.f32.vlgmr.msra.gmra.mrb[14].mxu0 %vm184_vm0, %v1954_v28  ;;  %20094 = vmatprep.subr.bf16.mxu1 %v20093_v13  ;;  %v20097_v28 = vpack.c.bf16 %v168_v21, %v167_v26 }
 0xb2b   :  { %v1905_v30 = vpop.permute.xlu0 %1904  ;;  %v1947_v32 = vsel %vm288_vm1, %v21218_v51, %v1907_v29  ;;  %v17749_v51 = vld [vmem:[%s21378_s7] ss:$0 sm:$0xff]  ;;  %20096 = vmatpush3.bf16.msra.mxu1 %v20093_v13  ;;  %v170_v29 = vld [vmem:[%s21421_s29 + $0x18] sm:$0xff] }
 0xb2c   :  { %v1946_v46 = vsel %vm288_vm1, %v21220_v52, %v1905_v30  ;;  %v20101_v30 = vpack.c.bf16 %v170_v29, %v169_v27  ;;  %20098 = vmatprep.subr.bf16.mxu0 %v20097_v28 }
 0xb2d   :  { %20100 = vmatpush3.bf16.msra.mxu0 %v20097_v28 }
 0xb2e   :  { %v1923_v47 = vpop.permute.xlu1 %1922  ;;  %20102 = vmatprep.subr.bf16.mxu0 %v20101_v30 }
 0xb2f   :  { %v1921_v14 = vpop.permute.xlu0 %1920  ;;  %v1951_v12 = vsel %vm465_vm3, %v1947_v32, %v1923_v47  ;;  %v171_v47 = vld [vmem:[%s21421_s29 + $0x20] sm:$0xff] }
 0xb30   :  { %v1950_v33 = vsel %vm465_vm3, %v1946_v46, %v1921_v14  ;;  %v172_v14 = vld [vmem:[%s21421_s29 + $0x28] sm:$0xff] }
 0xb31   :  { %v20105_v46 = vpack.c.bf16 %v172_v14, %v171_v47  ;;  %20104 = vmatpush3.bf16.msra.mxu0 %v20101_v30 }
 0xb32   :  { %v1939_v31 = vpop.permute.xlu1 %1938 }
 0xb33   :  { %v1937_v34 = vpop.permute.xlu0 %1936  ;;  %v1956_v36 = vsel %vm1952_vm4, %v1951_v12, %v1939_v31  ;;  %20106 = vmatprep.subr.bf16.mxu0 %v20105_v46 }
 0xb34   :  { %v1955_v35 = vsel %vm1952_vm4, %v1950_v33, %v1937_v34 }
 0xb35   :  { %18912 = vmatprep.mubr.msk.f32.mxu0 %vm184_vm0, %v1955_v35  ;;  %20108 = vmatpush3.bf16.msra.mxu0 %v20105_v46 }
 0xb36   :  { %18913 = vmatmul.mubr.msk.f32.gmra.mrb[16].mxu0 %vm184_vm0, %v1956_v36 }
 0xbfd   :  { %v18911_v52 = vpop.f32.mrb[14].mxu0 }
 0xbfe   :  { %v2047_v37 = vadd.f32 %v18911_v52, %v17749_v51  ;;  %v2041_v38 = vpop.f32.mrb[15].mxu0 }
 0xbff   :  { %v2042_v39 = vadd.f32 %v17749_v51, %v2041_v38 }
 0xc00   :  { %v2061_v41 = vadd.f32 %v21041_v40, %v2047_v37  ;;  %v17754_v37 = vld [vmem:[%s21432_s5] ss:$0 sm:$0xff] }
 0xc01   :  { %v2060_v43 = vadd.f32 %v21042_v42, %v2042_v39 }
 0xc02   :  { %v2067_v44 = vsel %vm184_vm0, %v2061_v41, 0.0 }
 0xc03   :  { %2068 = vadd.xlane.f32.xlu1 %v2067_v44  ;;  %v2064_v45 = vsel %vm184_vm0, %v2060_v43, 0.0  ;;  %v17755_v44 = vld [vmem:[%s21438_s10] ss:$0 sm:$0xff] }
 0xc04   :  { %2065 = vadd.xlane.f32.xlu0 %v2064_v45 }
 0xc09   :  { %v18914_v48 = vpop.f32.mrb[16].mxu0 }
 0xc0a   :  { %v2051_v49 = vpop.f32.mrb[17].mxu0  ;;  %v2057_v54 = vadd.f32 %v18914_v48, %v17749_v51 }
 0xc0b   :  { %v2052_v16 = vadd.f32 %v17749_v51, %v2051_v49 }
 0xc0c   :  { %v2063_v58 = vadd.f32 %v21044_v53, %v2057_v54 }
 0xc0d   :  { %v2062_v56 = vadd.f32 %v21043_v55, %v2052_v16 }
 0xc0e   :  { %v2073_v50 = vsel %vm184_vm0, %v2063_v58, 0.0 }
 0xc0f   :  { %v2070_v57 = vsel %vm184_vm0, %v2062_v56, 0.0 }
 0xc10   :  { %2071 = vadd.xlane.f32.xlu0 %v2070_v57 }
 0xc14   :  { %2074 = vadd.xlane.f32.xlu0 %v2073_v50 }
 0xc90   :  { %v2069_v59 = vpop.xlane.xlu1 %2068 }
 0xc91   :  { %v2078_v60 = vmul.f32 0.03125, %v2069_v59  ;;  %v2066_v20 = vpop.xlane.xlu0 %2065 }
 0xc92   :  { %v2077_v62 = vmul.f32 0.03125, %v2066_v20  ;;  %v173_v20 = vld [vmem:[%s21421_s29 + $0x30] sm:$0xff] }
 0xc93   :  { %v21389_v63 = vsub.f32 %v2061_v41, %v2078_v60 }
 0xc94   :  { %v21391_v17 = vsub.f32 %v2060_v43, %v2077_v62  ;;  %v174_v62 = vld [vmem:[%s21421_s29 + $0x38] sm:$0xff] }
 0xc95   :  { %v2086_v1 = vmul.f32 %v21389_v63, %v21389_v63 }
 0xc96   :  { %v2085_v2 = vmul.f32 %v21391_v17, %v21391_v17 }
 0xc97   :  { %v2092_v19 = vsel %vm184_vm0, %v2086_v1, 0.0 }
 0xc98   :  { %2093 = vadd.xlane.f32.xlu0 %v2092_v19  ;;  %v2089_v3 = vsel %vm184_vm0, %v2085_v2, 0.0 }
 0xc99   :  { %2090 = vadd.xlane.f32.xlu1 %v2089_v3 }
 0xc9d   :  { %v2072_v4 = vpop.xlane.xlu0 %2071 }
 0xc9e   :  { %v2079_v5 = vmul.f32 0.03125, %v2072_v4 }
 0xca0   :  { %v21399_v6 = vsub.f32 %v2062_v56, %v2079_v5 }
 0xca1   :  { %v2075_v7 = vpop.xlane.xlu0 %2074 }
 0xca2   :  { %v2080_v8 = vmul.f32 0.03125, %v2075_v7  ;;  %v2087_v9 = vmul.f32 %v21399_v6, %v21399_v6 }
 0xca4   :  { %v21403_v10 = vsub.f32 %v2063_v58, %v2080_v8  ;;  %v2095_v11 = vsel %vm184_vm0, %v2087_v9, 0.0 }
 0xca5   :  { %2096 = vadd.xlane.f32.xlu1 %v2095_v11 }
 0xca6   :  { %v2088_v15 = vmul.f32 %v21403_v10, %v21403_v10 }
 0xca8   :  { %v2098_v18 = vsel %vm184_vm0, %v2088_v15, 0.0  ;;  %v17761_v15 = vld [vmem:[%s21465_s9] ss:$0 sm:$0xff] }
 0xca9   :  { %2099 = vadd.xlane.f32.xlu0 %v2098_v18 }
 0xd25   :  { %v2094_v31 = vpop.xlane.xlu0 %2093 }
 0xd26   :  { %v2102_v32 = vmul.f32 0.03125, %v2094_v31  ;;  %v2091_v33 = vpop.xlane.xlu1 %2090 }
 0xd27   :  { %v2101_v34 = vmul.f32 0.03125, %v2091_v33 }
 0xd28   :  { %v2106_v12 = vadd.f32 1e-05, %v2102_v32 }
 0xd29   :  { %v2105_v35 = vadd.f32 1e-05, %v2101_v34 }
 0xd2a   :  { %20641 = vrsqrt.f32 %v2106_v12 }
 0xd2b   :  { %20643 = vrsqrt.f32 %v2105_v35 }
 0xd32   :  { %v2097_v36 = vpop.xlane.xlu1 %2096 }
 0xd33   :  { %v2103_v51 = vmul.f32 0.03125, %v2097_v36 }
 0xd34   :  { %v20642_v52 = vpop.eup %20641 }
 0xd35   :  { %v20644_v38 = vpop.eup %20643  ;;  %v2114_v39 = vmul.f32 %v20642_v52, %v21389_v63  ;;  %v2107_v40 = vadd.f32 1e-05, %v2103_v51  ;;  %v20109_v63 = vpack.c.bf16 %v174_v62, %v173_v20 }
 0xd36   :  { %v2100_v41 = vpop.xlane.xlu0 %2099  ;;  %v2113_v42 = vmul.f32 %v20644_v38, %v21391_v17  ;;  %v17756_v17 = vld [vmem:[%s21455_s30] ss:$0 sm:$0xff] }
 0xd37   :  { %20645 = vrsqrt.f32 %v2107_v40  ;;  %v2104_v43 = vmul.f32 0.03125, %v2100_v41  ;;  %v2124_v45 = vmul.f32 %v17754_v37, %v2114_v39  ;;  %20110 = vmatprep.subr.bf16.mxu0 %v20109_v63 }
 0xd38   :  { %v2123_v48 = vmul.f32 %v17754_v37, %v2113_v42  ;;  %20112 = vmatpush3.bf16.msra.mxu0 %v20109_v63 }
 0xd39   :  { %v2108_v49 = vadd.f32 1e-05, %v2104_v43  ;;  %v2134_v16 = vadd.f32 %v17755_v44, %v2124_v45 }
 0xd3a   :  { %v2133_v54 = vadd.f32 %v17755_v44, %v2123_v48 }
 0xd3b   :  { %20647 = vrsqrt.f32 %v2108_v49 }
 0xd3c   :  { %18923 = vmatprep.mubr.msk.f32.mxu1 %vm184_vm0, %v2133_v54 }
 0xd3d   :  { %18924 = vmatmul.mubr.msk.f32.vlgmr.msra.gmra.mrb[22].mxu1 %vm184_vm0, %v2134_v16 }
 0xd41   :  { %v20646_v55 = vpop.eup %20645 }
 0xd42   :  { %v2115_v56 = vmul.f32 %v20646_v55, %v21399_v6 }
 0xd44   :  { %v2125_v57 = vmul.f32 %v17754_v37, %v2115_v56  ;;  %v17770_v56 = vld [vmem:[%s21105_s6 + $0x30] sm:$0xff] }
 0xd45   :  { %v20648_v53 = vpop.eup %20647 }
 0xd46   :  { %v2135_v58 = vadd.f32 %v17755_v44, %v2125_v57  ;;  %v2116_v50 = vmul.f32 %v20648_v53, %v21403_v10  ;;  %v17771_v57 = vld [vmem:[%s21105_s6 + $0x38] sm:$0xff] }
 0xd47   :  { %v20117_v53 = vpack.c.bf16 %v17771_v57, %v17770_v56 }
 0xd48   :  { %18926 = vmatprep.mubr.msk.f32.mxu1 %vm184_vm0, %v2135_v58  ;;  %v2126_v59 = vmul.f32 %v17754_v37, %v2116_v50 }
 0xd4a   :  { %v2136_v60 = vadd.f32 %v17755_v44, %v2126_v59 }
 0xd4c   :  { %18927 = vmatmul.mubr.msk.f32.gmra.mrb[24].mxu1 %vm184_vm0, %v2136_v60 }
 0xe10   :  { %v18925_v1 = vpop.f32.mrb[22].mxu1 }
 0xe11   :  { %v2227_v2 = vadd.f32 %v18925_v1, %v17756_v17  ;;  %v2221_v19 = vpop.f32.mrb[23].mxu1  ;;  %v17766_v1 = vld [vmem:[%s21483_s3] ss:$0 sm:$0xff] }
 0xe12   :  { %v2222_v3 = vadd.f32 %v17756_v17, %v2221_v19 }
 0xe13   :  { %v2241_v5 = vmax.f32 %v2227_v2, 0.0 }
 0xe14   :  { %v2240_v4 = vmax.f32 %v2222_v3, 0.0 }
 0xe16   :  { %18945 = vmatprep.mubr.msk.f32.mxu0 %vm2250_vm5, %v2240_v4 }
 0xe17   :  { %18946 = vmatmul.mubr.msk.f32.vlgmr.msra.gmra.mrb[18].mxu0 %vm2250_vm5, %v2241_v5 }
 0xe1f   :  { %v18928_v6 = vpop.f32.mrb[24].mxu1 }
 0xe20   :  { %v2237_v7 = vadd.f32 %v18928_v6, %v17756_v17  ;;  %v2231_v8 = vpop.f32.mrb[25].mxu1 }
 0xe21   :  { %v2232_v9 = vadd.f32 %v17756_v17, %v2231_v8  ;;  %v17767_v8 = vld [vmem:[%s21488_s2] ss:$0 sm:$0xff] }
 0xe22   :  { %v2243_v11 = vmax.f32 %v2237_v7, 0.0 }
 0xe23   :  { %v2242_v10 = vmax.f32 %v2232_v9, 0.0 }
 0xe25   :  { %18948 = vmatprep.mubr.msk.f32.mxu0 %vm2250_vm5, %v2242_v10 }
 0xe26   :  { %18949 = vmatmul.mubr.msk.f32.gmra.mrb[20].mxu0 %vm2250_vm5, %v2243_v11 }
 0xeea   :  { %v18947_v18 = vpop.f32.mrb[18].mxu0 }
 0xeeb   :  { %v2335_v22 = vadd.f32 %v18947_v18, %v17761_v15  ;;  %v2329_v23 = vpop.f32.mrb[19].mxu0 }
 0xeec   :  { %v2330_v61 = vadd.f32 %v17761_v15, %v2329_v23 }
 0xeed   :  { %v2349_v0 = vadd.f32 %v2335_v22, %v2134_v16  ;;  %v17769_v16 = vld [vmem:[%s21105_s6 + $0x28] sm:$0xff] }
 0xeee   :  { %v2348_v25 = vadd.f32 %v2330_v61, %v2133_v54  ;;  %v17768_v54 = vld [vmem:[%s21105_s6 + $0x20] sm:$0xff]  ;;  %s21079_s6 = smov 18  }
 0xeef   :  { %v2355_v13 = vsel %vm184_vm0, %v2349_v0, 0.0  ;;  %v20113_v55 = vpack.c.bf16 %v17769_v16, %v17768_v54 }
 0xef0   :  { %2356 = vadd.xlane.f32.xlu0 %v2355_v13  ;;  %v2352_v26 = vsel %vm184_vm0, %v2348_v25, 0.0 }
 0xef1   :  { %2353 = vadd.xlane.f32.xlu1 %v2352_v26  ;;  %20114 = vmatprep.subr.bf16.mxu1 %v20113_v55 }
 0xef2   :  { %20116 = vmatpush3.bf16.msra.mxu1 %v20113_v55 }
 0xef3   :  { %20118 = vmatprep.subr.bf16.mxu1 %v20117_v53 }
 0xef6   :  { %20120 = vmatpush3.bf16.msra.mxu1 %v20117_v53 }
 0xef9   :  { %v18950_v21 = vpop.f32.mrb[20].mxu0 }
 0xefa   :  { %v2345_v27 = vadd.f32 %v18950_v21, %v17761_v15  ;;  %v2339_v28 = vpop.f32.mrb[21].mxu0 }
 0xefb   :  { %v2340_v29 = vadd.f32 %v17761_v15, %v2339_v28 }
 0xefc   :  { %v2351_v30 = vadd.f32 %v2345_v27, %v2136_v60  ;;  %v17796_v27 = vld [vmem:[%s21127_s14 + $0x1] ss:$0 sm:$0xff]  ;;  %s23620_s14 = smov 24  }
 0xefd   :  { %v2350_v47 = vadd.f32 %v2340_v29, %v2135_v58 }
 0xefe   :  { %v2361_v14 = vsel %vm184_vm0, %v2351_v30, 0.0 }
 0xeff   :  { %2362 = vadd.xlane.f32.xlu0 %v2361_v14  ;;  %v2358_v46 = vsel %vm184_vm0, %v2350_v47, 0.0 }
 0xf00   :  { %2359 = vadd.xlane.f32.xlu1 %v2358_v46 }
 0xf7d   :  { %v2357_v31 = vpop.xlane.xlu0 %2356 }
 0xf7e   :  { %v2365_v32 = vmul.f32 0.03125, %v2357_v31  ;;  %v2354_v33 = vpop.xlane.xlu1 %2353 }
 0xf7f   :  { %v2364_v34 = vmul.f32 0.03125, %v2354_v33 }
 0xf80   :  { %v2369_v12 = vsub.f32 %v2349_v0, %v2365_v32 }
 0xf81   :  { %v2368_v35 = vsub.f32 %v2348_v25, %v2364_v34 }
 0xf82   :  { %v2373_v36 = vmul.f32 %v2369_v12, %v2369_v12 }
 0xf83   :  { %v2372_v51 = vmul.f32 %v2368_v35, %v2368_v35 }
 0xf84   :  { %v2379_v52 = vsel %vm184_vm0, %v2373_v36, 0.0 }
 0xf85   :  { %2380 = vadd.xlane.f32.xlu0 %v2379_v52  ;;  %v2376_v37 = vsel %vm184_vm0, %v2372_v51, 0.0 }
 0xf86   :  { %2377 = vadd.xlane.f32.xlu1 %v2376_v37 }
 0xf8c   :  { %v2363_v38 = vpop.xlane.xlu0 %2362 }
 0xf8d   :  { %v2367_v39 = vmul.f32 0.03125, %v2363_v38  ;;  %v2360_v40 = vpop.xlane.xlu1 %2359 }
 0xf8e   :  { %v2366_v41 = vmul.f32 0.03125, %v2360_v40 }
 0xf8f   :  { %v2371_v42 = vsub.f32 %v2351_v30, %v2367_v39 }
 0xf90   :  { %v2370_v43 = vsub.f32 %v2350_v47, %v2366_v41 }
 0xf91   :  { %v2375_v44 = vmul.f32 %v2371_v42, %v2371_v42 }
 0xf92   :  { %v2374_v45 = vmul.f32 %v2370_v43, %v2370_v43 }
 0xf93   :  { %v2385_v48 = vsel %vm184_vm0, %v2375_v44, 0.0 }
 0xf94   :  { %2386 = vadd.xlane.f32.xlu0 %v2385_v48  ;;  %v2382_v49 = vsel %vm184_vm0, %v2374_v45, 0.0 }
 0xf95   :  { %2383 = vadd.xlane.f32.xlu1 %v2382_v49 }
0x1012   :  { %v2381_v58 = vpop.xlane.xlu0 %2380 }
0x1013   :  { %v2389_v50 = vmul.f32 0.03125, %v2381_v58  ;;  %v2378_v59 = vpop.xlane.xlu1 %2377 }
0x1014   :  { %v2388_v60 = vmul.f32 0.03125, %v2378_v59 }
0x1015   :  { %v2393_v20 = vadd.f32 1e-05, %v2389_v50 }
0x1016   :  { %v2392_v62 = vadd.f32 1e-05, %v2388_v60 }
0x1017   :  { %20649 = vrsqrt.f32 %v2393_v20 }
0x1018   :  { %20651 = vrsqrt.f32 %v2392_v62 }
0x1021   :  { %v20650_v63 = vpop.eup %20649  ;;  %v2387_v17 = vpop.xlane.xlu0 %2386 }
0x1022   :  { %v20652_v2 = vpop.eup %20651  ;;  %v2401_v19 = vmul.f32 %v20650_v63, %v2369_v12  ;;  %v2391_v3 = vmul.f32 0.03125, %v2387_v17  ;;  %v2384_v4 = vpop.xlane.xlu1 %2383 }
0x1023   :  { %v2390_v5 = vmul.f32 0.03125, %v2384_v4  ;;  %v2400_v6 = vmul.f32 %v20652_v2, %v2368_v35 }
0x1024   :  { %v2395_v7 = vadd.f32 1e-05, %v2391_v3  ;;  %v2411_v9 = vmul.f32 %v17766_v1, %v2401_v19 }
0x1025   :  { %v2394_v10 = vadd.f32 1e-05, %v2390_v5  ;;  %v2410_v11 = vmul.f32 %v17766_v1, %v2400_v6 }
0x1026   :  { %20653 = vrsqrt.f32 %v2395_v7  ;;  %v21494_v18 = vadd.f32 %v17767_v8, %v2411_v9 }
0x1027   :  { %20655 = vrsqrt.f32 %v2394_v10  ;;  %v21492_v15 = vadd.f32 %v17767_v8, %v2410_v11 }
0x1029   :  { %18959 = vmatprep.mubr.msk.f32.mxu1 %vm184_vm0, %v21492_v15 }
0x102a   :  { %18960 = vmatmul.mubr.msk.f32.vlgmr.msra.gmra.mrb[26].mxu1 %vm184_vm0, %v21494_v18 }
0x1030   :  { %v20654_v22 = vpop.eup %20653 }
0x1031   :  { %v20656_v23 = vpop.eup %20655  ;;  %v2403_v61 = vmul.f32 %v20654_v22, %v2371_v42 }
0x1032   :  { %v2402_v0 = vmul.f32 %v20656_v23, %v2370_v43 }
0x1033   :  { %v2413_v25 = vmul.f32 %v17766_v1, %v2403_v61 }
0x1034   :  { %v2412_v13 = vmul.f32 %v17766_v1, %v2402_v0 }
0x1035   :  { %v21502_v21 = vadd.f32 %v17767_v8, %v2413_v25 }
0x1036   :  { %v21500_v26 = vadd.f32 %v17767_v8, %v2412_v13 }
0x1038   :  { %18962 = vmatprep.mubr.msk.f32.mxu1 %vm184_vm0, %v21500_v26 }
0x1039   :  { %18963 = vmatmul.mubr.msk.f32.gmra.mrb[28].mxu1 %vm184_vm0, %v21502_v21 }
0x10fd   :  { %v18961_v28 = vpop.f32.mrb[26].mxu1 }
0x10fe   :  { %v21509_v29 = vadd.f32 %v18961_v28, %v17796_v27  ;;  %v2548_v30 = vpop.f32.mrb[27].mxu1 }
0x10ff   :  { %v21511_v47 = vadd.f32 %v17796_v27, %v2548_v30 }
0x1101   :  { %18969 = vmatprep.mubr.msk.f32.mxu1 %vm288_vm1, %v21511_v47  ;;  %v21517_v14 = vpack.i.bf16 %v21509_v29, %v21511_v47 }
0x1103   :  { %20498 = vrot.lane.b32.xlu1 %v21517_v14, %s21052_s15 }
0x110c   :  { %v18964_v46 = vpop.f32.mrb[28].mxu1 }
0x110d   :  { %v21521_v31 = vadd.f32 %v18964_v46, %v17796_v27  ;;  %v2558_v32 = vpop.f32.mrb[29].mxu1 }
0x110e   :  { %v21523_v33 = vadd.f32 %v17796_v27, %v2558_v32 }
0x1110   :  { %18976 = vmatprep.mubr.msk.f32.mxu0 %vm288_vm1, %v21523_v33  ;;  %v21529_v34 = vpack.i.bf16 %v21521_v31, %v21523_v33 }
0x1112   :  { %20503 = vrot.lane.b32.xlu0 %v21529_v34, %s21052_s15 }
0x1175   :  { %v20499_v12 = vpop.permute.xlu1 %20498 }
0x1176   :  { %v20501_v35 = vunpack.i.h.bf16 %v20499_v12  ;;  %v20500_v36 = vunpack.i.l.bf16 %v20499_v12 }
0x1178   :  { %v20121_v51 = vpack.c.bf16 %v20501_v35, %v20500_v36 }
0x117a   :  { %20123 = vmatprep.subr.msk.bf16.mxu1 %vm21156_vm2, %v20121_v51 }
0x117b   :  { %20126 = vmatpush3.bf16.xpose.msk.msra.mxu1 %vm21156_vm2, %v20121_v51 }
0x1182   :  { %18970 = vmatmul.mubr.msk.f32.vlgmr.msra.gmra.mrb[30].mxu1 %vm288_vm1, %v21509_v29 }
0x1184   :  { %v20504_v52 = vpop.permute.xlu0 %20503 }
0x1185   :  { %v20506_v37 = vunpack.i.h.bf16 %v20504_v52  ;;  %v20505_v38 = vunpack.i.l.bf16 %v20504_v52 }
0x1187   :  { %v20127_v39 = vpack.c.bf16 %v20506_v37, %v20505_v38 }
0x1189   :  { %20129 = vmatprep.subr.msk.bf16.mxu0 %vm21156_vm2, %v20127_v39 }
0x118a   :  { %20132 = vmatpush3.bf16.xpose.msk.msra.mxu0 %vm21156_vm2, %v20127_v39 }
0x1191   :  { %18977 = vmatmul.mubr.msk.f32.vlgmr.msra.gmra.mrb[22].mxu0 %vm288_vm1, %v21521_v31 }
0x1255   :  { %v18971_v40 = vpop.f32.mrb[30].mxu1 }
0x1256   :  { %v2746_v41 = vmul.f32 0.35355338, %v18971_v40  ;;  %v2647_v42 = vpop.f32.mrb[31].mxu1 }
0x1257   :  { %v2745_v43 = vmul.f32 0.35355338, %v2647_v42 }
0x1258   :  { %v2752_v44 = vsel %vm465_vm3, %v2746_v41, -inf }
0x1259   :  { %2753 = vmax.xlane.f32.xlu0 %v2752_v44  ;;  %v2749_v45 = vsel %vm465_vm3, %v2745_v43, -inf }
0x125a   :  { %2750 = vmax.xlane.f32.xlu1 %v2749_v45 }
0x1264   :  { %v18978_v48 = vpop.f32.mrb[22].mxu0 }
0x1265   :  { %v2748_v49 = vmul.f32 0.35355338, %v18978_v48  ;;  %v2736_v54 = vpop.f32.mrb[23].mxu0 }
0x1266   :  { %v2747_v16 = vmul.f32 0.35355338, %v2736_v54 }
0x1267   :  { %v2758_v55 = vsel %vm465_vm3, %v2748_v49, -inf }
0x1268   :  { %2759 = vmax.xlane.f32.xlu0 %v2758_v55  ;;  %v2755_v56 = vsel %vm465_vm3, %v2747_v16, -inf }
0x1269   :  { %2756 = vmax.xlane.f32.xlu1 %v2755_v56 }
0x12e6   :  { %v2754_v57 = vpop.xlane.xlu0 %2753 }
0x12e7   :  { %v2762_v53 = vsub.f32 %v2746_v41, %v2754_v57  ;;  %v2751_v58 = vpop.xlane.xlu1 %2750 }
0x12e8   :  { %v2761_v50 = vsub.f32 %v2745_v43, %v2751_v58 }
0x12e9   :  { %v2767_v59 = vmul.f32 1.442695, %v2762_v53 }
0x12ea   :  { %v2765_v60 = vmul.f32 1.442695, %v2761_v50 }
0x12eb   :  { %20657 = vpow2.f32 %v2767_v59 }
0x12ec   :  { %20659 = vpow2.f32 %v2765_v60 }
0x12f5   :  { %v20658_v20 = vpop.eup %20657  ;;  %v2760_v1 = vpop.xlane.xlu0 %2759 }
0x12f6   :  { %v20660_v62 = vpop.eup %20659  ;;  %v2776_v63 = vsel %vm465_vm3, %v20658_v20, 0.0  ;;  %v2764_v2 = vsub.f32 %v2748_v49, %v2760_v1  ;;  %v2757_v3 = vpop.xlane.xlu1 %2756 }
0x12f7   :  { %2777 = vadd.xlane.f32.xlu0 %v2776_v63  ;;  %v2773_v17 = vsel %vm465_vm3, %v20660_v62, 0.0  ;;  %v2763_v4 = vsub.f32 %v2747_v16, %v2757_v3 }
0x12f8   :  { %2774 = vadd.xlane.f32.xlu1 %v2773_v17  ;;  %v2771_v19 = vmul.f32 1.442695, %v2764_v2 }
0x12f9   :  { %v2769_v5 = vmul.f32 1.442695, %v2763_v4 }
0x12fa   :  { %20661 = vpow2.f32 %v2771_v19 }
0x12fb   :  { %20663 = vpow2.f32 %v2769_v5 }
0x1304   :  { %v20662_v6 = vpop.eup %20661 }
0x1305   :  { %v2782_v7 = vsel %vm465_vm3, %v20662_v6, 0.0  ;;  %v20664_v8 = vpop.eup %20663 }
0x1306   :  { %v2779_v9 = vsel %vm465_vm3, %v20664_v8, 0.0 }
0x1309   :  { %20508 = vrot.lane.b32.xlu1 %v21517_v14, %s21053_s16 }
0x130d   :  { %20513 = vrot.lane.b32.xlu0 %v21529_v34, %s21053_s16  ;;  %20518 = vrot.lane.b32.xlu1 %v21517_v14, %s21054_s17 }
0x1311   :  { %20523 = vrot.lane.b32.xlu1 %v21529_v34, %s21054_s17 }
0x1315   :  { %2969 = vrot.lane.b32.xlu1 %v21509_v29, %s23616_s18 }
0x132c   :  { %2783 = vadd.xlane.f32.xlu0 %v2782_v7 }
0x1339   :  { %2780 = vadd.xlane.f32.xlu1 %v2779_v9 }
0x1342   :  { %2967 = vrot.lane.b32.xlu0 %v21511_v47, %s23616_s18 }
0x1346   :  { %3058 = vrot.lane.b32.xlu0 %v21523_v33, %s23616_s18 }
0x134a   :  { %3060 = vrot.lane.b32.xlu1 %v21521_v31, %s23616_s18 }
0x1384   :  { %v2778_v10 = vpop.xlane.xlu0 %2777 }
0x1385   :  { %20665 = vrcp.f32 %v2778_v10  ;;  %v2775_v11 = vpop.xlane.xlu1 %2774 }
0x1386   :  { %20667 = vrcp.f32 %v2775_v11 }
0x1388   :  { %v20514_v22 = vpop.permute.xlu0 %20513 }
0x1389   :  { %v20509_v23 = vpop.permute.xlu1 %20508  ;;  %v20516_v61 = vunpack.i.h.bf16 %v20514_v22  ;;  %v20515_v0 = vunpack.i.l.bf16 %v20514_v22 }
0x138a   :  { %v20511_v25 = vunpack.i.h.bf16 %v20509_v23  ;;  %v20510_v13 = vunpack.i.l.bf16 %v20509_v23 }
0x138b   :  { %v20137_v32 = vpack.c.bf16 %v20516_v61, %v20515_v0 }
0x138c   :  { %v20133_v27 = vpack.c.bf16 %v20511_v25, %v20510_v13 }
0x138d   :  { %v20519_v28 = vpop.permute.xlu1 %20518 }
0x138e   :  { %v20521_v30 = vunpack.i.h.bf16 %v20519_v28  ;;  %v20520_v46 = vunpack.i.l.bf16 %v20519_v28  ;;  %20134 = vmatprep.subr.bf16.mxu1 %v20133_v27 }
0x138f   :  { %v20666_v12 = vpop.eup %20665  ;;  %20136 = vmatpush3.bf16.msra.mxu1 %v20133_v27 }
0x1390   :  { %v20668_v35 = vpop.eup %20667  ;;  %v20141_v36 = vpack.c.bf16 %v20521_v30, %v20520_v46  ;;  %20138 = vmatprep.subr.bf16.mxu1 %v20137_v32  ;;  %v2790_v39 = vmul.f32 %v20666_v12, %v20658_v20 }
0x1391   :  { %v20524_v51 = vpop.permute.xlu1 %20523  ;;  %v2789_v52 = vmul.f32 %v20668_v35, %v20660_v62 }
0x1392   :  { %v20526_v37 = vunpack.i.h.bf16 %v20524_v51  ;;  %v20525_v38 = vunpack.i.l.bf16 %v20524_v51  ;;  %20143 = vmatprep.subr.msk.bf16.mxu0 %vm21156_vm2, %v20141_v36 }
0x1393   :  { %18983 = vmatprep.mubr.msk.f32.mxu1 %vm465_vm3, %v2789_v52  ;;  %20146 = vmatpush3.bf16.xpose.msk.msra.mxu0 %vm21156_vm2, %v20141_v36 }
0x1394   :  { %v20147_v40 = vpack.c.bf16 %v20526_v37, %v20525_v38  ;;  %18984 = vmatmul.mubr.msk.f32.vlgmr.msra.gmra.mrb[32].mxu1 %vm465_vm3, %v2790_v39 }
0x1395   :  { %20140 = vmatpush3.bf16.msra.mxu1 %v20137_v32  ;;  %v2970_v43 = vpop.permute.xlu1 %2969 }
0x1396   :  { %20149 = vmatprep.subr.msk.bf16.mxu1 %vm21156_vm2, %v20147_v40 }
0x13b9   :  { %v2784_v41 = vpop.xlane.xlu0 %2783 }
0x13ba   :  { %20669 = vrcp.f32 %v2784_v41 }
0x13bd   :  { %v2968_v42 = vpop.permute.xlu0 %2967 }
0x13be   :  { %18997 = vmatprep.mubr.msk.f32.mxu0 %vm288_vm1, %v2968_v42 }
0x13bf   :  { %18998 = vmatmul.mubr.msk.f32.vlgmr.msra.gmra.mrb[24].mxu0 %vm288_vm1, %v2970_v43 }
0x13c1   :  { %v3059_v16 = vpop.permute.xlu0 %3058 }
0x13c4   :  { %v20670_v45 = vpop.eup %20669 }
0x13c5   :  { %v2792_v54 = vmul.f32 %v20670_v45, %v20662_v6 }
0x13c6   :  { %v2781_v44 = vpop.xlane.xlu1 %2780 }
0x13c7   :  { %20671 = vrcp.f32 %v2781_v44 }
0x13ca   :  { %v3061_v55 = vpop.permute.xlu1 %3060 }
0x13d1   :  { %v20672_v48 = vpop.eup %20671 }
0x13d2   :  { %v2791_v49 = vmul.f32 %v20672_v48, %v20664_v8 }
0x13d4   :  { %18990 = vmatprep.mubr.msk.f32.mxu1 %vm465_vm3, %v2791_v49 }
0x13d5   :  { %18991 = vmatmul.mubr.msk.f32.vlgmr.msra.gmra.mrb[34].mxu1 %vm465_vm3, %v2792_v54 }
0x13d6   :  { %20152 = vmatpush3.bf16.xpose.msk.msra.mxu1 %vm21156_vm2, %v20147_v40  ;;  %19004 = vmatprep.mubr.msk.f32.mxu1 %vm288_vm1, %v3059_v16 }
0x13dd   :  { %19005 = vmatmul.mubr.msk.f32.vlgmr.msra.gmra.mrb[36].mxu1 %vm288_vm1, %v3061_v55 }
0x1467   :  { %v21585_v56 = vpop.f32.mrb[32].mxu1 }
0x1468   :  { %v21587_v57 = vpop.f32.mrb[33].mxu1 }
0x1492   :  { %v18999_v53 = vpop.f32.mrb[24].mxu0 }
0x1493   :  { %v3150_v58 = vmul.f32 0.35355338, %v18999_v53  ;;  %v3049_v50 = vpop.f32.mrb[25].mxu0 }
0x1494   :  { %v3149_v59 = vmul.f32 0.35355338, %v3049_v50 }
0x1495   :  { %v3156_v60 = vsel %vm465_vm3, %v3150_v58, -inf }
0x1496   :  { %3157 = vmax.xlane.f32.xlu1 %v3156_v60  ;;  %v3153_v20 = vsel %vm465_vm3, %v3149_v59, -inf }
0x1497   :  { %3154 = vmax.xlane.f32.xlu0 %v3153_v20 }
0x14a8   :  { %v21591_v62 = vpop.f32.mrb[34].mxu1 }
0x14a9   :  { %v21593_v63 = vpop.f32.mrb[35].mxu1 }
0x14b0   :  { %v19006_v17 = vpop.f32.mrb[36].mxu1 }
0x14b1   :  { %v3140_v1 = vpop.f32.mrb[37].mxu1  ;;  %v3152_v19 = vmul.f32 0.35355338, %v19006_v17 }
0x14b2   :  { %v3151_v2 = vmul.f32 0.35355338, %v3140_v1 }
0x14b3   :  { %v3162_v4 = vsel %vm465_vm3, %v3152_v19, -inf }
0x14b4   :  { %v3159_v3 = vsel %vm465_vm3, %v3151_v2, -inf }
0x14b5   :  { %3160 = vmax.xlane.f32.xlu0 %v3159_v3 }
0x14b9   :  { %3163 = vmax.xlane.f32.xlu0 %v3162_v4 }
0x1523   :  { %v3158_v5 = vpop.xlane.xlu1 %3157 }
0x1524   :  { %v3166_v6 = vsub.f32 %v3150_v58, %v3158_v5  ;;  %v3155_v7 = vpop.xlane.xlu0 %3154 }
0x1525   :  { %v3165_v8 = vsub.f32 %v3149_v59, %v3155_v7 }
0x1526   :  { %v3171_v9 = vmul.f32 1.442695, %v3166_v6 }
0x1527   :  { %v3169_v10 = vmul.f32 1.442695, %v3165_v8 }
0x1528   :  { %20673 = vpow2.f32 %v3171_v9 }
0x1529   :  { %20675 = vpow2.f32 %v3169_v10 }
0x1532   :  { %v20674_v11 = vpop.eup %20673 }
0x1533   :  { %v20676_v22 = vpop.eup %20675  ;;  %v3180_v23 = vsel %vm465_vm3, %v20674_v11, 0.0 }
0x1534   :  { %3181 = vadd.xlane.f32.xlu0 %v3180_v23  ;;  %v3177_v61 = vsel %vm465_vm3, %v20676_v22, 0.0 }
0x1535   :  { %3178 = vadd.xlane.f32.xlu1 %v3177_v61 }
0x1542   :  { %v3161_v0 = vpop.xlane.xlu0 %3160 }
0x1543   :  { %v3167_v28 = vsub.f32 %v3151_v2, %v3161_v0 }
0x1545   :  { %v3173_v30 = vmul.f32 1.442695, %v3167_v28 }
0x1546   :  { %20528 = vrot.lane.b32.xlu1 %v21517_v14, %s23614_s19  ;;  %v3164_v25 = vpop.xlane.xlu0 %3163 }
0x1547   :  { %v3168_v13 = vsub.f32 %v3152_v19, %v3164_v25 }
0x1549   :  { %v3175_v27 = vmul.f32 1.442695, %v3168_v13 }
0x154a   :  { %20538 = vrot.lane.b32.xlu1 %v21517_v14, %s23612_s20  ;;  %20533 = vrot.lane.b32.xlu0 %v21529_v34, %s23614_s19 }
0x154b   :  { %20677 = vpow2.f32 %v3175_v27 }
0x154c   :  { %20679 = vpow2.f32 %v3173_v30 }
0x154e   :  { %20543 = vrot.lane.b32.xlu1 %v21529_v34, %s23612_s20 }
0x1552   :  { %3373 = vrot.lane.b32.xlu1 %v21509_v29, %s23610_s21 }
0x1555   :  { %v20678_v46 = vpop.eup %20677 }
0x1556   :  { %v3186_v32 = vsel %vm465_vm3, %v20678_v46, 0.0  ;;  %v20680_v12 = vpop.eup %20679 }
0x1557   :  { %v3183_v35 = vsel %vm465_vm3, %v20680_v12, 0.0 }
0x1569   :  { %3187 = vadd.xlane.f32.xlu0 %v3186_v32 }
0x1576   :  { %3184 = vadd.xlane.f32.xlu1 %v3183_v35 }
0x157f   :  { %3371 = vrot.lane.b32.xlu0 %v21511_v47, %s23610_s21 }
0x1583   :  { %3462 = vrot.lane.b32.xlu0 %v21523_v33, %s23610_s21 }
0x1587   :  { %3464 = vrot.lane.b32.xlu1 %v21521_v31, %s23610_s21 }
0x15c1   :  { %v3182_v36 = vpop.xlane.xlu0 %3181 }
0x15c2   :  { %20681 = vrcp.f32 %v3182_v36  ;;  %v3179_v51 = vpop.xlane.xlu1 %3178 }
0x15c3   :  { %20683 = vrcp.f32 %v3179_v51 }
0x15c5   :  { %v20534_v52 = vpop.permute.xlu0 %20533 }
0x15c6   :  { %v20536_v37 = vunpack.i.h.bf16 %v20534_v52  ;;  %v20535_v38 = vunpack.i.l.bf16 %v20534_v52  ;;  %v20529_v39 = vpop.permute.xlu1 %20528 }
0x15c7   :  { %v20531_v40 = vunpack.i.h.bf16 %v20529_v39  ;;  %v20530_v41 = vunpack.i.l.bf16 %v20529_v39 }
0x15c8   :  { %v20157_v42 = vpack.c.bf16 %v20536_v37, %v20535_v38 }
0x15c9   :  { %v20153_v43 = vpack.c.bf16 %v20531_v40, %v20530_v41 }
0x15ca   :  { %v20539_v44 = vpop.permute.xlu1 %20538  ;;  %20158 = vmatprep.subr.bf16.mxu1 %v20157_v42 }
0x15cb   :  { %v20541_v45 = vunpack.i.h.bf16 %v20539_v44  ;;  %v20540_v48 = vunpack.i.l.bf16 %v20539_v44  ;;  %20154 = vmatprep.subr.bf16.mxu0 %v20153_v43  ;;  %20160 = vmatpush3.bf16.msra.mxu1 %v20157_v42 }
0x15cc   :  { %v20682_v49 = vpop.eup %20681  ;;  %20156 = vmatpush3.bf16.msra.mxu0 %v20153_v43 }
0x15cd   :  { %v20684_v54 = vpop.eup %20683  ;;  %v20161_v16 = vpack.c.bf16 %v20541_v45, %v20540_v48  ;;  %v3194_v59 = vmul.f32 %v20682_v49, %v20674_v11 }
0x15ce   :  { %v20544_v55 = vpop.permute.xlu1 %20543  ;;  %v3193_v53 = vmul.f32 %v20684_v54, %v20676_v22 }
0x15cf   :  { %v20546_v58 = vunpack.i.h.bf16 %v20544_v55  ;;  %v20545_v50 = vunpack.i.l.bf16 %v20544_v55  ;;  %20163 = vmatprep.subr.msk.bf16.mxu0 %vm21156_vm2, %v20161_v16 }
0x15d0   :  { %19011 = vmatprep.mubr.msk.f32.mxu0 %vm465_vm3, %v3193_v53 }
0x15d1   :  { %v20167_v60 = vpack.c.bf16 %v20546_v58, %v20545_v50  ;;  %19012 = vmatmul.mubr.msk.f32.vlgmr.msra.gmra.mrb[26].mxu0 %vm465_vm3, %v3194_v59 }
0x15d2   :  { %v3374_v1 = vpop.permute.xlu1 %3373 }
0x15d3   :  { %20169 = vmatprep.subr.msk.bf16.mxu1 %vm21156_vm2, %v20167_v60 }
0x15d5   :  { %20166 = vmatpush3.bf16.xpose.msk.msra.mxu0 %vm21156_vm2, %v20161_v16 }
0x15f6   :  { %v3188_v20 = vpop.xlane.xlu0 %3187 }
0x15f7   :  { %20685 = vrcp.f32 %v3188_v20 }
0x15fa   :  { %v3372_v17 = vpop.permute.xlu0 %3371 }
0x15fb   :  { %19025 = vmatprep.mubr.msk.f32.mxu0 %vm288_vm1, %v3372_v17 }
0x15fc   :  { %19026 = vmatmul.mubr.msk.f32.vlgmr.msra.gmra.mrb[28].mxu0 %vm288_vm1, %v3374_v1 }
0x15fe   :  { %v3463_v6 = vpop.permute.xlu0 %3462 }
0x1601   :  { %v20686_v19 = vpop.eup %20685 }
0x1602   :  { %v3196_v5 = vmul.f32 %v20686_v19, %v20678_v46 }
0x1603   :  { %v3185_v2 = vpop.xlane.xlu1 %3184 }
0x1604   :  { %20687 = vrcp.f32 %v3185_v2 }
0x1607   :  { %v3465_v7 = vpop.permute.xlu1 %3464 }
0x160e   :  { %v20688_v3 = vpop.eup %20687 }
0x160f   :  { %v3195_v4 = vmul.f32 %v20688_v3, %v20680_v12 }
0x1611   :  { %19018 = vmatprep.mubr.msk.f32.mxu1 %vm465_vm3, %v3195_v4 }
0x1612   :  { %19019 = vmatmul.mubr.msk.f32.vlgmr.msra.gmra.mrb[38].mxu1 %vm465_vm3, %v3196_v5 }
0x1613   :  { %20172 = vmatpush3.bf16.xpose.msk.msra.mxu1 %vm21156_vm2, %v20167_v60  ;;  %19032 = vmatprep.mubr.msk.f32.mxu1 %vm288_vm1, %v3463_v6 }
0x161a   :  { %19033 = vmatmul.mubr.msk.f32.vlgmr.msra.gmra.mrb[40].mxu1 %vm288_vm1, %v3465_v7 }
0x16a4   :  { %v21633_v8 = vpop.f32.mrb[26].mxu0 }
0x16a5   :  { %v21635_v9 = vpop.f32.mrb[27].mxu0 }
0x16cf   :  { %v19027_v10 = vpop.f32.mrb[28].mxu0 }
0x16d0   :  { %v3554_v11 = vmul.f32 0.35355338, %v19027_v10  ;;  %v3453_v22 = vpop.f32.mrb[29].mxu0 }
0x16d1   :  { %v3553_v23 = vmul.f32 0.35355338, %v3453_v22 }
0x16d2   :  { %v3560_v61 = vsel %vm465_vm3, %v3554_v11, -inf }
0x16d3   :  { %3561 = vmax.xlane.f32.xlu1 %v3560_v61  ;;  %v3557_v0 = vsel %vm465_vm3, %v3553_v23, -inf }
0x16d4   :  { %3558 = vmax.xlane.f32.xlu0 %v3557_v0 }
0x16e5   :  { %v21639_v25 = vpop.f32.mrb[38].mxu1 }
0x16e6   :  { %v21641_v13 = vpop.f32.mrb[39].mxu1 }
0x16ed   :  { %v19034_v27 = vpop.f32.mrb[40].mxu1 }
0x16ee   :  { %v3544_v28 = vpop.f32.mrb[41].mxu1  ;;  %v3556_v46 = vmul.f32 0.35355338, %v19034_v27 }
0x16ef   :  { %v3555_v30 = vmul.f32 0.35355338, %v3544_v28 }
0x16f0   :  { %v3566_v12 = vsel %vm465_vm3, %v3556_v46, -inf }
0x16f1   :  { %v3563_v32 = vsel %vm465_vm3, %v3555_v30, -inf }
0x16f2   :  { %3564 = vmax.xlane.f32.xlu0 %v3563_v32 }
0x16f6   :  { %3567 = vmax.xlane.f32.xlu0 %v3566_v12 }
0x1760   :  { %v3562_v35 = vpop.xlane.xlu1 %3561 }
0x1761   :  { %v3570_v36 = vsub.f32 %v3554_v11, %v3562_v35  ;;  %v3559_v51 = vpop.xlane.xlu0 %3558 }
0x1762   :  { %v3569_v52 = vsub.f32 %v3553_v23, %v3559_v51 }
0x1763   :  { %v3575_v37 = vmul.f32 1.442695, %v3570_v36 }
0x1764   :  { %v3573_v38 = vmul.f32 1.442695, %v3569_v52 }
0x1765   :  { %20689 = vpow2.f32 %v3575_v37 }
0x1766   :  { %20691 = vpow2.f32 %v3573_v38 }
0x176f   :  { %v20690_v39 = vpop.eup %20689 }
0x1770   :  { %v20692_v40 = vpop.eup %20691  ;;  %v3584_v41 = vsel %vm465_vm3, %v20690_v39, 0.0 }
0x1771   :  { %3585 = vadd.xlane.f32.xlu0 %v3584_v41  ;;  %v3581_v42 = vsel %vm465_vm3, %v20692_v40, 0.0 }
0x1772   :  { %3582 = vadd.xlane.f32.xlu1 %v3581_v42 }
0x177f   :  { %v3565_v43 = vpop.xlane.xlu0 %3564 }
0x1780   :  { %v3571_v49 = vsub.f32 %v3555_v30, %v3565_v43 }
0x1782   :  { %v3577_v54 = vmul.f32 1.442695, %v3571_v49 }
0x1783   :  { %20548 = vrot.lane.b32.xlu1 %v21517_v14, %s23608_s22  ;;  %v3568_v44 = vpop.xlane.xlu0 %3567 }
0x1784   :  { %v3572_v45 = vsub.f32 %v3556_v46, %v3568_v44 }
0x1786   :  { %v3579_v48 = vmul.f32 1.442695, %v3572_v45 }
0x1787   :  { %20558 = vrot.lane.b32.xlu1 %v21517_v14, %s23606_s23  ;;  %20553 = vrot.lane.b32.xlu0 %v21529_v34, %s23608_s22 }
0x1788   :  { %20693 = vpow2.f32 %v3579_v48 }
0x1789   :  { %20695 = vpow2.f32 %v3577_v54 }
0x178b   :  { %20563 = vrot.lane.b32.xlu1 %v21529_v34, %s23606_s23 }
0x178f   :  { %3777 = vrot.lane.b32.xlu1 %v21509_v29, %s23604_s24 }
0x1792   :  { %v20694_v16 = vpop.eup %20693 }
0x1793   :  { %v3590_v55 = vsel %vm465_vm3, %v20694_v16, 0.0  ;;  %v20696_v53 = vpop.eup %20695 }
0x1794   :  { %v3587_v58 = vsel %vm465_vm3, %v20696_v53, 0.0 }
0x17a6   :  { %3591 = vadd.xlane.f32.xlu0 %v3590_v55 }
0x17b3   :  { %3588 = vadd.xlane.f32.xlu1 %v3587_v58 }
0x17bc   :  { %3775 = vrot.lane.b32.xlu0 %v21511_v47, %s23604_s24 }
0x17c0   :  { %3866 = vrot.lane.b32.xlu0 %v21523_v33, %s23604_s24 }
0x17c4   :  { %3868 = vrot.lane.b32.xlu1 %v21521_v31, %s23604_s24 }
0x17fe   :  { %v3586_v29 = vpop.xlane.xlu0 %3585 }
0x17ff   :  { %20697 = vrcp.f32 %v3586_v29  ;;  %v3583_v50 = vpop.xlane.xlu1 %3582 }
0x1800   :  { %20699 = vrcp.f32 %v3583_v50 }
0x1802   :  { %v20554_v59 = vpop.permute.xlu0 %20553 }
0x1803   :  { %v20556_v60 = vunpack.i.h.bf16 %v20554_v59  ;;  %v20555_v20 = vunpack.i.l.bf16 %v20554_v59  ;;  %v20549_v17 = vpop.permute.xlu1 %20548 }
0x1804   :  { %v20551_v1 = vunpack.i.h.bf16 %v20549_v17  ;;  %v20550_v2 = vunpack.i.l.bf16 %v20549_v17 }
0x1805   :  { %v20177_v19 = vpack.c.bf16 %v20556_v60, %v20555_v20 }
0x1806   :  { %v20173_v3 = vpack.c.bf16 %v20551_v1, %v20550_v2 }
0x1807   :  { %v20559_v4 = vpop.permute.xlu1 %20558  ;;  %20178 = vmatprep.subr.bf16.mxu1 %v20177_v19 }
0x1808   :  { %v20561_v47 = vunpack.i.h.bf16 %v20559_v4  ;;  %v20560_v5 = vunpack.i.l.bf16 %v20559_v4  ;;  %20174 = vmatprep.subr.bf16.mxu0 %v20173_v3  ;;  %20180 = vmatpush3.bf16.msra.mxu1 %v20177_v19 }
0x1809   :  { %v20698_v33 = vpop.eup %20697  ;;  %20176 = vmatpush3.bf16.msra.mxu0 %v20173_v3 }
0x180a   :  { %v20700_v31 = vpop.eup %20699  ;;  %v20181_v6 = vpack.c.bf16 %v20561_v47, %v20560_v5  ;;  %v3598_v23 = vmul.f32 %v20698_v33, %v20690_v39 }
0x180b   :  { %v20564_v7 = vpop.permute.xlu1 %20563  ;;  %v3597_v10 = vmul.f32 %v20700_v31, %v20692_v40 }
0x180c   :  { %v20566_v11 = vunpack.i.h.bf16 %v20564_v7  ;;  %v20565_v22 = vunpack.i.l.bf16 %v20564_v7  ;;  %20183 = vmatprep.subr.msk.bf16.mxu0 %vm21156_vm2, %v20181_v6 }
0x180d   :  { %19039 = vmatprep.mubr.msk.f32.mxu0 %vm465_vm3, %v3597_v10 }
0x180e   :  { %v20187_v61 = vpack.c.bf16 %v20566_v11, %v20565_v22  ;;  %19040 = vmatmul.mubr.msk.f32.vlgmr.msra.gmra.mrb[30].mxu0 %vm465_vm3, %v3598_v23 }
0x180f   :  { %v3778_v28 = vpop.permute.xlu1 %3777 }
0x1810   :  { %20189 = vmatprep.subr.msk.bf16.mxu1 %vm21156_vm2, %v20187_v61 }
0x1812   :  { %20186 = vmatpush3.bf16.xpose.msk.msra.mxu0 %vm21156_vm2, %v20181_v6 }
0x1833   :  { %v3592_v0 = vpop.xlane.xlu0 %3591 }
0x1834   :  { %20701 = vrcp.f32 %v3592_v0 }
0x1837   :  { %v3776_v27 = vpop.permute.xlu0 %3775 }
0x1838   :  { %19053 = vmatprep.mubr.msk.f32.mxu0 %vm288_vm1, %v3776_v27 }
0x1839   :  { %19054 = vmatmul.mubr.msk.f32.vlgmr.msra.gmra.mrb[32].mxu0 %vm288_vm1, %v3778_v28 }
0x183b   :  { %v3867_v36 = vpop.permute.xlu0 %3866 }
0x183e   :  { %v20702_v46 = vpop.eup %20701 }
0x183f   :  { %v3600_v35 = vmul.f32 %v20702_v46, %v20694_v16 }
0x1840   :  { %v3589_v30 = vpop.xlane.xlu1 %3588 }
0x1841   :  { %20703 = vrcp.f32 %v3589_v30 }
0x1844   :  { %v3869_v51 = vpop.permute.xlu1 %3868 }
0x184b   :  { %v20704_v32 = vpop.eup %20703 }
0x184c   :  { %v3599_v12 = vmul.f32 %v20704_v32, %v20696_v53 }
0x184e   :  { %19046 = vmatprep.mubr.msk.f32.mxu1 %vm465_vm3, %v3599_v12 }
0x184f   :  { %19047 = vmatmul.mubr.msk.f32.vlgmr.msra.gmra.mrb[42].mxu1 %vm465_vm3, %v3600_v35 }
0x1850   :  { %20192 = vmatpush3.bf16.xpose.msk.msra.mxu1 %vm21156_vm2, %v20187_v61  ;;  %19060 = vmatprep.mubr.msk.f32.mxu1 %vm288_vm1, %v3867_v36 }
0x1857   :  { %19061 = vmatmul.mubr.msk.f32.vlgmr.msra.gmra.mrb[44].mxu1 %vm288_vm1, %v3869_v51 }
0x18e1   :  { %v19041_v52 = vpop.f32.mrb[30].mxu0 }
0x18e2   :  { %v3679_v37 = vpop.f32.mrb[31].mxu0 }
0x190c   :  { %v19055_v38 = vpop.f32.mrb[32].mxu0 }
0x190d   :  { %v3958_v39 = vmul.f32 0.35355338, %v19055_v38  ;;  %v3857_v40 = vpop.f32.mrb[33].mxu0  ;;  %v17773_v38 = vld [vmem:[%s21337_s1 + $0x20] sm:$0xff] }
0x190e   :  { %v3957_v41 = vmul.f32 0.35355338, %v3857_v40  ;;  %v17775_v40 = vld [vmem:[%s21337_s1 + $0x30] sm:$0xff] }
0x190f   :  { %v3964_v42 = vsel %vm465_vm3, %v3958_v39, -inf }
0x1910   :  { %3965 = vmax.xlane.f32.xlu1 %v3964_v42  ;;  %v3961_v43 = vsel %vm465_vm3, %v3957_v41, -inf  ;;  %v17776_v42 = vld [vmem:[%s21337_s1 + $0x38] sm:$0xff] }
0x1911   :  { %3962 = vmax.xlane.f32.xlu0 %v3961_v43  ;;  %v20205_v43 = vpack.c.bf16 %v17776_v42, %v17775_v40 }
0x1922   :  { %v21683_v44 = vpop.f32.mrb[42].mxu1 }
0x1923   :  { %v21685_v24 = vpop.f32.mrb[43].mxu1 }
0x192a   :  { %v19062_v45 = vpop.f32.mrb[44].mxu1 }
0x192b   :  { %v3948_v48 = vpop.f32.mrb[45].mxu1  ;;  %v3960_v54 = vmul.f32 0.35355338, %v19062_v45 }
0x192c   :  { %v3959_v49 = vmul.f32 0.35355338, %v3948_v48 }
0x192d   :  { %v3970_v55 = vsel %vm465_vm3, %v3960_v54, -inf }
0x192e   :  { %v3967_v16 = vsel %vm465_vm3, %v3959_v49, -inf }
0x192f   :  { %3968 = vmax.xlane.f32.xlu0 %v3967_v16 }
0x1933   :  { %3971 = vmax.xlane.f32.xlu0 %v3970_v55 }
0x199d   :  { %v3966_v53 = vpop.xlane.xlu1 %3965 }
0x199e   :  { %v3974_v58 = vsub.f32 %v3958_v39, %v3966_v53  ;;  %v3963_v29 = vpop.xlane.xlu0 %3962  ;;  %v17774_v39 = vld [vmem:[%s21337_s1 + $0x28] sm:$0xff] }
0x199f   :  { %v3973_v50 = vsub.f32 %v3957_v41, %v3963_v29  ;;  %v20201_v41 = vpack.c.bf16 %v17774_v39, %v17773_v38 }
0x19a0   :  { %v3979_v59 = vmul.f32 1.442695, %v3974_v58 }
0x19a1   :  { %v3977_v60 = vmul.f32 1.442695, %v3973_v50 }
0x19a2   :  { %20705 = vpow2.f32 %v3979_v59 }
0x19a3   :  { %20707 = vpow2.f32 %v3977_v60 }
0x19ac   :  { %v20706_v20 = vpop.eup %20705 }
0x19ad   :  { %v20708_v17 = vpop.eup %20707  ;;  %v3988_v1 = vsel %vm465_vm3, %v20706_v20, 0.0 }
0x19ae   :  { %3989 = vadd.xlane.f32.xlu0 %v3988_v1  ;;  %v3985_v2 = vsel %vm465_vm3, %v20708_v17, 0.0 }
0x19af   :  { %3986 = vadd.xlane.f32.xlu1 %v3985_v2 }
0x19bc   :  { %v3969_v19 = vpop.xlane.xlu0 %3968 }
0x19bd   :  { %v3975_v3 = vsub.f32 %v3959_v49, %v3969_v19 }
0x19bf   :  { %v3981_v4 = vmul.f32 1.442695, %v3975_v3 }
0x19c0   :  { %v3972_v47 = vpop.xlane.xlu0 %3971 }
0x19c1   :  { %20709 = vpow2.f32 %v3981_v4  ;;  %v3976_v5 = vsub.f32 %v3960_v54, %v3972_v47 }
0x19c3   :  { %v3983_v33 = vmul.f32 1.442695, %v3976_v5 }
0x19c5   :  { %20711 = vpow2.f32 %v3983_v33 }
0x19cb   :  { %v20710_v31 = vpop.eup %20709 }
0x19cc   :  { %v3991_v6 = vsel %vm465_vm3, %v20710_v31, 0.0 }
0x19cd   :  { %3992 = vadd.xlane.f32.xlu1 %v3991_v6 }
0x19cf   :  { %v20712_v7 = vpop.eup %20711 }
0x19d0   :  { %v3994_v10 = vsel %vm465_vm3, %v20712_v7, 0.0 }
0x19d1   :  { %3995 = vadd.xlane.f32.xlu0 %v3994_v10 }
0x19de   :  { %20568 = vrot.lane.b32.xlu1 %v21517_v14, %s23602_s25 }
0x19e2   :  { %4183 = vrot.lane.b32.xlu1 %v21635_v9, %s23600_s26 }
0x19e6   :  { %4185 = vrot.lane.b32.xlu1 %v21633_v8, %s23600_s26 }
0x19e7   :  { %20573 = vrot.lane.b32.xlu0 %v21529_v34, %s23602_s25 }
0x19ea   :  { %4201 = vrot.lane.b32.xlu1 %v19041_v52, %s23598_s27 }
0x19eb   :  { %4199 = vrot.lane.b32.xlu0 %v3679_v37, %s23598_s27 }
0x1a3b   :  { %v3990_v14 = vpop.xlane.xlu0 %3989 }
0x1a3c   :  { %v3987_v11 = vpop.xlane.xlu1 %3986 }
0x1a3d   :  { %20713 = vrcp.f32 %v3987_v11 }
0x1a3e   :  { %20715 = vrcp.f32 %v3990_v14 }
0x1a47   :  { %v20714_v22 = vpop.eup %20713 }
0x1a48   :  { %v4001_v23 = vmul.f32 %v20714_v22, %v20708_v17  ;;  %v20716_v28 = vpop.eup %20715 }
0x1a49   :  { %v4002_v35 = vmul.f32 %v20716_v28, %v20706_v20 }
0x1a4a   :  { %19067 = vmatprep.mubr.msk.f32.mxu0 %vm465_vm3, %v4001_v23 }
0x1a5a   :  { %v3993_v61 = vpop.xlane.xlu1 %3992 }
0x1a5b   :  { %20717 = vrcp.f32 %v3993_v61 }
0x1a5e   :  { %v20569_v9 = vpop.permute.xlu1 %20568  ;;  %v3996_v0 = vpop.xlane.xlu0 %3995 }
0x1a5f   :  { %v20571_v8 = vunpack.i.h.bf16 %v20569_v9  ;;  %v20570_v27 = vunpack.i.l.bf16 %v20569_v9  ;;  %20719 = vrcp.f32 %v3996_v0 }
0x1a61   :  { %v20193_v34 = vpack.c.bf16 %v20571_v8, %v20570_v27 }
0x1a62   :  { %v20574_v30 = vpop.permute.xlu0 %20573  ;;  %v4184_v16 = vpop.permute.xlu1 %4183 }
0x1a63   :  { %v20576_v46 = vunpack.i.h.bf16 %v20574_v30  ;;  %v20575_v32 = vunpack.i.l.bf16 %v20574_v30  ;;  %20194 = vmatprep.subr.bf16.mxu0 %v20193_v34 }
0x1a64   :  { %20196 = vmatpush3.bf16.msra.mxu0 %v20193_v34 }
0x1a65   :  { %v20718_v12 = vpop.eup %20717  ;;  %v20197_v36 = vpack.c.bf16 %v20576_v46, %v20575_v32  ;;  %20202 = vmatprep.subr.bf16.mxu0 %v20201_v41 }
0x1a66   :  { %v4003_v51 = vmul.f32 %v20718_v12, %v20710_v31  ;;  %v4186_v55 = vpop.permute.xlu1 %4185  ;;  %v4200_v58 = vpop.permute.xlu0 %4199  ;;  %v17849_v31 = vld [vmem:[%s21378_s7 + $0x1] ss:$0 sm:$0xff]  ;;  %s22194_s7 = sld [smem:[%s23595_s0 + %s21079_s6]]  }
0x1a67   :  { %19068 = vmatmul.mubr.msk.f32.vlgmr.msra.gmra.mrb[34].mxu0 %vm465_vm3, %v4002_v35  ;;  %20198 = vmatprep.subr.bf16.mxu1 %v20197_v36 }
0x1a68   :  { %20200 = vmatpush3.bf16.msra.mxu1 %v20197_v36  ;;  %19074 = vmatprep.mubr.msk.f32.mxu1 %vm465_vm3, %v4003_v51 }
0x1a69   :  { %v20720_v52 = vpop.eup %20719  ;;  %20204 = vmatpush3.bf16.msra.mxu0 %v20201_v41 }
0x1a6a   :  { %v4004_v37 = vmul.f32 %v20720_v52, %v20712_v7  ;;  %20206 = vmatprep.subr.bf16.mxu0 %v20205_v43  ;;  %v4202_v53 = vpop.permute.xlu1 %4201 }
0x1a6c   :  { %19075 = vmatmul.mubr.msk.f32.vlgmr.msra.gmra.mrb[46].mxu1 %vm465_vm3, %v4004_v37 }
0x1a6d   :  { %20208 = vmatpush3.bf16.msra.mxu0 %v20205_v43 }
0x1b3a   :  { %v19069_v45 = vpop.f32.mrb[34].mxu0 }
0x1b3b   :  { %4217 = vrot.lane.b32.xlu1 %v19069_v45, %s23620_s14  ;;  %v4083_v48 = vpop.f32.mrb[35].mxu0 }
0x1b3c   :  { %4215 = vrot.lane.b32.xlu0 %v4083_v48, %s23620_s14  ;;  %v17780_v48 = vld [vmem:[%s21412_s11 + $0x20] sm:$0xff] }
0x1b3f   :  { %4189 = vrot.lane.b32.xlu1 %v21639_v25, %s23600_s26  ;;  %v19076_v49 = vpop.f32.mrb[46].mxu1  ;;  %v4227_v25 = vsel %vm288_vm1, %v21587_v57, %v4184_v16  ;;  %v17782_v16 = vld [vmem:[%s21412_s11 + $0x30] sm:$0xff] }
0x1b40   :  { %4187 = vrot.lane.b32.xlu0 %v21641_v13, %s23600_s26  ;;  %v4170_v54 = vpop.f32.mrb[47].mxu1  ;;  %v4228_v13 = vsel %vm288_vm1, %v21585_v56, %v4186_v55  ;;  %v17783_v55 = vld [vmem:[%s21412_s11 + $0x38] sm:$0xff] }
0x1b43   :  { %4205 = vrot.lane.b32.xlu1 %v21683_v44, %s23598_s27  ;;  %v4231_v44 = vsel %vm465_vm3, %v4227_v25, %v4200_v58  ;;  %v17785_v58 = vld [vmem:[%s21421_s29 + $0x40] sm:$0xff]  ;;  %v17786_v25 = vld [vmem:[%s21421_s29 + $0x48] sm:$0xff] }
0x1b44   :  { %4203 = vrot.lane.b32.xlu0 %v21685_v24, %s23598_s27  ;;  %v4232_v24 = vsel %vm465_vm3, %v4228_v13, %v4202_v53  ;;  %v20213_v53 = vpack.c.bf16 %v17783_v55, %v17782_v16  ;;  %v20217_v13 = vpack.c.bf16 %v17786_v25, %v17785_v58 }
0x1b46   :  { %20218 = vmatprep.subr.bf16.mxu0 %v20217_v13 }
0x1b47   :  { %4221 = vrot.lane.b32.xlu1 %v19076_v49, %s23620_s14  ;;  %v17781_v49 = vld [vmem:[%s21412_s11 + $0x28] sm:$0xff]  ;;  %s21801_s11 = sld [smem:[%s23595_s0]]  }
0x1b48   :  { %4219 = vrot.lane.b32.xlu0 %v4170_v54, %s23620_s14  ;;  %v20209_v54 = vpack.c.bf16 %v17781_v49, %v17780_v48 }
0x1b4a   :  { %20210 = vmatprep.subr.bf16.mxu1 %v20209_v54 }
0x1b4b   :  { %20212 = vmatpush3.bf16.msra.mxu1 %v20209_v54 }
0x1b4c   :  { %20214 = vmatprep.subr.bf16.mxu1 %v20213_v53 }
0x1b4f   :  { %20216 = vmatpush3.bf16.msra.mxu1 %v20213_v53 }
0x1bad   :  { %v4218_v29 = vpop.permute.xlu1 %4217 }
0x1bae   :  { %v4216_v50 = vpop.permute.xlu0 %4215  ;;  %v4236_v60 = vsel %vm1952_vm4, %v4232_v24, %v4218_v29  ;;  %v17787_v29 = vld [vmem:[%s21421_s29 + $0x50] sm:$0xff]  ;;  %v17789_v24 = vld [vmem:[%s21421_s29 + $0x60] sm:$0xff] }
0x1baf   :  { %v4235_v59 = vsel %vm1952_vm4, %v4231_v44, %v4216_v50  ;;  %v17788_v44 = vld [vmem:[%s21421_s29 + $0x58] sm:$0xff] }
0x1bb0   :  { %19085 = vmatprep.mubr.msk.f32.mxu0 %vm184_vm0, %v4235_v59  ;;  %v20221_v50 = vpack.c.bf16 %v17788_v44, %v17787_v29  ;;  %v17790_v59 = vld [vmem:[%s21421_s29 + $0x68] sm:$0xff] }
0x1bb1   :  { %v4190_v20 = vpop.permute.xlu1 %4189  ;;  %19086 = vmatmul.mubr.msk.f32.vlgmr.msra.gmra.mrb[36].mxu0 %vm184_vm0, %v4236_v60  ;;  %v20225_v60 = vpack.c.bf16 %v17790_v59, %v17789_v24 }
0x1bb2   :  { %v4188_v57 = vpop.permute.xlu0 %4187  ;;  %v4230_v19 = vsel %vm288_vm1, %v21591_v62, %v4190_v20  ;;  %20220 = vmatpush3.bf16.msra.mxu0 %v20217_v13 }
0x1bb3   :  { %v4229_v56 = vsel %vm288_vm1, %v21593_v63, %v4188_v57  ;;  %20222 = vmatprep.subr.bf16.mxu0 %v20221_v50 }
0x1bb5   :  { %v4206_v17 = vpop.permute.xlu1 %4205 }
0x1bb6   :  { %v4204_v1 = vpop.permute.xlu0 %4203  ;;  %v4234_v47 = vsel %vm465_vm3, %v4230_v19, %v4206_v17  ;;  %20224 = vmatpush3.bf16.msra.mxu0 %v20221_v50 }
0x1bb7   :  { %v4233_v3 = vsel %vm465_vm3, %v4229_v56, %v4204_v1  ;;  %20226 = vmatprep.subr.bf16.mxu0 %v20225_v60 }
0x1bb9   :  { %v4222_v2 = vpop.permute.xlu1 %4221 }
0x1bba   :  { %v4220_v4 = vpop.permute.xlu0 %4219  ;;  %v4238_v33 = vsel %vm1952_vm4, %v4234_v47, %v4222_v2  ;;  %20228 = vmatpush3.bf16.msra.mxu0 %v20225_v60  ;;  %v17854_v47 = vld [vmem:[%s21432_s5 + $0x1] ss:$0 sm:$0xff]  ;;  %s21085_s5 = smov 22  }
0x1bbb   :  { %v4237_v5 = vsel %vm1952_vm4, %v4233_v3, %v4220_v4 }
0x1bbc   :  { %19088 = vmatprep.mubr.msk.f32.mxu0 %vm184_vm0, %v4237_v5 }
0x1bbd   :  { %19089 = vmatmul.mubr.msk.f32.gmra.mrb[38].mxu0 %vm184_vm0, %v4238_v33 }
0x1c84   :  { %v19087_v6 = vpop.f32.mrb[36].mxu0 }
0x1c85   :  { %v4329_v63 = vadd.f32 %v19087_v6, %v17849_v31  ;;  %v4323_v7 = vpop.f32.mrb[37].mxu0 }
0x1c86   :  { %v4324_v10 = vadd.f32 %v17849_v31, %v4323_v7 }
0x1c87   :  { %v4343_v62 = vadd.f32 %v4329_v63, %v21494_v18 }
0x1c88   :  { %v4342_v11 = vadd.f32 %v4324_v10, %v21492_v15  ;;  %v17855_v10 = vld [vmem:[%s21438_s10 + $0x1] ss:$0 sm:$0xff] }
0x1c89   :  { %v4349_v22 = vsel %vm184_vm0, %v4343_v62, 0.0 }
0x1c8a   :  { %4350 = vadd.xlane.f32.xlu1 %v4349_v22  ;;  %v4346_v23 = vsel %vm184_vm0, %v4342_v11, 0.0 }
0x1c8b   :  { %4347 = vadd.xlane.f32.xlu0 %v4346_v23 }
0x1c90   :  { %v19090_v14 = vpop.f32.mrb[38].mxu0 }
0x1c91   :  { %v4333_v61 = vpop.f32.mrb[39].mxu0  ;;  %v4339_v9 = vadd.f32 %v19090_v14, %v17849_v31 }
0x1c92   :  { %v4334_v0 = vadd.f32 %v17849_v31, %v4333_v61 }
0x1c93   :  { %v4345_v27 = vadd.f32 %v4339_v9, %v21502_v21 }
0x1c94   :  { %v4344_v8 = vadd.f32 %v4334_v0, %v21500_v26 }
0x1c95   :  { %v4355_v18 = vsel %vm184_vm0, %v4345_v27, 0.0 }
0x1c96   :  { %v4352_v34 = vsel %vm184_vm0, %v4344_v8, 0.0 }
0x1c97   :  { %4353 = vadd.xlane.f32.xlu0 %v4352_v34 }
0x1c9b   :  { %4356 = vadd.xlane.f32.xlu0 %v4355_v18 }
0x1d17   :  { %v4351_v15 = vpop.xlane.xlu1 %4350 }
0x1d18   :  { %v4359_v28 = vmul.f32 0.03125, %v4351_v15  ;;  %v4348_v30 = vpop.xlane.xlu0 %4347 }
0x1d19   :  { %v4358_v46 = vmul.f32 0.03125, %v4348_v30  ;;  %v17792_v30 = vld [vmem:[%s21421_s29 + $0x78] sm:$0xff] }
0x1d1a   :  { %v4363_v32 = vsub.f32 %v4343_v62, %v4359_v28  ;;  %v17791_v28 = vld [vmem:[%s21421_s29 + $0x70] sm:$0xff]  ;;  %s21075_s29 = smov 15  }
0x1d1b   :  { %v4362_v12 = vsub.f32 %v4342_v11, %v4358_v46  ;;  %v20229_v46 = vpack.c.bf16 %v17792_v30, %v17791_v28 }
0x1d1c   :  { %v4367_v35 = vmul.f32 %v4363_v32, %v4363_v32 }
0x1d1d   :  { %v4366_v36 = vmul.f32 %v4362_v12, %v4362_v12  ;;  %20230 = vmatprep.subr.bf16.mxu0 %v20229_v46 }
0x1d1e   :  { %v4373_v51 = vsel %vm184_vm0, %v4367_v35, 0.0  ;;  %20232 = vmatpush3.bf16.msra.mxu0 %v20229_v46 }
0x1d1f   :  { %4374 = vadd.xlane.f32.xlu0 %v4373_v51  ;;  %v4370_v26 = vsel %vm184_vm0, %v4366_v36, 0.0 }
0x1d20   :  { %4371 = vadd.xlane.f32.xlu1 %v4370_v26 }
0x1d24   :  { %v4354_v21 = vpop.xlane.xlu0 %4353 }
0x1d25   :  { %v4360_v52 = vmul.f32 0.03125, %v4354_v21 }
0x1d27   :  { %v21754_v37 = vsub.f32 %v4344_v8, %v4360_v52 }
0x1d28   :  { %v4357_v38 = vpop.xlane.xlu0 %4356 }
0x1d29   :  { %v4361_v39 = vmul.f32 0.03125, %v4357_v38  ;;  %v4368_v40 = vmul.f32 %v21754_v37, %v21754_v37 }
0x1d2b   :  { %v21758_v41 = vsub.f32 %v4345_v27, %v4361_v39  ;;  %v4376_v42 = vsel %vm184_vm0, %v4368_v40, 0.0 }
0x1d2c   :  { %4377 = vadd.xlane.f32.xlu1 %v4376_v42  ;;  %v17861_v42 = vld [vmem:[%s21465_s9 + $0x1] ss:$0 sm:$0xff]  ;;  %s21084_s9 = smov 20  }
0x1d2d   :  { %v4369_v43 = vmul.f32 %v21758_v41, %v21758_v41  ;;  %s22260_s6 = sld [smem:[%s23595_s0 + %s21084_s9]]  }
0x1d2e   :  { %s22603_s9 = sld [smem:[%s23595_s0 + %s21086_s8]]  }
0x1d2f   :  { %v4379_v45 = vsel %vm184_vm0, %v4369_v43, 0.0 }
0x1d30   :  { %4380 = vadd.xlane.f32.xlu0 %v4379_v45 }
0x1dac   :  { %v4375_v20 = vpop.xlane.xlu0 %4374 }
0x1dad   :  { %v4383_v57 = vmul.f32 0.03125, %v4375_v20  ;;  %v4372_v17 = vpop.xlane.xlu1 %4371 }
0x1dae   :  { %v4382_v1 = vmul.f32 0.03125, %v4372_v17 }
0x1daf   :  { %v4387_v56 = vadd.f32 1e-05, %v4383_v57 }
0x1db0   :  { %v4386_v2 = vadd.f32 1e-05, %v4382_v1 }
0x1db1   :  { %20721 = vrsqrt.f32 %v4387_v56 }
0x1db2   :  { %20723 = vrsqrt.f32 %v4386_v2 }
0x1db9   :  { %v4378_v19 = vpop.xlane.xlu1 %4377 }
0x1dba   :  { %v4384_v3 = vmul.f32 0.03125, %v4378_v19 }
0x1dbb   :  { %v20722_v4 = vpop.eup %20721 }
0x1dbc   :  { %v20724_v5 = vpop.eup %20723  ;;  %v4395_v33 = vmul.f32 %v20722_v4, %v4363_v32  ;;  %v4388_v31 = vadd.f32 1e-05, %v4384_v3  ;;  %v17856_v32 = vld [vmem:[%s21455_s30 + $0x1] ss:$0 sm:$0xff]  ;;  %s21810_s30 = sld [smem:[%s23595_s0 + %s21075_s29]]  }
0x1dbd   :  { %v4381_v6 = vpop.xlane.xlu0 %4380  ;;  %v4394_v63 = vmul.f32 %v20724_v5, %v4362_v12  ;;  %s22288_s29 = sld [smem:[%s23595_s0 + %s23620_s14]]  }
0x1dbe   :  { %20725 = vrsqrt.f32 %v4388_v31  ;;  %v4385_v7 = vmul.f32 0.03125, %v4381_v6  ;;  %v4405_v62 = vmul.f32 %v17854_v47, %v4395_v33 }
0x1dbf   :  { %v4404_v11 = vmul.f32 %v17854_v47, %v4394_v63 }
0x1dc0   :  { %v4389_v22 = vadd.f32 1e-05, %v4385_v7  ;;  %v4415_v14 = vadd.f32 %v17855_v10, %v4405_v62 }
0x1dc1   :  { %v4414_v23 = vadd.f32 %v17855_v10, %v4404_v11 }
0x1dc2   :  { %20727 = vrsqrt.f32 %v4389_v22  ;;  %v4704_v22 = vld [vmem:[%s21801_s11] sm:$0xff] }
0x1dc3   :  { %19099 = vmatprep.mubr.msk.f32.mxu1 %vm184_vm0, %v4414_v23 }
0x1dc4   :  { %19100 = vmatmul.mubr.msk.f32.vlgmr.msra.gmra.mrb[48].mxu1 %vm184_vm0, %v4415_v14 }
0x1dc8   :  { %v20726_v61 = vpop.eup %20725 }
0x1dc9   :  { %v4396_v9 = vmul.f32 %v20726_v61, %v21754_v37 }
0x1dcb   :  { %v4406_v0 = vmul.f32 %v17854_v47, %v4396_v9 }
0x1dcc   :  { %v20728_v8 = vpop.eup %20727 }
0x1dcd   :  { %v4416_v27 = vadd.f32 %v17855_v10, %v4406_v0  ;;  %v4397_v34 = vmul.f32 %v20728_v8, %v21758_v41 }
0x1dcf   :  { %19102 = vmatprep.mubr.msk.f32.mxu1 %vm184_vm0, %v4416_v27  ;;  %v4407_v18 = vmul.f32 %v17854_v47, %v4397_v34 }
0x1dd1   :  { %v4417_v15 = vadd.f32 %v17855_v10, %v4407_v18  ;;  %v17866_v18 = vld [vmem:[%s21483_s3 + $0x1] ss:$0 sm:$0xff]  ;;  %s21082_s3 = smov 2  }
0x1dd2   :  { %s22232_s1 = sld [smem:[%s23595_s0 + %s21082_s3]]  }
0x1dd3   :  { %19103 = vmatmul.mubr.msk.f32.gmra.mrb[50].mxu1 %vm184_vm0, %v4417_v15  ;;  %s22308_s3 = sld [smem:[%s23595_s0 + %s21085_s5]]  }
0x1dd4   :  { %19135 = vmatprep.mubr.msk.f32.mxu1 %vm184_vm0, %v4704_v22  ;;  %s22644_s5 = sld [smem:[%s23595_s0 + %s21087_s13]]   ;;  %s21088_s13 = smov 29  }
0x1e97   :  { %v19101_v12 = vpop.f32.mrb[48].mxu1 }
0x1e98   :  { %v4508_v35 = vadd.f32 %v19101_v12, %v17856_v32  ;;  %v4502_v36 = vpop.f32.mrb[49].mxu1  ;;  %v17867_v12 = vld [vmem:[%s21488_s2 + $0x1] ss:$0 sm:$0xff]  ;;  %s21081_s2 = smov 21  }
0x1e99   :  { %v4503_v51 = vadd.f32 %v17856_v32, %v4502_v36  ;;  %s22223_s28 = sld [smem:[%s23595_s0 + %s21081_s2]]  }
0x1e9a   :  { %v4522_v21 = vmax.f32 %v4508_v35, 0.0 }
0x1e9b   :  { %v4521_v26 = vmax.f32 %v4503_v51, 0.0 }
0x1e9d   :  { %19121 = vmatprep.mubr.msk.f32.mxu0 %vm2250_vm5, %v4521_v26 }
0x1e9e   :  { %19122 = vmatmul.mubr.msk.f32.vlgmr.msra.gmra.mrb[40].mxu0 %vm2250_vm5, %v4522_v21 }
0x1ea6   :  { %v19104_v52 = vpop.f32.mrb[50].mxu1 }
0x1ea7   :  { %v4518_v37 = vadd.f32 %v19104_v52, %v17856_v32  ;;  %v4512_v38 = vpop.f32.mrb[51].mxu1 }
0x1ea8   :  { %v4513_v39 = vadd.f32 %v17856_v32, %v4512_v38 }
0x1ea9   :  { %v4524_v41 = vmax.f32 %v4518_v37, 0.0 }
0x1eaa   :  { %v4523_v40 = vmax.f32 %v4513_v39, 0.0 }
0x1eac   :  { %19124 = vmatprep.mubr.msk.f32.mxu0 %vm2250_vm5, %v4523_v40 }
0x1ead   :  { %19125 = vmatmul.mubr.msk.f32.gmra.mrb[42].mxu0 %vm2250_vm5, %v4524_v41 }
0x1f71   :  { %v19123_v43 = vpop.f32.mrb[40].mxu0 }
0x1f72   :  { %v4615_v45 = vadd.f32 %v19123_v43, %v17861_v42  ;;  %v4609_v48 = vpop.f32.mrb[41].mxu0 }
0x1f73   :  { %v4610_v49 = vadd.f32 %v17861_v42, %v4609_v48 }
0x1f74   :  { %v4629_v54 = vadd.f32 %v4615_v45, %v4415_v14 }
0x1f75   :  { %v4628_v16 = vadd.f32 %v4610_v49, %v4414_v23  ;;  %v4809_v49 = vld [vmem:[%s21810_s30] sm:$0xff] }
0x1f76   :  { %v4635_v55 = vsel %vm184_vm0, %v4629_v54, 0.0 }
0x1f77   :  { %4636 = vadd.xlane.f32.xlu0 %v4635_v55  ;;  %v4632_v53 = vsel %vm184_vm0, %v4628_v16, 0.0 }
0x1f78   :  { %4633 = vadd.xlane.f32.xlu1 %v4632_v53 }
0x1f80   :  { %v19126_v58 = vpop.f32.mrb[42].mxu0 }
0x1f81   :  { %v4625_v25 = vadd.f32 %v19126_v58, %v17861_v42  ;;  %v4619_v29 = vpop.f32.mrb[43].mxu0  ;;  %v4811_v58 = vld [vmem:[%s21810_s30 + $0x10] sm:$0xff] }
0x1f82   :  { %v4620_v13 = vadd.f32 %v17861_v42, %v4619_v29  ;;  %v4705_v29 = vld [vmem:[%s21801_s11 + $0x8] sm:$0xff] }
0x1f83   :  { %v4631_v44 = vadd.f32 %v4625_v25, %v4417_v15  ;;  %v4812_v25 = vld [vmem:[%s21810_s30 + $0x18] sm:$0xff] }
0x1f84   :  { %v4630_v50 = vadd.f32 %v4620_v13, %v4416_v27  ;;  %v4706_v13 = vld [vmem:[%s21801_s11 + $0x10] sm:$0xff] }
0x1f85   :  { %v4641_v24 = vsel %vm184_vm0, %v4631_v44, 0.0 }
0x1f86   :  { %4642 = vadd.xlane.f32.xlu0 %v4641_v24  ;;  %v4638_v59 = vsel %vm184_vm0, %v4630_v50, 0.0 }
0x1f87   :  { %4639 = vadd.xlane.f32.xlu1 %v4638_v59 }
0x2004   :  { %v4637_v60 = vpop.xlane.xlu0 %4636 }
0x2005   :  { %v4645_v20 = vmul.f32 0.03125, %v4637_v60  ;;  %v4634_v57 = vpop.xlane.xlu1 %4633 }
0x2006   :  { %v4644_v17 = vmul.f32 0.03125, %v4634_v57  ;;  %v21076_v57 = vmov 0.0  }
0x2007   :  { %v4649_v1 = vsub.f32 %v4629_v54, %v4645_v20  ;;  %v4810_v54 = vld [vmem:[%s21810_s30 + $0x8] sm:$0xff]  ;;  %19155 = vmatprep.subr.mxu0 %v21076_v57  ;;  %19157 = vmatprep.mubr.msk.f32.mxu0 %vm21077_vm6, %v21076_v57 }
0x2008   :  { %v4648_v56 = vsub.f32 %v4628_v16, %v4644_v17  ;;  %v20241_v53 = vpack.c.bf16 %v4810_v54, %v4809_v49  ;;  %v17872_v17 = vld [vmem:[%s21844_s12] ss:$0 sm:$0xff] }
0x2009   :  { %v4653_v2 = vmul.f32 %v4649_v1, %v4649_v1 }
0x200a   :  { %v4652_v19 = vmul.f32 %v4648_v56, %v4648_v56 }
0x200b   :  { %v4659_v3 = vsel %vm184_vm0, %v4653_v2, 0.0 }
0x200c   :  { %4660 = vadd.xlane.f32.xlu0 %v4659_v3  ;;  %v4656_v4 = vsel %vm184_vm0, %v4652_v19, 0.0 }
0x200d   :  { %4657 = vadd.xlane.f32.xlu1 %v4656_v4 }
0x2013   :  { %v4643_v47 = vpop.xlane.xlu0 %4642 }
0x2014   :  { %v4647_v5 = vmul.f32 0.03125, %v4643_v47  ;;  %v4640_v33 = vpop.xlane.xlu1 %4639 }
0x2015   :  { %v4646_v31 = vmul.f32 0.03125, %v4640_v33 }
0x2016   :  { %v4651_v6 = vsub.f32 %v4631_v44, %v4647_v5  ;;  %v20245_v44 = vpack.c.bf16 %v4812_v25, %v4811_v58 }
0x2017   :  { %v4650_v63 = vsub.f32 %v4630_v50, %v4646_v31  ;;  %v4707_v50 = vld [vmem:[%s21801_s11 + $0x18] sm:$0xff]  ;;  %s21080_s11 = smov 23  }
0x2018   :  { %v4655_v7 = vmul.f32 %v4651_v6, %v4651_v6  ;;  %s22218_s10 = sld [smem:[%s23595_s0 + %s21080_s11]]   ;;  %s21083_s11 = smov 19  }
0x2019   :  { %v4654_v10 = vmul.f32 %v4650_v63, %v4650_v63  ;;  %s22255_s2 = sld [smem:[%s23595_s0 + %s21083_s11]]   ;;  %s21091_s11 = smov 28  }
0x201a   :  { %v4665_v62 = vsel %vm184_vm0, %v4655_v7, 0.0 }
0x201b   :  { %4666 = vadd.xlane.f32.xlu0 %v4665_v62  ;;  %v4662_v11 = vsel %vm184_vm0, %v4654_v10, 0.0 }
0x201c   :  { %4663 = vadd.xlane.f32.xlu1 %v4662_v11 }
0x2099   :  { %v4661_v23 = vpop.xlane.xlu0 %4660 }
0x209a   :  { %v4669_v14 = vmul.f32 0.03125, %v4661_v23  ;;  %v4658_v61 = vpop.xlane.xlu1 %4657 }
0x209b   :  { %v4668_v9 = vmul.f32 0.03125, %v4658_v61 }
0x209c   :  { %v4673_v0 = vadd.f32 1e-05, %v4669_v14 }
0x209d   :  { %v4672_v8 = vadd.f32 1e-05, %v4668_v9 }
0x209e   :  { %20729 = vrsqrt.f32 %v4673_v0 }
0x209f   :  { %20731 = vrsqrt.f32 %v4672_v8 }
0x20a8   :  { %v20730_v27 = vpop.eup %20729  ;;  %v4667_v34 = vpop.xlane.xlu0 %4666 }
0x20a9   :  { %v20732_v15 = vpop.eup %20731  ;;  %v4671_v28 = vmul.f32 0.03125, %v4667_v34  ;;  %v4664_v30 = vpop.xlane.xlu1 %4663  ;;  %v4681_v46 = vmul.f32 %v20730_v27, %v4649_v1 }
0x20aa   :  { %v4670_v32 = vmul.f32 0.03125, %v4664_v30  ;;  %v4680_v35 = vmul.f32 %v20732_v15, %v4648_v56 }
0x20ab   :  { %v4675_v36 = vadd.f32 1e-05, %v4671_v28  ;;  %v4691_v51 = vmul.f32 %v17866_v18, %v4681_v46 }
0x20ac   :  { %v4674_v26 = vadd.f32 1e-05, %v4670_v32  ;;  %v4690_v21 = vmul.f32 %v17866_v18, %v4680_v35 }
0x20ad   :  { %20733 = vrsqrt.f32 %v4675_v36  ;;  %v4701_v52 = vadd.f32 %v17867_v12, %v4691_v51 }
0x20ae   :  { %20735 = vrsqrt.f32 %v4674_v26  ;;  %v4700_v37 = vadd.f32 %v17867_v12, %v4690_v21 }
0x20b0   :  { %v20233_v38 = vpack.c.bf16 %v4701_v52, %v4700_v37 }
0x20b2   :  { %20234 = vmatprep.subr.bf16.mxu1 %v20233_v38 }
0x20b3   :  { %20236 = vmatpush3.bf16.msra.mxu1 %v20233_v38 }
0x20b7   :  { %v20734_v39 = vpop.eup %20733 }
0x20b8   :  { %v20736_v40 = vpop.eup %20735  ;;  %v4683_v41 = vmul.f32 %v20734_v39, %v4651_v6 }
0x20b9   :  { %v4682_v42 = vmul.f32 %v20736_v40, %v4650_v63 }
0x20ba   :  { %v4693_v43 = vmul.f32 %v17866_v18, %v4683_v41 }
0x20bb   :  { %v4692_v45 = vmul.f32 %v17866_v18, %v4682_v42 }
0x20bc   :  { %v4703_v48 = vadd.f32 %v17867_v12, %v4693_v43 }
0x20bd   :  { %v4702_v16 = vadd.f32 %v17867_v12, %v4692_v45 }
0x20bf   :  { %v20237_v55 = vpack.c.bf16 %v4703_v48, %v4702_v16 }
0x20c1   :  { %20238 = vmatprep.subr.bf16.mxu1 %v20237_v55 }
0x20c2   :  { %20240 = vmatpush3.bf16.msra.mxu1 %v20237_v55 }
0x20c3   :  { %20242 = vmatprep.subr.bf16.mxu1 %v20241_v53 }
0x20c5   :  { %19136 = vmatmul.mubr.msk.f32.vlgmr.msra.gmra.mrb[52].mxu1 %vm184_vm0, %v4705_v29 }
0x20c6   :  { %19138 = vmatprep.mubr.msk.f32.mxu1 %vm184_vm0, %v4706_v13  ;;  %20244 = vmatpush3.bf16.msra.mxu1 %v20241_v53 }
0x20c7   :  { %20246 = vmatprep.subr.bf16.mxu1 %v20245_v44 }
0x20c9   :  { %19139 = vmatmul.mubr.msk.f32.gmra.mrb[54].mxu1 %vm184_vm0, %v4707_v50 }
0x20ca   :  { %20248 = vmatpush3.bf16.msra.mxu1 %v20245_v44 }
0x20cb   :  { %19160 = vmatprep.subr.mxu1 %v21076_v57 }
0x2198   :  { %v21822_v24 = vpop.f32.mrb[52].mxu1 }
0x2199   :  { %v21824_v59 = vpop.f32.mrb[53].mxu1 }
0x219a   :  { %19149 = vmatprep.mubr.msk.f32.mxu1 %vm184_vm0, %v21824_v59 }
0x219b   :  { %19150 = vmatmul.mubr.msk.f32.vlgmr.msra.gmra.mrb[56].mxu1 %vm184_vm0, %v21822_v24 }
0x219c   :  { %v21830_v60 = vpop.f32.mrb[54].mxu1 }
0x219d   :  { %v21832_v20 = vpop.f32.mrb[55].mxu1 }
0x219e   :  { %19152 = vmatprep.mubr.msk.f32.mxu1 %vm184_vm0, %v21832_v20 }
0x219f   :  { %19153 = vmatmul.mubr.msk.f32.gmra.mrb[58].mxu1 %vm184_vm0, %v21830_v60 }
0x21a0   :  { %19162 = vmatprep.mubr.msk.f32.mxu1 %vm21077_vm6, %v21076_v57 }
0x226e   :  { %v19151_v1 = vpop.f32.mrb[56].mxu1 }
0x226f   :  { %v21851_v56 = vadd.f32 %v19151_v1, %v17872_v17  ;;  %v4938_v2 = vpop.f32.mrb[57].mxu1 }
0x2270   :  { %v21853_v19 = vadd.f32 %v17872_v17, %v4938_v2 }
0x2271   :  { %5035 = vrot.lane.b32.xlu0 %v21851_v56, %s21052_s15 }
0x2272   :  { %v19154_v3 = vpop.f32.mrb[58].mxu1  ;;  %4958 = vrot.lane.b32.xlu1 %v21853_v19, %s21052_s15 }
0x2273   :  { %v4948_v4 = vpop.f32.mrb[59].mxu1  ;;  %v21861_v5 = vadd.f32 %v19154_v3, %v17872_v17 }
0x2274   :  { %v21859_v47 = vadd.f32 %v17872_v17, %v4948_v4 }
0x2276   :  { %5112 = vrot.lane.b32.xlu1 %v21859_v47, %s21052_s15 }
0x227a   :  { %5189 = vrot.lane.b32.xlu1 %v21861_v5, %s21052_s15 }
0x22e3   :  { %v5036_v33 = vpop.permute.xlu0 %5035 }
0x22e4   :  { %19161 = vmatpush3.xpose.msk.msra.mxu1 %vm288_vm1, %v5036_v33  ;;  %v4959_v31 = vpop.permute.xlu1 %4958 }
0x22e5   :  { %19156 = vmatpush3.xpose.msk.msra.mxu0 %vm288_vm1, %v4959_v31  ;;  %19170 = vmatprep.subr.mxu1 %v21076_v57 }
0x22e6   :  { %19165 = vmatprep.subr.mxu0 %v21076_v57 }
0x22e7   :  { %19163 = vmatmul.mubr.msk.f32.vlgmr.msra.gmra.mrb[60].mxu1 %vm288_vm1, %v21851_v56 }
0x22e8   :  { %19158 = vmatmul.mubr.msk.f32.vlgmr.msra.gmra.mrb[44].mxu0 %vm288_vm1, %v21853_v19  ;;  %v5113_v6 = vpop.permute.xlu1 %5112  ;;  %19172 = vmatprep.mubr.msk.f32.mxu1 %vm21077_vm6, %v21076_v57 }
0x22e9   :  { %19166 = vmatpush3.xpose.msk.msra.mxu0 %vm288_vm1, %v5113_v6  ;;  %19167 = vmatprep.mubr.msk.f32.mxu0 %vm21077_vm6, %v21076_v57 }
0x22ea   :  { %19175 = vmatprep.subr.mxu0 %v21076_v57 }
0x22ec   :  { %19168 = vmatmul.mubr.msk.f32.vlgmr.msra.gmra.mrb[46].mxu0 %vm288_vm1, %v21859_v47  ;;  %v5190_v63 = vpop.permute.xlu1 %5189 }
0x22ed   :  { %19171 = vmatpush3.xpose.msk.msra.mxu1 %vm288_vm1, %v5190_v63  ;;  %19177 = vmatprep.mubr.msk.f32.mxu0 %vm21077_vm6, %v21076_v57 }
0x22ee   :  { %19180 = vmatprep.subr.mxu1 %v21076_v57 }
0x22f0   :  { %19173 = vmatmul.mubr.msk.f32.vlgmr.msra.gmra.mrb[62].mxu1 %vm288_vm1, %v21861_v5 }
0x22f1   :  { %19182 = vmatprep.mubr.msk.f32.mxu1 %vm21077_vm6, %v21076_v57 }
0x23ba   :  { %v5107_v7 = vpop.f32.mrb[60].mxu1 }
0x23bb   :  { %v5266_v10 = vmul.f32 0.35355338, %v5107_v7  ;;  %v5030_v62 = vpop.f32.mrb[44].mxu0  ;;  %v19164_v11 = vpop.f32.mrb[61].mxu1 }
0x23bc   :  { %v5265_v22 = vmul.f32 0.35355338, %v5030_v62  ;;  %v19159_v23 = vpop.f32.mrb[45].mxu0 }
0x23bd   :  { %v5272_v14 = vsel %vm288_vm1, %v5266_v10, -inf }
0x23be   :  { %5273 = vmax.xlane.f32.xlu1 %v5272_v14  ;;  %v5269_v61 = vsel %vm288_vm1, %v5265_v22, -inf }
0x23bf   :  { %5270 = vmax.xlane.f32.xlu0 %v5269_v61  ;;  %v5184_v9 = vpop.f32.mrb[46].mxu0 }
0x23c0   :  { %v5267_v0 = vmul.f32 0.35355338, %v5184_v9  ;;  %v19169_v8 = vpop.f32.mrb[47].mxu0 }
0x23c2   :  { %v5275_v27 = vsel %vm288_vm1, %v5267_v0, -inf }
0x23c3   :  { %5276 = vmax.xlane.f32.xlu0 %v5275_v27  ;;  %v5261_v34 = vpop.f32.mrb[62].mxu1 }
0x23c4   :  { %v5268_v18 = vmul.f32 0.35355338, %v5261_v34  ;;  %v19174_v15 = vpop.f32.mrb[63].mxu1 }
0x23c6   :  { %v5278_v28 = vsel %vm288_vm1, %v5268_v18, -inf }
0x23c7   :  { %5279 = vmax.xlane.f32.xlu0 %v5278_v28 }
0x23cf   :  { %5313 = vrot.lane.b32.xlu1 %v21853_v19, %s21053_s16 }
0x23d3   :  { %5465 = vrot.lane.b32.xlu1 %v21859_v47, %s21053_s16 }
0x23d7   :  { %5541 = vrot.lane.b32.xlu1 %v21861_v5, %s21053_s16 }
0x23db   :  { %5697 = vrot.lane.b32.xlu1 %v21851_v56, %s21054_s17 }
0x23dd   :  { %5389 = vrot.lane.b32.xlu0 %v21851_v56, %s21053_s16 }
0x23e1   :  { %5619 = vrot.lane.b32.xlu0 %v21853_v19, %s21054_s17 }
0x244b   :  { %v5274_v30 = vpop.xlane.xlu1 %5273 }
0x244c   :  { %v5282_v46 = vsub.f32 %v5266_v10, %v5274_v30  ;;  %v5271_v32 = vpop.xlane.xlu0 %5270 }
0x244d   :  { %v5281_v12 = vsub.f32 %v5265_v22, %v5271_v32 }
0x244e   :  { %v5287_v35 = vmul.f32 1.442695, %v5282_v46 }
0x244f   :  { %v5285_v36 = vmul.f32 1.442695, %v5281_v12  ;;  %v5314_v51 = vpop.permute.xlu1 %5313 }
0x2450   :  { %20737 = vpow2.f32 %v5287_v35  ;;  %v5277_v26 = vpop.xlane.xlu0 %5276  ;;  %19176 = vmatpush3.msra.mxu0 %v5314_v51 }
0x2451   :  { %20739 = vpow2.f32 %v5285_v36  ;;  %19185 = vmatprep.subr.mxu0 %v21076_v57  ;;  %v5283_v48 = vsub.f32 %v5267_v0, %v5277_v26 }
0x2453   :  { %v5289_v49 = vmul.f32 1.442695, %v5283_v48  ;;  %v5466_v55 = vpop.permute.xlu1 %5465 }
0x2454   :  { %v5280_v21 = vpop.xlane.xlu0 %5279 }
0x2455   :  { %v5284_v52 = vsub.f32 %v5268_v18, %v5280_v21 }
0x2457   :  { %v5291_v37 = vmul.f32 1.442695, %v5284_v52  ;;  %v5542_v53 = vpop.permute.xlu1 %5541 }
0x2458   :  { %v5390_v38 = vpop.permute.xlu0 %5389 }
0x2459   :  { %20741 = vpow2.f32 %v5291_v37  ;;  %19181 = vmatpush3.msra.mxu1 %v5390_v38 }
0x245a   :  { %v20738_v39 = vpop.eup %20737  ;;  %19190 = vmatprep.subr.mxu1 %v21076_v57  ;;  %20743 = vpow2.f32 %v5289_v49 }
0x245b   :  { %v20740_v40 = vpop.eup %20739  ;;  %v5296_v41 = vsel %vm288_vm1, %v20738_v39, 0.0  ;;  %v5698_v25 = vpop.permute.xlu1 %5697 }
0x245c   :  { %5297 = vadd.xlane.f32.xlu0 %v5296_v41  ;;  %v5293_v42 = vsel %vm288_vm1, %v20740_v40, 0.0  ;;  %v5620_v58 = vpop.permute.xlu0 %5619 }
0x245d   :  { %5294 = vadd.xlane.f32.xlu1 %v5293_v42 }
0x2463   :  { %v20742_v43 = vpop.eup %20741 }
0x2464   :  { %v5302_v45 = vsel %vm288_vm1, %v20742_v43, 0.0  ;;  %v20744_v54 = vpop.eup %20743 }
0x2465   :  { %5303 = vadd.xlane.f32.xlu0 %v5302_v45  ;;  %v5299_v16 = vsel %vm288_vm1, %v20744_v54, 0.0 }
0x246e   :  { %5695 = vrot.lane.b32.xlu1 %v21851_v56, %s23616_s18 }
0x247b   :  { %5617 = vrot.lane.b32.xlu0 %v21853_v19, %s23616_s18 }
0x247f   :  { %5775 = vrot.lane.b32.xlu0 %v21859_v47, %s21054_s17 }
0x2483   :  { %5773 = vrot.lane.b32.xlu0 %v21859_v47, %s23616_s18 }
0x2492   :  { %5300 = vadd.xlane.f32.xlu1 %v5299_v16 }
0x24a3   :  { %5853 = vrot.lane.b32.xlu1 %v21861_v5, %s21054_s17 }
0x24a7   :  { %5851 = vrot.lane.b32.xlu1 %v21861_v5, %s23616_s18 }
0x24e9   :  { %v5298_v29 = vpop.xlane.xlu0 %5297 }
0x24ea   :  { %20745 = vrcp.f32 %v5298_v29  ;;  %v5295_v13 = vpop.xlane.xlu1 %5294 }
0x24eb   :  { %20747 = vrcp.f32 %v5295_v13 }
0x24ee   :  { %v5696_v33 = vpop.permute.xlu1 %5695 }
0x24f2   :  { %v5304_v44 = vpop.xlane.xlu0 %5303 }
0x24f3   :  { %20749 = vrcp.f32 %v5304_v44 }
0x24f4   :  { %v20746_v50 = vpop.eup %20745 }
0x24f5   :  { %v20748_v17 = vpop.eup %20747  ;;  %v5310_v1 = vmul.f32 %v20746_v50, %v20738_v39 }
0x24f6   :  { %v5309_v2 = vmul.f32 %v20748_v17, %v20740_v40  ;;  %v5618_v7 = vpop.permute.xlu0 %5617 }
0x24f7   :  { %19183 = vmatmul.mubr.msk.f32.vlgmr.msra.gmra.mrb[64].mxu1 %vm288_vm1, %v5310_v1 }
0x24f8   :  { %19191 = vmatpush3.msra.mxu1 %v5542_v53  ;;  %19178 = vmatmul.mubr.msk.f32.vlgmr.msra.gmra.mrb[48].mxu0 %vm288_vm1, %v5309_v2 }
0x24f9   :  { %19186 = vmatpush3.msra.mxu0 %v5466_v55  ;;  %19192 = vmatprep.mubr.msk.f32.mxu1 %vm21077_vm6, %v21076_v57 }
0x24fa   :  { %19200 = vmatprep.subr.mxu1 %v21076_v57  ;;  %19187 = vmatprep.mubr.msk.f32.mxu0 %vm21077_vm6, %v21076_v57  ;;  %v5776_v11 = vpop.permute.xlu0 %5775 }
0x24fb   :  { %19195 = vmatprep.subr.mxu0 %v21076_v57 }
0x24fd   :  { %v20750_v3 = vpop.eup %20749 }
0x24fe   :  { %v5312_v4 = vmul.f32 %v20750_v3, %v20742_v43  ;;  %v5774_v22 = vpop.permute.xlu0 %5773 }
0x2500   :  { %19193 = vmatmul.mubr.msk.f32.vlgmr.msra.gmra.mrb[66].mxu1 %vm288_vm1, %v5312_v4 }
0x2501   :  { %19201 = vmatpush3.xpose.msk.msra.mxu1 %vm288_vm1, %v5698_v25  ;;  %19202 = vmatprep.mubr.msk.f32.mxu1 %vm21077_vm6, %v21076_v57 }
0x2502   :  { %19210 = vmatprep.subr.mxu1 %v21076_v57 }
0x2504   :  { %19203 = vmatmul.mubr.msk.f32.vlgmr.msra.gmra.mrb[68].mxu1 %vm288_vm1, %v5696_v33 }
0x2505   :  { %19212 = vmatprep.mubr.msk.f32.mxu1 %vm21077_vm6, %v21076_v57 }
0x251f   :  { %v5301_v31 = vpop.xlane.xlu1 %5300 }
0x2520   :  { %20751 = vrcp.f32 %v5301_v31 }
0x2523   :  { %v5854_v6 = vpop.permute.xlu1 %5853 }
0x2524   :  { %19211 = vmatpush3.xpose.msk.msra.mxu1 %vm288_vm1, %v5854_v6 }
0x2525   :  { %19220 = vmatprep.subr.mxu1 %v21076_v57 }
0x2527   :  { %v5852_v63 = vpop.permute.xlu1 %5851 }
0x2528   :  { %19213 = vmatmul.mubr.msk.f32.vlgmr.msra.gmra.mrb[70].mxu1 %vm288_vm1, %v5852_v63 }
0x2529   :  { %19222 = vmatprep.mubr.msk.f32.mxu1 %vm21077_vm6, %v21076_v57 }
0x252a   :  { %v20752_v10 = vpop.eup %20751 }
0x252b   :  { %v5311_v62 = vmul.f32 %v20752_v10, %v20744_v54 }
0x252d   :  { %19188 = vmatmul.mubr.msk.f32.vlgmr.msra.gmra.mrb[50].mxu0 %vm288_vm1, %v5311_v62 }
0x252e   :  { %19196 = vmatpush3.xpose.msk.msra.mxu0 %vm288_vm1, %v5620_v58  ;;  %19197 = vmatprep.mubr.msk.f32.mxu0 %vm21077_vm6, %v21076_v57 }
0x252f   :  { %19205 = vmatprep.subr.mxu0 %v21076_v57 }
0x2531   :  { %19198 = vmatmul.mubr.msk.f32.vlgmr.msra.gmra.mrb[52].mxu0 %vm288_vm1, %v5618_v7 }
0x2532   :  { %19206 = vmatpush3.xpose.msk.msra.mxu0 %vm288_vm1, %v5776_v11  ;;  %19207 = vmatprep.mubr.msk.f32.mxu0 %vm21077_vm6, %v21076_v57 }
0x2533   :  { %19215 = vmatprep.subr.mxu0 %v21076_v57 }
0x2535   :  { %19208 = vmatmul.mubr.msk.f32.vlgmr.msra.gmra.mrb[54].mxu0 %vm288_vm1, %v5774_v22 }
0x2536   :  { %19217 = vmatprep.mubr.msk.f32.mxu0 %vm21077_vm6, %v21076_v57 }
0x25ca   :  { %v21959_v23 = vpop.f32.mrb[64].mxu1 }
0x25cb   :  { %v21961_v14 = vpop.f32.mrb[48].mxu0  ;;  %v19184_v61 = vpop.f32.mrb[65].mxu1 }
0x25cc   :  { %v19179_v9 = vpop.f32.mrb[49].mxu0 }
0x25d3   :  { %v21963_v0 = vpop.f32.mrb[66].mxu1 }
0x25d4   :  { %v19194_v8 = vpop.f32.mrb[67].mxu1 }
0x25d7   :  { %v5769_v27 = vpop.f32.mrb[68].mxu1 }
0x25d8   :  { %v5930_v34 = vmul.f32 0.35355338, %v5769_v27  ;;  %v19204_v18 = vpop.f32.mrb[69].mxu1 }
0x25da   :  { %v5936_v15 = vsel %vm288_vm1, %v5930_v34, -inf }
0x25db   :  { %5937 = vmax.xlane.f32.xlu1 %v5936_v15 }
0x25ec   :  { %5977 = vrot.lane.b32.xlu1 %v21853_v19, %s23614_s19 }
0x25f0   :  { %6129 = vrot.lane.b32.xlu1 %v21859_v47, %s23614_s19 }
0x25f4   :  { %6205 = vrot.lane.b32.xlu1 %v21861_v5, %s23614_s19 }
0x25f8   :  { %6361 = vrot.lane.b32.xlu1 %v21851_v56, %s23612_s20 }
0x25fb   :  { %v5925_v28 = vpop.f32.mrb[70].mxu1 }
0x25fc   :  { %v19214_v30 = vpop.f32.mrb[71].mxu1  ;;  %v5932_v37 = vmul.f32 0.35355338, %v5925_v28 }
0x25fe   :  { %v5942_v39 = vsel %vm288_vm1, %v5932_v37, -inf }
0x2600   :  { %v21974_v46 = vpop.f32.mrb[50].mxu0 }
0x2601   :  { %v19189_v32 = vpop.f32.mrb[51].mxu0 }
0x2604   :  { %v5691_v12 = vpop.f32.mrb[52].mxu0 }
0x2605   :  { %v5929_v35 = vmul.f32 0.35355338, %v5691_v12  ;;  %v19199_v36 = vpop.f32.mrb[53].mxu0 }
0x2607   :  { %v5933_v51 = vsel %vm288_vm1, %v5929_v35, -inf }
0x2608   :  { %5934 = vmax.xlane.f32.xlu0 %v5933_v51  ;;  %v5847_v26 = vpop.f32.mrb[54].mxu0 }
0x2609   :  { %v5931_v21 = vmul.f32 0.35355338, %v5847_v26  ;;  %v19209_v52 = vpop.f32.mrb[55].mxu0 }
0x260b   :  { %v5939_v38 = vsel %vm288_vm1, %v5931_v21, -inf }
0x260c   :  { %5940 = vmax.xlane.f32.xlu0 %v5939_v38 }
0x2610   :  { %5943 = vmax.xlane.f32.xlu0 %v5942_v39 }
0x2626   :  { %6053 = vrot.lane.b32.xlu0 %v21851_v56, %s23614_s19  ;;  %s23622_s19 = smov 56  }
0x262a   :  { %6283 = vrot.lane.b32.xlu0 %v21853_v19, %s23612_s20 }
0x2668   :  { %v5938_v40 = vpop.xlane.xlu1 %5937 }
0x2669   :  { %v5946_v41 = vsub.f32 %v5930_v34, %v5938_v40 }
0x266b   :  { %v5951_v42 = vmul.f32 1.442695, %v5946_v41 }
0x266c   :  { %v5978_v43 = vpop.permute.xlu1 %5977 }
0x266d   :  { %20753 = vpow2.f32 %v5951_v42  ;;  %19216 = vmatpush3.msra.mxu0 %v5978_v43 }
0x266e   :  { %19225 = vmatprep.subr.mxu0 %v21076_v57 }
0x2670   :  { %v6130_v6 = vpop.permute.xlu1 %6129 }
0x2674   :  { %v6206_v10 = vpop.permute.xlu1 %6205 }
0x2677   :  { %v20754_v45 = vpop.eup %20753 }
0x2678   :  { %v5960_v48 = vsel %vm288_vm1, %v20754_v45, 0.0  ;;  %v6362_v62 = vpop.permute.xlu1 %6361 }
0x2679   :  { %5961 = vadd.xlane.f32.xlu0 %v5960_v48 }
0x2695   :  { %v5935_v49 = vpop.xlane.xlu0 %5934 }
0x2696   :  { %v5945_v54 = vsub.f32 %v5929_v35, %v5935_v49 }
0x2698   :  { %v5949_v16 = vmul.f32 1.442695, %v5945_v54 }
0x2699   :  { %v5941_v55 = vpop.xlane.xlu0 %5940 }
0x269a   :  { %20755 = vpow2.f32 %v5949_v16  ;;  %v5947_v1 = vsub.f32 %v5931_v21, %v5941_v55 }
0x269c   :  { %v5953_v2 = vmul.f32 1.442695, %v5947_v1 }
0x269d   :  { %v5944_v53 = vpop.xlane.xlu0 %5943 }
0x269e   :  { %v5948_v58 = vsub.f32 %v5932_v37, %v5944_v53 }
0x26a0   :  { %v5955_v25 = vmul.f32 1.442695, %v5948_v58 }
0x26a1   :  { %v6054_v29 = vpop.permute.xlu0 %6053 }
0x26a2   :  { %20757 = vpow2.f32 %v5955_v25  ;;  %19221 = vmatpush3.msra.mxu1 %v6054_v29 }
0x26a3   :  { %19230 = vmatprep.subr.mxu1 %v21076_v57  ;;  %20759 = vpow2.f32 %v5953_v2 }
0x26a4   :  { %v20756_v13 = vpop.eup %20755 }
0x26a5   :  { %v5957_v44 = vsel %vm288_vm1, %v20756_v13, 0.0  ;;  %v6284_v33 = vpop.permute.xlu0 %6283 }
0x26a6   :  { %5958 = vadd.xlane.f32.xlu1 %v5957_v44 }
0x26ac   :  { %v20758_v50 = vpop.eup %20757 }
0x26ad   :  { %v5966_v17 = vsel %vm288_vm1, %v20758_v50, 0.0  ;;  %v20760_v3 = vpop.eup %20759 }
0x26ae   :  { %5967 = vadd.xlane.f32.xlu0 %v5966_v17  ;;  %v5963_v4 = vsel %vm288_vm1, %v20760_v3, 0.0 }
0x26b7   :  { %6359 = vrot.lane.b32.xlu1 %v21851_v56, %s23610_s21 }
0x26c4   :  { %6281 = vrot.lane.b32.xlu0 %v21853_v19, %s23610_s21 }
0x26c8   :  { %6439 = vrot.lane.b32.xlu0 %v21859_v47, %s23612_s20 }
0x26cc   :  { %6437 = vrot.lane.b32.xlu0 %v21859_v47, %s23610_s21 }
0x26db   :  { %5964 = vadd.xlane.f32.xlu1 %v5963_v4 }
0x26ec   :  { %6517 = vrot.lane.b32.xlu1 %v21861_v5, %s23612_s20 }
0x26f0   :  { %6515 = vrot.lane.b32.xlu1 %v21861_v5, %s23610_s21 }
0x2706   :  { %v5962_v31 = vpop.xlane.xlu0 %5961 }
0x2707   :  { %20761 = vrcp.f32 %v5962_v31 }
0x2711   :  { %v20762_v63 = vpop.eup %20761 }
0x2712   :  { %v5974_v7 = vmul.f32 %v20762_v63, %v20754_v45 }
0x2714   :  { %19223 = vmatmul.mubr.msk.f32.vlgmr.msra.gmra.mrb[72].mxu1 %vm288_vm1, %v5974_v7 }
0x2715   :  { %19231 = vmatpush3.msra.mxu1 %v6206_v10  ;;  %19232 = vmatprep.mubr.msk.f32.mxu1 %vm21077_vm6, %v21076_v57 }
0x2716   :  { %19240 = vmatprep.subr.mxu1 %v21076_v57 }
0x2733   :  { %v5959_v11 = vpop.xlane.xlu1 %5958 }
0x2734   :  { %20763 = vrcp.f32 %v5959_v11 }
0x2737   :  { %v6360_v34 = vpop.permute.xlu1 %6359 }
0x273b   :  { %v5968_v22 = vpop.xlane.xlu0 %5967 }
0x273c   :  { %20765 = vrcp.f32 %v5968_v22 }
0x273e   :  { %v20764_v61 = vpop.eup %20763 }
0x273f   :  { %v5973_v9 = vmul.f32 %v20764_v61, %v20756_v13  ;;  %v6282_v30 = vpop.permute.xlu0 %6281 }
0x2741   :  { %19218 = vmatmul.mubr.msk.f32.vlgmr.msra.gmra.mrb[56].mxu0 %vm288_vm1, %v5973_v9 }
0x2742   :  { %19226 = vmatpush3.msra.mxu0 %v6130_v6  ;;  %19227 = vmatprep.mubr.msk.f32.mxu0 %vm21077_vm6, %v21076_v57 }
0x2743   :  { %19235 = vmatprep.subr.mxu0 %v21076_v57  ;;  %v6440_v35 = vpop.permute.xlu0 %6439 }
0x2746   :  { %v20766_v8 = vpop.eup %20765 }
0x2747   :  { %v5976_v27 = vmul.f32 %v20766_v8, %v20758_v50  ;;  %v6438_v36 = vpop.permute.xlu0 %6437 }
0x2749   :  { %19233 = vmatmul.mubr.msk.f32.vlgmr.msra.gmra.mrb[74].mxu1 %vm288_vm1, %v5976_v27 }
0x274a   :  { %19241 = vmatpush3.xpose.msk.msra.mxu1 %vm288_vm1, %v6362_v62  ;;  %19242 = vmatprep.mubr.msk.f32.mxu1 %vm21077_vm6, %v21076_v57 }
0x274b   :  { %19250 = vmatprep.subr.mxu1 %v21076_v57 }
0x274d   :  { %19243 = vmatmul.mubr.msk.f32.vlgmr.msra.gmra.mrb[76].mxu1 %vm288_vm1, %v6360_v34 }
0x274e   :  { %19252 = vmatprep.mubr.msk.f32.mxu1 %vm21077_vm6, %v21076_v57 }
0x2768   :  { %v5965_v18 = vpop.xlane.xlu1 %5964 }
0x2769   :  { %20767 = vrcp.f32 %v5965_v18 }
0x276c   :  { %v6518_v15 = vpop.permute.xlu1 %6517 }
0x276d   :  { %19251 = vmatpush3.xpose.msk.msra.mxu1 %vm288_vm1, %v6518_v15 }
0x276e   :  { %19260 = vmatprep.subr.mxu1 %v21076_v57 }
0x2770   :  { %v6516_v28 = vpop.permute.xlu1 %6515 }
0x2771   :  { %19253 = vmatmul.mubr.msk.f32.vlgmr.msra.gmra.mrb[78].mxu1 %vm288_vm1, %v6516_v28 }
0x2772   :  { %19262 = vmatprep.mubr.msk.f32.mxu1 %vm21077_vm6, %v21076_v57 }
0x2773   :  { %v20768_v32 = vpop.eup %20767 }
0x2774   :  { %v5975_v12 = vmul.f32 %v20768_v32, %v20760_v3 }
0x2776   :  { %19228 = vmatmul.mubr.msk.f32.vlgmr.msra.gmra.mrb[58].mxu0 %vm288_vm1, %v5975_v12 }
0x2777   :  { %19236 = vmatpush3.xpose.msk.msra.mxu0 %vm288_vm1, %v6284_v33  ;;  %19237 = vmatprep.mubr.msk.f32.mxu0 %vm21077_vm6, %v21076_v57 }
0x2778   :  { %19245 = vmatprep.subr.mxu0 %v21076_v57 }
0x277a   :  { %19238 = vmatmul.mubr.msk.f32.vlgmr.msra.gmra.mrb[60].mxu0 %vm288_vm1, %v6282_v30 }
0x277b   :  { %19246 = vmatpush3.xpose.msk.msra.mxu0 %vm288_vm1, %v6440_v35  ;;  %19247 = vmatprep.mubr.msk.f32.mxu0 %vm21077_vm6, %v21076_v57 }
0x277c   :  { %19255 = vmatprep.subr.mxu0 %v21076_v57 }
0x277e   :  { %19248 = vmatmul.mubr.msk.f32.vlgmr.msra.gmra.mrb[62].mxu0 %vm288_vm1, %v6438_v36 }
0x277f   :  { %19257 = vmatprep.mubr.msk.f32.mxu0 %vm21077_vm6, %v21076_v57 }
0x27e7   :  { %v22035_v51 = vpop.f32.mrb[72].mxu1 }
0x27e8   :  { %v19224_v26 = vpop.f32.mrb[73].mxu1 }
0x2814   :  { %v22037_v21 = vpop.f32.mrb[56].mxu0 }
0x2815   :  { %v19219_v52 = vpop.f32.mrb[57].mxu0 }
0x281c   :  { %v22039_v37 = vpop.f32.mrb[74].mxu1 }
0x281d   :  { %v19234_v38 = vpop.f32.mrb[75].mxu1 }
0x2820   :  { %v6433_v39 = vpop.f32.mrb[76].mxu1 }
0x2821   :  { %v6594_v40 = vmul.f32 0.35355338, %v6433_v39  ;;  %v19244_v41 = vpop.f32.mrb[77].mxu1 }
0x2823   :  { %v6600_v42 = vsel %vm288_vm1, %v6594_v40, -inf }
0x2824   :  { %6601 = vmax.xlane.f32.xlu1 %v6600_v42 }
0x2835   :  { %6641 = vrot.lane.b32.xlu1 %v21853_v19, %s23608_s22 }
0x2839   :  { %6793 = vrot.lane.b32.xlu1 %v21859_v47, %s23608_s22 }
0x283d   :  { %6869 = vrot.lane.b32.xlu1 %v21861_v5, %s23608_s22 }
0x2841   :  { %7025 = vrot.lane.b32.xlu1 %v21851_v56, %s23606_s23 }
0x2844   :  { %v6589_v43 = vpop.f32.mrb[78].mxu1 }
0x2845   :  { %v19254_v45 = vpop.f32.mrb[79].mxu1  ;;  %v6596_v53 = vmul.f32 0.35355338, %v6589_v43 }
0x2847   :  { %v6606_v44 = vsel %vm288_vm1, %v6596_v53, -inf }
0x2849   :  { %v22050_v48 = vpop.f32.mrb[58].mxu0 }
0x284a   :  { %v19229_v49 = vpop.f32.mrb[59].mxu0 }
0x284d   :  { %v6355_v54 = vpop.f32.mrb[60].mxu0 }
0x284e   :  { %v6593_v16 = vmul.f32 0.35355338, %v6355_v54  ;;  %v19239_v55 = vpop.f32.mrb[61].mxu0 }
0x2850   :  { %v6597_v58 = vsel %vm288_vm1, %v6593_v16, -inf }
0x2851   :  { %6598 = vmax.xlane.f32.xlu0 %v6597_v58  ;;  %v6511_v25 = vpop.f32.mrb[62].mxu0 }
0x2852   :  { %v19249_v29 = vpop.f32.mrb[63].mxu0  ;;  %v6595_v13 = vmul.f32 0.35355338, %v6511_v25 }
0x2854   :  { %v6603_v50 = vsel %vm288_vm1, %v6595_v13, -inf }
0x2855   :  { %6607 = vmax.xlane.f32.xlu0 %v6606_v44 }
0x2859   :  { %6604 = vmax.xlane.f32.xlu0 %v6603_v50 }
0x286f   :  { %6717 = vrot.lane.b32.xlu0 %v21851_v56, %s23608_s22  ;;  %s21092_s22 = smov 30  }
0x28b1   :  { %v6602_v17 = vpop.xlane.xlu1 %6601 }
0x28b2   :  { %v6610_v1 = vsub.f32 %v6594_v40, %v6602_v17 }
0x28b4   :  { %v6615_v2 = vmul.f32 1.442695, %v6610_v1 }
0x28b5   :  { %v6642_v3 = vpop.permute.xlu1 %6641 }
0x28b6   :  { %20769 = vpow2.f32 %v6615_v2  ;;  %19256 = vmatpush3.msra.mxu0 %v6642_v3 }
0x28b7   :  { %19265 = vmatprep.subr.mxu0 %v21076_v57 }
0x28b9   :  { %v6794_v32 = vpop.permute.xlu1 %6793 }
0x28bd   :  { %v6870_v36 = vpop.permute.xlu1 %6869 }
0x28c0   :  { %v20770_v4 = vpop.eup %20769 }
0x28c1   :  { %v6624_v33 = vsel %vm288_vm1, %v20770_v4, 0.0  ;;  %v7026_v26 = vpop.permute.xlu1 %7025 }
0x28c2   :  { %6625 = vadd.xlane.f32.xlu0 %v6624_v33 }
0x28d8   :  { %6947 = vrot.lane.b32.xlu0 %v21853_v19, %s23606_s23 }
0x28de   :  { %v6599_v31 = vpop.xlane.xlu0 %6598 }
0x28df   :  { %v6609_v6 = vsub.f32 %v6593_v16, %v6599_v31 }
0x28e1   :  { %v6613_v63 = vmul.f32 1.442695, %v6609_v6 }
0x28e2   :  { %v6608_v7 = vpop.xlane.xlu0 %6607 }
0x28e3   :  { %20771 = vpow2.f32 %v6613_v63  ;;  %v6612_v10 = vsub.f32 %v6596_v53, %v6608_v7 }
0x28e5   :  { %v6619_v62 = vmul.f32 1.442695, %v6612_v10 }
0x28e6   :  { %v6605_v11 = vpop.xlane.xlu0 %6604 }
0x28e7   :  { %v6611_v22 = vsub.f32 %v6595_v13, %v6605_v11  ;;  %20773 = vpow2.f32 %v6619_v62 }
0x28e9   :  { %v6617_v61 = vmul.f32 1.442695, %v6611_v22 }
0x28ea   :  { %v6718_v9 = vpop.permute.xlu0 %6717 }
0x28eb   :  { %20775 = vpow2.f32 %v6617_v61  ;;  %19261 = vmatpush3.msra.mxu1 %v6718_v9 }
0x28ec   :  { %19270 = vmatprep.subr.mxu1 %v21076_v57 }
0x28ed   :  { %v20772_v8 = vpop.eup %20771 }
0x28ee   :  { %v6621_v27 = vsel %vm288_vm1, %v20772_v8, 0.0 }
0x28ef   :  { %6622 = vadd.xlane.f32.xlu1 %v6621_v27 }
0x28f1   :  { %v20774_v34 = vpop.eup %20773 }
0x28f2   :  { %v6630_v28 = vsel %vm288_vm1, %v20774_v34, 0.0 }
0x28f5   :  { %v20776_v18 = vpop.eup %20775 }
0x28f6   :  { %v6627_v15 = vsel %vm288_vm1, %v20776_v18, 0.0 }
0x28f7   :  { %6628 = vadd.xlane.f32.xlu1 %v6627_v15  ;;  %6631 = vadd.xlane.f32.xlu0 %v6630_v28 }
0x2908   :  { %7023 = vrot.lane.b32.xlu1 %v21851_v56, %s23604_s24 }
0x290c   :  { %7181 = vrot.lane.b32.xlu1 %v21861_v5, %s23606_s23 }
0x290d   :  { %6945 = vrot.lane.b32.xlu0 %v21853_v19, %s23604_s24 }
0x2910   :  { %7179 = vrot.lane.b32.xlu1 %v21861_v5, %s23604_s24 }
0x2911   :  { %7103 = vrot.lane.b32.xlu0 %v21859_v47, %s23606_s23 }
0x2915   :  { %7101 = vrot.lane.b32.xlu0 %v21859_v47, %s23604_s24 }
0x294f   :  { %v6626_v30 = vpop.xlane.xlu0 %6625 }
0x2950   :  { %20777 = vrcp.f32 %v6626_v30 }
0x2953   :  { %v6948_v38 = vpop.permute.xlu0 %6947 }
0x295a   :  { %v20778_v12 = vpop.eup %20777 }
0x295b   :  { %v6638_v35 = vmul.f32 %v20778_v12, %v20770_v4 }
0x295d   :  { %19263 = vmatmul.mubr.msk.f32.vlgmr.msra.gmra.mrb[80].mxu1 %vm288_vm1, %v6638_v35 }
0x295e   :  { %19271 = vmatpush3.msra.mxu1 %v6870_v36  ;;  %19272 = vmatprep.mubr.msk.f32.mxu1 %vm21077_vm6, %v21076_v57 }
0x295f   :  { %19280 = vmatprep.subr.mxu1 %v21076_v57 }
0x297c   :  { %v6623_v52 = vpop.xlane.xlu1 %6622 }
0x297d   :  { %20779 = vrcp.f32 %v6623_v52 }
0x2984   :  { %v6632_v39 = vpop.xlane.xlu0 %6631  ;;  %v6629_v40 = vpop.xlane.xlu1 %6628 }
0x2985   :  { %20781 = vrcp.f32 %v6632_v39 }
0x2986   :  { %20783 = vrcp.f32 %v6629_v40 }
0x2987   :  { %v20780_v41 = vpop.eup %20779 }
0x2988   :  { %v6637_v42 = vmul.f32 %v20780_v41, %v20772_v8  ;;  %v7024_v43 = vpop.permute.xlu1 %7023  ;;  %v6946_v45 = vpop.permute.xlu0 %6945 }
0x298a   :  { %19258 = vmatmul.mubr.msk.f32.vlgmr.msra.gmra.mrb[64].mxu0 %vm288_vm1, %v6637_v42 }
0x298b   :  { %19266 = vmatpush3.msra.mxu0 %v6794_v32  ;;  %19267 = vmatprep.mubr.msk.f32.mxu0 %vm21077_vm6, %v21076_v57 }
0x298c   :  { %19275 = vmatprep.subr.mxu0 %v21076_v57  ;;  %v7182_v53 = vpop.permute.xlu1 %7181  ;;  %v7104_v58 = vpop.permute.xlu0 %7103 }
0x298f   :  { %v20782_v49 = vpop.eup %20781 }
0x2990   :  { %v20784_v54 = vpop.eup %20783  ;;  %v6640_v16 = vmul.f32 %v20782_v49, %v20774_v34  ;;  %v7180_v25 = vpop.permute.xlu1 %7179 }
0x2991   :  { %v6639_v55 = vmul.f32 %v20784_v54, %v20776_v18  ;;  %v7102_v29 = vpop.permute.xlu0 %7101 }
0x2992   :  { %19273 = vmatmul.mubr.msk.f32.vlgmr.msra.gmra.mrb[82].mxu1 %vm288_vm1, %v6640_v16 }
0x2993   :  { %19268 = vmatmul.mubr.msk.f32.vlgmr.msra.gmra.mrb[66].mxu0 %vm288_vm1, %v6639_v55  ;;  %19281 = vmatpush3.xpose.msk.msra.mxu1 %vm288_vm1, %v7026_v26 }
0x2994   :  { %19276 = vmatpush3.xpose.msk.msra.mxu0 %vm288_vm1, %v6948_v38  ;;  %19277 = vmatprep.mubr.msk.f32.mxu0 %vm21077_vm6, %v21076_v57 }
0x2995   :  { %19282 = vmatprep.mubr.msk.f32.mxu1 %vm21077_vm6, %v21076_v57  ;;  %19285 = vmatprep.subr.mxu0 %v21076_v57 }
0x2996   :  { %19290 = vmatprep.subr.mxu1 %v21076_v57  ;;  %19283 = vmatmul.mubr.msk.f32.vlgmr.msra.gmra.mrb[84].mxu1 %vm288_vm1, %v7024_v43 }
0x2997   :  { %19278 = vmatmul.mubr.msk.f32.vlgmr.msra.gmra.mrb[68].mxu0 %vm288_vm1, %v6946_v45  ;;  %19291 = vmatpush3.xpose.msk.msra.mxu1 %vm288_vm1, %v7182_v53 }
0x2998   :  { %19286 = vmatpush3.xpose.msk.msra.mxu0 %vm288_vm1, %v7104_v58  ;;  %19287 = vmatprep.mubr.msk.f32.mxu0 %vm21077_vm6, %v21076_v57 }
0x2999   :  { %19292 = vmatprep.mubr.msk.f32.mxu1 %vm21077_vm6, %v21076_v57  ;;  %19295 = vmatprep.subr.mxu0 %v21076_v57 }
0x299a   :  { %19293 = vmatmul.mubr.msk.f32.vlgmr.msra.gmra.mrb[86].mxu1 %vm288_vm1, %v7180_v25  ;;  %19300 = vmatprep.subr.mxu1 %v21076_v57 }
0x299b   :  { %19288 = vmatmul.mubr.msk.f32.vlgmr.msra.gmra.mrb[70].mxu0 %vm288_vm1, %v7102_v29  ;;  %19302 = vmatprep.mubr.msk.f32.mxu1 %vm21077_vm6, %v21076_v57 }
0x299c   :  { %19297 = vmatprep.mubr.msk.f32.mxu0 %vm21077_vm6, %v21076_v57 }
0x2a30   :  { %v22111_v13 = vpop.f32.mrb[80].mxu1 }
0x2a31   :  { %v19264_v44 = vpop.f32.mrb[81].mxu1 }
0x2a5d   :  { %v6713_v50 = vpop.f32.mrb[64].mxu0 }
0x2a5e   :  { %v19259_v17 = vpop.f32.mrb[65].mxu0 }
0x2a65   :  { %v22113_v1 = vpop.f32.mrb[82].mxu1 }
0x2a66   :  { %v22115_v2 = vpop.f32.mrb[66].mxu0  ;;  %v19274_v3 = vpop.f32.mrb[83].mxu1 }
0x2a67   :  { %v19269_v4 = vpop.f32.mrb[67].mxu0 }
0x2a69   :  { %v7097_v33 = vpop.f32.mrb[84].mxu1 }
0x2a6a   :  { %v7019_v31 = vpop.f32.mrb[68].mxu0  ;;  %v7258_v6 = vmul.f32 0.35355338, %v7097_v33  ;;  %v19284_v63 = vpop.f32.mrb[85].mxu1 }
0x2a6b   :  { %v7257_v7 = vmul.f32 0.35355338, %v7019_v31  ;;  %v19279_v10 = vpop.f32.mrb[69].mxu0  ;;  %v4814_v31 = vld [vmem:[%s22153_s4] sm:$0xff]  ;;  %v4816_v63 = vld [vmem:[%s22153_s4 + $0x10] sm:$0xff] }
0x2a6c   :  { %v7264_v62 = vsel %vm288_vm1, %v7258_v6, -inf  ;;  %v4817_v10 = vld [vmem:[%s22153_s4 + $0x18] sm:$0xff] }
0x2a6d   :  { %v7261_v11 = vsel %vm288_vm1, %v7257_v7, -inf  ;;  %7265 = vmax.xlane.f32.xlu1 %v7264_v62  ;;  %v7253_v22 = vpop.f32.mrb[86].mxu1  ;;  %v20253_v62 = vpack.c.bf16 %v4817_v10, %v4816_v63  ;;  %v4826_v63 = vld [vmem:[%s22218_s10] sm:$0xff] }
0x2a6e   :  { %7262 = vmax.xlane.f32.xlu0 %v7261_v11  ;;  %v7175_v61 = vpop.f32.mrb[70].mxu0  ;;  %v19294_v9 = vpop.f32.mrb[87].mxu1  ;;  %v7260_v34 = vmul.f32 0.35355338, %v7253_v22 }
0x2a6f   :  { %v7259_v8 = vmul.f32 0.35355338, %v7175_v61  ;;  %v19289_v27 = vpop.f32.mrb[71].mxu0 }
0x2a70   :  { %v7270_v15 = vsel %vm288_vm1, %v7260_v34, -inf }
0x2a71   :  { %v7267_v18 = vsel %vm288_vm1, %v7259_v8, -inf }
0x2a72   :  { %7268 = vmax.xlane.f32.xlu0 %v7267_v18 }
0x2a76   :  { %7271 = vmax.xlane.f32.xlu0 %v7270_v15 }
0x2a7e   :  { %7305 = vrot.lane.b32.xlu1 %v21853_v19, %s23602_s25 }
0x2afa   :  { %v7266_v28 = vpop.xlane.xlu1 %7265 }
0x2afb   :  { %v7263_v30 = vpop.xlane.xlu0 %7262  ;;  %v7274_v32 = vsub.f32 %v7258_v6, %v7266_v28  ;;  %v4815_v6 = vld [vmem:[%s22153_s4 + $0x8] sm:$0xff] }
0x2afc   :  { %v7273_v12 = vsub.f32 %v7257_v7, %v7263_v30  ;;  %v20249_v7 = vpack.c.bf16 %v4815_v6, %v4814_v31 }
0x2afd   :  { %v7279_v35 = vmul.f32 1.442695, %v7274_v32 }
0x2afe   :  { %v7277_v36 = vmul.f32 1.442695, %v7273_v12  ;;  %v7306_v26 = vpop.permute.xlu1 %7305 }
0x2aff   :  { %20785 = vpow2.f32 %v7279_v35  ;;  %v7269_v52 = vpop.xlane.xlu0 %7268  ;;  %19296 = vmatpush3.msra.mxu0 %v7306_v26 }
0x2b00   :  { %20787 = vpow2.f32 %v7277_v36  ;;  %19305 = vmatprep.subr.mxu0 %v21076_v57  ;;  %v7275_v54 = vsub.f32 %v7259_v8, %v7269_v52 }
0x2b02   :  { %v7281_v16 = vmul.f32 1.442695, %v7275_v54 }
0x2b03   :  { %v7272_v38 = vpop.xlane.xlu0 %7271 }
0x2b04   :  { %v7276_v39 = vsub.f32 %v7260_v34, %v7272_v38 }
0x2b06   :  { %v7283_v40 = vmul.f32 1.442695, %v7276_v39 }
0x2b08   :  { %20789 = vpow2.f32 %v7283_v40 }
0x2b09   :  { %v20786_v41 = vpop.eup %20785  ;;  %20791 = vpow2.f32 %v7281_v16 }
0x2b0a   :  { %v20788_v42 = vpop.eup %20787  ;;  %v7288_v19 = vsel %vm288_vm1, %v20786_v41, 0.0 }
0x2b0b   :  { %v7285_v43 = vsel %vm288_vm1, %v20788_v42, 0.0  ;;  %7289 = vadd.xlane.f32.xlu0 %v7288_v19 }
0x2b0c   :  { %7286 = vadd.xlane.f32.xlu1 %v7285_v43 }
0x2b12   :  { %v20790_v45 = vpop.eup %20789 }
0x2b13   :  { %v7294_v49 = vsel %vm288_vm1, %v20790_v45, 0.0  ;;  %v20792_v55 = vpop.eup %20791 }
0x2b14   :  { %7295 = vadd.xlane.f32.xlu0 %v7294_v49  ;;  %v7291_v53 = vsel %vm288_vm1, %v20792_v55, 0.0 }
0x2b1d   :  { %7457 = vrot.lane.b32.xlu1 %v21859_v47, %s23602_s25 }
0x2b2a   :  { %7381 = vrot.lane.b32.xlu0 %v21851_v56, %s23602_s25 }
0x2b2e   :  { %7613 = vrot.lane.b32.xlu0 %v22037_v21, %s23600_s26 }
0x2b32   :  { %7629 = vrot.lane.b32.xlu0 %v6713_v50, %s23598_s27 }
0x2b41   :  { %7292 = vadd.xlane.f32.xlu1 %v7291_v53 }
0x2b52   :  { %7533 = vrot.lane.b32.xlu1 %v21861_v5, %s23602_s25  ;;  %s22721_s25 = sld [smem:[%s23595_s0 + %s21092_s22]]  }
0x2b56   :  { %7615 = vrot.lane.b32.xlu1 %v22035_v51, %s23600_s26 }
0x2b5a   :  { %7631 = vrot.lane.b32.xlu1 %v22111_v13, %s23598_s27 }
0x2b98   :  { %v7290_v56 = vpop.xlane.xlu0 %7289 }
0x2b99   :  { %20793 = vrcp.f32 %v7290_v56  ;;  %v7287_v47 = vpop.xlane.xlu1 %7286 }
0x2b9a   :  { %20795 = vrcp.f32 %v7287_v47 }
0x2b9d   :  { %v7458_v17 = vpop.permute.xlu1 %7457 }
0x2ba1   :  { %v7296_v21 = vpop.xlane.xlu0 %7295 }
0x2ba2   :  { %20797 = vrcp.f32 %v7296_v21 }
0x2ba3   :  { %v20794_v58 = vpop.eup %20793 }
0x2ba4   :  { %v20796_v25 = vpop.eup %20795  ;;  %v7302_v29 = vmul.f32 %v20794_v58, %v20786_v41 }
0x2ba5   :  { %v7382_v44 = vpop.permute.xlu0 %7381  ;;  %v7301_v50 = vmul.f32 %v20796_v25, %v20788_v42 }
0x2ba6   :  { %19301 = vmatpush3.msra.mxu1 %v7382_v44 }
0x2ba7   :  { %19298 = vmatmul.mubr.msk.f32.vlgmr.msra.gmra.mrb[72].mxu0 %vm288_vm1, %v7301_v50  ;;  %19303 = vmatmul.mubr.msk.f32.vlgmr.msra.gmra.mrb[88].mxu1 %vm288_vm1, %v7302_v29 }
0x2ba8   :  { %19306 = vmatpush3.msra.mxu0 %v7458_v17  ;;  %19310 = vmatprep.subr.mxu1 %v21076_v57 }
0x2ba9   :  { %19312 = vmatprep.mubr.msk.f32.mxu1 %vm21077_vm6, %v21076_v57  ;;  %19307 = vmatprep.mubr.msk.f32.mxu0 %vm21077_vm6, %v21076_v57  ;;  %v7614_v15 = vpop.permute.xlu0 %7613 }
0x2baa   :  { %20250 = vmatprep.subr.bf16.mxu0 %v20249_v7 }
0x2bac   :  { %v20798_v51 = vpop.eup %20797 }
0x2bad   :  { %v7304_v3 = vmul.f32 %v20798_v51, %v20790_v45 }
0x2bce   :  { %v7293_v5 = vpop.xlane.xlu1 %7292 }
0x2bcf   :  { %20799 = vrcp.f32 %v7293_v5 }
0x2bd2   :  { %v7534_v13 = vpop.permute.xlu1 %7533 }
0x2bd3   :  { %19311 = vmatpush3.msra.mxu1 %v7534_v13 }
0x2bd4   :  { %19313 = vmatmul.mubr.msk.f32.vlgmr.msra.gmra.mrb[90].mxu1 %vm288_vm1, %v7304_v3 }
0x2bd6   :  { %v7616_v28 = vpop.permute.xlu1 %7615 }
0x2bd9   :  { %v20800_v4 = vpop.eup %20799 }
0x2bda   :  { %v7303_v33 = vmul.f32 %v20800_v4, %v20792_v55  ;;  %v7632_v30 = vpop.permute.xlu1 %7631 }
0x2bdc   :  { %19308 = vmatmul.mubr.msk.f32.vlgmr.msra.gmra.mrb[74].mxu0 %vm288_vm1, %v7303_v33 }
0x2bdd   :  { %20252 = vmatpush3.bf16.msra.mxu0 %v20249_v7  ;;  %v4827_v7 = vld [vmem:[%s22218_s10 + $0x8] sm:$0xff] }
0x2bde   :  { %20254 = vmatprep.subr.bf16.mxu0 %v20253_v62  ;;  %v20265_v10 = vpack.c.bf16 %v4827_v7, %v4826_v63 }
0x2be1   :  { %20256 = vmatpush3.bf16.msra.mxu0 %v20253_v62  ;;  %v4821_v62 = vld [vmem:[%s22223_s28] sm:$0xff] }
0x2be2   :  { %20266 = vmatprep.subr.bf16.mxu0 %v20265_v10 }
0x2c7a   :  { %v7377_v11 = vpop.f32.mrb[72].mxu0  ;;  %v7453_v22 = vpop.f32.mrb[88].mxu1 }
0x2c7b   :  { %7647 = vrot.lane.b32.xlu1 %v7453_v22, %s23620_s14  ;;  %v19304_v61 = vpop.f32.mrb[89].mxu1  ;;  %7645 = vrot.lane.b32.xlu0 %v7377_v11, %s23620_s14  ;;  %v19299_v9 = vpop.f32.mrb[73].mxu0  ;;  %v4822_v11 = vld [vmem:[%s22223_s28 + $0x8] sm:$0xff] }
0x2c7c   :  { %v20257_v22 = vpack.c.bf16 %v4822_v11, %v4821_v62  ;;  %v4828_v61 = vld [vmem:[%s22218_s10 + $0x10] sm:$0xff]  ;;  %v4829_v9 = vld [vmem:[%s22218_s10 + $0x18] sm:$0xff] }
0x2c7e   :  { %20258 = vmatprep.subr.bf16.mxu1 %v20257_v22 }
0x2c7f   :  { %7619 = vrot.lane.b32.xlu1 %v22039_v37, %s23600_s26  ;;  %7617 = vrot.lane.b32.xlu0 %v22050_v48, %s23600_s26  ;;  %v7630_v37 = vpop.permute.xlu0 %7629  ;;  %v7657_v48 = vsel %vm288_vm1, %v21961_v14, %v7614_v15  ;;  %v4805_v15 = vld [vmem:[%s22232_s1] sm:$0xff] }
0x2c80   :  { %20260 = vmatpush3.bf16.msra.mxu1 %v20257_v22 }
0x2c83   :  { %7635 = vrot.lane.b32.xlu1 %v22113_v1, %s23598_s27  ;;  %7633 = vrot.lane.b32.xlu0 %v22115_v2, %s23598_s27  ;;  %v7658_v1 = vsel %vm288_vm1, %v21959_v23, %v7616_v28  ;;  %v7661_v2 = vsel %vm465_vm3, %v7657_v48, %v7630_v37  ;;  %v4806_v28 = vld [vmem:[%s22232_s1 + $0x8] sm:$0xff] }
0x2c84   :  { %v7662_v32 = vsel %vm465_vm3, %v7658_v1, %v7632_v30 }
0x2ca7   :  { %v7605_v8 = vpop.f32.mrb[90].mxu1 }
0x2ca8   :  { %7651 = vrot.lane.b32.xlu1 %v7605_v8, %s23620_s14  ;;  %v19314_v27 = vpop.f32.mrb[91].mxu1  ;;  %v20269_v8 = vpack.c.bf16 %v4829_v9, %v4828_v61 }
0x2ca9   :  { %v4823_v27 = vld [vmem:[%s22223_s28 + $0x10] sm:$0xff] }
0x2caf   :  { %v7529_v34 = vpop.f32.mrb[74].mxu0 }
0x2cb0   :  { %7649 = vrot.lane.b32.xlu0 %v7529_v34, %s23620_s14  ;;  %v19309_v18 = vpop.f32.mrb[75].mxu0  ;;  %v4824_v34 = vld [vmem:[%s22223_s28 + $0x18] sm:$0xff] }
0x2cb1   :  { %v20261_v18 = vpack.c.bf16 %v4824_v34, %v4823_v27 }
0x2cb3   :  { %20262 = vmatprep.subr.bf16.mxu1 %v20261_v18 }
0x2cb4   :  { %20264 = vmatpush3.bf16.msra.mxu1 %v20261_v18 }
0x2cb5   :  { %19357 = vmatprep.subr.mxu1 %v21076_v57 }
0x2ced   :  { %v7646_v12 = vpop.permute.xlu0 %7645  ;;  %v7648_v35 = vpop.permute.xlu1 %7647 }
0x2cee   :  { %v7665_v36 = vsel %vm1952_vm4, %v7661_v2, %v7646_v12  ;;  %v7666_v26 = vsel %vm1952_vm4, %v7662_v32, %v7648_v35 }
0x2cef   :  { %19323 = vmatprep.mubr.msk.f32.mxu0 %vm184_vm0, %v7665_v36 }
0x2cf0   :  { %19324 = vmatmul.mubr.msk.f32.vlgmr.msra.gmra.mrb[76].mxu0 %vm184_vm0, %v7666_v26 }
0x2cf1   :  { %v7620_v52 = vpop.permute.xlu1 %7619  ;;  %v7618_v38 = vpop.permute.xlu0 %7617  ;;  %20268 = vmatpush3.bf16.msra.mxu0 %v20265_v10  ;;  %v17932_v10 = vld [vmem:[%s22308_s3] ss:$0 sm:$0xff] }
0x2cf2   :  { %v7659_v23 = vsel %vm288_vm1, %v21974_v46, %v7618_v38  ;;  %v7660_v41 = vsel %vm288_vm1, %v21963_v0, %v7620_v52  ;;  %v17925_v0 = vld [vmem:[%s22194_s7] ss:$0 sm:$0xff]  ;;  %20270 = vmatprep.subr.bf16.mxu0 %v20269_v8  ;;  %v4807_v52 = vld [vmem:[%s22232_s1 + $0x10] sm:$0xff]  ;;  %v4808_v38 = vld [vmem:[%s22232_s1 + $0x18] sm:$0xff] }
0x2cf5   :  { %v7636_v14 = vpop.permute.xlu1 %7635  ;;  %v7634_v39 = vpop.permute.xlu0 %7633  ;;  %20272 = vmatpush3.bf16.msra.mxu0 %v20269_v8 }
0x2cf6   :  { %v7663_v42 = vsel %vm465_vm3, %v7659_v23, %v7634_v39  ;;  %v7664_v43 = vsel %vm465_vm3, %v7660_v41, %v7636_v14  ;;  %19367 = vmatprep.subr.mxu0 %v21076_v57 }
0x2d1a   :  { %v7652_v40 = vpop.permute.xlu1 %7651 }
0x2d1b   :  { %v7668_v49 = vsel %vm1952_vm4, %v7664_v43, %v7652_v40  ;;  %v17930_v43 = vld [vmem:[%s22255_s2] ss:$0 sm:$0xff] }
0x2d22   :  { %v7650_v19 = vpop.permute.xlu0 %7649 }
0x2d23   :  { %v7667_v45 = vsel %vm1952_vm4, %v7663_v42, %v7650_v19 }
0x2d24   :  { %19326 = vmatprep.mubr.msk.f32.mxu0 %vm184_vm0, %v7667_v45 }
0x2d25   :  { %19327 = vmatmul.mubr.msk.f32.gmra.mrb[78].mxu0 %vm184_vm0, %v7668_v49 }
0x2d26   :  { %19351 = vmatprep.mubr.msk.f32.mxu0 %vm184_vm0, %v4805_v15 }
0x2d29   :  { %19352 = vmatmul.mubr.msk.f32.vlgmr.msra.gmra.mrb[80].mxu0 %vm184_vm0, %v4806_v28 }
0x2d2a   :  { %19354 = vmatprep.mubr.msk.f32.mxu0 %vm184_vm0, %v4807_v52 }
0x2d2d   :  { %19355 = vmatmul.mubr.msk.f32.gmra.mrb[82].mxu0 %vm184_vm0, %v4808_v38 }
0x2d2e   :  { %19369 = vmatprep.mubr.msk.f32.mxu0 %vm21077_vm6, %v21076_v57 }
0x2dc3   :  { %v19325_v46 = vpop.f32.mrb[76].mxu0 }
0x2dc4   :  { %v7759_v54 = vadd.f32 %v19325_v46, %v17925_v0  ;;  %v7753_v16 = vpop.f32.mrb[77].mxu0  ;;  %v17931_v46 = vld [vmem:[%s22260_s6] ss:$0 sm:$0xff] }
0x2dc5   :  { %v7754_v55 = vadd.f32 %v17925_v0, %v7753_v16 }
0x2dc6   :  { %v7773_v53 = vadd.f32 %v21822_v24, %v7759_v54 }
0x2dc7   :  { %v7772_v56 = vadd.f32 %v7754_v55, %v21824_v59 }
0x2dc8   :  { %v7779_v47 = vsel %vm184_vm0, %v7773_v53, 0.0 }
0x2dc9   :  { %7780 = vadd.xlane.f32.xlu1 %v7779_v47  ;;  %v7776_v21 = vsel %vm184_vm0, %v7772_v56, 0.0 }
0x2dca   :  { %7777 = vadd.xlane.f32.xlu0 %v7776_v21 }
0x2df8   :  { %v19328_v58 = vpop.f32.mrb[78].mxu0 }
0x2df9   :  { %v7769_v25 = vadd.f32 %v19328_v58, %v17925_v0  ;;  %v7763_v29 = vpop.f32.mrb[79].mxu0 }
0x2dfa   :  { %v7764_v44 = vadd.f32 %v17925_v0, %v7763_v29 }
0x2dfb   :  { %v7775_v50 = vadd.f32 %v21830_v60, %v7769_v25 }
0x2dfc   :  { %v7774_v17 = vadd.f32 %v7764_v44, %v21832_v20 }
0x2dfd   :  { %v7785_v24 = vsel %vm184_vm0, %v7775_v50, 0.0 }
0x2dfe   :  { %v7782_v5 = vsel %vm184_vm0, %v7774_v17, 0.0 }
0x2dff   :  { %7783 = vadd.xlane.f32.xlu0 %v7782_v5 }
0x2e03   :  { %7786 = vadd.xlane.f32.xlu0 %v7785_v24 }
0x2e56   :  { %v7781_v59 = vpop.xlane.xlu1 %7780 }
0x2e57   :  { %v7789_v51 = vmul.f32 0.03125, %v7781_v59  ;;  %v7778_v13 = vpop.xlane.xlu0 %7777 }
0x2e58   :  { %v7788_v3 = vmul.f32 0.03125, %v7778_v13 }
0x2e59   :  { %v22205_v4 = vsub.f32 %v7773_v53, %v7789_v51 }
0x2e5a   :  { %v22207_v33 = vsub.f32 %v7772_v56, %v7788_v3  ;;  %v17937_v3 = vld [vmem:[%s22288_s29] ss:$0 sm:$0xff] }
0x2e5b   :  { %v7797_v31 = vmul.f32 %v22205_v4, %v22205_v4 }
0x2e5c   :  { %v7796_v60 = vmul.f32 %v22207_v33, %v22207_v33 }
0x2e5d   :  { %v7803_v20 = vsel %vm184_vm0, %v7797_v31, 0.0 }
0x2e5e   :  { %7804 = vadd.xlane.f32.xlu0 %v7803_v20  ;;  %v7800_v6 = vsel %vm184_vm0, %v7796_v60, 0.0 }
0x2e5f   :  { %7801 = vadd.xlane.f32.xlu1 %v7800_v6 }
0x2e8c   :  { %v7784_v37 = vpop.xlane.xlu0 %7783 }
0x2e8d   :  { %v7790_v30 = vmul.f32 0.03125, %v7784_v37 }
0x2e8f   :  { %v7794_v48 = vsub.f32 %v7774_v17, %v7790_v30 }
0x2e90   :  { %v7787_v1 = vpop.xlane.xlu0 %7786 }
0x2e91   :  { %v7791_v2 = vmul.f32 0.03125, %v7787_v1  ;;  %v7798_v32 = vmul.f32 %v7794_v48, %v7794_v48 }
0x2e93   :  { %v7795_v12 = vsub.f32 %v7775_v50, %v7791_v2  ;;  %v7806_v35 = vsel %vm184_vm0, %v7798_v32, 0.0 }
0x2e94   :  { %7807 = vadd.xlane.f32.xlu1 %v7806_v35 }
0x2e95   :  { %v7799_v36 = vmul.f32 %v7795_v12, %v7795_v12 }
0x2e97   :  { %v7809_v26 = vsel %vm184_vm0, %v7799_v36, 0.0 }
0x2e98   :  { %7810 = vadd.xlane.f32.xlu0 %v7809_v26 }
0x2eeb   :  { %v7805_v14 = vpop.xlane.xlu0 %7804 }
0x2eec   :  { %v7813_v39 = vmul.f32 0.03125, %v7805_v14  ;;  %v7802_v23 = vpop.xlane.xlu1 %7801 }
0x2eed   :  { %v7812_v40 = vmul.f32 0.03125, %v7802_v23 }
0x2eee   :  { %v7817_v41 = vadd.f32 1e-05, %v7813_v39 }
0x2eef   :  { %v7816_v42 = vadd.f32 1e-05, %v7812_v40 }
0x2ef0   :  { %20801 = vrsqrt.f32 %v7817_v41 }
0x2ef1   :  { %20803 = vrsqrt.f32 %v7816_v42 }
0x2efa   :  { %v20802_v19 = vpop.eup %20801 }
0x2efb   :  { %v20804_v45 = vpop.eup %20803  ;;  %v7825_v49 = vmul.f32 %v20802_v19, %v22205_v4  ;;  %v19353_v4 = vpop.f32.mrb[80].mxu0 }
0x2efc   :  { %v7824_v0 = vmul.f32 %v20804_v45, %v22207_v33  ;;  %v22291_v33 = vadd.f32 %v19353_v4, %v17937_v3  ;;  %v8035_v31 = vpop.f32.mrb[81].mxu0 }
0x2efd   :  { %v7835_v54 = vmul.f32 %v17930_v43, %v7825_v49  ;;  %v22293_v60 = vadd.f32 %v17937_v3, %v8035_v31  ;;  %v19356_v20 = vpop.f32.mrb[82].mxu0 }
0x2efe   :  { %v7834_v16 = vmul.f32 %v17930_v43, %v7824_v0  ;;  %v22298_v6 = vadd.f32 %v19356_v20, %v17937_v3  ;;  %v8045_v63 = vpop.f32.mrb[83].mxu0 }
0x2eff   :  { %v22268_v53 = vadd.f32 %v17931_v46, %v7835_v54  ;;  %v22300_v7 = vadd.f32 %v17937_v3, %v8045_v63 }
0x2f00   :  { %v22266_v55 = vadd.f32 %v17931_v46, %v7834_v16 }
0x2f01   :  { %19368 = vmatpush3.xpose.msk.msra.mxu0 %vm288_vm1, %v22300_v7 }
0x2f02   :  { %19337 = vmatprep.mubr.msk.f32.mxu1 %vm184_vm0, %v22266_v55  ;;  %19377 = vmatprep.subr.mxu0 %v21076_v57 }
0x2f03   :  { %19338 = vmatmul.mubr.msk.f32.vlgmr.msra.gmra.mrb[92].mxu1 %vm184_vm0, %v22268_v53 }
0x2f04   :  { %19358 = vmatpush3.xpose.msk.msra.mxu1 %vm288_vm1, %v22293_v60 }
0x2f05   :  { %19362 = vmatprep.subr.mxu1 %v21076_v57 }
0x2f21   :  { %v7808_v56 = vpop.xlane.xlu1 %7807 }
0x2f22   :  { %v7814_v47 = vmul.f32 0.03125, %v7808_v56 }
0x2f24   :  { %v7818_v21 = vadd.f32 1e-05, %v7814_v47 }
0x2f25   :  { %v7811_v58 = vpop.xlane.xlu0 %7810 }
0x2f26   :  { %20805 = vrsqrt.f32 %v7818_v21  ;;  %v7815_v25 = vmul.f32 0.03125, %v7811_v58 }
0x2f28   :  { %v7819_v29 = vadd.f32 1e-05, %v7815_v25 }
0x2f2a   :  { %20807 = vrsqrt.f32 %v7819_v29 }
0x2f30   :  { %v20806_v44 = vpop.eup %20805 }
0x2f31   :  { %v7826_v50 = vmul.f32 %v20806_v44, %v7794_v48 }
0x2f33   :  { %v7836_v17 = vmul.f32 %v17930_v43, %v7826_v50 }
0x2f34   :  { %v20808_v5 = vpop.eup %20807 }
0x2f35   :  { %v22274_v24 = vadd.f32 %v17931_v46, %v7836_v17  ;;  %v7827_v59 = vmul.f32 %v20808_v5, %v7795_v12 }
0x2f37   :  { %19340 = vmatprep.mubr.msk.f32.mxu1 %vm184_vm0, %v22274_v24  ;;  %v7837_v51 = vmul.f32 %v17930_v43, %v7827_v59 }
0x2f39   :  { %v22278_v13 = vadd.f32 %v17931_v46, %v7837_v51 }
0x2f3b   :  { %19341 = vmatmul.mubr.msk.f32.gmra.mrb[94].mxu1 %vm184_vm0, %v22278_v13 }
0x2f3c   :  { %19359 = vmatprep.mubr.msk.f32.mxu1 %vm21077_vm6, %v21076_v57 }
0x2fd6   :  { %v19339_v62 = vpop.f32.mrb[92].mxu1 }
0x2fd7   :  { %v7932_v11 = vpop.f32.mrb[93].mxu1  ;;  %v22319_v61 = vadd.f32 %v19339_v62, %v17932_v10 }
0x2fd8   :  { %v22311_v22 = vadd.f32 %v17932_v10, %v7932_v11 }
0x2fda   :  { %19360 = vmatmul.mubr.msk.f32.vlgmr.msra.gmra.mrb[96].mxu1 %vm288_vm1, %v22311_v22 }
0x2fdb   :  { %19363 = vmatpush3.xpose.msk.msra.mxu1 %vm288_vm1, %v22291_v33  ;;  %19364 = vmatprep.mubr.msk.f32.mxu1 %vm21077_vm6, %v21076_v57 }
0x2fdc   :  { %19372 = vmatprep.subr.mxu1 %v21076_v57 }
0x2fde   :  { %19365 = vmatmul.mubr.msk.f32.vlgmr.msra.gmra.mrb[98].mxu1 %vm288_vm1, %v22319_v61 }
0x2fdf   :  { %19373 = vmatpush3.xpose.msk.msra.mxu1 %vm288_vm1, %v22298_v6  ;;  %19374 = vmatprep.mubr.msk.f32.mxu1 %vm21077_vm6, %v21076_v57 }
0x2fe0   :  { %19382 = vmatprep.subr.mxu1 %v21076_v57 }
0x300e   :  { %v19342_v9 = vpop.f32.mrb[94].mxu1 }
0x300f   :  { %v22329_v8 = vadd.f32 %v19342_v9, %v17932_v10  ;;  %v7942_v27 = vpop.f32.mrb[95].mxu1 }
0x3010   :  { %v22331_v34 = vadd.f32 %v17932_v10, %v7942_v27 }
0x3011   :  { %19375 = vmatmul.mubr.msk.f32.vlgmr.msra.gmra.mrb[100].mxu1 %vm288_vm1, %v22329_v8 }
0x3012   :  { %19370 = vmatmul.mubr.msk.f32.vlgmr.msra.gmra.mrb[84].mxu0 %vm288_vm1, %v22331_v34  ;;  %19384 = vmatprep.mubr.msk.f32.mxu1 %vm21077_vm6, %v21076_v57 }
0x3013   :  { %19379 = vmatprep.mubr.msk.f32.mxu0 %vm21077_vm6, %v21076_v57 }
0x30ad   :  { %v8126_v18 = vpop.f32.mrb[96].mxu1 }
0x30ae   :  { %v8358_v15 = vmul.f32 0.35355338, %v8126_v18  ;;  %v19361_v28 = vpop.f32.mrb[97].mxu1 }
0x30b0   :  { %v8362_v37 = vsel %vm288_vm1, %v8358_v15, -inf }
0x30b1   :  { %8363 = vmax.xlane.f32.xlu1 %v8362_v37  ;;  %v8202_v30 = vpop.f32.mrb[98].mxu1 }
0x30b2   :  { %v8359_v48 = vmul.f32 0.35355338, %v8202_v30  ;;  %v19366_v1 = vpop.f32.mrb[99].mxu1 }
0x30b4   :  { %v8365_v2 = vsel %vm288_vm1, %v8359_v48, -inf }
0x30b5   :  { %8366 = vmax.xlane.f32.xlu0 %v8365_v2 }
0x30e4   :  { %v8354_v32 = vpop.f32.mrb[100].mxu1 }
0x30e5   :  { %v8361_v12 = vmul.f32 0.35355338, %v8354_v32  ;;  %v8278_v35 = vpop.f32.mrb[84].mxu0  ;;  %v19376_v36 = vpop.f32.mrb[101].mxu1 }
0x30e6   :  { %v8360_v26 = vmul.f32 0.35355338, %v8278_v35  ;;  %v19371_v52 = vpop.f32.mrb[85].mxu0 }
0x30e7   :  { %v8371_v38 = vsel %vm288_vm1, %v8361_v12, -inf }
0x30e8   :  { %8372 = vmax.xlane.f32.xlu0 %v8371_v38  ;;  %v8368_v14 = vsel %vm288_vm1, %v8360_v26, -inf }
0x30e9   :  { %8369 = vmax.xlane.f32.xlu1 %v8368_v14 }
0x30fa   :  { %8406 = vrot.lane.b32.xlu1 %v22293_v60, %s21052_s15 }
0x30fe   :  { %8482 = vrot.lane.b32.xlu0 %v22291_v33, %s21052_s15  ;;  %8558 = vrot.lane.b32.xlu1 %v22300_v7, %s21052_s15 }
0x3102   :  { %8712 = vrot.lane.b32.xlu0 %v22293_v60, %s23616_s18  ;;  %8634 = vrot.lane.b32.xlu1 %v22298_v6, %s21052_s15 }
0x3106   :  { %8790 = vrot.lane.b32.xlu1 %v22291_v33, %s23616_s18 }
0x313e   :  { %v8364_v39 = vpop.xlane.xlu1 %8363 }
0x313f   :  { %v8374_v23 = vsub.f32 %v8358_v15, %v8364_v39 }
0x3141   :  { %v8378_v40 = vmul.f32 1.442695, %v8374_v23 }
0x3142   :  { %v8367_v41 = vpop.xlane.xlu0 %8366 }
0x3143   :  { %20809 = vpow2.f32 %v8378_v40  ;;  %v8375_v42 = vsub.f32 %v8359_v48, %v8367_v41 }
0x3145   :  { %v8380_v19 = vmul.f32 1.442695, %v8375_v42 }
0x3147   :  { %20811 = vpow2.f32 %v8380_v19 }
0x314d   :  { %v20810_v43 = vpop.eup %20809 }
0x314e   :  { %v8386_v45 = vsel %vm288_vm1, %v20810_v43, 0.0 }
0x314f   :  { %8387 = vadd.xlane.f32.xlu1 %v8386_v45 }
0x3151   :  { %v20812_v49 = vpop.eup %20811 }
0x3152   :  { %v8389_v0 = vsel %vm288_vm1, %v20812_v49, 0.0 }
0x3153   :  { %8390 = vadd.xlane.f32.xlu0 %v8389_v0 }
0x3175   :  { %v8373_v46 = vpop.xlane.xlu0 %8372 }
0x3176   :  { %v8377_v54 = vsub.f32 %v8361_v12, %v8373_v46  ;;  %v8370_v16 = vpop.xlane.xlu1 %8369 }
0x3177   :  { %v8376_v56 = vsub.f32 %v8360_v26, %v8370_v16 }
0x3178   :  { %v8384_v47 = vmul.f32 1.442695, %v8377_v54 }
0x3179   :  { %v8382_v21 = vmul.f32 1.442695, %v8376_v56  ;;  %v8483_v58 = vpop.permute.xlu0 %8482 }
0x317a   :  { %20813 = vpow2.f32 %v8384_v47  ;;  %19383 = vmatpush3.msra.mxu1 %v8483_v58  ;;  %v8407_v25 = vpop.permute.xlu1 %8406 }
0x317b   :  { %20815 = vpow2.f32 %v8382_v21  ;;  %19378 = vmatpush3.msra.mxu0 %v8407_v25  ;;  %19392 = vmatprep.subr.mxu1 %v21076_v57 }
0x317c   :  { %19387 = vmatprep.subr.mxu0 %v21076_v57 }
0x317d   :  { %v8713_v3 = vpop.permute.xlu0 %8712 }
0x317e   :  { %v8559_v5 = vpop.permute.xlu1 %8558 }
0x3182   :  { %v8635_v59 = vpop.permute.xlu1 %8634 }
0x3184   :  { %v20814_v29 = vpop.eup %20813 }
0x3185   :  { %v20816_v44 = vpop.eup %20815  ;;  %v8395_v50 = vsel %vm288_vm1, %v20814_v29, 0.0 }
0x3186   :  { %8396 = vadd.xlane.f32.xlu0 %v8395_v50  ;;  %v8392_v17 = vsel %vm288_vm1, %v20816_v44, 0.0  ;;  %v8791_v51 = vpop.permute.xlu1 %8790 }
0x3187   :  { %8393 = vadd.xlane.f32.xlu1 %v8392_v17 }
0x3198   :  { %8788 = vrot.lane.b32.xlu1 %v22319_v61, %s23616_s18 }
0x319c   :  { %8710 = vrot.lane.b32.xlu0 %v22311_v22, %s23616_s18  ;;  %8946 = vrot.lane.b32.xlu1 %v22298_v6, %s23616_s18 }
0x31a0   :  { %8868 = vrot.lane.b32.xlu0 %v22300_v7, %s23616_s18  ;;  %8944 = vrot.lane.b32.xlu1 %v22329_v8, %s23616_s18 }
0x31a4   :  { %8866 = vrot.lane.b32.xlu0 %v22331_v34, %s23616_s18 }
0x31dc   :  { %v8388_v4 = vpop.xlane.xlu1 %8387 }
0x31dd   :  { %20817 = vrcp.f32 %v8388_v4 }
0x31e0   :  { %v8391_v31 = vpop.xlane.xlu0 %8390 }
0x31e1   :  { %20819 = vrcp.f32 %v8391_v31 }
0x31e7   :  { %v20818_v20 = vpop.eup %20817 }
0x31e8   :  { %v8402_v63 = vmul.f32 %v20818_v20, %v20810_v43 }
0x31ea   :  { %19380 = vmatmul.mubr.msk.f32.vlgmr.msra.gmra.mrb[86].mxu0 %vm288_vm1, %v8402_v63 }
0x31eb   :  { %v20820_v10 = vpop.eup %20819  ;;  %19388 = vmatpush3.msra.mxu0 %v8559_v5  ;;  %19389 = vmatprep.mubr.msk.f32.mxu0 %vm21077_vm6, %v21076_v57 }
0x31ec   :  { %v8403_v62 = vmul.f32 %v20820_v10, %v20812_v49  ;;  %19397 = vmatprep.subr.mxu0 %v21076_v57 }
0x31ee   :  { %19385 = vmatmul.mubr.msk.f32.vlgmr.msra.gmra.mrb[102].mxu1 %vm288_vm1, %v8403_v62 }
0x31ef   :  { %19393 = vmatpush3.msra.mxu1 %v8635_v59  ;;  %19394 = vmatprep.mubr.msk.f32.mxu1 %vm21077_vm6, %v21076_v57 }
0x31f0   :  { %19402 = vmatprep.subr.mxu1 %v21076_v57 }
0x3213   :  { %v8397_v11 = vpop.xlane.xlu0 %8396 }
0x3214   :  { %20821 = vrcp.f32 %v8397_v11  ;;  %v8394_v9 = vpop.xlane.xlu1 %8393 }
0x3215   :  { %20823 = vrcp.f32 %v8394_v9 }
0x3217   :  { %v8711_v18 = vpop.permute.xlu0 %8710 }
0x3218   :  { %v8789_v27 = vpop.permute.xlu1 %8788 }
0x321b   :  { %v8869_v1 = vpop.permute.xlu0 %8868 }
0x321c   :  { %v8947_v48 = vpop.permute.xlu1 %8946 }
0x321e   :  { %v20822_v15 = vpop.eup %20821 }
0x321f   :  { %v20824_v28 = vpop.eup %20823  ;;  %v8405_v37 = vmul.f32 %v20822_v15, %v20814_v29  ;;  %v8867_v32 = vpop.permute.xlu0 %8866 }
0x3220   :  { %v8404_v30 = vmul.f32 %v20824_v28, %v20816_v44  ;;  %v8945_v2 = vpop.permute.xlu1 %8944 }
0x3221   :  { %19395 = vmatmul.mubr.msk.f32.vlgmr.msra.gmra.mrb[104].mxu1 %vm288_vm1, %v8405_v37 }
0x3222   :  { %19403 = vmatpush3.xpose.msk.msra.mxu1 %vm288_vm1, %v8791_v51  ;;  %19390 = vmatmul.mubr.msk.f32.vlgmr.msra.gmra.mrb[88].mxu0 %vm288_vm1, %v8404_v30 }
0x3223   :  { %19398 = vmatpush3.xpose.msk.msra.mxu0 %vm288_vm1, %v8713_v3  ;;  %19404 = vmatprep.mubr.msk.f32.mxu1 %vm21077_vm6, %v21076_v57 }
0x3224   :  { %19412 = vmatprep.subr.mxu1 %v21076_v57  ;;  %19399 = vmatprep.mubr.msk.f32.mxu0 %vm21077_vm6, %v21076_v57 }
0x3225   :  { %19405 = vmatmul.mubr.msk.f32.vlgmr.msra.gmra.mrb[106].mxu1 %vm288_vm1, %v8789_v27  ;;  %19407 = vmatprep.subr.mxu0 %v21076_v57 }
0x3226   :  { %19413 = vmatpush3.xpose.msk.msra.mxu1 %vm288_vm1, %v8947_v48  ;;  %19400 = vmatmul.mubr.msk.f32.vlgmr.msra.gmra.mrb[90].mxu0 %vm288_vm1, %v8711_v18 }
0x3227   :  { %19408 = vmatpush3.xpose.msk.msra.mxu0 %vm288_vm1, %v8869_v1  ;;  %19414 = vmatprep.mubr.msk.f32.mxu1 %vm21077_vm6, %v21076_v57 }
0x3228   :  { %19409 = vmatprep.mubr.msk.f32.mxu0 %vm21077_vm6, %v21076_v57  ;;  %19417 = vmatprep.subr.mxu0 %v21076_v57 }
0x3229   :  { %19415 = vmatmul.mubr.msk.f32.vlgmr.msra.gmra.mrb[108].mxu1 %vm288_vm1, %v8945_v2  ;;  %19422 = vmatprep.subr.mxu1 %v21076_v57 }
0x322a   :  { %19410 = vmatmul.mubr.msk.f32.vlgmr.msra.gmra.mrb[92].mxu0 %vm288_vm1, %v8867_v32  ;;  %19424 = vmatprep.mubr.msk.f32.mxu1 %vm21077_vm6, %v21076_v57 }
0x322b   :  { %19419 = vmatprep.mubr.msk.f32.mxu0 %vm21077_vm6, %v21076_v57 }
0x32bd   :  { %v22409_v12 = vpop.f32.mrb[86].mxu0 }
0x32be   :  { %v19381_v35 = vpop.f32.mrb[87].mxu0 }
0x32c1   :  { %v22411_v36 = vpop.f32.mrb[102].mxu1 }
0x32c2   :  { %v19386_v26 = vpop.f32.mrb[103].mxu1 }
0x32f4   :  { %v22413_v52 = vpop.f32.mrb[104].mxu1 }
0x32f5   :  { %v22415_v38 = vpop.f32.mrb[88].mxu0  ;;  %v19396_v14 = vpop.f32.mrb[105].mxu1 }
0x32f6   :  { %v19391_v39 = vpop.f32.mrb[89].mxu0 }
0x32f8   :  { %v8862_v23 = vpop.f32.mrb[106].mxu1 }
0x32f9   :  { %v9023_v40 = vmul.f32 0.35355338, %v8862_v23  ;;  %v8784_v41 = vpop.f32.mrb[90].mxu0  ;;  %v19406_v42 = vpop.f32.mrb[107].mxu1 }
0x32fa   :  { %v9022_v19 = vmul.f32 0.35355338, %v8784_v41  ;;  %v19401_v43 = vpop.f32.mrb[91].mxu0 }
0x32fb   :  { %v9029_v45 = vsel %vm288_vm1, %v9023_v40, -inf }
0x32fc   :  { %9030 = vmax.xlane.f32.xlu1 %v9029_v45  ;;  %v9018_v49 = vpop.f32.mrb[108].mxu1  ;;  %v9026_v0 = vsel %vm288_vm1, %v9022_v19, -inf }
0x32fd   :  { %v19416_v46 = vpop.f32.mrb[109].mxu1  ;;  %9027 = vmax.xlane.f32.xlu0 %v9026_v0  ;;  %v8940_v54 = vpop.f32.mrb[92].mxu0  ;;  %v9025_v47 = vmul.f32 0.35355338, %v9018_v49 }
0x32fe   :  { %v9024_v16 = vmul.f32 0.35355338, %v8940_v54  ;;  %v19411_v56 = vpop.f32.mrb[93].mxu0 }
0x32ff   :  { %v9035_v58 = vsel %vm288_vm1, %v9025_v47, -inf }
0x3300   :  { %v9032_v21 = vsel %vm288_vm1, %v9024_v16, -inf }
0x3301   :  { %9033 = vmax.xlane.f32.xlu0 %v9032_v21 }
0x3305   :  { %9036 = vmax.xlane.f32.xlu0 %v9035_v58 }
0x330d   :  { %9070 = vrot.lane.b32.xlu1 %v22293_v60, %s21054_s17 }
0x3311   :  { %9222 = vrot.lane.b32.xlu1 %v22300_v7, %s21054_s17 }
0x3315   :  { %9298 = vrot.lane.b32.xlu1 %v22298_v6, %s21054_s17 }
0x3319   :  { %9454 = vrot.lane.b32.xlu1 %v22291_v33, %s23610_s21 }
0x331b   :  { %9146 = vrot.lane.b32.xlu0 %v22291_v33, %s21054_s17 }
0x331f   :  { %9376 = vrot.lane.b32.xlu0 %v22293_v60, %s23610_s21 }
0x3389   :  { %v9031_v25 = vpop.xlane.xlu1 %9030 }
0x338a   :  { %v9039_v29 = vsub.f32 %v9023_v40, %v9031_v25  ;;  %v9028_v44 = vpop.xlane.xlu0 %9027 }
0x338b   :  { %v9038_v50 = vsub.f32 %v9022_v19, %v9028_v44 }
0x338c   :  { %v9044_v17 = vmul.f32 1.442695, %v9039_v29 }
0x338d   :  { %v9042_v5 = vmul.f32 1.442695, %v9038_v50  ;;  %v9071_v59 = vpop.permute.xlu1 %9070 }
0x338e   :  { %20825 = vpow2.f32 %v9044_v17  ;;  %19418 = vmatpush3.msra.mxu0 %v9071_v59  ;;  %v9034_v51 = vpop.xlane.xlu0 %9033 }
0x338f   :  { %20827 = vpow2.f32 %v9042_v5  ;;  %v9040_v3 = vsub.f32 %v9024_v16, %v9034_v51  ;;  %19427 = vmatprep.subr.mxu0 %v21076_v57 }
0x3391   :  { %v9046_v4 = vmul.f32 1.442695, %v9040_v3  ;;  %v9223_v30 = vpop.permute.xlu1 %9222 }
0x3392   :  { %v9037_v31 = vpop.xlane.xlu0 %9036 }
0x3393   :  { %20829 = vpow2.f32 %v9046_v4  ;;  %v9041_v20 = vsub.f32 %v9025_v47, %v9037_v31 }
0x3395   :  { %v9048_v63 = vmul.f32 1.442695, %v9041_v20  ;;  %v9299_v48 = vpop.permute.xlu1 %9298 }
0x3396   :  { %v9147_v10 = vpop.permute.xlu0 %9146 }
0x3397   :  { %20831 = vpow2.f32 %v9048_v63  ;;  %19423 = vmatpush3.msra.mxu1 %v9147_v10 }
0x3398   :  { %v20826_v62 = vpop.eup %20825  ;;  %19432 = vmatprep.subr.mxu1 %v21076_v57 }
0x3399   :  { %v20828_v11 = vpop.eup %20827  ;;  %v9053_v9 = vsel %vm288_vm1, %v20826_v62, 0.0  ;;  %v9455_v2 = vpop.permute.xlu1 %9454 }
0x339a   :  { %9054 = vadd.xlane.f32.xlu0 %v9053_v9  ;;  %v9050_v27 = vsel %vm288_vm1, %v20828_v11, 0.0  ;;  %v9377_v1 = vpop.permute.xlu0 %9376 }
0x339b   :  { %9051 = vadd.xlane.f32.xlu1 %v9050_v27 }
0x339d   :  { %v20830_v18 = vpop.eup %20829 }
0x339e   :  { %v9056_v15 = vsel %vm288_vm1, %v20830_v18, 0.0 }
0x339f   :  { %9057 = vadd.xlane.f32.xlu1 %v9056_v15 }
0x33a1   :  { %v20832_v28 = vpop.eup %20831 }
0x33a2   :  { %v9059_v37 = vsel %vm288_vm1, %v20832_v28, 0.0 }
0x33a3   :  { %9060 = vadd.xlane.f32.xlu0 %v9059_v37 }
0x33b0   :  { %9452 = vrot.lane.b32.xlu1 %v22319_v61, %s23610_s21 }
0x33b4   :  { %9610 = vrot.lane.b32.xlu1 %v22298_v6, %s23610_s21 }
0x33b8   :  { %9608 = vrot.lane.b32.xlu1 %v22329_v8, %s23610_s21 }
0x33b9   :  { %9374 = vrot.lane.b32.xlu0 %v22311_v22, %s23610_s21 }
0x33bc   :  { %9734 = vrot.lane.b32.xlu1 %v22293_v60, %s23612_s20 }
0x33bd   :  { %9532 = vrot.lane.b32.xlu0 %v22300_v7, %s23610_s21 }
0x33c1   :  { %9530 = vrot.lane.b32.xlu0 %v22331_v34, %s23610_s21  ;;  %s22703_s21 = sld [smem:[%s23595_s0 + %s21091_s11]]   ;;  %s23627_s11 = smov 104  }
0x3427   :  { %v9055_v32 = vpop.xlane.xlu0 %9054 }
0x3428   :  { %20833 = vrcp.f32 %v9055_v32  ;;  %v9052_v35 = vpop.xlane.xlu1 %9051 }
0x3429   :  { %20835 = vrcp.f32 %v9052_v35 }
0x342c   :  { %v9058_v26 = vpop.xlane.xlu1 %9057 }
0x342d   :  { %20837 = vrcp.f32 %v9058_v26 }
0x3430   :  { %v9061_v14 = vpop.xlane.xlu0 %9060  ;;  %v9453_v40 = vpop.permute.xlu1 %9452 }
0x3431   :  { %20839 = vrcp.f32 %v9061_v14 }
0x3432   :  { %v20834_v39 = vpop.eup %20833 }
0x3433   :  { %v20836_v23 = vpop.eup %20835  ;;  %v9067_v41 = vmul.f32 %v20834_v39, %v20826_v62 }
0x3434   :  { %v9066_v42 = vmul.f32 %v20836_v23, %v20828_v11  ;;  %v9375_v43 = vpop.permute.xlu0 %9374  ;;  %v9611_v49 = vpop.permute.xlu1 %9610 }
0x3435   :  { %19425 = vmatmul.mubr.msk.f32.vlgmr.msra.gmra.mrb[110].mxu1 %vm288_vm1, %v9067_v41 }
0x3436   :  { %19433 = vmatpush3.msra.mxu1 %v9299_v48  ;;  %19420 = vmatmul.mubr.msk.f32.vlgmr.msra.gmra.mrb[94].mxu0 %vm288_vm1, %v9066_v42 }
0x3437   :  { %v20838_v19 = vpop.eup %20837  ;;  %19428 = vmatpush3.msra.mxu0 %v9223_v30  ;;  %19429 = vmatprep.mubr.msk.f32.mxu0 %vm21077_vm6, %v21076_v57 }
0x3438   :  { %v9068_v45 = vmul.f32 %v20838_v19, %v20830_v18  ;;  %19437 = vmatprep.subr.mxu0 %v21076_v57  ;;  %19434 = vmatprep.mubr.msk.f32.mxu1 %vm21077_vm6, %v21076_v57  ;;  %v9533_v54 = vpop.permute.xlu0 %9532  ;;  %v9609_v16 = vpop.permute.xlu1 %9608 }
0x3439   :  { %19442 = vmatprep.subr.mxu1 %v21076_v57 }
0x343a   :  { %19430 = vmatmul.mubr.msk.f32.vlgmr.msra.gmra.mrb[96].mxu0 %vm288_vm1, %v9068_v45 }
0x343b   :  { %v20840_v0 = vpop.eup %20839  ;;  %19439 = vmatprep.mubr.msk.f32.mxu0 %vm21077_vm6, %v21076_v57 }
0x343c   :  { %v9069_v46 = vmul.f32 %v20840_v0, %v20832_v28  ;;  %v9531_v56 = vpop.permute.xlu0 %9530  ;;  %v9735_v47 = vpop.permute.xlu1 %9734 }
0x343e   :  { %19438 = vmatpush3.xpose.msk.msra.mxu0 %vm288_vm1, %v9377_v1  ;;  %19435 = vmatmul.mubr.msk.f32.vlgmr.msra.gmra.mrb[112].mxu1 %vm288_vm1, %v9069_v46 }
0x343f   :  { %19443 = vmatpush3.xpose.msk.msra.mxu1 %vm288_vm1, %v9455_v2  ;;  %19447 = vmatprep.subr.mxu0 %v21076_v57 }
0x3440   :  { %19444 = vmatprep.mubr.msk.f32.mxu1 %vm21077_vm6, %v21076_v57  ;;  %19452 = vmatprep.subr.mxu1 %v21076_v57 }
0x3441   :  { %19440 = vmatmul.mubr.msk.f32.vlgmr.msra.gmra.mrb[98].mxu0 %vm288_vm1, %v9375_v43 }
0x3442   :  { %19448 = vmatpush3.xpose.msk.msra.mxu0 %vm288_vm1, %v9533_v54  ;;  %19445 = vmatmul.mubr.msk.f32.vlgmr.msra.gmra.mrb[114].mxu1 %vm288_vm1, %v9453_v40 }
0x3443   :  { %19453 = vmatpush3.xpose.msk.msra.mxu1 %vm288_vm1, %v9611_v49  ;;  %19449 = vmatprep.mubr.msk.f32.mxu0 %vm21077_vm6, %v21076_v57 }
0x3444   :  { %19457 = vmatprep.subr.mxu0 %v21076_v57  ;;  %19454 = vmatprep.mubr.msk.f32.mxu1 %vm21077_vm6, %v21076_v57 }
0x3445   :  { %19450 = vmatmul.mubr.msk.f32.vlgmr.msra.gmra.mrb[100].mxu0 %vm288_vm1, %v9531_v56  ;;  %19462 = vmatprep.subr.mxu1 %v21076_v57 }
0x3446   :  { %19458 = vmatpush3.msra.mxu0 %v9735_v47  ;;  %19455 = vmatmul.mubr.msk.f32.vlgmr.msra.gmra.mrb[116].mxu1 %vm288_vm1, %v9609_v16 }
0x3447   :  { %19459 = vmatprep.mubr.msk.f32.mxu0 %vm21077_vm6, %v21076_v57  ;;  %19467 = vmatprep.subr.mxu0 %v21076_v57 }
0x3448   :  { %19464 = vmatprep.mubr.msk.f32.mxu1 %vm21077_vm6, %v21076_v57 }
0x3508   :  { %v22488_v21 = vpop.f32.mrb[110].mxu1 }
0x3509   :  { %v22490_v58 = vpop.f32.mrb[94].mxu0  ;;  %v19426_v25 = vpop.f32.mrb[111].mxu1 }
0x350a   :  { %v19421_v29 = vpop.f32.mrb[95].mxu0 }
0x350d   :  { %v22492_v44 = vpop.f32.mrb[96].mxu0 }
0x350e   :  { %v19431_v50 = vpop.f32.mrb[97].mxu0 }
0x3511   :  { %v22494_v17 = vpop.f32.mrb[112].mxu1 }
0x3512   :  { %v19436_v5 = vpop.f32.mrb[113].mxu1 }
0x3514   :  { %v9448_v59 = vpop.f32.mrb[98].mxu0 }
0x3515   :  { %v9686_v51 = vmul.f32 0.35355338, %v9448_v59  ;;  %v19441_v3 = vpop.f32.mrb[99].mxu0  ;;  %v9526_v4 = vpop.f32.mrb[114].mxu1 }
0x3516   :  { %v9687_v31 = vmul.f32 0.35355338, %v9526_v4  ;;  %v19446_v20 = vpop.f32.mrb[115].mxu1 }
0x3517   :  { %v9690_v63 = vsel %vm288_vm1, %v9686_v51, -inf }
0x3518   :  { %9691 = vmax.xlane.f32.xlu0 %v9690_v63  ;;  %v9604_v10 = vpop.f32.mrb[100].mxu0  ;;  %v9693_v62 = vsel %vm288_vm1, %v9687_v31, -inf }
0x3519   :  { %v9688_v11 = vmul.f32 0.35355338, %v9604_v10  ;;  %v19451_v9 = vpop.f32.mrb[101].mxu0  ;;  %9694 = vmax.xlane.f32.xlu1 %v9693_v62  ;;  %v9682_v27 = vpop.f32.mrb[116].mxu1 }
0x351a   :  { %v19456_v18 = vpop.f32.mrb[117].mxu1  ;;  %v9689_v15 = vmul.f32 0.35355338, %v9682_v27 }
0x351b   :  { %v9696_v28 = vsel %vm288_vm1, %v9688_v11, -inf }
0x351c   :  { %9697 = vmax.xlane.f32.xlu0 %v9696_v28  ;;  %v9699_v37 = vsel %vm288_vm1, %v9689_v15, -inf }
0x3520   :  { %9700 = vmax.xlane.f32.xlu0 %v9699_v37 }
0x352a   :  { %9886 = vrot.lane.b32.xlu1 %v22300_v7, %s23612_s20 }
0x352e   :  { %9962 = vrot.lane.b32.xlu1 %v22298_v6, %s23612_s20 }
0x3536   :  { %9810 = vrot.lane.b32.xlu0 %v22291_v33, %s23612_s20  ;;  %s23623_s20 = smov 80  }
0x35a5   :  { %v9692_v30 = vpop.xlane.xlu0 %9691 }
0x35a6   :  { %v9702_v48 = vsub.f32 %v9686_v51, %v9692_v30  ;;  %v9695_v1 = vpop.xlane.xlu1 %9694 }
0x35a7   :  { %v9703_v2 = vsub.f32 %v9687_v31, %v9695_v1 }
0x35a8   :  { %v9706_v32 = vmul.f32 1.442695, %v9702_v48 }
0x35a9   :  { %v9708_v35 = vmul.f32 1.442695, %v9703_v2  ;;  %v9698_v26 = vpop.xlane.xlu0 %9697 }
0x35aa   :  { %20841 = vpow2.f32 %v9706_v32  ;;  %v9704_v19 = vsub.f32 %v9688_v11, %v9698_v26  ;;  %v9887_v56 = vpop.permute.xlu1 %9886 }
0x35ab   :  { %20843 = vpow2.f32 %v9708_v35 }
0x35ac   :  { %v9710_v45 = vmul.f32 1.442695, %v9704_v19 }
0x35ad   :  { %v9701_v14 = vpop.xlane.xlu0 %9700 }
0x35ae   :  { %v9705_v43 = vsub.f32 %v9689_v15, %v9701_v14  ;;  %20845 = vpow2.f32 %v9710_v45  ;;  %v9963_v47 = vpop.permute.xlu1 %9962 }
0x35b0   :  { %v9712_v49 = vmul.f32 1.442695, %v9705_v43 }
0x35b1   :  { %v9811_v39 = vpop.permute.xlu0 %9810 }
0x35b2   :  { %19463 = vmatpush3.msra.mxu1 %v9811_v39  ;;  %20847 = vpow2.f32 %v9712_v49 }
0x35b3   :  { %19472 = vmatprep.subr.mxu1 %v21076_v57 }
0x35b4   :  { %v20842_v23 = vpop.eup %20841 }
0x35b5   :  { %v20844_v40 = vpop.eup %20843  ;;  %v9714_v41 = vsel %vm288_vm1, %v20842_v23, 0.0 }
0x35b6   :  { %9715 = vadd.xlane.f32.xlu1 %v9714_v41  ;;  %v9717_v42 = vsel %vm288_vm1, %v20844_v40, 0.0 }
0x35b7   :  { %9718 = vadd.xlane.f32.xlu0 %v9717_v42 }
0x35b8   :  { %v20846_v0 = vpop.eup %20845 }
0x35b9   :  { %v9720_v54 = vsel %vm288_vm1, %v20846_v0, 0.0 }
0x35bc   :  { %v20848_v46 = vpop.eup %20847 }
0x35bd   :  { %v9723_v16 = vsel %vm288_vm1, %v20848_v46, 0.0 }
0x35c7   :  { %10118 = vrot.lane.b32.xlu1 %v22291_v33, %s23604_s24 }
0x35cd   :  { %10040 = vrot.lane.b32.xlu0 %v22293_v60, %s23604_s24 }
0x35eb   :  { %9721 = vadd.xlane.f32.xlu1 %v9720_v54 }
0x35ec   :  { %9724 = vadd.xlane.f32.xlu0 %v9723_v16 }
0x35fc   :  { %10116 = vrot.lane.b32.xlu1 %v22319_v61, %s23604_s24 }
0x3600   :  { %10274 = vrot.lane.b32.xlu1 %v22298_v6, %s23604_s24 }
0x3602   :  { %10038 = vrot.lane.b32.xlu0 %v22311_v22, %s23604_s24 }
0x3604   :  { %10272 = vrot.lane.b32.xlu1 %v22329_v8, %s23604_s24 }
0x3606   :  { %10196 = vrot.lane.b32.xlu0 %v22300_v7, %s23604_s24 }
0x360a   :  { %10194 = vrot.lane.b32.xlu0 %v22331_v34, %s23604_s24  ;;  %s21090_s24 = smov 27  }
0x360b   :  { %s22698_s8 = sld [smem:[%s23595_s0 + %s21090_s24]]   ;;  %s21094_s24 = smov 33  }
0x360c   :  { %s22752_s22 = sld [smem:[%s23595_s0 + %s21094_s24]]   ;;  %s23625_s24 = smov 48  }
0x3643   :  { %v9716_v25 = vpop.xlane.xlu1 %9715 }
0x3644   :  { %20849 = vrcp.f32 %v9716_v25  ;;  %v9719_v61 = vpop.xlane.xlu0 %9718 }
0x3645   :  { %20851 = vrcp.f32 %v9719_v61 }
0x3647   :  { %v10119_v22 = vpop.permute.xlu1 %10118 }
0x3648   :  { %v10041_v8 = vpop.permute.xlu0 %10040 }
0x364e   :  { %v20850_v29 = vpop.eup %20849 }
0x364f   :  { %v20852_v50 = vpop.eup %20851  ;;  %v9730_v5 = vmul.f32 %v20850_v29, %v20842_v23 }
0x3650   :  { %v9731_v59 = vmul.f32 %v20852_v50, %v20844_v40 }
0x3651   :  { %19460 = vmatmul.mubr.msk.f32.vlgmr.msra.gmra.mrb[102].mxu0 %vm288_vm1, %v9730_v5 }
0x3652   :  { %19468 = vmatpush3.msra.mxu0 %v9887_v56  ;;  %19465 = vmatmul.mubr.msk.f32.vlgmr.msra.gmra.mrb[118].mxu1 %vm288_vm1, %v9731_v59 }
0x3653   :  { %19473 = vmatpush3.msra.mxu1 %v9963_v47  ;;  %19469 = vmatprep.mubr.msk.f32.mxu0 %vm21077_vm6, %v21076_v57 }
0x3654   :  { %19477 = vmatprep.subr.mxu0 %v21076_v57  ;;  %19474 = vmatprep.mubr.msk.f32.mxu1 %vm21077_vm6, %v21076_v57 }
0x3655   :  { %19482 = vmatprep.subr.mxu1 %v21076_v57 }
0x3678   :  { %v9722_v34 = vpop.xlane.xlu1 %9721 }
0x3679   :  { %20853 = vrcp.f32 %v9722_v34  ;;  %v9725_v51 = vpop.xlane.xlu0 %9724 }
0x367a   :  { %20855 = vrcp.f32 %v9725_v51 }
0x367c   :  { %v10117_v4 = vpop.permute.xlu1 %10116 }
0x367d   :  { %v10039_v3 = vpop.permute.xlu0 %10038 }
0x3680   :  { %v10275_v11 = vpop.permute.xlu1 %10274 }
0x3681   :  { %v10197_v62 = vpop.permute.xlu0 %10196 }
0x3683   :  { %v20854_v31 = vpop.eup %20853 }
0x3684   :  { %v20856_v20 = vpop.eup %20855  ;;  %v9732_v63 = vmul.f32 %v20854_v31, %v20846_v0  ;;  %v10273_v27 = vpop.permute.xlu1 %10272 }
0x3685   :  { %v9733_v10 = vmul.f32 %v20856_v20, %v20848_v46  ;;  %v10195_v9 = vpop.permute.xlu0 %10194 }
0x3686   :  { %19470 = vmatmul.mubr.msk.f32.vlgmr.msra.gmra.mrb[104].mxu0 %vm288_vm1, %v9732_v63 }
0x3687   :  { %19478 = vmatpush3.xpose.msk.msra.mxu0 %vm288_vm1, %v10041_v8  ;;  %19475 = vmatmul.mubr.msk.f32.vlgmr.msra.gmra.mrb[120].mxu1 %vm288_vm1, %v9733_v10 }
0x3688   :  { %19483 = vmatpush3.xpose.msk.msra.mxu1 %vm288_vm1, %v10119_v22  ;;  %19479 = vmatprep.mubr.msk.f32.mxu0 %vm21077_vm6, %v21076_v57 }
0x3689   :  { %19487 = vmatprep.subr.mxu0 %v21076_v57  ;;  %19484 = vmatprep.mubr.msk.f32.mxu1 %vm21077_vm6, %v21076_v57 }
0x368a   :  { %19480 = vmatmul.mubr.msk.f32.vlgmr.msra.gmra.mrb[106].mxu0 %vm288_vm1, %v10039_v3  ;;  %19492 = vmatprep.subr.mxu1 %v21076_v57 }
0x368b   :  { %19488 = vmatpush3.xpose.msk.msra.mxu0 %vm288_vm1, %v10197_v62  ;;  %19485 = vmatmul.mubr.msk.f32.vlgmr.msra.gmra.mrb[122].mxu1 %vm288_vm1, %v10117_v4 }
0x368c   :  { %19493 = vmatpush3.xpose.msk.msra.mxu1 %vm288_vm1, %v10275_v11  ;;  %19489 = vmatprep.mubr.msk.f32.mxu0 %vm21077_vm6, %v21076_v57 }
0x368d   :  { %19494 = vmatprep.mubr.msk.f32.mxu1 %vm21077_vm6, %v21076_v57  ;;  %19497 = vmatprep.subr.mxu0 %v21076_v57 }
0x368e   :  { %19490 = vmatmul.mubr.msk.f32.vlgmr.msra.gmra.mrb[108].mxu0 %vm288_vm1, %v10195_v9  ;;  %19502 = vmatprep.subr.mxu1 %v21076_v57 }
0x368f   :  { %19495 = vmatmul.mubr.msk.f32.vlgmr.msra.gmra.mrb[124].mxu1 %vm288_vm1, %v10273_v27  ;;  %19499 = vmatprep.mubr.msk.f32.mxu0 %vm21077_vm6, %v21076_v57 }
0x3690   :  { %19504 = vmatprep.mubr.msk.f32.mxu1 %vm21077_vm6, %v21076_v57 }
0x3724   :  { %v22561_v18 = vpop.f32.mrb[102].mxu0 }
0x3725   :  { %v19461_v15 = vpop.f32.mrb[103].mxu0  ;;  %v9882_v28 = vpop.f32.mrb[118].mxu1 }
0x3726   :  { %v19466_v37 = vpop.f32.mrb[119].mxu1 }
0x3759   :  { %v22563_v30 = vpop.f32.mrb[104].mxu0 }
0x375a   :  { %v19471_v48 = vpop.f32.mrb[105].mxu0  ;;  %v22565_v1 = vpop.f32.mrb[120].mxu1 }
0x375b   :  { %v19476_v2 = vpop.f32.mrb[121].mxu1 }
0x375d   :  { %v10112_v32 = vpop.f32.mrb[106].mxu0 }
0x375e   :  { %v10350_v35 = vmul.f32 0.35355338, %v10112_v32  ;;  %v19481_v26 = vpop.f32.mrb[107].mxu0  ;;  %v10190_v14 = vpop.f32.mrb[122].mxu1 }
0x375f   :  { %v10351_v39 = vmul.f32 0.35355338, %v10190_v14  ;;  %v19486_v23 = vpop.f32.mrb[123].mxu1  ;;  %v4832_v26 = vld [vmem:[%s22603_s9 + $0x8] sm:$0xff]  ;;  %v4833_v14 = vld [vmem:[%s22603_s9 + $0x10] sm:$0xff] }
0x3760   :  { %v10354_v40 = vsel %vm288_vm1, %v10350_v35, -inf  ;;  %v4834_v23 = vld [vmem:[%s22603_s9 + $0x18] sm:$0xff] }
0x3761   :  { %10355 = vmax.xlane.f32.xlu0 %v10354_v40  ;;  %v10268_v41 = vpop.f32.mrb[108].mxu0  ;;  %v10357_v42 = vsel %vm288_vm1, %v10351_v39, -inf  ;;  %v20277_v40 = vpack.c.bf16 %v4834_v23, %v4833_v14 }
0x3762   :  { %v10352_v19 = vmul.f32 0.35355338, %v10268_v41  ;;  %v19491_v43 = vpop.f32.mrb[109].mxu0  ;;  %10358 = vmax.xlane.f32.xlu1 %v10357_v42  ;;  %v10346_v45 = vpop.f32.mrb[124].mxu1 }
0x3763   :  { %v19496_v49 = vpop.f32.mrb[125].mxu1  ;;  %v10353_v0 = vmul.f32 0.35355338, %v10346_v45 }
0x3764   :  { %v10360_v46 = vsel %vm288_vm1, %v10352_v19, -inf }
0x3765   :  { %10361 = vmax.xlane.f32.xlu0 %v10360_v46  ;;  %v10363_v54 = vsel %vm288_vm1, %v10353_v0, -inf }
0x3769   :  { %10364 = vmax.xlane.f32.xlu0 %v10363_v54 }
0x3773   :  { %10398 = vrot.lane.b32.xlu1 %v22293_v60, %s23606_s23 }
0x37ee   :  { %v10356_v16 = vpop.xlane.xlu0 %10355 }
0x37ef   :  { %v10366_v56 = vsub.f32 %v10350_v35, %v10356_v16  ;;  %v10359_v47 = vpop.xlane.xlu1 %10358  ;;  %v4831_v35 = vld [vmem:[%s22603_s9] sm:$0xff] }
0x37f0   :  { %v10367_v25 = vsub.f32 %v10351_v39, %v10359_v47  ;;  %v20273_v39 = vpack.c.bf16 %v4832_v26, %v4831_v35 }
0x37f1   :  { %v10370_v61 = vmul.f32 1.442695, %v10366_v56 }
0x37f2   :  { %v10372_v29 = vmul.f32 1.442695, %v10367_v25  ;;  %v10362_v50 = vpop.xlane.xlu0 %10361 }
0x37f3   :  { %20857 = vpow2.f32 %v10370_v61  ;;  %v10368_v5 = vsub.f32 %v10352_v19, %v10362_v50  ;;  %v10399_v59 = vpop.permute.xlu1 %10398 }
0x37f4   :  { %20859 = vpow2.f32 %v10372_v29  ;;  %19498 = vmatpush3.msra.mxu0 %v10399_v59 }
0x37f5   :  { %v10374_v22 = vmul.f32 1.442695, %v10368_v5  ;;  %19507 = vmatprep.subr.mxu0 %v21076_v57 }
0x37f6   :  { %v10365_v8 = vpop.xlane.xlu0 %10364 }
0x37f7   :  { %20861 = vpow2.f32 %v10374_v22  ;;  %v10369_v34 = vsub.f32 %v10353_v0, %v10365_v8 }
0x37f9   :  { %v10376_v51 = vmul.f32 1.442695, %v10369_v34 }
0x37fb   :  { %20863 = vpow2.f32 %v10376_v51 }
0x37fd   :  { %v20858_v60 = vpop.eup %20857 }
0x37fe   :  { %v20860_v3 = vpop.eup %20859  ;;  %v10378_v4 = vsel %vm288_vm1, %v20858_v60, 0.0 }
0x37ff   :  { %10379 = vadd.xlane.f32.xlu1 %v10378_v4  ;;  %v10381_v31 = vsel %vm288_vm1, %v20860_v3, 0.0 }
0x3800   :  { %10382 = vadd.xlane.f32.xlu0 %v10381_v31 }
0x3801   :  { %v20862_v20 = vpop.eup %20861 }
0x3802   :  { %v10384_v63 = vsel %vm288_vm1, %v20862_v20, 0.0 }
0x3803   :  { %10385 = vadd.xlane.f32.xlu1 %v10384_v63 }
0x3805   :  { %v20864_v10 = vpop.eup %20863 }
0x3806   :  { %v10387_v62 = vsel %vm288_vm1, %v20864_v10, 0.0 }
0x3807   :  { %10388 = vadd.xlane.f32.xlu0 %v10387_v62 }
0x3814   :  { %10550 = vrot.lane.b32.xlu1 %v22300_v7, %s23606_s23 }
0x3818   :  { %10626 = vrot.lane.b32.xlu1 %v22298_v6, %s23606_s23 }
0x381c   :  { %10708 = vrot.lane.b32.xlu1 %v22488_v21, %s23600_s26 }
0x381d   :  { %10474 = vrot.lane.b32.xlu0 %v22291_v33, %s23606_s23 }
0x3820   :  { %10724 = vrot.lane.b32.xlu1 %v9882_v28, %s23598_s27 }
0x3821   :  { %10706 = vrot.lane.b32.xlu0 %v22490_v58, %s23600_s26 }
0x3825   :  { %10722 = vrot.lane.b32.xlu0 %v22561_v18, %s23598_s27 }
0x388c   :  { %v10380_v11 = vpop.xlane.xlu1 %10379 }
0x388d   :  { %20865 = vrcp.f32 %v10380_v11  ;;  %v10383_v7 = vpop.xlane.xlu0 %10382 }
0x388e   :  { %20867 = vrcp.f32 %v10383_v7 }
0x3890   :  { %v10386_v9 = vpop.xlane.xlu1 %10385 }
0x3891   :  { %20869 = vrcp.f32 %v10386_v9 }
0x3894   :  { %v10389_v6 = vpop.xlane.xlu0 %10388  ;;  %v10551_v27 = vpop.permute.xlu1 %10550 }
0x3895   :  { %20871 = vrcp.f32 %v10389_v6 }
0x3897   :  { %v20866_v21 = vpop.eup %20865 }
0x3898   :  { %v20868_v15 = vpop.eup %20867  ;;  %v10475_v33 = vpop.permute.xlu0 %10474  ;;  %v10394_v37 = vmul.f32 %v20866_v21, %v20858_v60 }
0x3899   :  { %19503 = vmatpush3.msra.mxu1 %v10475_v33  ;;  %v10395_v28 = vmul.f32 %v20868_v15, %v20860_v3  ;;  %v10627_v18 = vpop.permute.xlu1 %10626 }
0x389a   :  { %19500 = vmatmul.mubr.msk.f32.vlgmr.msra.gmra.mrb[110].mxu0 %vm288_vm1, %v10394_v37  ;;  %19512 = vmatprep.subr.mxu1 %v21076_v57 }
0x389b   :  { %v20870_v58 = vpop.eup %20869  ;;  %19508 = vmatpush3.msra.mxu0 %v10551_v27  ;;  %19505 = vmatmul.mubr.msk.f32.vlgmr.msra.gmra.mrb[126].mxu1 %vm288_vm1, %v10395_v28 }
0x389c   :  { %19513 = vmatpush3.msra.mxu1 %v10627_v18  ;;  %19509 = vmatprep.mubr.msk.f32.mxu0 %vm21077_vm6, %v21076_v57  ;;  %v10396_v48 = vmul.f32 %v20870_v58, %v20862_v20  ;;  %v10707_v54 = vpop.permute.xlu0 %10706 }
0x389d   :  { %19514 = vmatprep.mubr.msk.f32.mxu1 %vm21077_vm6, %v21076_v57  ;;  %20274 = vmatprep.subr.bf16.mxu0 %v20273_v39  ;;  %v10709_v16 = vpop.permute.xlu1 %10708  ;;  %v10750_v47 = vsel %vm288_vm1, %v22409_v12, %v10707_v54 }
0x389e   :  { %19510 = vmatmul.mubr.msk.f32.vlgmr.msra.gmra.mrb[112].mxu0 %vm288_vm1, %v10396_v48 }
0x389f   :  { %v20872_v2 = vpop.eup %20871  ;;  %20276 = vmatpush3.bf16.msra.mxu0 %v20273_v39 }
0x38a0   :  { %v10397_v32 = vmul.f32 %v20872_v2, %v20864_v10  ;;  %20278 = vmatprep.subr.bf16.mxu0 %v20277_v40  ;;  %v10723_v56 = vpop.permute.xlu0 %10722 }
0x38a1   :  { %v10754_v25 = vsel %vm465_vm3, %v10750_v47, %v10723_v56 }
0x38a2   :  { %19515 = vmatmul.mubr.msk.f32.vlgmr.msra.gmra.mrb[128].mxu1 %vm288_vm1, %v10397_v32 }
0x38a3   :  { %20280 = vmatpush3.bf16.msra.mxu0 %v20277_v40 }
0x396d   :  { %v10470_v41 = vpop.f32.mrb[110].mxu0 }
0x396e   :  { %10738 = vrot.lane.b32.xlu0 %v10470_v41, %s23620_s14  ;;  %v19501_v42 = vpop.f32.mrb[111].mxu0  ;;  %v10546_v19 = vpop.f32.mrb[126].mxu1 }
0x396f   :  { %10740 = vrot.lane.b32.xlu1 %v10546_v19, %s23620_s14  ;;  %v19506_v43 = vpop.f32.mrb[127].mxu1 }
0x3971   :  { %v10622_v45 = vpop.f32.mrb[112].mxu0 }
0x3972   :  { %10710 = vrot.lane.b32.xlu0 %v22492_v44, %s23600_s26  ;;  %v19511_v49 = vpop.f32.mrb[113].mxu0  ;;  %v10725_v44 = vpop.permute.xlu1 %10724 }
0x3973   :  { %10712 = vrot.lane.b32.xlu1 %v22494_v17, %s23600_s26  ;;  %v10751_v17 = vsel %vm288_vm1, %v22411_v36, %v10709_v16  ;;  %s21089_s26 = smov 31  }
0x3974   :  { %v10755_v61 = vsel %vm465_vm3, %v10751_v17, %v10725_v44 }
0x3975   :  { %v10698_v0 = vpop.f32.mrb[128].mxu1 }
0x3976   :  { %v19516_v46 = vpop.f32.mrb[129].mxu1  ;;  %10726 = vrot.lane.b32.xlu0 %v22563_v30, %s23598_s27 }
0x3977   :  { %10728 = vrot.lane.b32.xlu1 %v22565_v1, %s23598_s27  ;;  %s22678_s27 = sld [smem:[%s23595_s0 + %s21088_s13]]  }
0x3978   :  { %s22687_s13 = sld [smem:[%s23595_s0 + %s21089_s26]]   ;;  %s21093_s26 = smov 32  }
0x3979   :  { %s22733_s23 = sld [smem:[%s23595_s0 + %s21093_s26]]   ;;  %s23626_s26 = smov 72  }
0x397a   :  { %10742 = vrot.lane.b32.xlu0 %v10622_v45, %s23620_s14 }
0x397b   :  { %10744 = vrot.lane.b32.xlu1 %v10698_v0, %s23620_s14 }
0x397d   :  { %v4838_v0 = vld [vmem:[%s22678_s27] sm:$0xff]  ;;  %v4839_v46 = vld [vmem:[%s22678_s27 + $0x8] sm:$0xff]  ;;  %v4840_v16 = vld [vmem:[%s22678_s27 + $0x10] sm:$0xff] }
0x397e   :  { %v20281_v54 = vpack.c.bf16 %v4839_v46, %v4838_v0  ;;  %v4841_v56 = vld [vmem:[%s22678_s27 + $0x18] sm:$0xff]  ;;  %v4843_v47 = vld [vmem:[%s22687_s13] sm:$0xff]  ;;  %v4844_v17 = vld [vmem:[%s22687_s13 + $0x8] sm:$0xff] }
0x397f   :  { %v20285_v44 = vpack.c.bf16 %v4841_v56, %v4840_v16 }
0x3980   :  { %20282 = vmatprep.subr.bf16.mxu1 %v20281_v54 }
0x3981   :  { %20284 = vmatpush3.bf16.msra.mxu1 %v20281_v54 }
0x3982   :  { %20286 = vmatprep.subr.bf16.mxu1 %v20285_v44 }
0x3985   :  { %20288 = vmatpush3.bf16.msra.mxu1 %v20285_v44 }
0x39e0   :  { %v10739_v30 = vpop.permute.xlu0 %10738 }
0x39e1   :  { %v10758_v1 = vsel %vm1952_vm4, %v10754_v25, %v10739_v30  ;;  %v10741_v29 = vpop.permute.xlu1 %10740  ;;  %v4845_v25 = vld [vmem:[%s22687_s13 + $0x10] sm:$0xff]  ;;  %v20289_v30 = vpack.c.bf16 %v4844_v17, %v4843_v47 }
0x39e2   :  { %v10759_v50 = vsel %vm1952_vm4, %v10755_v61, %v10741_v29  ;;  %19525 = vmatprep.mubr.msk.f32.mxu0 %vm184_vm0, %v10758_v1  ;;  %v4846_v61 = vld [vmem:[%s22687_s13 + $0x18] sm:$0xff]  ;;  %v4847_v29 = vld [vmem:[%s22687_s13 + $0x20] sm:$0xff] }
0x39e3   :  { %19526 = vmatmul.mubr.msk.f32.vlgmr.msra.gmra.mrb[114].mxu0 %vm184_vm0, %v10759_v50  ;;  %v20293_v1 = vpack.c.bf16 %v4846_v61, %v4845_v25  ;;  %v4848_v50 = vld [vmem:[%s22687_s13 + $0x28] sm:$0xff]  ;;  %20290 = vmatprep.subr.bf16.mxu0 %v20289_v30 }
0x39e4   :  { %v10711_v5 = vpop.permute.xlu0 %10710  ;;  %20292 = vmatpush3.bf16.msra.mxu0 %v20289_v30 }
0x39e5   :  { %v10713_v59 = vpop.permute.xlu1 %10712  ;;  %v10752_v36 = vsel %vm288_vm1, %v22415_v38, %v10711_v5  ;;  %20294 = vmatprep.subr.bf16.mxu0 %v20293_v1  ;;  %v20297_v5 = vpack.c.bf16 %v4848_v50, %v4847_v29 }
0x39e6   :  { %v10753_v8 = vsel %vm288_vm1, %v22413_v52, %v10713_v59  ;;  %v17990_v52 = vld [vmem:[%s22644_s5] ss:$0 sm:$0xff] }
0x39e8   :  { %v10727_v12 = vpop.permute.xlu0 %10726  ;;  %20296 = vmatpush3.bf16.msra.mxu0 %v20293_v1 }
0x39e9   :  { %v10729_v22 = vpop.permute.xlu1 %10728  ;;  %v10756_v34 = vsel %vm465_vm3, %v10752_v36, %v10727_v12  ;;  %20298 = vmatprep.subr.bf16.mxu0 %v20297_v5 }
0x39ea   :  { %v10757_v60 = vsel %vm465_vm3, %v10753_v8, %v10729_v22 }
0x39ec   :  { %v10743_v51 = vpop.permute.xlu0 %10742  ;;  %20300 = vmatpush3.bf16.msra.mxu0 %v20297_v5 }
0x39ed   :  { %v10760_v3 = vsel %vm1952_vm4, %v10756_v34, %v10743_v51  ;;  %v10745_v4 = vpop.permute.xlu1 %10744 }
0x39ee   :  { %v10761_v31 = vsel %vm1952_vm4, %v10757_v60, %v10745_v4  ;;  %19528 = vmatprep.mubr.msk.f32.mxu0 %vm184_vm0, %v10760_v3  ;;  %v17995_v4 = vld [vmem:[%s22698_s8] ss:$0 sm:$0xff] }
0x39ef   :  { %19529 = vmatmul.mubr.msk.f32.gmra.mrb[116].mxu0 %vm184_vm0, %v10761_v31 }
0x3ab6   :  { %v19527_v38 = vpop.f32.mrb[114].mxu0 }
0x3ab7   :  { %v10852_v20 = vadd.f32 %v19527_v38, %v17990_v52  ;;  %v10846_v63 = vpop.f32.mrb[115].mxu0 }
0x3ab8   :  { %v10847_v10 = vadd.f32 %v17990_v52, %v10846_v63 }
0x3ab9   :  { %v10866_v62 = vadd.f32 %v10852_v20, %v22268_v53 }
0x3aba   :  { %v10865_v11 = vadd.f32 %v10847_v10, %v22266_v55 }
0x3abb   :  { %v10872_v7 = vsel %vm184_vm0, %v10866_v62, 0.0 }
0x3abc   :  { %10873 = vadd.xlane.f32.xlu1 %v10872_v7  ;;  %v10869_v9 = vsel %vm184_vm0, %v10865_v11, 0.0 }
0x3abd   :  { %10870 = vadd.xlane.f32.xlu0 %v10869_v9 }
0x3ac2   :  { %v19530_v6 = vpop.f32.mrb[116].mxu0 }
0x3ac3   :  { %v10856_v27 = vpop.f32.mrb[117].mxu0  ;;  %v10862_v21 = vadd.f32 %v19530_v6, %v17990_v52 }
0x3ac4   :  { %v10857_v15 = vadd.f32 %v17990_v52, %v10856_v27 }
0x3ac5   :  { %v10868_v37 = vadd.f32 %v10862_v21, %v22278_v13 }
0x3ac6   :  { %v10867_v33 = vadd.f32 %v10857_v15, %v22274_v24 }
0x3ac7   :  { %v10878_v53 = vsel %vm184_vm0, %v10868_v37, 0.0 }
0x3ac8   :  { %v10875_v28 = vsel %vm184_vm0, %v10867_v33, 0.0 }
0x3ac9   :  { %10876 = vadd.xlane.f32.xlu0 %v10875_v28 }
0x3acd   :  { %10879 = vadd.xlane.f32.xlu0 %v10878_v53 }
0x3b49   :  { %v10874_v55 = vpop.xlane.xlu1 %10873 }
0x3b4a   :  { %v10882_v58 = vmul.f32 0.03125, %v10874_v55  ;;  %v10871_v18 = vpop.xlane.xlu0 %10870 }
0x3b4b   :  { %v10881_v48 = vmul.f32 0.03125, %v10871_v18  ;;  %v4849_v18 = vld [vmem:[%s22687_s13 + $0x30] sm:$0xff] }
0x3b4c   :  { %v22655_v2 = vsub.f32 %v10866_v62, %v10882_v58  ;;  %v17996_v62 = vld [vmem:[%s22703_s21] ss:$0 sm:$0xff] }
0x3b4d   :  { %v22657_v32 = vsub.f32 %v10865_v11, %v10881_v48  ;;  %v4850_v48 = vld [vmem:[%s22687_s13 + $0x38] sm:$0xff] }
0x3b4e   :  { %v10890_v35 = vmul.f32 %v22655_v2, %v22655_v2 }
0x3b4f   :  { %v10889_v24 = vmul.f32 %v22657_v32, %v22657_v32 }
0x3b50   :  { %v10896_v13 = vsel %vm184_vm0, %v10890_v35, 0.0 }
0x3b51   :  { %10897 = vadd.xlane.f32.xlu0 %v10896_v13  ;;  %v10893_v26 = vsel %vm184_vm0, %v10889_v24, 0.0 }
0x3b52   :  { %10894 = vadd.xlane.f32.xlu1 %v10893_v26 }
0x3b56   :  { %v10877_v14 = vpop.xlane.xlu0 %10876 }
0x3b57   :  { %v10883_v39 = vmul.f32 0.03125, %v10877_v14 }
0x3b59   :  { %v22665_v23 = vsub.f32 %v10867_v33, %v10883_v39 }
0x3b5a   :  { %v10880_v40 = vpop.xlane.xlu0 %10879 }
0x3b5b   :  { %v10884_v41 = vmul.f32 0.03125, %v10880_v40  ;;  %v10891_v42 = vmul.f32 %v22665_v23, %v22665_v23 }
0x3b5d   :  { %v22669_v19 = vsub.f32 %v10868_v37, %v10884_v41  ;;  %v10899_v43 = vsel %vm184_vm0, %v10891_v42, 0.0 }
0x3b5e   :  { %10900 = vadd.xlane.f32.xlu1 %v10899_v43 }
0x3b5f   :  { %v10892_v45 = vmul.f32 %v22669_v19, %v22669_v19 }
0x3b61   :  { %v10902_v49 = vsel %vm184_vm0, %v10892_v45, 0.0  ;;  %v18002_v45 = vld [vmem:[%s22733_s23] ss:$0 sm:$0xff] }
0x3b62   :  { %10903 = vadd.xlane.f32.xlu0 %v10902_v49 }
0x3bde   :  { %v10898_v59 = vpop.xlane.xlu0 %10897 }
0x3bdf   :  { %v10906_v12 = vmul.f32 0.03125, %v10898_v59  ;;  %v10895_v22 = vpop.xlane.xlu1 %10894 }
0x3be0   :  { %v10905_v36 = vmul.f32 0.03125, %v10895_v22 }
0x3be1   :  { %v10910_v8 = vadd.f32 1e-05, %v10906_v12 }
0x3be2   :  { %v10909_v34 = vadd.f32 1e-05, %v10905_v36 }
0x3be3   :  { %20873 = vrsqrt.f32 %v10910_v8 }
0x3be4   :  { %20875 = vrsqrt.f32 %v10909_v34 }
0x3beb   :  { %v10901_v51 = vpop.xlane.xlu1 %10900 }
0x3bec   :  { %v10907_v60 = vmul.f32 0.03125, %v10901_v51 }
0x3bed   :  { %v20874_v3 = vpop.eup %20873 }
0x3bee   :  { %v20876_v31 = vpop.eup %20875  ;;  %v10918_v52 = vmul.f32 %v20874_v3, %v22655_v2  ;;  %v10911_v38 = vadd.f32 1e-05, %v10907_v60  ;;  %v20301_v2 = vpack.c.bf16 %v4850_v48, %v4849_v18 }
0x3bef   :  { %v10904_v20 = vpop.xlane.xlu0 %10903  ;;  %v10917_v63 = vmul.f32 %v20876_v31, %v22657_v32  ;;  %v17997_v32 = vld [vmem:[%s22721_s25] ss:$0 sm:$0xff] }
0x3bf0   :  { %20877 = vrsqrt.f32 %v10911_v38  ;;  %v10908_v10 = vmul.f32 0.03125, %v10904_v20  ;;  %v10928_v11 = vmul.f32 %v17995_v4, %v10918_v52  ;;  %20302 = vmatprep.subr.bf16.mxu0 %v20301_v2 }
0x3bf1   :  { %v10927_v7 = vmul.f32 %v17995_v4, %v10917_v63  ;;  %20304 = vmatpush3.bf16.msra.mxu0 %v20301_v2 }
0x3bf2   :  { %v10912_v9 = vadd.f32 1e-05, %v10908_v10  ;;  %v10938_v27 = vadd.f32 %v17996_v62, %v10928_v11  ;;  %19591 = vmatprep.subr.mxu0 %v21076_v57 }
0x3bf3   :  { %v10937_v6 = vadd.f32 %v17996_v62, %v10927_v7 }
0x3bf4   :  { %20879 = vrsqrt.f32 %v10912_v9 }
0x3bf5   :  { %19539 = vmatprep.mubr.msk.f32.mxu1 %vm184_vm0, %v10937_v6 }
0x3bf6   :  { %19540 = vmatmul.mubr.msk.f32.vlgmr.msra.gmra.mrb[130].mxu1 %vm184_vm0, %v10938_v27 }
0x3bfa   :  { %v20878_v21 = vpop.eup %20877 }
0x3bfb   :  { %v10919_v15 = vmul.f32 %v20878_v21, %v22665_v23 }
0x3bfd   :  { %v10929_v33 = vmul.f32 %v17995_v4, %v10919_v15  ;;  %v18011_v15 = vld [vmem:[%s21810_s30 + $0x30] sm:$0xff] }
0x3bfe   :  { %v20880_v37 = vpop.eup %20879 }
0x3bff   :  { %v10939_v28 = vadd.f32 %v17996_v62, %v10929_v33  ;;  %v10920_v53 = vmul.f32 %v20880_v37, %v22669_v19  ;;  %v18012_v33 = vld [vmem:[%s21810_s30 + $0x38] sm:$0xff] }
0x3c00   :  { %v20309_v37 = vpack.c.bf16 %v18012_v33, %v18011_v15 }
0x3c01   :  { %19542 = vmatprep.mubr.msk.f32.mxu1 %vm184_vm0, %v10939_v28  ;;  %v10930_v55 = vmul.f32 %v17995_v4, %v10920_v53 }
0x3c03   :  { %v10940_v58 = vadd.f32 %v17996_v62, %v10930_v55 }
0x3c05   :  { %19543 = vmatmul.mubr.msk.f32.gmra.mrb[132].mxu1 %vm184_vm0, %v10940_v58 }
0x3cc9   :  { %v19541_v35 = vpop.f32.mrb[130].mxu1 }
0x3cca   :  { %v11031_v24 = vadd.f32 %v19541_v35, %v17997_v32  ;;  %v11025_v13 = vpop.f32.mrb[131].mxu1  ;;  %v18007_v35 = vld [vmem:[%s22752_s22] ss:$0 sm:$0xff] }
0x3ccb   :  { %v11026_v26 = vadd.f32 %v17997_v32, %v11025_v13 }
0x3ccc   :  { %v11045_v39 = vmax.f32 %v11031_v24, 0.0 }
0x3ccd   :  { %v11044_v14 = vmax.f32 %v11026_v26, 0.0 }
0x3ccf   :  { %19561 = vmatprep.mubr.msk.f32.mxu0 %vm2250_vm5, %v11044_v14 }
0x3cd0   :  { %19562 = vmatmul.mubr.msk.f32.vlgmr.msra.gmra.mrb[118].mxu0 %vm2250_vm5, %v11045_v39 }
0x3cd8   :  { %v19544_v23 = vpop.f32.mrb[132].mxu1 }
0x3cd9   :  { %v11041_v40 = vadd.f32 %v19544_v23, %v17997_v32  ;;  %v11035_v41 = vpop.f32.mrb[133].mxu1 }
0x3cda   :  { %v11036_v42 = vadd.f32 %v17997_v32, %v11035_v41 }
0x3cdb   :  { %v11047_v43 = vmax.f32 %v11041_v40, 0.0 }
0x3cdc   :  { %v11046_v19 = vmax.f32 %v11036_v42, 0.0 }
0x3cde   :  { %19564 = vmatprep.mubr.msk.f32.mxu0 %vm2250_vm5, %v11046_v19 }
0x3cdf   :  { %19565 = vmatmul.mubr.msk.f32.gmra.mrb[120].mxu0 %vm2250_vm5, %v11047_v43 }
0x3ce0   :  { %19593 = vmatprep.mubr.msk.f32.mxu0 %vm21077_vm6, %v21076_v57 }
0x3da3   :  { %v19563_v49 = vpop.f32.mrb[118].mxu0 }
0x3da4   :  { %v11138_v0 = vadd.f32 %v19563_v49, %v18002_v45  ;;  %v11132_v46 = vpop.f32.mrb[119].mxu0 }
0x3da5   :  { %v11133_v54 = vadd.f32 %v18002_v45, %v11132_v46 }
0x3da6   :  { %v11152_v16 = vadd.f32 %v11138_v0, %v10938_v27  ;;  %v18010_v27 = vld [vmem:[%s21810_s30 + $0x28] sm:$0xff] }
0x3da7   :  { %v11151_v56 = vadd.f32 %v11133_v54, %v10937_v6  ;;  %v18009_v6 = vld [vmem:[%s21810_s30 + $0x20] sm:$0xff]  ;;  %s21095_s30 = smov 34  }
0x3da8   :  { %v11158_v44 = vsel %vm184_vm0, %v11152_v16, 0.0  ;;  %v20305_v21 = vpack.c.bf16 %v18010_v27, %v18009_v6  ;;  %s22757_s18 = sld [smem:[%s23595_s0 + %s21095_s30]]   ;;  %s23628_s30 = smov 40  }
0x3da9   :  { %11159 = vadd.xlane.f32.xlu0 %v11158_v44  ;;  %v11155_v47 = vsel %vm184_vm0, %v11151_v56, 0.0 }
0x3daa   :  { %11156 = vadd.xlane.f32.xlu1 %v11155_v47  ;;  %20306 = vmatprep.subr.bf16.mxu1 %v20305_v21 }
0x3dab   :  { %20308 = vmatpush3.bf16.msra.mxu1 %v20305_v21 }
0x3dac   :  { %20310 = vmatprep.subr.bf16.mxu1 %v20309_v37 }
0x3dae   :  { %v18008_v41 = vld [vmem:[%s22757_s18] ss:$0 sm:$0xff] }
0x3daf   :  { %20312 = vmatpush3.bf16.msra.mxu1 %v20309_v37 }
0x3db0   :  { %19581 = vmatprep.subr.mxu1 %v21076_v57 }
0x3db2   :  { %v19566_v17 = vpop.f32.mrb[120].mxu0 }
0x3db3   :  { %v11148_v25 = vadd.f32 %v19566_v17, %v18002_v45  ;;  %v11142_v30 = vpop.f32.mrb[121].mxu0 }
0x3db4   :  { %v11143_v61 = vadd.f32 %v18002_v45, %v11142_v30 }
0x3db5   :  { %v11154_v1 = vadd.f32 %v11148_v25, %v10940_v58  ;;  %v18054_v25 = vld [vmem:[%s21844_s12 + $0x1] ss:$0 sm:$0xff]  ;;  %s23624_s12 = smov 112  }
0x3db6   :  { %v11153_v29 = vadd.f32 %v11143_v61, %v10939_v28 }
0x3db7   :  { %v11164_v50 = vsel %vm184_vm0, %v11154_v1, 0.0 }
0x3db8   :  { %11165 = vadd.xlane.f32.xlu0 %v11164_v50  ;;  %v11161_v5 = vsel %vm184_vm0, %v11153_v29, 0.0 }
0x3db9   :  { %11162 = vadd.xlane.f32.xlu1 %v11161_v5 }
0x3e36   :  { %v11160_v59 = vpop.xlane.xlu0 %11159 }
0x3e37   :  { %v11168_v12 = vmul.f32 0.03125, %v11160_v59  ;;  %v11157_v22 = vpop.xlane.xlu1 %11156 }
0x3e38   :  { %v11167_v36 = vmul.f32 0.03125, %v11157_v22 }
0x3e39   :  { %v11172_v8 = vsub.f32 %v11152_v16, %v11168_v12 }
0x3e3a   :  { %v11171_v34 = vsub.f32 %v11151_v56, %v11167_v36 }
0x3e3b   :  { %v11176_v51 = vmul.f32 %v11172_v8, %v11172_v8 }
0x3e3c   :  { %v11175_v60 = vmul.f32 %v11171_v34, %v11171_v34 }
0x3e3d   :  { %v11182_v3 = vsel %vm184_vm0, %v11176_v51, 0.0 }
0x3e3e   :  { %11183 = vadd.xlane.f32.xlu0 %v11182_v3  ;;  %v11179_v4 = vsel %vm184_vm0, %v11175_v60, 0.0 }
0x3e3f   :  { %11180 = vadd.xlane.f32.xlu1 %v11179_v4 }
0x3e45   :  { %v11166_v31 = vpop.xlane.xlu0 %11165 }
0x3e46   :  { %v11170_v52 = vmul.f32 0.03125, %v11166_v31  ;;  %v11163_v38 = vpop.xlane.xlu1 %11162 }
0x3e47   :  { %v11169_v20 = vmul.f32 0.03125, %v11163_v38 }
0x3e48   :  { %v11174_v63 = vsub.f32 %v11154_v1, %v11170_v52 }
0x3e49   :  { %v11173_v10 = vsub.f32 %v11153_v29, %v11169_v20 }
0x3e4a   :  { %v11178_v62 = vmul.f32 %v11174_v63, %v11174_v63 }
0x3e4b   :  { %v11177_v11 = vmul.f32 %v11173_v10, %v11173_v10 }
0x3e4c   :  { %v11188_v7 = vsel %vm184_vm0, %v11178_v62, 0.0 }
0x3e4d   :  { %11189 = vadd.xlane.f32.xlu0 %v11188_v7  ;;  %v11185_v9 = vsel %vm184_vm0, %v11177_v11, 0.0 }
0x3e4e   :  { %11186 = vadd.xlane.f32.xlu1 %v11185_v9 }
0x3ecb   :  { %v11184_v28 = vpop.xlane.xlu0 %11183 }
0x3ecc   :  { %v11192_v53 = vmul.f32 0.03125, %v11184_v28  ;;  %v11181_v55 = vpop.xlane.xlu1 %11180 }
0x3ecd   :  { %v11191_v58 = vmul.f32 0.03125, %v11181_v55 }
0x3ece   :  { %v11196_v18 = vadd.f32 1e-05, %v11192_v53 }
0x3ecf   :  { %v11195_v48 = vadd.f32 1e-05, %v11191_v58 }
0x3ed0   :  { %20881 = vrsqrt.f32 %v11196_v18 }
0x3ed1   :  { %20883 = vrsqrt.f32 %v11195_v48 }
0x3eda   :  { %v20882_v2 = vpop.eup %20881  ;;  %v11190_v32 = vpop.xlane.xlu0 %11189 }
0x3edb   :  { %v20884_v24 = vpop.eup %20883  ;;  %v11204_v13 = vmul.f32 %v20882_v2, %v11172_v8  ;;  %v11194_v26 = vmul.f32 0.03125, %v11190_v32  ;;  %v11187_v14 = vpop.xlane.xlu1 %11186 }
0x3edc   :  { %v11193_v39 = vmul.f32 0.03125, %v11187_v14  ;;  %v11203_v23 = vmul.f32 %v20884_v24, %v11171_v34 }
0x3edd   :  { %v11198_v40 = vadd.f32 1e-05, %v11194_v26  ;;  %v11214_v42 = vmul.f32 %v18007_v35, %v11204_v13 }
0x3ede   :  { %v11197_v19 = vadd.f32 1e-05, %v11193_v39  ;;  %v11213_v43 = vmul.f32 %v18007_v35, %v11203_v23 }
0x3edf   :  { %20885 = vrsqrt.f32 %v11198_v40  ;;  %v22763_v49 = vadd.f32 %v18008_v41, %v11214_v42 }
0x3ee0   :  { %20887 = vrsqrt.f32 %v11197_v19  ;;  %v22761_v45 = vadd.f32 %v18008_v41, %v11213_v43 }
0x3ee2   :  { %19575 = vmatprep.mubr.msk.f32.mxu1 %vm184_vm0, %v22761_v45 }
0x3ee3   :  { %19576 = vmatmul.mubr.msk.f32.vlgmr.msra.gmra.mrb[134].mxu1 %vm184_vm0, %v22763_v49 }
0x3ee9   :  { %v20886_v0 = vpop.eup %20885 }
0x3eea   :  { %v20888_v46 = vpop.eup %20887  ;;  %v11206_v54 = vmul.f32 %v20886_v0, %v11174_v63 }
0x3eeb   :  { %v11205_v16 = vmul.f32 %v20888_v46, %v11173_v10 }
0x3eec   :  { %v11216_v56 = vmul.f32 %v18007_v35, %v11206_v54 }
0x3eed   :  { %v11215_v44 = vmul.f32 %v18007_v35, %v11205_v16 }
0x3eee   :  { %v22771_v17 = vadd.f32 %v18008_v41, %v11216_v56 }
0x3eef   :  { %v22769_v47 = vadd.f32 %v18008_v41, %v11215_v44 }
0x3ef1   :  { %19578 = vmatprep.mubr.msk.f32.mxu1 %vm184_vm0, %v22769_v47 }
0x3ef2   :  { %19579 = vmatmul.mubr.msk.f32.gmra.mrb[136].mxu1 %vm184_vm0, %v22771_v17 }
0x3ef3   :  { %19583 = vmatprep.mubr.msk.f32.mxu1 %vm21077_vm6, %v21076_v57 }
0x3fb6   :  { %v19577_v30 = vpop.f32.mrb[134].mxu1 }
0x3fb7   :  { %v22780_v61 = vadd.f32 %v19577_v30, %v18054_v25  ;;  %v11376_v1 = vpop.f32.mrb[135].mxu1 }
0x3fb8   :  { %v22782_v29 = vadd.f32 %v18054_v25, %v11376_v1 }
0x3fb9   :  { %11473 = vrot.lane.b32.xlu0 %v22780_v61, %s21052_s15 }
0x3fba   :  { %11396 = vrot.lane.b32.xlu1 %v22782_v29, %s21052_s15 }
0x3fc5   :  { %v19580_v50 = vpop.f32.mrb[136].mxu1 }
0x3fc6   :  { %v11386_v5 = vpop.f32.mrb[137].mxu1  ;;  %v22792_v12 = vadd.f32 %v19580_v50, %v18054_v25 }
0x3fc7   :  { %v22788_v59 = vadd.f32 %v18054_v25, %v11386_v5 }
0x3fc9   :  { %11550 = vrot.lane.b32.xlu1 %v22788_v59, %s21052_s15 }
0x3fcd   :  { %11627 = vrot.lane.b32.xlu1 %v22792_v12, %s21052_s15 }
0x402b   :  { %v11474_v36 = vpop.permute.xlu0 %11473 }
0x402c   :  { %v11397_v22 = vpop.permute.xlu1 %11396 }
0x402d   :  { %19582 = vmatpush3.xpose.msk.msra.mxu1 %vm288_vm1, %v11397_v22 }
0x402e   :  { %19586 = vmatprep.subr.mxu1 %v21076_v57 }
0x4030   :  { %19584 = vmatmul.mubr.msk.f32.vlgmr.msra.gmra.mrb[138].mxu1 %vm288_vm1, %v22782_v29 }
0x4031   :  { %19587 = vmatpush3.xpose.msk.msra.mxu1 %vm288_vm1, %v11474_v36  ;;  %19588 = vmatprep.mubr.msk.f32.mxu1 %vm21077_vm6, %v21076_v57 }
0x4032   :  { %19596 = vmatprep.subr.mxu1 %v21076_v57 }
0x4034   :  { %19589 = vmatmul.mubr.msk.f32.vlgmr.msra.gmra.mrb[140].mxu1 %vm288_vm1, %v22780_v61 }
0x4035   :  { %19598 = vmatprep.mubr.msk.f32.mxu1 %vm21077_vm6, %v21076_v57 }
0x403b   :  { %v11551_v8 = vpop.permute.xlu1 %11550 }
0x403c   :  { %19592 = vmatpush3.xpose.msk.msra.mxu0 %vm288_vm1, %v11551_v8 }
0x403d   :  { %19601 = vmatprep.subr.mxu0 %v21076_v57 }
0x403f   :  { %19594 = vmatmul.mubr.msk.f32.vlgmr.msra.gmra.mrb[122].mxu0 %vm288_vm1, %v22788_v59  ;;  %v11628_v34 = vpop.permute.xlu1 %11627 }
0x4040   :  { %19597 = vmatpush3.xpose.msk.msra.mxu1 %vm288_vm1, %v11628_v34  ;;  %19603 = vmatprep.mubr.msk.f32.mxu0 %vm21077_vm6, %v21076_v57 }
0x4041   :  { %19606 = vmatprep.subr.mxu1 %v21076_v57 }
0x4043   :  { %19599 = vmatmul.mubr.msk.f32.vlgmr.msra.gmra.mrb[142].mxu1 %vm288_vm1, %v22792_v12 }
0x4044   :  { %19608 = vmatprep.mubr.msk.f32.mxu1 %vm21077_vm6, %v21076_v57 }
0x4103   :  { %v11468_v51 = vpop.f32.mrb[138].mxu1 }
0x4104   :  { %v11703_v60 = vmul.f32 0.35355338, %v11468_v51  ;;  %v19585_v3 = vpop.f32.mrb[139].mxu1 }
0x4106   :  { %v11707_v4 = vsel %vm288_vm1, %v11703_v60, -inf }
0x4107   :  { %11708 = vmax.xlane.f32.xlu0 %v11707_v4  ;;  %v11545_v31 = vpop.f32.mrb[140].mxu1 }
0x4108   :  { %v11704_v52 = vmul.f32 0.35355338, %v11545_v31  ;;  %v19590_v38 = vpop.f32.mrb[141].mxu1 }
0x410a   :  { %v11710_v20 = vsel %vm288_vm1, %v11704_v52, -inf }
0x410b   :  { %11711 = vmax.xlane.f32.xlu1 %v11710_v20 }
0x4112   :  { %v11622_v63 = vpop.f32.mrb[122].mxu0 }
0x4113   :  { %v11705_v10 = vmul.f32 0.35355338, %v11622_v63  ;;  %v19595_v62 = vpop.f32.mrb[123].mxu0 }
0x4115   :  { %v11713_v11 = vsel %vm288_vm1, %v11705_v10, -inf }
0x4116   :  { %11714 = vmax.xlane.f32.xlu0 %v11713_v11  ;;  %v11699_v7 = vpop.f32.mrb[142].mxu1 }
0x4117   :  { %v11706_v9 = vmul.f32 0.35355338, %v11699_v7  ;;  %v19600_v6 = vpop.f32.mrb[143].mxu1 }
0x4119   :  { %v11716_v27 = vsel %vm288_vm1, %v11706_v9, -inf }
0x411a   :  { %11717 = vmax.xlane.f32.xlu0 %v11716_v27 }
0x411c   :  { %11751 = vrot.lane.b32.xlu1 %v22782_v29, %s21053_s16 }
0x4120   :  { %11903 = vrot.lane.b32.xlu1 %v22788_v59, %s21053_s16 }
0x4124   :  { %11979 = vrot.lane.b32.xlu1 %v22792_v12, %s21053_s16 }
0x4128   :  { %12135 = vrot.lane.b32.xlu1 %v22780_v61, %s21054_s17 }
0x4130   :  { %11827 = vrot.lane.b32.xlu0 %v22780_v61, %s21053_s16  ;;  %s23621_s16 = smov 120  }
0x4134   :  { %12057 = vrot.lane.b32.xlu0 %v22782_v29, %s21054_s17 }
0x4194   :  { %v11709_v21 = vpop.xlane.xlu0 %11708 }
0x4195   :  { %v11719_v15 = vsub.f32 %v11703_v60, %v11709_v21 }
0x4197   :  { %v11723_v33 = vmul.f32 1.442695, %v11719_v15 }
0x4198   :  { %v11712_v37 = vpop.xlane.xlu1 %11711 }
0x4199   :  { %20889 = vpow2.f32 %v11723_v33  ;;  %v11720_v28 = vsub.f32 %v11704_v52, %v11712_v37 }
0x419b   :  { %v11725_v53 = vmul.f32 1.442695, %v11720_v28 }
0x419c   :  { %v11752_v55 = vpop.permute.xlu1 %11751 }
0x419d   :  { %20891 = vpow2.f32 %v11725_v53  ;;  %19602 = vmatpush3.msra.mxu0 %v11752_v55 }
0x419e   :  { %19611 = vmatprep.subr.mxu0 %v21076_v57 }
0x41a0   :  { %v11904_v19 = vpop.permute.xlu1 %11903 }
0x41a3   :  { %v20890_v58 = vpop.eup %20889  ;;  %v11715_v18 = vpop.xlane.xlu0 %11714 }
0x41a4   :  { %v11721_v48 = vsub.f32 %v11705_v10, %v11715_v18  ;;  %v11731_v2 = vsel %vm288_vm1, %v20890_v58, 0.0  ;;  %v11980_v43 = vpop.permute.xlu1 %11979 }
0x41a5   :  { %11732 = vadd.xlane.f32.xlu1 %v11731_v2 }
0x41a6   :  { %v11727_v32 = vmul.f32 1.442695, %v11721_v48 }
0x41a7   :  { %v20892_v35 = vpop.eup %20891  ;;  %v11718_v24 = vpop.xlane.xlu0 %11717 }
0x41a8   :  { %20893 = vpow2.f32 %v11727_v32  ;;  %v11722_v13 = vsub.f32 %v11706_v9, %v11718_v24  ;;  %v11734_v26 = vsel %vm288_vm1, %v20892_v35, 0.0  ;;  %v12136_v0 = vpop.permute.xlu1 %12135 }
0x41a9   :  { %11735 = vadd.xlane.f32.xlu0 %v11734_v26 }
0x41aa   :  { %v11729_v14 = vmul.f32 1.442695, %v11722_v13 }
0x41ab   :  { %v11828_v39 = vpop.permute.xlu0 %11827 }
0x41ac   :  { %20895 = vpow2.f32 %v11729_v14  ;;  %19607 = vmatpush3.msra.mxu1 %v11828_v39 }
0x41ad   :  { %19616 = vmatprep.subr.mxu1 %v21076_v57 }
0x41af   :  { %v12058_v46 = vpop.permute.xlu0 %12057 }
0x41b2   :  { %v20894_v23 = vpop.eup %20893 }
0x41b3   :  { %v11737_v40 = vsel %vm288_vm1, %v20894_v23, 0.0 }
0x41b4   :  { %11738 = vadd.xlane.f32.xlu1 %v11737_v40 }
0x41b6   :  { %v20896_v41 = vpop.eup %20895 }
0x41b7   :  { %v11740_v42 = vsel %vm288_vm1, %v20896_v41, 0.0 }
0x41b8   :  { %11741 = vadd.xlane.f32.xlu0 %v11740_v42 }
0x41c5   :  { %12133 = vrot.lane.b32.xlu1 %v22780_v61, %s23621_s16 }
0x41c9   :  { %12291 = vrot.lane.b32.xlu1 %v22792_v12, %s21054_s17 }
0x41cd   :  { %12289 = vrot.lane.b32.xlu1 %v22792_v12, %s23621_s16 }
0x41ce   :  { %12055 = vrot.lane.b32.xlu0 %v22782_v29, %s23621_s16 }
0x41d2   :  { %12213 = vrot.lane.b32.xlu0 %v22788_v59, %s21054_s17 }
0x41d6   :  { %12211 = vrot.lane.b32.xlu0 %v22788_v59, %s23621_s16 }
0x4232   :  { %v11733_v54 = vpop.xlane.xlu1 %11732 }
0x4233   :  { %20897 = vrcp.f32 %v11733_v54 }
0x4236   :  { %v11736_v16 = vpop.xlane.xlu0 %11735 }
0x4237   :  { %20899 = vrcp.f32 %v11736_v16 }
0x423d   :  { %v20898_v56 = vpop.eup %20897 }
0x423e   :  { %v11747_v44 = vmul.f32 %v20898_v56, %v20890_v58 }
0x4240   :  { %19604 = vmatmul.mubr.msk.f32.vlgmr.msra.gmra.mrb[124].mxu0 %vm288_vm1, %v11747_v44 }
0x4241   :  { %v20900_v25 = vpop.eup %20899  ;;  %19612 = vmatpush3.msra.mxu0 %v11904_v19  ;;  %v11739_v30 = vpop.xlane.xlu1 %11738  ;;  %19613 = vmatprep.mubr.msk.f32.mxu0 %vm21077_vm6, %v21076_v57 }
0x4242   :  { %20901 = vrcp.f32 %v11739_v30  ;;  %v11748_v1 = vmul.f32 %v20900_v25, %v20892_v35  ;;  %19621 = vmatprep.subr.mxu0 %v21076_v57 }
0x4244   :  { %19609 = vmatmul.mubr.msk.f32.vlgmr.msra.gmra.mrb[144].mxu1 %vm288_vm1, %v11748_v1 }
0x4245   :  { %19617 = vmatpush3.msra.mxu1 %v11980_v43  ;;  %v11742_v50 = vpop.xlane.xlu0 %11741  ;;  %19618 = vmatprep.mubr.msk.f32.mxu1 %vm21077_vm6, %v21076_v57  ;;  %v12134_v8 = vpop.permute.xlu1 %12133 }
0x4246   :  { %20903 = vrcp.f32 %v11742_v50  ;;  %19626 = vmatprep.subr.mxu1 %v21076_v57 }
0x4249   :  { %v12056_v5 = vpop.permute.xlu0 %12055  ;;  %v12292_v3 = vpop.permute.xlu1 %12291 }
0x424c   :  { %v20902_v22 = vpop.eup %20901 }
0x424d   :  { %v11749_v36 = vmul.f32 %v20902_v22, %v20894_v23  ;;  %v12214_v51 = vpop.permute.xlu0 %12213  ;;  %v12290_v31 = vpop.permute.xlu1 %12289 }
0x424f   :  { %19614 = vmatmul.mubr.msk.f32.vlgmr.msra.gmra.mrb[126].mxu0 %vm288_vm1, %v11749_v36 }
0x4250   :  { %v20904_v34 = vpop.eup %20903  ;;  %19622 = vmatpush3.xpose.msk.msra.mxu0 %vm288_vm1, %v12058_v46  ;;  %19623 = vmatprep.mubr.msk.f32.mxu0 %vm21077_vm6, %v21076_v57 }
0x4251   :  { %19631 = vmatprep.subr.mxu0 %v21076_v57  ;;  %v11750_v60 = vmul.f32 %v20904_v34, %v20896_v41  ;;  %v12212_v4 = vpop.permute.xlu0 %12211 }
0x4253   :  { %19619 = vmatmul.mubr.msk.f32.vlgmr.msra.gmra.mrb[146].mxu1 %vm288_vm1, %v11750_v60  ;;  %19624 = vmatmul.mubr.msk.f32.vlgmr.msra.gmra.mrb[128].mxu0 %vm288_vm1, %v12056_v5 }
0x4254   :  { %19627 = vmatpush3.xpose.msk.msra.mxu1 %vm288_vm1, %v12136_v0  ;;  %19632 = vmatpush3.xpose.msk.msra.mxu0 %vm288_vm1, %v12214_v51 }
0x4255   :  { %19628 = vmatprep.mubr.msk.f32.mxu1 %vm21077_vm6, %v21076_v57  ;;  %19633 = vmatprep.mubr.msk.f32.mxu0 %vm21077_vm6, %v21076_v57 }
0x4256   :  { %19636 = vmatprep.subr.mxu1 %v21076_v57  ;;  %19641 = vmatprep.subr.mxu0 %v21076_v57 }
0x4257   :  { %19629 = vmatmul.mubr.msk.f32.vlgmr.msra.gmra.mrb[148].mxu1 %vm288_vm1, %v12134_v8  ;;  %19634 = vmatmul.mubr.msk.f32.vlgmr.msra.gmra.mrb[130].mxu0 %vm288_vm1, %v12212_v4 }
0x4258   :  { %19637 = vmatpush3.xpose.msk.msra.mxu1 %vm288_vm1, %v12292_v3  ;;  %19638 = vmatprep.mubr.msk.f32.mxu1 %vm21077_vm6, %v21076_v57 }
0x4259   :  { %19646 = vmatprep.subr.mxu1 %v21076_v57  ;;  %19643 = vmatprep.mubr.msk.f32.mxu0 %vm21077_vm6, %v21076_v57 }
0x425b   :  { %19639 = vmatmul.mubr.msk.f32.vlgmr.msra.gmra.mrb[150].mxu1 %vm288_vm1, %v12290_v31 }
0x425c   :  { %19648 = vmatprep.mubr.msk.f32.mxu1 %vm21077_vm6, %v21076_v57 }
0x4313   :  { %v22888_v52 = vpop.f32.mrb[124].mxu0 }
0x4314   :  { %v19605_v38 = vpop.f32.mrb[125].mxu0 }
0x4317   :  { %v22890_v20 = vpop.f32.mrb[144].mxu1 }
0x4318   :  { %v19610_v63 = vpop.f32.mrb[145].mxu1 }
0x4322   :  { %v22892_v10 = vpop.f32.mrb[126].mxu0 }
0x4323   :  { %v19615_v62 = vpop.f32.mrb[127].mxu0 }
0x4326   :  { %v22894_v11 = vpop.f32.mrb[146].mxu1  ;;  %v12129_v7 = vpop.f32.mrb[128].mxu0 }
0x4327   :  { %v12367_v9 = vmul.f32 0.35355338, %v12129_v7  ;;  %v19620_v6 = vpop.f32.mrb[147].mxu1  ;;  %v19625_v27 = vpop.f32.mrb[129].mxu0 }
0x4329   :  { %v12371_v21 = vsel %vm288_vm1, %v12367_v9, -inf }
0x432a   :  { %v12207_v15 = vpop.f32.mrb[148].mxu1  ;;  %12372 = vmax.xlane.f32.xlu0 %v12371_v21  ;;  %v12285_v33 = vpop.f32.mrb[130].mxu0 }
0x432b   :  { %v12368_v37 = vmul.f32 0.35355338, %v12207_v15  ;;  %v12369_v28 = vmul.f32 0.35355338, %v12285_v33  ;;  %v19630_v53 = vpop.f32.mrb[149].mxu1  ;;  %v19635_v55 = vpop.f32.mrb[131].mxu0 }
0x432d   :  { %v12374_v58 = vsel %vm288_vm1, %v12368_v37, -inf  ;;  %v12377_v18 = vsel %vm288_vm1, %v12369_v28, -inf }
0x432e   :  { %12375 = vmax.xlane.f32.xlu1 %v12374_v58  ;;  %v12363_v48 = vpop.f32.mrb[150].mxu1  ;;  %12378 = vmax.xlane.f32.xlu0 %v12377_v18 }
0x432f   :  { %v12370_v2 = vmul.f32 0.35355338, %v12363_v48  ;;  %v19640_v32 = vpop.f32.mrb[151].mxu1 }
0x4331   :  { %v12380_v35 = vsel %vm288_vm1, %v12370_v2, -inf }
0x4332   :  { %12381 = vmax.xlane.f32.xlu0 %v12380_v35 }
0x433f   :  { %12415 = vrot.lane.b32.xlu1 %v22782_v29, %s23622_s19 }
0x4343   :  { %12567 = vrot.lane.b32.xlu1 %v22788_v59, %s23622_s19 }
0x4347   :  { %12643 = vrot.lane.b32.xlu1 %v22792_v12, %s23622_s19 }
0x4348   :  { %12491 = vrot.lane.b32.xlu0 %v22780_v61, %s23622_s19  ;;  %s23629_s19 = smov 8  }
0x434b   :  { %12799 = vrot.lane.b32.xlu1 %v22780_v61, %s23623_s20 }
0x434c   :  { %12721 = vrot.lane.b32.xlu0 %v22782_v29, %s23623_s20 }
0x43b7   :  { %v12373_v24 = vpop.xlane.xlu0 %12372 }
0x43b8   :  { %v12383_v13 = vsub.f32 %v12367_v9, %v12373_v24 }
0x43ba   :  { %v12387_v26 = vmul.f32 1.442695, %v12383_v13 }
0x43bb   :  { %v12376_v14 = vpop.xlane.xlu1 %12375  ;;  %v12379_v39 = vpop.xlane.xlu0 %12378 }
0x43bc   :  { %20905 = vpow2.f32 %v12387_v26  ;;  %v12384_v23 = vsub.f32 %v12368_v37, %v12376_v14  ;;  %v12385_v40 = vsub.f32 %v12369_v28, %v12379_v39 }
0x43be   :  { %v12389_v41 = vmul.f32 1.442695, %v12384_v23  ;;  %v12391_v42 = vmul.f32 1.442695, %v12385_v40 }
0x43bf   :  { %v12416_v19 = vpop.permute.xlu1 %12415  ;;  %v12382_v43 = vpop.xlane.xlu0 %12381 }
0x43c0   :  { %20907 = vpow2.f32 %v12389_v41  ;;  %v12386_v0 = vsub.f32 %v12370_v2, %v12382_v43  ;;  %19642 = vmatpush3.msra.mxu0 %v12416_v19 }
0x43c1   :  { %20909 = vpow2.f32 %v12391_v42  ;;  %19651 = vmatprep.subr.mxu0 %v21076_v57 }
0x43c2   :  { %v12393_v46 = vmul.f32 1.442695, %v12386_v0 }
0x43c3   :  { %v12492_v54 = vpop.permute.xlu0 %12491  ;;  %v12568_v22 = vpop.permute.xlu1 %12567 }
0x43c4   :  { %20911 = vpow2.f32 %v12393_v46  ;;  %19647 = vmatpush3.msra.mxu1 %v12492_v54 }
0x43c5   :  { %19656 = vmatprep.subr.mxu1 %v21076_v57 }
0x43c6   :  { %v20906_v16 = vpop.eup %20905 }
0x43c7   :  { %v12395_v56 = vsel %vm288_vm1, %v20906_v16, 0.0  ;;  %v12644_v36 = vpop.permute.xlu1 %12643  ;;  %v12722_v34 = vpop.permute.xlu0 %12721 }
0x43c8   :  { %12396 = vadd.xlane.f32.xlu1 %v12395_v56 }
0x43ca   :  { %v20908_v44 = vpop.eup %20907 }
0x43cb   :  { %v20910_v25 = vpop.eup %20909  ;;  %v12398_v30 = vsel %vm288_vm1, %v20908_v44, 0.0  ;;  %v12800_v8 = vpop.permute.xlu1 %12799 }
0x43cc   :  { %12399 = vadd.xlane.f32.xlu0 %v12398_v30  ;;  %v12401_v1 = vsel %vm288_vm1, %v20910_v25, 0.0 }
0x43cd   :  { %12402 = vadd.xlane.f32.xlu1 %v12401_v1 }
0x43ce   :  { %v20912_v50 = vpop.eup %20911 }
0x43cf   :  { %v12404_v5 = vsel %vm288_vm1, %v20912_v50, 0.0 }
0x43d0   :  { %12405 = vadd.xlane.f32.xlu0 %v12404_v5 }
0x43de   :  { %12797 = vrot.lane.b32.xlu1 %v22780_v61, %s23624_s12 }
0x43e2   :  { %12955 = vrot.lane.b32.xlu1 %v22792_v12, %s23623_s20 }
0x43e6   :  { %12953 = vrot.lane.b32.xlu1 %v22792_v12, %s23624_s12  ;;  %12719 = vrot.lane.b32.xlu0 %v22782_v29, %s23624_s12 }
0x43ea   :  { %13079 = vrot.lane.b32.xlu1 %v22782_v29, %s23625_s24  ;;  %12877 = vrot.lane.b32.xlu0 %v22788_v59, %s23623_s20 }
0x43ee   :  { %12875 = vrot.lane.b32.xlu0 %v22788_v59, %s23624_s12 }
0x4455   :  { %v12397_v51 = vpop.xlane.xlu1 %12396 }
0x4456   :  { %20913 = vrcp.f32 %v12397_v51 }
0x4459   :  { %v12400_v60 = vpop.xlane.xlu0 %12399 }
0x445a   :  { %v12403_v3 = vpop.xlane.xlu1 %12402  ;;  %20915 = vrcp.f32 %v12400_v60 }
0x445b   :  { %20917 = vrcp.f32 %v12403_v3 }
0x445d   :  { %v12406_v4 = vpop.xlane.xlu0 %12405 }
0x445e   :  { %20919 = vrcp.f32 %v12406_v4  ;;  %v12798_v38 = vpop.permute.xlu1 %12797 }
0x4460   :  { %v20914_v31 = vpop.eup %20913 }
0x4461   :  { %v12411_v63 = vmul.f32 %v20914_v31, %v20906_v16  ;;  %v12720_v9 = vpop.permute.xlu0 %12719 }
0x4462   :  { %v12956_v27 = vpop.permute.xlu1 %12955 }
0x4463   :  { %19644 = vmatmul.mubr.msk.f32.vlgmr.msra.gmra.mrb[132].mxu0 %vm288_vm1, %v12411_v63 }
0x4464   :  { %v20916_v62 = vpop.eup %20915  ;;  %19652 = vmatpush3.msra.mxu0 %v12568_v22  ;;  %19653 = vmatprep.mubr.msk.f32.mxu0 %vm21077_vm6, %v21076_v57 }
0x4465   :  { %v20918_v7 = vpop.eup %20917  ;;  %v12412_v6 = vmul.f32 %v20916_v62, %v20908_v44  ;;  %19661 = vmatprep.subr.mxu0 %v21076_v57  ;;  %v12878_v37 = vpop.permute.xlu0 %12877 }
0x4466   :  { %v12413_v21 = vmul.f32 %v20918_v7, %v20910_v25  ;;  %v12954_v28 = vpop.permute.xlu1 %12953 }
0x4467   :  { %19649 = vmatmul.mubr.msk.f32.vlgmr.msra.gmra.mrb[152].mxu1 %vm288_vm1, %v12412_v6 }
0x4468   :  { %v20920_v15 = vpop.eup %20919  ;;  %19654 = vmatmul.mubr.msk.f32.vlgmr.msra.gmra.mrb[134].mxu0 %vm288_vm1, %v12413_v21  ;;  %19657 = vmatpush3.msra.mxu1 %v12644_v36 }
0x4469   :  { %19658 = vmatprep.mubr.msk.f32.mxu1 %vm21077_vm6, %v21076_v57  ;;  %v12414_v33 = vmul.f32 %v20920_v15, %v20912_v50  ;;  %19663 = vmatprep.mubr.msk.f32.mxu0 %vm21077_vm6, %v21076_v57  ;;  %v12876_v53 = vpop.permute.xlu0 %12875 }
0x446a   :  { %19666 = vmatprep.subr.mxu1 %v21076_v57  ;;  %v13080_v55 = vpop.permute.xlu1 %13079 }
0x446b   :  { %19662 = vmatpush3.xpose.msk.msra.mxu0 %vm288_vm1, %v12722_v34  ;;  %19659 = vmatmul.mubr.msk.f32.vlgmr.msra.gmra.mrb[154].mxu1 %vm288_vm1, %v12414_v33 }
0x446c   :  { %19671 = vmatprep.subr.mxu0 %v21076_v57  ;;  %19668 = vmatprep.mubr.msk.f32.mxu1 %vm21077_vm6, %v21076_v57 }
0x446e   :  { %19664 = vmatmul.mubr.msk.f32.vlgmr.msra.gmra.mrb[136].mxu0 %vm288_vm1, %v12720_v9 }
0x446f   :  { %19667 = vmatpush3.xpose.msk.msra.mxu1 %vm288_vm1, %v12800_v8  ;;  %19672 = vmatpush3.xpose.msk.msra.mxu0 %vm288_vm1, %v12878_v37 }
0x4470   :  { %19673 = vmatprep.mubr.msk.f32.mxu0 %vm21077_vm6, %v21076_v57  ;;  %19676 = vmatprep.subr.mxu1 %v21076_v57 }
0x4471   :  { %19681 = vmatprep.subr.mxu0 %v21076_v57 }
0x4472   :  { %19669 = vmatmul.mubr.msk.f32.vlgmr.msra.gmra.mrb[156].mxu1 %vm288_vm1, %v12798_v38  ;;  %19674 = vmatmul.mubr.msk.f32.vlgmr.msra.gmra.mrb[138].mxu0 %vm288_vm1, %v12876_v53 }
0x4473   :  { %19677 = vmatpush3.xpose.msk.msra.mxu1 %vm288_vm1, %v12956_v27  ;;  %19682 = vmatpush3.msra.mxu0 %v13080_v55 }
0x4474   :  { %19678 = vmatprep.mubr.msk.f32.mxu1 %vm21077_vm6, %v21076_v57  ;;  %19686 = vmatprep.subr.mxu1 %v21076_v57 }
0x4475   :  { %19683 = vmatprep.mubr.msk.f32.mxu0 %vm21077_vm6, %v21076_v57  ;;  %19691 = vmatprep.subr.mxu0 %v21076_v57 }
0x4476   :  { %19679 = vmatmul.mubr.msk.f32.vlgmr.msra.gmra.mrb[158].mxu1 %vm288_vm1, %v12954_v28 }
0x4477   :  { %19688 = vmatprep.mubr.msk.f32.mxu1 %vm21077_vm6, %v21076_v57 }
0x4536   :  { %v22967_v58 = vpop.f32.mrb[132].mxu0 }
0x4537   :  { %v19645_v18 = vpop.f32.mrb[133].mxu0 }
0x453a   :  { %v22969_v48 = vpop.f32.mrb[152].mxu1 }
0x453b   :  { %v22971_v2 = vpop.f32.mrb[134].mxu0  ;;  %v19650_v32 = vpop.f32.mrb[153].mxu1 }
0x453c   :  { %v19655_v35 = vpop.f32.mrb[135].mxu0 }
0x453e   :  { %v22973_v24 = vpop.f32.mrb[154].mxu1 }
0x453f   :  { %v19660_v13 = vpop.f32.mrb[155].mxu1 }
0x4541   :  { %v12793_v26 = vpop.f32.mrb[136].mxu0 }
0x4542   :  { %v13031_v14 = vmul.f32 0.35355338, %v12793_v26  ;;  %v19665_v39 = vpop.f32.mrb[137].mxu0 }
0x4544   :  { %v13035_v23 = vsel %vm288_vm1, %v13031_v14, -inf }
0x4545   :  { %v12871_v40 = vpop.f32.mrb[156].mxu1  ;;  %13036 = vmax.xlane.f32.xlu0 %v13035_v23  ;;  %v12949_v41 = vpop.f32.mrb[138].mxu0 }
0x4546   :  { %v13032_v42 = vmul.f32 0.35355338, %v12871_v40  ;;  %v13033_v19 = vmul.f32 0.35355338, %v12949_v41  ;;  %v19670_v43 = vpop.f32.mrb[157].mxu1  ;;  %v19675_v0 = vpop.f32.mrb[139].mxu0 }
0x4548   :  { %v13038_v46 = vsel %vm288_vm1, %v13032_v42, -inf  ;;  %v13041_v54 = vsel %vm288_vm1, %v13033_v19, -inf }
0x4549   :  { %13039 = vmax.xlane.f32.xlu1 %v13038_v46  ;;  %v13027_v16 = vpop.f32.mrb[158].mxu1  ;;  %13042 = vmax.xlane.f32.xlu0 %v13041_v54 }
0x454a   :  { %v13034_v56 = vmul.f32 0.35355338, %v13027_v16  ;;  %v19680_v44 = vpop.f32.mrb[159].mxu1 }
0x454c   :  { %v13044_v25 = vsel %vm288_vm1, %v13034_v56, -inf }
0x454d   :  { %13045 = vmax.xlane.f32.xlu0 %v13044_v25 }
0x455a   :  { %13231 = vrot.lane.b32.xlu1 %v22788_v59, %s23625_s24 }
0x455e   :  { %13307 = vrot.lane.b32.xlu1 %v22792_v12, %s23625_s24 }
0x4563   :  { %13155 = vrot.lane.b32.xlu0 %v22780_v61, %s23625_s24  ;;  %s23630_s24 = smov 16  }
0x45d2   :  { %v13037_v30 = vpop.xlane.xlu0 %13036 }
0x45d3   :  { %v13047_v1 = vsub.f32 %v13031_v14, %v13037_v30 }
0x45d5   :  { %v13051_v50 = vmul.f32 1.442695, %v13047_v1 }
0x45d6   :  { %v13040_v5 = vpop.xlane.xlu1 %13039  ;;  %v13043_v22 = vpop.xlane.xlu0 %13042 }
0x45d7   :  { %20921 = vpow2.f32 %v13051_v50  ;;  %v13048_v36 = vsub.f32 %v13032_v42, %v13040_v5  ;;  %v13049_v38 = vsub.f32 %v13033_v19, %v13043_v22 }
0x45d9   :  { %v13053_v8 = vmul.f32 1.442695, %v13048_v36  ;;  %v13055_v63 = vmul.f32 1.442695, %v13049_v38 }
0x45da   :  { %v13046_v34 = vpop.xlane.xlu0 %13045  ;;  %v13232_v15 = vpop.permute.xlu1 %13231 }
0x45db   :  { %20923 = vpow2.f32 %v13053_v8  ;;  %v13050_v62 = vsub.f32 %v13034_v56, %v13046_v34 }
0x45dc   :  { %20925 = vpow2.f32 %v13055_v63 }
0x45dd   :  { %v13057_v7 = vmul.f32 1.442695, %v13050_v62 }
0x45de   :  { %v13156_v51 = vpop.permute.xlu0 %13155  ;;  %v13308_v33 = vpop.permute.xlu1 %13307 }
0x45df   :  { %19687 = vmatpush3.msra.mxu1 %v13156_v51  ;;  %20927 = vpow2.f32 %v13057_v7 }
0x45e0   :  { %19696 = vmatprep.subr.mxu1 %v21076_v57 }
0x45e1   :  { %v20922_v60 = vpop.eup %20921 }
0x45e2   :  { %v13059_v3 = vsel %vm288_vm1, %v20922_v60, 0.0 }
0x45e3   :  { %13060 = vadd.xlane.f32.xlu1 %v13059_v3 }
0x45e5   :  { %v20924_v4 = vpop.eup %20923 }
0x45e6   :  { %v13062_v31 = vsel %vm288_vm1, %v20924_v4, 0.0  ;;  %v20926_v9 = vpop.eup %20925 }
0x45e7   :  { %13063 = vadd.xlane.f32.xlu0 %v13062_v31  ;;  %v13065_v6 = vsel %vm288_vm1, %v20926_v9, 0.0 }
0x45e9   :  { %v20928_v27 = vpop.eup %20927 }
0x45ea   :  { %v13068_v21 = vsel %vm288_vm1, %v20928_v27, 0.0 }
0x45f4   :  { %13463 = vrot.lane.b32.xlu1 %v22780_v61, %s23626_s26 }
0x45fd   :  { %13385 = vrot.lane.b32.xlu0 %v22782_v29, %s23626_s26 }
0x4618   :  { %13066 = vadd.xlane.f32.xlu1 %v13065_v6 }
0x461c   :  { %13069 = vadd.xlane.f32.xlu0 %v13068_v21 }
0x4629   :  { %13461 = vrot.lane.b32.xlu1 %v22780_v61, %s23627_s11 }
0x462d   :  { %13619 = vrot.lane.b32.xlu1 %v22792_v12, %s23626_s26 }
0x4631   :  { %13617 = vrot.lane.b32.xlu1 %v22792_v12, %s23627_s11 }
0x4632   :  { %13383 = vrot.lane.b32.xlu0 %v22782_v29, %s23627_s11 }
0x4636   :  { %13541 = vrot.lane.b32.xlu0 %v22788_v59, %s23626_s26 }
0x463a   :  { %13539 = vrot.lane.b32.xlu0 %v22788_v59, %s23627_s11 }
0x4670   :  { %v13061_v37 = vpop.xlane.xlu1 %13060 }
0x4671   :  { %20929 = vrcp.f32 %v13061_v37 }
0x4674   :  { %v13064_v28 = vpop.xlane.xlu0 %13063  ;;  %v13464_v35 = vpop.permute.xlu1 %13463 }
0x4675   :  { %20931 = vrcp.f32 %v13064_v28 }
0x4678   :  { %v13386_v13 = vpop.permute.xlu0 %13385 }
0x467b   :  { %v20930_v53 = vpop.eup %20929 }
0x467c   :  { %v13075_v55 = vmul.f32 %v20930_v53, %v20922_v60 }
0x467e   :  { %19684 = vmatmul.mubr.msk.f32.vlgmr.msra.gmra.mrb[140].mxu0 %vm288_vm1, %v13075_v55 }
0x467f   :  { %v20932_v18 = vpop.eup %20931  ;;  %19692 = vmatpush3.msra.mxu0 %v13232_v15  ;;  %19693 = vmatprep.mubr.msk.f32.mxu0 %vm21077_vm6, %v21076_v57 }
0x4680   :  { %v13076_v32 = vmul.f32 %v20932_v18, %v20924_v4  ;;  %19701 = vmatprep.subr.mxu0 %v21076_v57 }
0x4682   :  { %19689 = vmatmul.mubr.msk.f32.vlgmr.msra.gmra.mrb[160].mxu1 %vm288_vm1, %v13076_v32 }
0x4683   :  { %19697 = vmatpush3.msra.mxu1 %v13308_v33  ;;  %19698 = vmatprep.mubr.msk.f32.mxu1 %vm21077_vm6, %v21076_v57 }
0x4684   :  { %19706 = vmatprep.subr.mxu1 %v21076_v57 }
0x46a5   :  { %v13067_v26 = vpop.xlane.xlu1 %13066 }
0x46a6   :  { %20933 = vrcp.f32 %v13067_v26 }
0x46a9   :  { %v13070_v14 = vpop.xlane.xlu0 %13069  ;;  %v13462_v41 = vpop.permute.xlu1 %13461 }
0x46aa   :  { %20935 = vrcp.f32 %v13070_v14 }
0x46ad   :  { %v13384_v39 = vpop.permute.xlu0 %13383  ;;  %v13620_v0 = vpop.permute.xlu1 %13619 }
0x46b0   :  { %v20934_v23 = vpop.eup %20933 }
0x46b1   :  { %v13077_v40 = vmul.f32 %v20934_v23, %v20926_v9  ;;  %v13542_v19 = vpop.permute.xlu0 %13541  ;;  %v13618_v54 = vpop.permute.xlu1 %13617 }
0x46b3   :  { %19694 = vmatmul.mubr.msk.f32.vlgmr.msra.gmra.mrb[142].mxu0 %vm288_vm1, %v13077_v40 }
0x46b4   :  { %v20936_v42 = vpop.eup %20935  ;;  %19702 = vmatpush3.xpose.msk.msra.mxu0 %vm288_vm1, %v13386_v13  ;;  %19703 = vmatprep.mubr.msk.f32.mxu0 %vm21077_vm6, %v21076_v57 }
0x46b5   :  { %19711 = vmatprep.subr.mxu0 %v21076_v57  ;;  %v13078_v43 = vmul.f32 %v20936_v42, %v20928_v27  ;;  %v13540_v46 = vpop.permute.xlu0 %13539 }
0x46b7   :  { %19699 = vmatmul.mubr.msk.f32.vlgmr.msra.gmra.mrb[162].mxu1 %vm288_vm1, %v13078_v43  ;;  %19704 = vmatmul.mubr.msk.f32.vlgmr.msra.gmra.mrb[144].mxu0 %vm288_vm1, %v13384_v39 }
0x46b8   :  { %19707 = vmatpush3.xpose.msk.msra.mxu1 %vm288_vm1, %v13464_v35  ;;  %19712 = vmatpush3.xpose.msk.msra.mxu0 %vm288_vm1, %v13542_v19 }
0x46b9   :  { %19708 = vmatprep.mubr.msk.f32.mxu1 %vm21077_vm6, %v21076_v57  ;;  %19713 = vmatprep.mubr.msk.f32.mxu0 %vm21077_vm6, %v21076_v57 }
0x46ba   :  { %19716 = vmatprep.subr.mxu1 %v21076_v57  ;;  %19721 = vmatprep.subr.mxu0 %v21076_v57 }
0x46bb   :  { %19709 = vmatmul.mubr.msk.f32.vlgmr.msra.gmra.mrb[164].mxu1 %vm288_vm1, %v13462_v41  ;;  %19714 = vmatmul.mubr.msk.f32.vlgmr.msra.gmra.mrb[146].mxu0 %vm288_vm1, %v13540_v46 }
0x46bc   :  { %19717 = vmatpush3.xpose.msk.msra.mxu1 %vm288_vm1, %v13620_v0  ;;  %19718 = vmatprep.mubr.msk.f32.mxu1 %vm21077_vm6, %v21076_v57 }
0x46bd   :  { %19726 = vmatprep.subr.mxu1 %v21076_v57  ;;  %19723 = vmatprep.mubr.msk.f32.mxu0 %vm21077_vm6, %v21076_v57 }
0x46bf   :  { %19719 = vmatmul.mubr.msk.f32.vlgmr.msra.gmra.mrb[166].mxu1 %vm288_vm1, %v13618_v54 }
0x46c0   :  { %19728 = vmatprep.mubr.msk.f32.mxu1 %vm21077_vm6, %v21076_v57 }
0x4751   :  { %v23040_v16 = vpop.f32.mrb[140].mxu0 }
0x4752   :  { %v19685_v56 = vpop.f32.mrb[141].mxu0 }
0x4755   :  { %v13227_v44 = vpop.f32.mrb[160].mxu1 }
0x4756   :  { %v19690_v25 = vpop.f32.mrb[161].mxu1 }
0x4786   :  { %v23042_v30 = vpop.f32.mrb[142].mxu0 }
0x4787   :  { %v19695_v1 = vpop.f32.mrb[143].mxu0 }
0x478a   :  { %v23044_v50 = vpop.f32.mrb[162].mxu1  ;;  %v13457_v5 = vpop.f32.mrb[144].mxu0 }
0x478b   :  { %v13695_v22 = vmul.f32 0.35355338, %v13457_v5  ;;  %v19700_v36 = vpop.f32.mrb[163].mxu1  ;;  %v19705_v8 = vpop.f32.mrb[145].mxu0 }
0x478c   :  { %v18014_v36 = vld [vmem:[%s22153_s4 + $0x20] sm:$0xff]  ;;  %v18015_v8 = vld [vmem:[%s22153_s4 + $0x28] sm:$0xff] }
0x478d   :  { %v13699_v34 = vsel %vm288_vm1, %v13695_v22, -inf }
0x478e   :  { %v13535_v51 = vpop.f32.mrb[164].mxu1  ;;  %13700 = vmax.xlane.f32.xlu0 %v13699_v34  ;;  %v13613_v60 = vpop.f32.mrb[146].mxu0  ;;  %v20313_v34 = vpack.c.bf16 %v18015_v8, %v18014_v36 }
0x478f   :  { %v13696_v3 = vmul.f32 0.35355338, %v13535_v51  ;;  %v13697_v4 = vmul.f32 0.35355338, %v13613_v60  ;;  %v19710_v31 = vpop.f32.mrb[165].mxu1  ;;  %v19715_v38 = vpop.f32.mrb[147].mxu0 }
0x4790   :  { %v18016_v51 = vld [vmem:[%s22153_s4 + $0x30] sm:$0xff]  ;;  %v18017_v60 = vld [vmem:[%s22153_s4 + $0x38] sm:$0xff] }
0x4791   :  { %v13702_v63 = vsel %vm288_vm1, %v13696_v3, -inf  ;;  %v13705_v62 = vsel %vm288_vm1, %v13697_v4, -inf }
0x4792   :  { %13703 = vmax.xlane.f32.xlu1 %v13702_v63  ;;  %v13691_v7 = vpop.f32.mrb[166].mxu1  ;;  %13706 = vmax.xlane.f32.xlu0 %v13705_v62 }
0x4793   :  { %v13698_v9 = vmul.f32 0.35355338, %v13691_v7  ;;  %v19720_v6 = vpop.f32.mrb[167].mxu1 }
0x4795   :  { %v13708_v27 = vsel %vm288_vm1, %v13698_v9, -inf }
0x4796   :  { %13709 = vmax.xlane.f32.xlu0 %v13708_v27 }
0x47a3   :  { %13743 = vrot.lane.b32.xlu1 %v22782_v29, %s23628_s30 }
0x481b   :  { %v13701_v21 = vpop.xlane.xlu0 %13700 }
0x481c   :  { %v13711_v15 = vsub.f32 %v13695_v22, %v13701_v21 }
0x481e   :  { %v13715_v33 = vmul.f32 1.442695, %v13711_v15 }
0x481f   :  { %v13704_v37 = vpop.xlane.xlu1 %13703  ;;  %v13707_v28 = vpop.xlane.xlu0 %13706 }
0x4820   :  { %20937 = vpow2.f32 %v13715_v33  ;;  %v13712_v53 = vsub.f32 %v13696_v3, %v13704_v37  ;;  %v13713_v55 = vsub.f32 %v13697_v4, %v13707_v28  ;;  %v20317_v3 = vpack.c.bf16 %v18017_v60, %v18016_v51 }
0x4822   :  { %v13717_v18 = vmul.f32 1.442695, %v13712_v53  ;;  %v13719_v32 = vmul.f32 1.442695, %v13713_v55 }
0x4823   :  { %v13744_v35 = vpop.permute.xlu1 %13743  ;;  %v13710_v13 = vpop.xlane.xlu0 %13709 }
0x4824   :  { %20939 = vpow2.f32 %v13717_v18  ;;  %v13714_v26 = vsub.f32 %v13698_v9, %v13710_v13  ;;  %19722 = vmatpush3.msra.mxu0 %v13744_v35 }
0x4825   :  { %20941 = vpow2.f32 %v13719_v32  ;;  %19731 = vmatprep.subr.mxu0 %v21076_v57 }
0x4826   :  { %v13721_v14 = vmul.f32 1.442695, %v13714_v26 }
0x4828   :  { %20943 = vpow2.f32 %v13721_v14 }
0x482a   :  { %v20938_v29 = vpop.eup %20937 }
0x482b   :  { %v13723_v39 = vsel %vm288_vm1, %v20938_v29, 0.0 }
0x482c   :  { %13724 = vadd.xlane.f32.xlu1 %v13723_v39 }
0x482e   :  { %v20940_v23 = vpop.eup %20939 }
0x482f   :  { %v20942_v40 = vpop.eup %20941  ;;  %v13726_v41 = vsel %vm288_vm1, %v20940_v23, 0.0 }
0x4830   :  { %13727 = vadd.xlane.f32.xlu0 %v13726_v41  ;;  %v13729_v42 = vsel %vm288_vm1, %v20942_v40, 0.0  ;;  %v21045_v41 = vld [vmem:[%s22232_s1] sm:$0xff] }
0x4831   :  { %13730 = vadd.xlane.f32.xlu1 %v13729_v42 }
0x4832   :  { %v20944_v19 = vpop.eup %20943 }
0x4833   :  { %v13732_v43 = vsel %vm288_vm1, %v20944_v19, 0.0 }
0x4834   :  { %13733 = vadd.xlane.f32.xlu0 %v13732_v43 }
0x4842   :  { %13895 = vrot.lane.b32.xlu1 %v22788_v59, %s23628_s30 }
0x4846   :  { %13971 = vrot.lane.b32.xlu1 %v22792_v12, %s23628_s30 }
0x484a   :  { %14053 = vrot.lane.b32.xlu1 %v22969_v48, %s23629_s19  ;;  %13819 = vrot.lane.b32.xlu0 %v22780_v61, %s23628_s30 }
0x484e   :  { %14069 = vrot.lane.b32.xlu1 %v13227_v44, %s23630_s24  ;;  %14051 = vrot.lane.b32.xlu0 %v22967_v58, %s23629_s19 }
0x4852   :  { %14067 = vrot.lane.b32.xlu0 %v23040_v16, %s23630_s24 }
0x48b9   :  { %v13725_v0 = vpop.xlane.xlu1 %13724 }
0x48ba   :  { %20945 = vrcp.f32 %v13725_v0 }
0x48bd   :  { %v13728_v59 = vpop.xlane.xlu0 %13727 }
0x48be   :  { %v13731_v46 = vpop.xlane.xlu1 %13730  ;;  %20947 = vrcp.f32 %v13728_v59 }
0x48bf   :  { %20949 = vrcp.f32 %v13731_v46 }
0x48c1   :  { %v13734_v12 = vpop.xlane.xlu0 %13733 }
0x48c2   :  { %20951 = vrcp.f32 %v13734_v12  ;;  %v13896_v54 = vpop.permute.xlu1 %13895 }
0x48c4   :  { %v20946_v48 = vpop.eup %20945 }
0x48c5   :  { %v13820_v56 = vpop.permute.xlu0 %13819  ;;  %v13739_v61 = vmul.f32 %v20946_v48, %v20938_v29 }
0x48c6   :  { %19727 = vmatpush3.msra.mxu1 %v13820_v56  ;;  %v13972_v1 = vpop.permute.xlu1 %13971 }
0x48c7   :  { %19724 = vmatmul.mubr.msk.f32.vlgmr.msra.gmra.mrb[148].mxu0 %vm288_vm1, %v13739_v61  ;;  %19736 = vmatprep.subr.mxu1 %v21076_v57 }
0x48c8   :  { %v20948_v58 = vpop.eup %20947  ;;  %19732 = vmatpush3.msra.mxu0 %v13896_v54  ;;  %19733 = vmatprep.mubr.msk.f32.mxu0 %vm21077_vm6, %v21076_v57 }
0x48c9   :  { %v20950_v16 = vpop.eup %20949  ;;  %v13740_v44 = vmul.f32 %v20948_v58, %v20940_v23  ;;  %20314 = vmatprep.subr.bf16.mxu0 %v20313_v34 }
0x48ca   :  { %v13741_v25 = vmul.f32 %v20950_v16, %v20942_v40  ;;  %v14054_v27 = vpop.permute.xlu1 %14053 }
0x48cb   :  { %19729 = vmatmul.mubr.msk.f32.vlgmr.msra.gmra.mrb[168].mxu1 %vm288_vm1, %v13740_v44  ;;  %v14096_v28 = vsel %vm288_vm1, %v22890_v20, %v14054_v27 }
0x48cc   :  { %v20952_v5 = vpop.eup %20951  ;;  %19734 = vmatmul.mubr.msk.f32.vlgmr.msra.gmra.mrb[150].mxu0 %vm288_vm1, %v13741_v25  ;;  %19737 = vmatpush3.msra.mxu1 %v13972_v1 }
0x48cd   :  { %19738 = vmatprep.mubr.msk.f32.mxu1 %vm21077_vm6, %v21076_v57  ;;  %v13742_v22 = vmul.f32 %v20952_v5, %v20944_v19  ;;  %20316 = vmatpush3.bf16.msra.mxu0 %v20313_v34 }
0x48ce   :  { %20318 = vmatprep.subr.bf16.mxu0 %v20317_v3  ;;  %v14070_v33 = vpop.permute.xlu1 %14069 }
0x48cf   :  { %19739 = vmatmul.mubr.msk.f32.vlgmr.msra.gmra.mrb[170].mxu1 %vm288_vm1, %v13742_v22 }
0x48d1   :  { %20320 = vmatpush3.bf16.msra.mxu0 %v20317_v3 }
0x499a   :  { %v13815_v4 = vpop.f32.mrb[148].mxu0 }
0x499b   :  { %v19725_v31 = vpop.f32.mrb[149].mxu0  ;;  %14083 = vrot.lane.b32.xlu0 %v13815_v4, %s23620_s14 }
0x499e   :  { %v13891_v38 = vpop.f32.mrb[168].mxu1 }
0x499f   :  { %v13967_v63 = vpop.f32.mrb[150].mxu0  ;;  %14055 = vrot.lane.b32.xlu0 %v22971_v2, %s23629_s19  ;;  %14085 = vrot.lane.b32.xlu1 %v13891_v38, %s23620_s14  ;;  %v19730_v62 = vpop.f32.mrb[169].mxu1 }
0x49a0   :  { %v19735_v7 = vpop.f32.mrb[151].mxu0  ;;  %v14052_v2 = vpop.permute.xlu0 %14051 }
0x49a1   :  { %v14095_v15 = vsel %vm288_vm1, %v22888_v52, %v14052_v2  ;;  %v18027_v2 = vld [vmem:[%s22218_s10 + $0x28] sm:$0xff] }
0x49a2   :  { %v14043_v9 = vpop.f32.mrb[170].mxu1 }
0x49a3   :  { %14071 = vrot.lane.b32.xlu0 %v23042_v30, %s23630_s24  ;;  %14057 = vrot.lane.b32.xlu1 %v22973_v24, %s23629_s19  ;;  %v19740_v6 = vpop.f32.mrb[171].mxu1 }
0x49a4   :  { %v14068_v21 = vpop.permute.xlu0 %14067  ;;  %v18026_v6 = vld [vmem:[%s22218_s10 + $0x20] sm:$0xff] }
0x49a5   :  { %v14099_v30 = vsel %vm465_vm3, %v14095_v15, %v14068_v21  ;;  %v20329_v27 = vpack.c.bf16 %v18027_v2, %v18026_v6  ;;  %v18021_v21 = vld [vmem:[%s22223_s28 + $0x20] sm:$0xff]  ;;  %v18022_v15 = vld [vmem:[%s22223_s28 + $0x28] sm:$0xff] }
0x49a7   :  { %14087 = vrot.lane.b32.xlu0 %v13967_v63, %s23620_s14  ;;  %14073 = vrot.lane.b32.xlu1 %v23044_v50, %s23630_s24  ;;  %v14100_v50 = vsel %vm465_vm3, %v14096_v28, %v14070_v33  ;;  %v20321_v33 = vpack.c.bf16 %v18022_v15, %v18021_v21  ;;  %v18023_v28 = vld [vmem:[%s22223_s28 + $0x30] sm:$0xff] }
0x49a8   :  { %20330 = vmatprep.subr.bf16.mxu0 %v20329_v27 }
0x49a9   :  { %20322 = vmatprep.subr.bf16.mxu1 %v20321_v33 }
0x49aa   :  { %20324 = vmatpush3.bf16.msra.mxu1 %v20321_v33 }
0x49ab   :  { %14089 = vrot.lane.b32.xlu1 %v14043_v9, %s23620_s14 }
0x4a0d   :  { %v14084_v37 = vpop.permute.xlu0 %14083 }
0x4a0e   :  { %v14103_v24 = vsel %vm1952_vm4, %v14099_v30, %v14084_v37  ;;  %v18028_v30 = vld [vmem:[%s22218_s10 + $0x30] sm:$0xff]  ;;  %v18029_v37 = vld [vmem:[%s22218_s10 + $0x38] sm:$0xff] }
0x4a0f   :  { %19749 = vmatprep.mubr.msk.f32.mxu0 %vm184_vm0, %v14103_v24  ;;  %v20333_v24 = vpack.c.bf16 %v18029_v37, %v18028_v30 }
0x4a11   :  { %v14086_v53 = vpop.permute.xlu1 %14085  ;;  %v14056_v55 = vpop.permute.xlu0 %14055 }
0x4a12   :  { %v14104_v18 = vsel %vm1952_vm4, %v14100_v50, %v14086_v53  ;;  %v14097_v35 = vsel %vm288_vm1, %v22892_v10, %v14056_v55  ;;  %v18107_v10 = vld [vmem:[%s22194_s7 + $0x1] ss:$0 sm:$0xff]  ;;  %v18024_v50 = vld [vmem:[%s22223_s28 + $0x38] sm:$0xff]  ;;  %v21046_v55 = vld [vmem:[%s22232_s1 + $0x8] sm:$0xff] }
0x4a13   :  { %19750 = vmatmul.mubr.msk.f32.vlgmr.msra.gmra.mrb[152].mxu0 %vm184_vm0, %v14104_v18  ;;  %v20325_v53 = vpack.c.bf16 %v18024_v50, %v18023_v28  ;;  %v21047_v18 = vld [vmem:[%s22232_s1 + $0x10] sm:$0xff] }
0x4a14   :  { %20332 = vmatpush3.bf16.msra.mxu0 %v20329_v27 }
0x4a15   :  { %v14058_v52 = vpop.permute.xlu1 %14057  ;;  %v14072_v32 = vpop.permute.xlu0 %14071  ;;  %20334 = vmatprep.subr.bf16.mxu0 %v20333_v24  ;;  %20326 = vmatprep.subr.bf16.mxu1 %v20325_v53 }
0x4a16   :  { %v14101_v13 = vsel %vm465_vm3, %v14097_v35, %v14072_v32  ;;  %v14098_v29 = vsel %vm288_vm1, %v22894_v11, %v14058_v52  ;;  %20328 = vmatpush3.bf16.msra.mxu1 %v20325_v53  ;;  %v21048_v52 = vld [vmem:[%s22232_s1 + $0x18] sm:$0xff] }
0x4a17   :  { %19783 = vmatprep.subr.mxu1 %v21076_v57 }
0x4a18   :  { %20336 = vmatpush3.bf16.msra.mxu0 %v20333_v24 }
0x4a19   :  { %v14074_v26 = vpop.permute.xlu1 %14073  ;;  %v14088_v14 = vpop.permute.xlu0 %14087  ;;  %19793 = vmatprep.subr.mxu0 %v21076_v57 }
0x4a1a   :  { %v14105_v20 = vsel %vm1952_vm4, %v14101_v13, %v14088_v14  ;;  %v14102_v39 = vsel %vm465_vm3, %v14098_v29, %v14074_v26 }
0x4a1b   :  { %19752 = vmatprep.mubr.msk.f32.mxu0 %vm184_vm0, %v14105_v20 }
0x4a1d   :  { %v14090_v23 = vpop.permute.xlu1 %14089 }
0x4a1e   :  { %v14106_v40 = vsel %vm1952_vm4, %v14102_v39, %v14090_v23 }
0x4a1f   :  { %19753 = vmatmul.mubr.msk.f32.gmra.mrb[154].mxu0 %vm184_vm0, %v14106_v40  ;;  %v18112_v40 = vld [vmem:[%s22255_s2 + $0x1] ss:$0 sm:$0xff] }
0x4a20   :  { %19777 = vmatprep.mubr.msk.f32.mxu0 %vm184_vm0, %v21045_v41 }
0x4a23   :  { %19778 = vmatmul.mubr.msk.f32.vlgmr.msra.gmra.mrb[156].mxu0 %vm184_vm0, %v21046_v55 }
0x4a24   :  { %19780 = vmatprep.mubr.msk.f32.mxu0 %vm184_vm0, %v21047_v18 }
0x4a27   :  { %19781 = vmatmul.mubr.msk.f32.gmra.mrb[158].mxu0 %vm184_vm0, %v21048_v52 }
0x4a28   :  { %19795 = vmatprep.mubr.msk.f32.mxu0 %vm21077_vm6, %v21076_v57 }
0x4ae6   :  { %v19751_v42 = vpop.f32.mrb[152].mxu0 }
0x4ae7   :  { %v14197_v19 = vadd.f32 %v19751_v42, %v18107_v10  ;;  %v14191_v43 = vpop.f32.mrb[153].mxu0 }
0x4ae8   :  { %v14192_v0 = vadd.f32 %v18107_v10, %v14191_v43 }
0x4ae9   :  { %v14211_v59 = vadd.f32 %v14197_v19, %v22763_v49 }
0x4aea   :  { %v14210_v46 = vadd.f32 %v14192_v0, %v22761_v45 }
0x4aeb   :  { %v14217_v11 = vsel %vm184_vm0, %v14211_v59, 0.0 }
0x4aec   :  { %14218 = vadd.xlane.f32.xlu1 %v14217_v11  ;;  %v14214_v12 = vsel %vm184_vm0, %v14210_v46, 0.0 }
0x4aed   :  { %14215 = vadd.xlane.f32.xlu0 %v14214_v12 }
0x4af2   :  { %v19754_v48 = vpop.f32.mrb[154].mxu0 }
0x4af3   :  { %v14201_v54 = vpop.f32.mrb[155].mxu0  ;;  %v14207_v56 = vadd.f32 %v19754_v48, %v18107_v10 }
0x4af4   :  { %v14202_v61 = vadd.f32 %v18107_v10, %v14201_v54 }
0x4af5   :  { %v14213_v16 = vadd.f32 %v14207_v56, %v22771_v17 }
0x4af6   :  { %v14212_v58 = vadd.f32 %v14202_v61, %v22769_v47 }
0x4af7   :  { %v14223_v49 = vsel %vm184_vm0, %v14213_v16, 0.0 }
0x4af8   :  { %v14220_v44 = vsel %vm184_vm0, %v14212_v58, 0.0 }
0x4af9   :  { %14221 = vadd.xlane.f32.xlu0 %v14220_v44 }
0x4afd   :  { %14224 = vadd.xlane.f32.xlu0 %v14223_v49 }
0x4b79   :  { %v14219_v45 = vpop.xlane.xlu1 %14218 }
0x4b7a   :  { %v14227_v25 = vmul.f32 0.03125, %v14219_v45  ;;  %v14216_v1 = vpop.xlane.xlu0 %14215 }
0x4b7b   :  { %v14226_v5 = vmul.f32 0.03125, %v14216_v1  ;;  %v18119_v1 = vld [vmem:[%s22288_s29 + $0x1] ss:$0 sm:$0xff] }
0x4b7c   :  { %v14231_v22 = vsub.f32 %v14211_v59, %v14227_v25  ;;  %v18113_v59 = vld [vmem:[%s22260_s6 + $0x1] ss:$0 sm:$0xff] }
0x4b7d   :  { %v23126_v36 = vsub.f32 %v14210_v46, %v14226_v5  ;;  %v19779_v5 = vpop.f32.mrb[156].mxu0 }
0x4b7e   :  { %v14235_v8 = vmul.f32 %v14231_v22, %v14231_v22 }
0x4b7f   :  { %v14234_v34 = vmul.f32 %v23126_v36, %v23126_v36 }
0x4b80   :  { %v14241_v47 = vsel %vm184_vm0, %v14235_v8, 0.0 }
0x4b81   :  { %14242 = vadd.xlane.f32.xlu0 %v14241_v47  ;;  %v14238_v17 = vsel %vm184_vm0, %v14234_v34, 0.0 }
0x4b82   :  { %14239 = vadd.xlane.f32.xlu1 %v14238_v17 }
0x4b86   :  { %v14222_v51 = vpop.xlane.xlu0 %14221 }
0x4b87   :  { %v14228_v60 = vmul.f32 0.03125, %v14222_v51 }
0x4b89   :  { %v23132_v3 = vsub.f32 %v14212_v58, %v14228_v60  ;;  %v18114_v60 = vld [vmem:[%s22308_s3 + $0x1] ss:$0 sm:$0xff] }
0x4b8a   :  { %v14225_v4 = vpop.xlane.xlu0 %14224 }
0x4b8b   :  { %v14229_v31 = vmul.f32 0.03125, %v14225_v4  ;;  %v14236_v38 = vmul.f32 %v23132_v3, %v23132_v3 }
0x4b8d   :  { %v23136_v63 = vsub.f32 %v14213_v16, %v14229_v31  ;;  %v14244_v62 = vsel %vm184_vm0, %v14236_v38, 0.0 }
0x4b8e   :  { %14245 = vadd.xlane.f32.xlu1 %v14244_v62 }
0x4b8f   :  { %v14237_v7 = vmul.f32 %v23136_v63, %v23136_v63 }
0x4b91   :  { %v14247_v9 = vsel %vm184_vm0, %v14237_v7, 0.0 }
0x4b92   :  { %14248 = vadd.xlane.f32.xlu0 %v14247_v9 }
0x4c0e   :  { %v14243_v32 = vpop.xlane.xlu0 %14242 }
0x4c0f   :  { %v14251_v35 = vmul.f32 0.03125, %v14243_v32  ;;  %v14240_v13 = vpop.xlane.xlu1 %14239 }
0x4c10   :  { %v14250_v26 = vmul.f32 0.03125, %v14240_v13 }
0x4c11   :  { %v14255_v14 = vadd.f32 1e-05, %v14251_v35 }
0x4c12   :  { %v14254_v20 = vadd.f32 1e-05, %v14250_v26 }
0x4c13   :  { %20953 = vrsqrt.f32 %v14255_v14 }
0x4c14   :  { %20955 = vrsqrt.f32 %v14254_v20 }
0x4c1b   :  { %v14246_v29 = vpop.xlane.xlu1 %14245 }
0x4c1c   :  { %v14252_v39 = vmul.f32 0.03125, %v14246_v29 }
0x4c1d   :  { %v20954_v23 = vpop.eup %20953 }
0x4c1e   :  { %v20956_v41 = vpop.eup %20955  ;;  %v14263_v10 = vmul.f32 %v20954_v23, %v14231_v22  ;;  %v14256_v42 = vadd.f32 1e-05, %v14252_v39  ;;  %v23184_v22 = vadd.f32 %v19779_v5, %v18119_v1 }
0x4c1f   :  { %v14249_v19 = vpop.xlane.xlu0 %14248  ;;  %v14262_v43 = vmul.f32 %v20956_v41, %v23126_v36  ;;  %v14461_v36 = vpop.f32.mrb[157].mxu0 }
0x4c20   :  { %20957 = vrsqrt.f32 %v14256_v42  ;;  %v14253_v0 = vmul.f32 0.03125, %v14249_v19  ;;  %v14273_v46 = vmul.f32 %v18112_v40, %v14263_v10  ;;  %v23186_v8 = vadd.f32 %v18119_v1, %v14461_v36  ;;  %v19782_v34 = vpop.f32.mrb[158].mxu0 }
0x4c21   :  { %v14272_v11 = vmul.f32 %v18112_v40, %v14262_v43  ;;  %v23191_v47 = vadd.f32 %v19782_v34, %v18119_v1  ;;  %v14471_v17 = vpop.f32.mrb[159].mxu0 }
0x4c22   :  { %v14257_v12 = vadd.f32 1e-05, %v14253_v0  ;;  %v23165_v54 = vadd.f32 %v18113_v59, %v14273_v46  ;;  %v23193_v51 = vadd.f32 %v18119_v1, %v14471_v17 }
0x4c23   :  { %v23163_v48 = vadd.f32 %v18113_v59, %v14272_v11 }
0x4c24   :  { %20959 = vrsqrt.f32 %v14257_v12  ;;  %19794 = vmatpush3.xpose.msk.msra.mxu0 %vm288_vm1, %v23193_v51 }
0x4c25   :  { %19763 = vmatprep.mubr.msk.f32.mxu1 %vm184_vm0, %v23163_v48  ;;  %19803 = vmatprep.subr.mxu0 %v21076_v57 }
0x4c26   :  { %19764 = vmatmul.mubr.msk.f32.vlgmr.msra.gmra.mrb[172].mxu1 %vm184_vm0, %v23165_v54 }
0x4c27   :  { %19784 = vmatpush3.xpose.msk.msra.mxu1 %vm288_vm1, %v23186_v8 }
0x4c28   :  { %19788 = vmatprep.subr.mxu1 %v21076_v57 }
0x4c2a   :  { %v20958_v56 = vpop.eup %20957 }
0x4c2b   :  { %v14264_v61 = vmul.f32 %v20958_v56, %v23132_v3 }
0x4c2d   :  { %v14274_v58 = vmul.f32 %v18112_v40, %v14264_v61 }
0x4c2e   :  { %v20960_v16 = vpop.eup %20959 }
0x4c2f   :  { %v23172_v44 = vadd.f32 %v18113_v59, %v14274_v58  ;;  %v14265_v49 = vmul.f32 %v20960_v16, %v23136_v63 }
0x4c31   :  { %19766 = vmatprep.mubr.msk.f32.mxu1 %vm184_vm0, %v23172_v44  ;;  %v14275_v45 = vmul.f32 %v18112_v40, %v14265_v49 }
0x4c33   :  { %v23177_v25 = vadd.f32 %v18113_v59, %v14275_v45 }
0x4c35   :  { %19767 = vmatmul.mubr.msk.f32.gmra.mrb[174].mxu1 %vm184_vm0, %v23177_v25 }
0x4c36   :  { %19785 = vmatprep.mubr.msk.f32.mxu1 %vm21077_vm6, %v21076_v57 }
0x4cf9   :  { %v19765_v3 = vpop.f32.mrb[172].mxu1 }
0x4cfa   :  { %v14370_v4 = vpop.f32.mrb[173].mxu1  ;;  %v23207_v38 = vadd.f32 %v19765_v3, %v18114_v60 }
0x4cfb   :  { %v23199_v31 = vadd.f32 %v18114_v60, %v14370_v4 }
0x4cfd   :  { %19786 = vmatmul.mubr.msk.f32.vlgmr.msra.gmra.mrb[176].mxu1 %vm288_vm1, %v23199_v31 }
0x4cfe   :  { %19789 = vmatpush3.xpose.msk.msra.mxu1 %vm288_vm1, %v23184_v22  ;;  %19790 = vmatprep.mubr.msk.f32.mxu1 %vm21077_vm6, %v21076_v57 }
0x4cff   :  { %19798 = vmatprep.subr.mxu1 %v21076_v57 }
0x4d01   :  { %19791 = vmatmul.mubr.msk.f32.vlgmr.msra.gmra.mrb[178].mxu1 %vm288_vm1, %v23207_v38 }
0x4d02   :  { %19799 = vmatpush3.xpose.msk.msra.mxu1 %vm288_vm1, %v23191_v47  ;;  %19800 = vmatprep.mubr.msk.f32.mxu1 %vm21077_vm6, %v21076_v57 }
0x4d03   :  { %19808 = vmatprep.subr.mxu1 %v21076_v57 }
0x4d08   :  { %v19768_v63 = vpop.f32.mrb[174].mxu1 }
0x4d09   :  { %v23217_v62 = vadd.f32 %v19768_v63, %v18114_v60  ;;  %v14380_v7 = vpop.f32.mrb[175].mxu1 }
0x4d0a   :  { %v23219_v9 = vadd.f32 %v18114_v60, %v14380_v7 }
0x4d0b   :  { %19801 = vmatmul.mubr.msk.f32.vlgmr.msra.gmra.mrb[180].mxu1 %vm288_vm1, %v23217_v62 }
0x4d0c   :  { %19796 = vmatmul.mubr.msk.f32.vlgmr.msra.gmra.mrb[160].mxu0 %vm288_vm1, %v23219_v9  ;;  %19810 = vmatprep.mubr.msk.f32.mxu1 %vm21077_vm6, %v21076_v57 }
0x4d0d   :  { %19805 = vmatprep.mubr.msk.f32.mxu0 %vm21077_vm6, %v21076_v57 }
0x4dd0   :  { %v14552_v6 = vpop.f32.mrb[176].mxu1 }
0x4dd1   :  { %v14784_v2 = vmul.f32 0.35355338, %v14552_v6  ;;  %v19787_v27 = vpop.f32.mrb[177].mxu1 }
0x4dd3   :  { %v14788_v21 = vsel %vm288_vm1, %v14784_v2, -inf }
0x4dd4   :  { %14789 = vmax.xlane.f32.xlu1 %v14788_v21  ;;  %v14628_v15 = vpop.f32.mrb[178].mxu1 }
0x4dd5   :  { %v14785_v33 = vmul.f32 0.35355338, %v14628_v15  ;;  %v19792_v30 = vpop.f32.mrb[179].mxu1 }
0x4dd7   :  { %v14791_v37 = vsel %vm288_vm1, %v14785_v33, -inf }
0x4dd8   :  { %14792 = vmax.xlane.f32.xlu0 %v14791_v37 }
0x4dde   :  { %v14780_v24 = vpop.f32.mrb[180].mxu1 }
0x4ddf   :  { %v14787_v28 = vmul.f32 0.35355338, %v14780_v24  ;;  %v14704_v50 = vpop.f32.mrb[160].mxu0  ;;  %v19802_v53 = vpop.f32.mrb[181].mxu1 }
0x4de0   :  { %v14786_v55 = vmul.f32 0.35355338, %v14704_v50  ;;  %v19797_v18 = vpop.f32.mrb[161].mxu0 }
0x4de1   :  { %v14797_v52 = vsel %vm288_vm1, %v14787_v28, -inf }
0x4de2   :  { %14798 = vmax.xlane.f32.xlu0 %v14797_v52  ;;  %v14794_v32 = vsel %vm288_vm1, %v14786_v55, -inf }
0x4de3   :  { %14795 = vmax.xlane.f32.xlu1 %v14794_v32 }
0x4df4   :  { %14832 = vrot.lane.b32.xlu1 %v23186_v8, %s21052_s15 }
0x4df8   :  { %14908 = vrot.lane.b32.xlu0 %v23184_v22, %s21052_s15  ;;  %14984 = vrot.lane.b32.xlu1 %v23193_v51, %s21052_s15 }
0x4dfc   :  { %15138 = vrot.lane.b32.xlu0 %v23186_v8, %s23621_s16  ;;  %15060 = vrot.lane.b32.xlu1 %v23191_v47, %s21052_s15  ;;  %s21096_s15 = smov 35  }
0x4e00   :  { %15216 = vrot.lane.b32.xlu1 %v23184_v22, %s23621_s16 }
0x4e61   :  { %v14790_v35 = vpop.xlane.xlu1 %14789 }
0x4e62   :  { %v14800_v13 = vsub.f32 %v14784_v2, %v14790_v35 }
0x4e64   :  { %v14804_v26 = vmul.f32 1.442695, %v14800_v13 }
0x4e65   :  { %v14793_v14 = vpop.xlane.xlu0 %14792 }
0x4e66   :  { %20961 = vpow2.f32 %v14804_v26  ;;  %v14801_v20 = vsub.f32 %v14785_v33, %v14793_v14 }
0x4e68   :  { %v14806_v29 = vmul.f32 1.442695, %v14801_v20 }
0x4e6a   :  { %20963 = vpow2.f32 %v14806_v29 }
0x4e6f   :  { %v14799_v39 = vpop.xlane.xlu0 %14798 }
0x4e70   :  { %v20962_v23 = vpop.eup %20961  ;;  %v14803_v40 = vsub.f32 %v14787_v28, %v14799_v39  ;;  %v14796_v41 = vpop.xlane.xlu1 %14795 }
0x4e71   :  { %v14802_v10 = vsub.f32 %v14786_v55, %v14796_v41  ;;  %v14812_v42 = vsel %vm288_vm1, %v20962_v23, 0.0 }
0x4e72   :  { %v14810_v19 = vmul.f32 1.442695, %v14803_v40  ;;  %14813 = vadd.xlane.f32.xlu1 %v14812_v42 }
0x4e73   :  { %v14808_v43 = vmul.f32 1.442695, %v14802_v10  ;;  %v14909_v0 = vpop.permute.xlu0 %14908 }
0x4e74   :  { %v20964_v59 = vpop.eup %20963  ;;  %20965 = vpow2.f32 %v14810_v19  ;;  %19809 = vmatpush3.msra.mxu1 %v14909_v0  ;;  %v14833_v46 = vpop.permute.xlu1 %14832 }
0x4e75   :  { %20967 = vpow2.f32 %v14808_v43  ;;  %19804 = vmatpush3.msra.mxu0 %v14833_v46  ;;  %v14815_v11 = vsel %vm288_vm1, %v20964_v59, 0.0  ;;  %19818 = vmatprep.subr.mxu1 %v21076_v57 }
0x4e76   :  { %14816 = vadd.xlane.f32.xlu0 %v14815_v11  ;;  %19813 = vmatprep.subr.mxu0 %v21076_v57 }
0x4e77   :  { %v15139_v1 = vpop.permute.xlu0 %15138 }
0x4e78   :  { %v14985_v16 = vpop.permute.xlu1 %14984 }
0x4e7c   :  { %v15061_v49 = vpop.permute.xlu1 %15060 }
0x4e7e   :  { %v20966_v12 = vpop.eup %20965 }
0x4e7f   :  { %v20968_v56 = vpop.eup %20967  ;;  %v14821_v61 = vsel %vm288_vm1, %v20966_v12, 0.0 }
0x4e80   :  { %14822 = vadd.xlane.f32.xlu0 %v14821_v61  ;;  %v14818_v58 = vsel %vm288_vm1, %v20968_v56, 0.0  ;;  %v15217_v45 = vpop.permute.xlu1 %15216 }
0x4e81   :  { %14819 = vadd.xlane.f32.xlu1 %v14818_v58 }
0x4e92   :  { %15214 = vrot.lane.b32.xlu1 %v23207_v38, %s23621_s16 }
0x4e96   :  { %15136 = vrot.lane.b32.xlu0 %v23199_v31, %s23621_s16  ;;  %15372 = vrot.lane.b32.xlu1 %v23191_v47, %s23621_s16 }
0x4e9a   :  { %15294 = vrot.lane.b32.xlu0 %v23193_v51, %s23621_s16  ;;  %15370 = vrot.lane.b32.xlu1 %v23217_v62, %s23621_s16 }
0x4e9e   :  { %15292 = vrot.lane.b32.xlu0 %v23219_v9, %s23621_s16 }
0x4eff   :  { %v14814_v5 = vpop.xlane.xlu1 %14813 }
0x4f00   :  { %20969 = vrcp.f32 %v14814_v5 }
0x4f03   :  { %v14817_v36 = vpop.xlane.xlu0 %14816 }
0x4f04   :  { %20971 = vrcp.f32 %v14817_v36 }
0x4f0a   :  { %v20970_v34 = vpop.eup %20969 }
0x4f0b   :  { %v14828_v17 = vmul.f32 %v20970_v34, %v20962_v23 }
0x4f0d   :  { %v14823_v60 = vpop.xlane.xlu0 %14822  ;;  %19806 = vmatmul.mubr.msk.f32.vlgmr.msra.gmra.mrb[162].mxu0 %vm288_vm1, %v14828_v17 }
0x4f0e   :  { %v20972_v3 = vpop.eup %20971  ;;  %20973 = vrcp.f32 %v14823_v60  ;;  %19814 = vmatpush3.msra.mxu0 %v14985_v16  ;;  %v14820_v4 = vpop.xlane.xlu1 %14819  ;;  %19815 = vmatprep.mubr.msk.f32.mxu0 %vm21077_vm6, %v21076_v57 }
0x4f0f   :  { %v14829_v63 = vmul.f32 %v20972_v3, %v20964_v59  ;;  %20975 = vrcp.f32 %v14820_v4  ;;  %19823 = vmatprep.subr.mxu0 %v21076_v57 }
0x4f11   :  { %19811 = vmatmul.mubr.msk.f32.vlgmr.msra.gmra.mrb[182].mxu1 %vm288_vm1, %v14829_v63  ;;  %v15137_v6 = vpop.permute.xlu0 %15136 }
0x4f12   :  { %19819 = vmatpush3.msra.mxu1 %v15061_v49  ;;  %19820 = vmatprep.mubr.msk.f32.mxu1 %vm21077_vm6, %v21076_v57  ;;  %v15215_v7 = vpop.permute.xlu1 %15214 }
0x4f13   :  { %19828 = vmatprep.subr.mxu1 %v21076_v57 }
0x4f15   :  { %v15295_v30 = vpop.permute.xlu0 %15294 }
0x4f16   :  { %v15373_v33 = vpop.permute.xlu1 %15372 }
0x4f18   :  { %v20974_v2 = vpop.eup %20973 }
0x4f19   :  { %v20976_v27 = vpop.eup %20975  ;;  %v14831_v21 = vmul.f32 %v20974_v2, %v20966_v12  ;;  %v15293_v24 = vpop.permute.xlu0 %15292 }
0x4f1a   :  { %v14830_v15 = vmul.f32 %v20976_v27, %v20968_v56  ;;  %v15371_v37 = vpop.permute.xlu1 %15370 }
0x4f1b   :  { %19821 = vmatmul.mubr.msk.f32.vlgmr.msra.gmra.mrb[184].mxu1 %vm288_vm1, %v14831_v21 }
0x4f1c   :  { %19829 = vmatpush3.xpose.msk.msra.mxu1 %vm288_vm1, %v15217_v45  ;;  %19816 = vmatmul.mubr.msk.f32.vlgmr.msra.gmra.mrb[164].mxu0 %vm288_vm1, %v14830_v15 }
0x4f1d   :  { %19824 = vmatpush3.xpose.msk.msra.mxu0 %vm288_vm1, %v15139_v1  ;;  %19830 = vmatprep.mubr.msk.f32.mxu1 %vm21077_vm6, %v21076_v57 }
0x4f1e   :  { %19838 = vmatprep.subr.mxu1 %v21076_v57  ;;  %19825 = vmatprep.mubr.msk.f32.mxu0 %vm21077_vm6, %v21076_v57 }
0x4f1f   :  { %19831 = vmatmul.mubr.msk.f32.vlgmr.msra.gmra.mrb[186].mxu1 %vm288_vm1, %v15215_v7  ;;  %19833 = vmatprep.subr.mxu0 %v21076_v57 }
0x4f20   :  { %19839 = vmatpush3.xpose.msk.msra.mxu1 %vm288_vm1, %v15373_v33  ;;  %19826 = vmatmul.mubr.msk.f32.vlgmr.msra.gmra.mrb[166].mxu0 %vm288_vm1, %v15137_v6 }
0x4f21   :  { %19834 = vmatpush3.xpose.msk.msra.mxu0 %vm288_vm1, %v15295_v30  ;;  %19840 = vmatprep.mubr.msk.f32.mxu1 %vm21077_vm6, %v21076_v57 }
0x4f22   :  { %19835 = vmatprep.mubr.msk.f32.mxu0 %vm21077_vm6, %v21076_v57  ;;  %19843 = vmatprep.subr.mxu0 %v21076_v57 }
0x4f23   :  { %19841 = vmatmul.mubr.msk.f32.vlgmr.msra.gmra.mrb[188].mxu1 %vm288_vm1, %v15371_v37  ;;  %19848 = vmatprep.subr.mxu1 %v21076_v57 }
0x4f24   :  { %19836 = vmatmul.mubr.msk.f32.vlgmr.msra.gmra.mrb[168].mxu0 %vm288_vm1, %v15293_v24  ;;  %19850 = vmatprep.mubr.msk.f32.mxu1 %vm21077_vm6, %v21076_v57 }
0x4f25   :  { %19845 = vmatprep.mubr.msk.f32.mxu0 %vm21077_vm6, %v21076_v57 }
0x4fe0   :  { %v23297_v28 = vpop.f32.mrb[162].mxu0 }
0x4fe1   :  { %v19807_v50 = vpop.f32.mrb[163].mxu0 }
0x4fe4   :  { %v23299_v53 = vpop.f32.mrb[182].mxu1 }
0x4fe5   :  { %v19812_v55 = vpop.f32.mrb[183].mxu1 }
0x4fee   :  { %v23301_v18 = vpop.f32.mrb[184].mxu1 }
0x4fef   :  { %v23303_v52 = vpop.f32.mrb[164].mxu0  ;;  %v19822_v32 = vpop.f32.mrb[185].mxu1 }
0x4ff0   :  { %v19817_v35 = vpop.f32.mrb[165].mxu0 }
0x4ff2   :  { %v15288_v13 = vpop.f32.mrb[186].mxu1 }
0x4ff3   :  { %v15449_v26 = vmul.f32 0.35355338, %v15288_v13  ;;  %v15210_v14 = vpop.f32.mrb[166].mxu0  ;;  %v19832_v20 = vpop.f32.mrb[187].mxu1 }
0x4ff4   :  { %v15448_v29 = vmul.f32 0.35355338, %v15210_v14  ;;  %v19827_v39 = vpop.f32.mrb[167].mxu0 }
0x4ff5   :  { %v15455_v23 = vsel %vm288_vm1, %v15449_v26, -inf }
0x4ff6   :  { %15456 = vmax.xlane.f32.xlu1 %v15455_v23  ;;  %v15444_v40 = vpop.f32.mrb[188].mxu1  ;;  %v15452_v41 = vsel %vm288_vm1, %v15448_v29, -inf }
0x4ff7   :  { %v19842_v10 = vpop.f32.mrb[189].mxu1  ;;  %15453 = vmax.xlane.f32.xlu0 %v15452_v41  ;;  %v15366_v42 = vpop.f32.mrb[168].mxu0  ;;  %v15451_v0 = vmul.f32 0.35355338, %v15444_v40 }
0x4ff8   :  { %v15450_v19 = vmul.f32 0.35355338, %v15366_v42  ;;  %v19837_v43 = vpop.f32.mrb[169].mxu0 }
0x4ff9   :  { %v15461_v46 = vsel %vm288_vm1, %v15451_v0, -inf }
0x4ffa   :  { %v15458_v59 = vsel %vm288_vm1, %v15450_v19, -inf }
0x4ffb   :  { %15459 = vmax.xlane.f32.xlu0 %v15458_v59 }
0x4fff   :  { %15462 = vmax.xlane.f32.xlu0 %v15461_v46 }
0x5007   :  { %15496 = vrot.lane.b32.xlu1 %v23186_v8, %s21054_s17 }
0x500b   :  { %15648 = vrot.lane.b32.xlu1 %v23193_v51, %s21054_s17 }
0x500f   :  { %15724 = vrot.lane.b32.xlu1 %v23191_v47, %s21054_s17 }
0x5013   :  { %15880 = vrot.lane.b32.xlu1 %v23184_v22, %s23624_s12 }
0x5015   :  { %15572 = vrot.lane.b32.xlu0 %v23184_v22, %s21054_s17 }
0x5019   :  { %15802 = vrot.lane.b32.xlu0 %v23186_v8, %s23624_s12 }
0x5083   :  { %v15457_v11 = vpop.xlane.xlu1 %15456 }
0x5084   :  { %v15465_v12 = vsub.f32 %v15449_v26, %v15457_v11  ;;  %v15454_v56 = vpop.xlane.xlu0 %15453 }
0x5085   :  { %v15464_v61 = vsub.f32 %v15448_v29, %v15454_v56 }
0x5086   :  { %v15470_v58 = vmul.f32 1.442695, %v15465_v12 }
0x5087   :  { %v15468_v16 = vmul.f32 1.442695, %v15464_v61  ;;  %v15497_v49 = vpop.permute.xlu1 %15496 }
0x5088   :  { %20977 = vpow2.f32 %v15470_v58  ;;  %19844 = vmatpush3.msra.mxu0 %v15497_v49  ;;  %v15460_v45 = vpop.xlane.xlu0 %15459 }
0x5089   :  { %20979 = vpow2.f32 %v15468_v16  ;;  %v15466_v1 = vsub.f32 %v15450_v19, %v15460_v45  ;;  %19853 = vmatprep.subr.mxu0 %v21076_v57 }
0x508b   :  { %v15472_v5 = vmul.f32 1.442695, %v15466_v1  ;;  %v15649_v15 = vpop.permute.xlu1 %15648 }
0x508c   :  { %v15463_v36 = vpop.xlane.xlu0 %15462 }
0x508d   :  { %20981 = vpow2.f32 %v15472_v5  ;;  %v15467_v34 = vsub.f32 %v15451_v0, %v15463_v36 }
0x508f   :  { %v15474_v17 = vmul.f32 1.442695, %v15467_v34  ;;  %v15725_v33 = vpop.permute.xlu1 %15724 }
0x5090   :  { %v15573_v60 = vpop.permute.xlu0 %15572 }
0x5091   :  { %20983 = vpow2.f32 %v15474_v17  ;;  %19849 = vmatpush3.msra.mxu1 %v15573_v60 }
0x5092   :  { %v20978_v3 = vpop.eup %20977  ;;  %19858 = vmatprep.subr.mxu1 %v21076_v57 }
0x5093   :  { %v20980_v4 = vpop.eup %20979  ;;  %v15479_v63 = vsel %vm288_vm1, %v20978_v3, 0.0  ;;  %v15881_v37 = vpop.permute.xlu1 %15880 }
0x5094   :  { %15480 = vadd.xlane.f32.xlu0 %v15479_v63  ;;  %v15476_v7 = vsel %vm288_vm1, %v20980_v4, 0.0  ;;  %v15803_v30 = vpop.permute.xlu0 %15802 }
0x5095   :  { %15477 = vadd.xlane.f32.xlu1 %v15476_v7 }
0x5097   :  { %v20982_v6 = vpop.eup %20981 }
0x5098   :  { %v15482_v2 = vsel %vm288_vm1, %v20982_v6, 0.0 }
0x5099   :  { %15483 = vadd.xlane.f32.xlu1 %v15482_v2 }
0x509b   :  { %v20984_v27 = vpop.eup %20983 }
0x509c   :  { %v15485_v21 = vsel %vm288_vm1, %v20984_v27, 0.0 }
0x509d   :  { %15486 = vadd.xlane.f32.xlu0 %v15485_v21 }
0x50aa   :  { %15878 = vrot.lane.b32.xlu1 %v23207_v38, %s23624_s12 }
0x50ae   :  { %16036 = vrot.lane.b32.xlu1 %v23191_v47, %s23624_s12 }
0x50b2   :  { %16034 = vrot.lane.b32.xlu1 %v23217_v62, %s23624_s12 }
0x50b3   :  { %15800 = vrot.lane.b32.xlu0 %v23199_v31, %s23624_s12 }
0x50b6   :  { %16160 = vrot.lane.b32.xlu1 %v23186_v8, %s23623_s20 }
0x50b7   :  { %15958 = vrot.lane.b32.xlu0 %v23193_v51, %s23624_s12 }
0x50ba   :  { %16312 = vrot.lane.b32.xlu1 %v23193_v51, %s23623_s20 }
0x50bb   :  { %15956 = vrot.lane.b32.xlu0 %v23219_v9, %s23624_s12 }
0x50be   :  { %16388 = vrot.lane.b32.xlu1 %v23191_v47, %s23623_s20 }
0x50bf   :  { %16236 = vrot.lane.b32.xlu0 %v23184_v22, %s23623_s20 }
0x5121   :  { %v15481_v24 = vpop.xlane.xlu0 %15480 }
0x5122   :  { %20985 = vrcp.f32 %v15481_v24  ;;  %v15478_v50 = vpop.xlane.xlu1 %15477 }
0x5123   :  { %20987 = vrcp.f32 %v15478_v50 }
0x5126   :  { %v15484_v55 = vpop.xlane.xlu1 %15483 }
0x5127   :  { %20989 = vrcp.f32 %v15484_v55 }
0x512a   :  { %v15487_v32 = vpop.xlane.xlu0 %15486  ;;  %v15879_v14 = vpop.permute.xlu1 %15878 }
0x512b   :  { %20991 = vrcp.f32 %v15487_v32 }
0x512c   :  { %v20986_v35 = vpop.eup %20985 }
0x512d   :  { %v20988_v13 = vpop.eup %20987  ;;  %v15493_v26 = vmul.f32 %v20986_v35, %v20978_v3 }
0x512e   :  { %v15492_v20 = vmul.f32 %v20988_v13, %v20980_v4  ;;  %v15801_v29 = vpop.permute.xlu0 %15800  ;;  %v16037_v40 = vpop.permute.xlu1 %16036 }
0x512f   :  { %19851 = vmatmul.mubr.msk.f32.vlgmr.msra.gmra.mrb[190].mxu1 %vm288_vm1, %v15493_v26 }
0x5130   :  { %19859 = vmatpush3.msra.mxu1 %v15725_v33  ;;  %19846 = vmatmul.mubr.msk.f32.vlgmr.msra.gmra.mrb[170].mxu0 %vm288_vm1, %v15492_v20 }
0x5131   :  { %v20990_v39 = vpop.eup %20989  ;;  %19854 = vmatpush3.msra.mxu0 %v15649_v15  ;;  %19855 = vmatprep.mubr.msk.f32.mxu0 %vm21077_vm6, %v21076_v57 }
0x5132   :  { %v15494_v23 = vmul.f32 %v20990_v39, %v20982_v6  ;;  %19863 = vmatprep.subr.mxu0 %v21076_v57  ;;  %19860 = vmatprep.mubr.msk.f32.mxu1 %vm21077_vm6, %v21076_v57  ;;  %v15959_v41 = vpop.permute.xlu0 %15958  ;;  %v16035_v19 = vpop.permute.xlu1 %16034 }
0x5133   :  { %19868 = vmatprep.subr.mxu1 %v21076_v57 }
0x5134   :  { %19856 = vmatmul.mubr.msk.f32.vlgmr.msra.gmra.mrb[172].mxu0 %vm288_vm1, %v15494_v23 }
0x5135   :  { %v20992_v10 = vpop.eup %20991  ;;  %19865 = vmatprep.mubr.msk.f32.mxu0 %vm21077_vm6, %v21076_v57 }
0x5136   :  { %v15495_v42 = vmul.f32 %v20992_v10, %v20984_v27  ;;  %v15957_v43 = vpop.permute.xlu0 %15956  ;;  %v16161_v0 = vpop.permute.xlu1 %16160 }
0x5138   :  { %19864 = vmatpush3.xpose.msk.msra.mxu0 %vm288_vm1, %v15803_v30  ;;  %19861 = vmatmul.mubr.msk.f32.vlgmr.msra.gmra.mrb[192].mxu1 %vm288_vm1, %v15495_v42 }
0x5139   :  { %19869 = vmatpush3.xpose.msk.msra.mxu1 %vm288_vm1, %v15881_v37  ;;  %19873 = vmatprep.subr.mxu0 %v21076_v57 }
0x513a   :  { %19870 = vmatprep.mubr.msk.f32.mxu1 %vm21077_vm6, %v21076_v57  ;;  %19878 = vmatprep.subr.mxu1 %v21076_v57  ;;  %v16237_v59 = vpop.permute.xlu0 %16236  ;;  %v16313_v33 = vpop.permute.xlu1 %16312 }
0x513b   :  { %19866 = vmatmul.mubr.msk.f32.vlgmr.msra.gmra.mrb[174].mxu0 %vm288_vm1, %v15801_v29 }
0x513c   :  { %19874 = vmatpush3.xpose.msk.msra.mxu0 %vm288_vm1, %v15959_v41  ;;  %19871 = vmatmul.mubr.msk.f32.vlgmr.msra.gmra.mrb[194].mxu1 %vm288_vm1, %v15879_v14 }
0x513d   :  { %19879 = vmatpush3.xpose.msk.msra.mxu1 %vm288_vm1, %v16037_v40  ;;  %19875 = vmatprep.mubr.msk.f32.mxu0 %vm21077_vm6, %v21076_v57 }
0x513e   :  { %19883 = vmatprep.subr.mxu0 %v21076_v57  ;;  %19880 = vmatprep.mubr.msk.f32.mxu1 %vm21077_vm6, %v21076_v57  ;;  %v16389_v30 = vpop.permute.xlu1 %16388 }
0x513f   :  { %19876 = vmatmul.mubr.msk.f32.vlgmr.msra.gmra.mrb[176].mxu0 %vm288_vm1, %v15957_v43  ;;  %19888 = vmatprep.subr.mxu1 %v21076_v57 }
0x5140   :  { %19884 = vmatpush3.msra.mxu0 %v16161_v0  ;;  %19881 = vmatmul.mubr.msk.f32.vlgmr.msra.gmra.mrb[196].mxu1 %vm288_vm1, %v16035_v19 }
0x5141   :  { %19889 = vmatpush3.msra.mxu1 %v16237_v59  ;;  %19885 = vmatprep.mubr.msk.f32.mxu0 %vm21077_vm6, %v21076_v57 }
0x5142   :  { %19893 = vmatprep.subr.mxu0 %v21076_v57  ;;  %19890 = vmatprep.mubr.msk.f32.mxu1 %vm21077_vm6, %v21076_v57 }
0x5143   :  { %19898 = vmatprep.subr.mxu1 %v21076_v57 }
0x5202   :  { %v23383_v46 = vpop.f32.mrb[190].mxu1 }
0x5203   :  { %v23385_v11 = vpop.f32.mrb[170].mxu0  ;;  %v19852_v12 = vpop.f32.mrb[191].mxu1 }
0x5204   :  { %v19847_v56 = vpop.f32.mrb[171].mxu0 }
0x5207   :  { %v23387_v61 = vpop.f32.mrb[172].mxu0 }
0x5208   :  { %v19857_v58 = vpop.f32.mrb[173].mxu0 }
0x520b   :  { %v23389_v16 = vpop.f32.mrb[192].mxu1 }
0x520c   :  { %v19862_v49 = vpop.f32.mrb[193].mxu1 }
0x520e   :  { %v15874_v45 = vpop.f32.mrb[174].mxu0 }
0x520f   :  { %v16112_v1 = vmul.f32 0.35355338, %v15874_v45  ;;  %v19867_v5 = vpop.f32.mrb[175].mxu0  ;;  %v15952_v36 = vpop.f32.mrb[194].mxu1 }
0x5210   :  { %v16113_v34 = vmul.f32 0.35355338, %v15952_v36  ;;  %v19872_v17 = vpop.f32.mrb[195].mxu1 }
0x5211   :  { %v16116_v60 = vsel %vm288_vm1, %v16112_v1, -inf }
0x5212   :  { %16117 = vmax.xlane.f32.xlu0 %v16116_v60  ;;  %v16030_v3 = vpop.f32.mrb[176].mxu0  ;;  %v16119_v4 = vsel %vm288_vm1, %v16113_v34, -inf }
0x5213   :  { %v16114_v63 = vmul.f32 0.35355338, %v16030_v3  ;;  %v19877_v7 = vpop.f32.mrb[177].mxu0  ;;  %16120 = vmax.xlane.f32.xlu1 %v16119_v4  ;;  %v16108_v6 = vpop.f32.mrb[196].mxu1 }
0x5214   :  { %v19882_v2 = vpop.f32.mrb[197].mxu1  ;;  %v16115_v27 = vmul.f32 0.35355338, %v16108_v6 }
0x5215   :  { %v16122_v21 = vsel %vm288_vm1, %v16114_v63, -inf }
0x5216   :  { %16123 = vmax.xlane.f32.xlu0 %v16122_v21  ;;  %v16125_v15 = vsel %vm288_vm1, %v16115_v27, -inf }
0x521a   :  { %16126 = vmax.xlane.f32.xlu0 %v16125_v15 }
0x5224   :  { %16544 = vrot.lane.b32.xlu1 %v23184_v22, %s23627_s11 }
0x5230   :  { %16466 = vrot.lane.b32.xlu0 %v23186_v8, %s23627_s11 }
0x529f   :  { %v16118_v37 = vpop.xlane.xlu0 %16117 }
0x52a0   :  { %v16128_v24 = vsub.f32 %v16112_v1, %v16118_v37  ;;  %v16121_v50 = vpop.xlane.xlu1 %16120 }
0x52a1   :  { %v16129_v55 = vsub.f32 %v16113_v34, %v16121_v50 }
0x52a2   :  { %v16132_v32 = vmul.f32 1.442695, %v16128_v24 }
0x52a3   :  { %v16134_v35 = vmul.f32 1.442695, %v16129_v55  ;;  %v16124_v29 = vpop.xlane.xlu0 %16123 }
0x52a4   :  { %20993 = vpow2.f32 %v16132_v32  ;;  %v16130_v23 = vsub.f32 %v16114_v63, %v16124_v29 }
0x52a5   :  { %20995 = vpow2.f32 %v16134_v35 }
0x52a6   :  { %v16136_v41 = vmul.f32 1.442695, %v16130_v23 }
0x52a7   :  { %v16127_v39 = vpop.xlane.xlu0 %16126 }
0x52a8   :  { %v16131_v40 = vsub.f32 %v16115_v27, %v16127_v39  ;;  %20997 = vpow2.f32 %v16136_v41 }
0x52aa   :  { %v16138_v10 = vmul.f32 1.442695, %v16131_v40 }
0x52ac   :  { %20999 = vpow2.f32 %v16138_v10 }
0x52ae   :  { %v20994_v13 = vpop.eup %20993 }
0x52af   :  { %v20996_v26 = vpop.eup %20995  ;;  %v16140_v14 = vsel %vm288_vm1, %v20994_v13, 0.0 }
0x52b0   :  { %16141 = vadd.xlane.f32.xlu1 %v16140_v14  ;;  %v16143_v20 = vsel %vm288_vm1, %v20996_v26, 0.0 }
0x52b1   :  { %16144 = vadd.xlane.f32.xlu0 %v16143_v20 }
0x52b2   :  { %v20998_v42 = vpop.eup %20997 }
0x52b3   :  { %v16146_v43 = vsel %vm288_vm1, %v20998_v42, 0.0 }
0x52b6   :  { %v21000_v19 = vpop.eup %20999 }
0x52b7   :  { %v16149_v0 = vsel %vm288_vm1, %v21000_v19, 0.0 }
0x52c1   :  { %16542 = vrot.lane.b32.xlu1 %v23207_v38, %s23627_s11  ;;  %v16467_v38 = vpop.permute.xlu0 %16466 }
0x52c7   :  { %16464 = vrot.lane.b32.xlu0 %v23199_v31, %s23627_s11  ;;  %v16545_v31 = vpop.permute.xlu1 %16544 }
0x52e5   :  { %16147 = vadd.xlane.f32.xlu1 %v16146_v43 }
0x52e6   :  { %16150 = vadd.xlane.f32.xlu0 %v16149_v0 }
0x52f6   :  { %16700 = vrot.lane.b32.xlu1 %v23191_v47, %s23627_s11 }
0x52fa   :  { %16698 = vrot.lane.b32.xlu1 %v23217_v62, %s23627_s11 }
0x52fc   :  { %16622 = vrot.lane.b32.xlu0 %v23193_v51, %s23627_s11 }
0x5300   :  { %16620 = vrot.lane.b32.xlu0 %v23219_v9, %s23627_s11 }
0x533d   :  { %v16142_v59 = vpop.xlane.xlu1 %16141 }
0x533e   :  { %21001 = vrcp.f32 %v16142_v59  ;;  %v16145_v12 = vpop.xlane.xlu0 %16144 }
0x533f   :  { %21003 = vrcp.f32 %v16145_v12 }
0x5341   :  { %v16543_v62 = vpop.permute.xlu1 %16542 }
0x5342   :  { %v16465_v9 = vpop.permute.xlu0 %16464 }
0x5348   :  { %v21002_v56 = vpop.eup %21001 }
0x5349   :  { %v21004_v58 = vpop.eup %21003  ;;  %v16156_v49 = vmul.f32 %v21002_v56, %v20994_v13 }
0x534a   :  { %v16157_v45 = vmul.f32 %v21004_v58, %v20996_v26 }
0x534b   :  { %19886 = vmatmul.mubr.msk.f32.vlgmr.msra.gmra.mrb[178].mxu0 %vm288_vm1, %v16156_v49 }
0x534c   :  { %19894 = vmatpush3.msra.mxu0 %v16313_v33  ;;  %19891 = vmatmul.mubr.msk.f32.vlgmr.msra.gmra.mrb[198].mxu1 %vm288_vm1, %v16157_v45 }
0x534d   :  { %19899 = vmatpush3.msra.mxu1 %v16389_v30  ;;  %19895 = vmatprep.mubr.msk.f32.mxu0 %vm21077_vm6, %v21076_v57 }
0x534e   :  { %19903 = vmatprep.subr.mxu0 %v21076_v57  ;;  %19900 = vmatprep.mubr.msk.f32.mxu1 %vm21077_vm6, %v21076_v57 }
0x534f   :  { %19908 = vmatprep.subr.mxu1 %v21076_v57 }
0x5372   :  { %v16148_v1 = vpop.xlane.xlu1 %16147 }
0x5373   :  { %21005 = vrcp.f32 %v16148_v1  ;;  %v16151_v5 = vpop.xlane.xlu0 %16150 }
0x5374   :  { %21007 = vrcp.f32 %v16151_v5 }
0x5376   :  { %v16701_v4 = vpop.permute.xlu1 %16700 }
0x5377   :  { %v16623_v3 = vpop.permute.xlu0 %16622 }
0x537a   :  { %v16699_v7 = vpop.permute.xlu1 %16698 }
0x537b   :  { %v16621_v63 = vpop.permute.xlu0 %16620 }
0x537d   :  { %v21006_v36 = vpop.eup %21005 }
0x537e   :  { %v21008_v34 = vpop.eup %21007  ;;  %v16158_v17 = vmul.f32 %v21006_v36, %v20998_v42 }
0x537f   :  { %v16159_v60 = vmul.f32 %v21008_v34, %v21000_v19 }
0x5380   :  { %19896 = vmatmul.mubr.msk.f32.vlgmr.msra.gmra.mrb[180].mxu0 %vm288_vm1, %v16158_v17 }
0x5381   :  { %19904 = vmatpush3.xpose.msk.msra.mxu0 %vm288_vm1, %v16467_v38  ;;  %19901 = vmatmul.mubr.msk.f32.vlgmr.msra.gmra.mrb[200].mxu1 %vm288_vm1, %v16159_v60 }
0x5382   :  { %19909 = vmatpush3.xpose.msk.msra.mxu1 %vm288_vm1, %v16545_v31  ;;  %19905 = vmatprep.mubr.msk.f32.mxu0 %vm21077_vm6, %v21076_v57 }
0x5383   :  { %19913 = vmatprep.subr.mxu0 %v21076_v57  ;;  %19910 = vmatprep.mubr.msk.f32.mxu1 %vm21077_vm6, %v21076_v57 }
0x5384   :  { %19906 = vmatmul.mubr.msk.f32.vlgmr.msra.gmra.mrb[182].mxu0 %vm288_vm1, %v16465_v9  ;;  %19918 = vmatprep.subr.mxu1 %v21076_v57 }
0x5385   :  { %19914 = vmatpush3.xpose.msk.msra.mxu0 %vm288_vm1, %v16623_v3  ;;  %19911 = vmatmul.mubr.msk.f32.vlgmr.msra.gmra.mrb[202].mxu1 %vm288_vm1, %v16543_v62 }
0x5386   :  { %19919 = vmatpush3.xpose.msk.msra.mxu1 %vm288_vm1, %v16701_v4  ;;  %19915 = vmatprep.mubr.msk.f32.mxu0 %vm21077_vm6, %v21076_v57 }
0x5387   :  { %19920 = vmatprep.mubr.msk.f32.mxu1 %vm21077_vm6, %v21076_v57  ;;  %19923 = vmatprep.subr.mxu0 %v21076_v57 }
0x5388   :  { %19916 = vmatmul.mubr.msk.f32.vlgmr.msra.gmra.mrb[184].mxu0 %vm288_vm1, %v16621_v63  ;;  %19928 = vmatprep.subr.mxu1 %v21076_v57 }
0x5389   :  { %19921 = vmatmul.mubr.msk.f32.vlgmr.msra.gmra.mrb[204].mxu1 %vm288_vm1, %v16699_v7  ;;  %19925 = vmatprep.mubr.msk.f32.mxu0 %vm21077_vm6, %v21076_v57 }
0x538a   :  { %19930 = vmatprep.mubr.msk.f32.mxu1 %vm21077_vm6, %v21076_v57 }
0x541e   :  { %v23449_v6 = vpop.f32.mrb[178].mxu0 }
0x541f   :  { %v19887_v2 = vpop.f32.mrb[179].mxu0  ;;  %v16308_v27 = vpop.f32.mrb[198].mxu1 }
0x5420   :  { %v19892_v21 = vpop.f32.mrb[199].mxu1 }
0x5453   :  { %v23451_v15 = vpop.f32.mrb[180].mxu0 }
0x5454   :  { %v19897_v33 = vpop.f32.mrb[181].mxu0  ;;  %v16460_v30 = vpop.f32.mrb[200].mxu1 }
0x5455   :  { %v19902_v37 = vpop.f32.mrb[201].mxu1  ;;  %v18031_v33 = vld [vmem:[%s22603_s9 + $0x20] sm:$0xff] }
0x5456   :  { %v18033_v37 = vld [vmem:[%s22603_s9 + $0x30] sm:$0xff] }
0x5457   :  { %v16538_v24 = vpop.f32.mrb[182].mxu0 }
0x5458   :  { %v16776_v50 = vmul.f32 0.35355338, %v16538_v24  ;;  %v19907_v55 = vpop.f32.mrb[183].mxu0  ;;  %v16616_v32 = vpop.f32.mrb[202].mxu1 }
0x5459   :  { %v16777_v35 = vmul.f32 0.35355338, %v16616_v32  ;;  %v19912_v13 = vpop.f32.mrb[203].mxu1 }
0x545a   :  { %v16780_v26 = vsel %vm288_vm1, %v16776_v50, -inf }
0x545b   :  { %16781 = vmax.xlane.f32.xlu0 %v16780_v26  ;;  %v16694_v14 = vpop.f32.mrb[184].mxu0  ;;  %v16783_v20 = vsel %vm288_vm1, %v16777_v35, -inf }
0x545c   :  { %v16778_v29 = vmul.f32 0.35355338, %v16694_v14  ;;  %v19917_v39 = vpop.f32.mrb[185].mxu0  ;;  %16784 = vmax.xlane.f32.xlu1 %v16783_v20  ;;  %v16772_v23 = vpop.f32.mrb[204].mxu1 }
0x545d   :  { %v19922_v40 = vpop.f32.mrb[205].mxu1  ;;  %v16779_v41 = vmul.f32 0.35355338, %v16772_v23 }
0x545e   :  { %v16786_v10 = vsel %vm288_vm1, %v16778_v29, -inf }
0x545f   :  { %16787 = vmax.xlane.f32.xlu0 %v16786_v10  ;;  %v16789_v42 = vsel %vm288_vm1, %v16779_v41, -inf }
0x5463   :  { %16790 = vmax.xlane.f32.xlu0 %v16789_v42 }
0x546d   :  { %16824 = vrot.lane.b32.xlu1 %v23186_v8, %s23626_s26 }
0x54e8   :  { %v16782_v19 = vpop.xlane.xlu0 %16781 }
0x54e9   :  { %v16792_v43 = vsub.f32 %v16776_v50, %v16782_v19  ;;  %v16785_v0 = vpop.xlane.xlu1 %16784  ;;  %v18034_v50 = vld [vmem:[%s22603_s9 + $0x38] sm:$0xff] }
0x54ea   :  { %v16793_v31 = vsub.f32 %v16777_v35, %v16785_v0  ;;  %v20341_v55 = vpack.c.bf16 %v18034_v50, %v18033_v37 }
0x54eb   :  { %v16796_v38 = vmul.f32 1.442695, %v16792_v43 }
0x54ec   :  { %v16798_v59 = vmul.f32 1.442695, %v16793_v31  ;;  %v16788_v12 = vpop.xlane.xlu0 %16787 }
0x54ed   :  { %21009 = vpow2.f32 %v16796_v38  ;;  %v16794_v56 = vsub.f32 %v16778_v29, %v16788_v12  ;;  %v16825_v58 = vpop.permute.xlu1 %16824 }
0x54ee   :  { %21011 = vpow2.f32 %v16798_v59  ;;  %19924 = vmatpush3.msra.mxu0 %v16825_v58 }
0x54ef   :  { %v16800_v49 = vmul.f32 1.442695, %v16794_v56  ;;  %19933 = vmatprep.subr.mxu0 %v21076_v57 }
0x54f0   :  { %v16791_v45 = vpop.xlane.xlu0 %16790 }
0x54f1   :  { %21013 = vpow2.f32 %v16800_v49  ;;  %v16795_v62 = vsub.f32 %v16779_v41, %v16791_v45 }
0x54f3   :  { %v16802_v9 = vmul.f32 1.442695, %v16795_v62 }
0x54f5   :  { %21015 = vpow2.f32 %v16802_v9 }
0x54f7   :  { %v21010_v8 = vpop.eup %21009 }
0x54f8   :  { %v21012_v1 = vpop.eup %21011  ;;  %v16804_v5 = vsel %vm288_vm1, %v21010_v8, 0.0 }
0x54f9   :  { %16805 = vadd.xlane.f32.xlu1 %v16804_v5  ;;  %v16807_v36 = vsel %vm288_vm1, %v21012_v1, 0.0 }
0x54fa   :  { %16808 = vadd.xlane.f32.xlu0 %v16807_v36 }
0x54fb   :  { %v21014_v34 = vpop.eup %21013 }
0x54fc   :  { %v16810_v17 = vsel %vm288_vm1, %v21014_v34, 0.0 }
0x54fd   :  { %16811 = vadd.xlane.f32.xlu1 %v16810_v17 }
0x54ff   :  { %v21016_v60 = vpop.eup %21015 }
0x5500   :  { %v16813_v3 = vsel %vm288_vm1, %v21016_v60, 0.0 }
0x5501   :  { %16814 = vadd.xlane.f32.xlu0 %v16813_v3 }
0x550e   :  { %16976 = vrot.lane.b32.xlu1 %v23193_v51, %s23626_s26 }
0x5512   :  { %17052 = vrot.lane.b32.xlu1 %v23191_v47, %s23626_s26 }
0x5516   :  { %17134 = vrot.lane.b32.xlu1 %v23383_v46, %s23629_s19 }
0x5517   :  { %16900 = vrot.lane.b32.xlu0 %v23184_v22, %s23626_s26 }
0x551a   :  { %17150 = vrot.lane.b32.xlu1 %v16308_v27, %s23630_s24 }
0x551b   :  { %17132 = vrot.lane.b32.xlu0 %v23385_v11, %s23629_s19 }
0x551e   :  { %17138 = vrot.lane.b32.xlu1 %v23389_v16, %s23629_s19 }
0x551f   :  { %17148 = vrot.lane.b32.xlu0 %v23449_v6, %s23630_s24 }
0x5522   :  { %17154 = vrot.lane.b32.xlu1 %v16460_v30, %s23630_s24  ;;  %v18032_v30 = vld [vmem:[%s22603_s9 + $0x28] sm:$0xff] }
0x5523   :  { %17136 = vrot.lane.b32.xlu0 %v23387_v61, %s23629_s19  ;;  %v20337_v24 = vpack.c.bf16 %v18032_v30, %v18031_v33 }
0x5527   :  { %17152 = vrot.lane.b32.xlu0 %v23451_v15, %s23630_s24 }
0x5586   :  { %v16806_v22 = vpop.xlane.xlu1 %16805 }
0x5587   :  { %21017 = vrcp.f32 %v16806_v22  ;;  %v16809_v47 = vpop.xlane.xlu0 %16808 }
0x5588   :  { %21019 = vrcp.f32 %v16809_v47 }
0x558a   :  { %v16812_v51 = vpop.xlane.xlu1 %16811 }
0x558b   :  { %21021 = vrcp.f32 %v16812_v51 }
0x558e   :  { %v16815_v46 = vpop.xlane.xlu0 %16814  ;;  %v16977_v11 = vpop.permute.xlu1 %16976 }
0x558f   :  { %21023 = vrcp.f32 %v16815_v46 }
0x5591   :  { %v21018_v16 = vpop.eup %21017 }
0x5592   :  { %v21020_v4 = vpop.eup %21019  ;;  %v16820_v63 = vmul.f32 %v21018_v16, %v21010_v8  ;;  %v16901_v7 = vpop.permute.xlu0 %16900 }
0x5593   :  { %v16821_v6 = vmul.f32 %v21020_v4, %v21012_v1  ;;  %19929 = vmatpush3.msra.mxu1 %v16901_v7  ;;  %v17053_v2 = vpop.permute.xlu1 %17052 }
0x5594   :  { %19926 = vmatmul.mubr.msk.f32.vlgmr.msra.gmra.mrb[186].mxu0 %vm288_vm1, %v16820_v63  ;;  %19938 = vmatprep.subr.mxu1 %v21076_v57 }
0x5595   :  { %v21022_v61 = vpop.eup %21021  ;;  %19934 = vmatpush3.msra.mxu0 %v16977_v11  ;;  %19931 = vmatmul.mubr.msk.f32.vlgmr.msra.gmra.mrb[206].mxu1 %vm288_vm1, %v16821_v6 }
0x5596   :  { %v16822_v27 = vmul.f32 %v21022_v61, %v21014_v34  ;;  %19939 = vmatpush3.msra.mxu1 %v17053_v2  ;;  %19935 = vmatprep.mubr.msk.f32.mxu0 %vm21077_vm6, %v21076_v57  ;;  %v17133_v39 = vpop.permute.xlu0 %17132 }
0x5597   :  { %19940 = vmatprep.mubr.msk.f32.mxu1 %vm21077_vm6, %v21076_v57  ;;  %20338 = vmatprep.subr.bf16.mxu0 %v20337_v24  ;;  %v17135_v23 = vpop.permute.xlu1 %17134  ;;  %v17176_v0 = vsel %vm288_vm1, %v23297_v28, %v17133_v39  ;;  %v18040_v39 = vld [vmem:[%s22678_s27 + $0x30] sm:$0xff] }
0x5598   :  { %19936 = vmatmul.mubr.msk.f32.vlgmr.msra.gmra.mrb[188].mxu0 %vm288_vm1, %v16822_v27  ;;  %v17177_v31 = vsel %vm288_vm1, %v23299_v53, %v17135_v23  ;;  %v18041_v23 = vld [vmem:[%s22678_s27 + $0x38] sm:$0xff] }
0x5599   :  { %v21024_v21 = vpop.eup %21023  ;;  %20340 = vmatpush3.bf16.msra.mxu0 %v20337_v24 }
0x559a   :  { %v16823_v15 = vmul.f32 %v21024_v21, %v21016_v60  ;;  %20342 = vmatprep.subr.bf16.mxu0 %v20341_v55  ;;  %v17149_v40 = vpop.permute.xlu0 %17148 }
0x559b   :  { %v17151_v41 = vpop.permute.xlu1 %17150  ;;  %v17180_v38 = vsel %vm465_vm3, %v17176_v0, %v17149_v40  ;;  %v20349_v40 = vpack.c.bf16 %v18041_v23, %v18040_v39 }
0x559c   :  { %19941 = vmatmul.mubr.msk.f32.vlgmr.msra.gmra.mrb[208].mxu1 %vm288_vm1, %v16823_v15  ;;  %v17181_v12 = vsel %vm465_vm3, %v17177_v31, %v17151_v41  ;;  %v18043_v41 = vld [vmem:[%s22687_s13 + $0x40] sm:$0xff] }
0x559d   :  { %20344 = vmatpush3.bf16.msra.mxu0 %v20341_v55  ;;  %v18047_v31 = vld [vmem:[%s22687_s13 + $0x60] sm:$0xff] }
0x559e   :  { %v17137_v10 = vpop.permute.xlu0 %17136 }
0x559f   :  { %v17139_v42 = vpop.permute.xlu1 %17138  ;;  %v17178_v45 = vsel %vm288_vm1, %v23303_v52, %v17137_v10  ;;  %v18172_v52 = vld [vmem:[%s22644_s5 + $0x1] ss:$0 sm:$0xff]  ;;  %v18044_v10 = vld [vmem:[%s22687_s13 + $0x48] sm:$0xff] }
0x55a0   :  { %v17179_v9 = vsel %vm288_vm1, %v23301_v18, %v17139_v42  ;;  %v18045_v42 = vld [vmem:[%s22687_s13 + $0x50] sm:$0xff] }
0x55a2   :  { %v17153_v19 = vpop.permute.xlu0 %17152 }
0x55a3   :  { %v17155_v43 = vpop.permute.xlu1 %17154  ;;  %v17182_v28 = vsel %vm465_vm3, %v17178_v45, %v17153_v19  ;;  %v20353_v19 = vpack.c.bf16 %v18044_v10, %v18043_v41 }
0x55a4   :  { %v17183_v8 = vsel %vm465_vm3, %v17179_v9, %v17155_v43  ;;  %v18046_v43 = vld [vmem:[%s22687_s13 + $0x58] sm:$0xff] }
0x55a5   :  { %v20357_v0 = vpack.c.bf16 %v18046_v43, %v18045_v42  ;;  %20354 = vmatprep.subr.bf16.mxu0 %v20353_v19 }
0x5667   :  { %v16896_v32 = vpop.f32.mrb[186].mxu0 }
0x5668   :  { %17164 = vrot.lane.b32.xlu0 %v16896_v32, %s23620_s14  ;;  %v19927_v57 = vpop.f32.mrb[187].mxu0  ;;  %v16972_v35 = vpop.f32.mrb[206].mxu1 }
0x5669   :  { %17166 = vrot.lane.b32.xlu1 %v16972_v35, %s23620_s14  ;;  %v19932_v13 = vpop.f32.mrb[207].mxu1 }
0x566b   :  { %v17048_v26 = vpop.f32.mrb[188].mxu0 }
0x566c   :  { %17168 = vrot.lane.b32.xlu0 %v17048_v26, %s23620_s14  ;;  %v19937_v14 = vpop.f32.mrb[189].mxu0 }
0x566d   :  { %v18038_v14 = vld [vmem:[%s22678_s27 + $0x20] sm:$0xff] }
0x566f   :  { %v17124_v20 = vpop.f32.mrb[208].mxu1 }
0x5670   :  { %17170 = vrot.lane.b32.xlu1 %v17124_v20, %s23620_s14  ;;  %v19942_v29 = vpop.f32.mrb[209].mxu1  ;;  %v18039_v20 = vld [vmem:[%s22678_s27 + $0x28] sm:$0xff]  ;;  %s17695_s27 = sld [smem:[%s23595_s0 + %s21096_s15]]  }
0x5671   :  { %v20345_v29 = vpack.c.bf16 %v18039_v20, %v18038_v14 }
0x5673   :  { %20346 = vmatprep.subr.bf16.mxu1 %v20345_v29 }
0x5674   :  { %20348 = vmatpush3.bf16.msra.mxu1 %v20345_v29 }
0x5675   :  { %20350 = vmatprep.subr.bf16.mxu1 %v20349_v40 }
0x5678   :  { %20352 = vmatpush3.bf16.msra.mxu1 %v20349_v40 }
0x56da   :  { %v17165_v59 = vpop.permute.xlu0 %17164 }
0x56db   :  { %v17184_v56 = vsel %vm1952_vm4, %v17180_v38, %v17165_v59  ;;  %v17167_v58 = vpop.permute.xlu1 %17166  ;;  %v18048_v38 = vld [vmem:[%s22687_s13 + $0x68] sm:$0xff] }
0x56dc   :  { %v17185_v49 = vsel %vm1952_vm4, %v17181_v12, %v17167_v58  ;;  %19951 = vmatprep.mubr.msk.f32.mxu0 %vm184_vm0, %v17184_v56  ;;  %v20361_v59 = vpack.c.bf16 %v18048_v38, %v18047_v31 }
0x56dd   :  { %19952 = vmatmul.mubr.msk.f32.vlgmr.msra.gmra.mrb[190].mxu0 %vm184_vm0, %v17185_v49 }
0x56de   :  { %v17169_v53 = vpop.permute.xlu0 %17168  ;;  %20356 = vmatpush3.bf16.msra.mxu0 %v20353_v19 }
0x56df   :  { %v17186_v62 = vsel %vm1952_vm4, %v17182_v28, %v17169_v53  ;;  %20358 = vmatprep.subr.bf16.mxu0 %v20357_v0 }
0x56e0   :  { %19954 = vmatprep.mubr.msk.f32.mxu0 %vm184_vm0, %v17186_v62 }
0x56e2   :  { %v17171_v1 = vpop.permute.xlu1 %17170  ;;  %20360 = vmatpush3.bf16.msra.mxu0 %v20357_v0 }
0x56e3   :  { %v17187_v5 = vsel %vm1952_vm4, %v17183_v8, %v17171_v1  ;;  %20362 = vmatprep.subr.bf16.mxu0 %v20361_v59 }
0x56e4   :  { %19955 = vmatmul.mubr.msk.f32.gmra.mrb[192].mxu0 %vm184_vm0, %v17187_v5 }
0x56e6   :  { %20364 = vmatpush3.bf16.msra.mxu0 %v20361_v59 }
0x57b0   :  { %v19953_v36 = vpop.f32.mrb[190].mxu0 }
0x57b1   :  { %v17278_v34 = vadd.f32 %v19953_v36, %v18172_v52  ;;  %v17272_v17 = vpop.f32.mrb[191].mxu0  ;;  %v18177_v36 = vld [vmem:[%s22698_s8 + $0x1] ss:$0 sm:$0xff] }
0x57b2   :  { %v17273_v60 = vadd.f32 %v18172_v52, %v17272_v17 }
0x57b3   :  { %v17292_v3 = vadd.f32 %v17278_v34, %v23165_v54 }
0x57b4   :  { %v17291_v22 = vadd.f32 %v17273_v60, %v23163_v48 }
0x57b5   :  { %v17298_v47 = vsel %vm184_vm0, %v17292_v3, 0.0 }
0x57b6   :  { %17299 = vadd.xlane.f32.xlu1 %v17298_v47  ;;  %v17295_v18 = vsel %vm184_vm0, %v17291_v22, 0.0 }
0x57b7   :  { %v19956_v51 = vpop.f32.mrb[192].mxu0  ;;  %17296 = vadd.xlane.f32.xlu0 %v17295_v18 }
0x57b8   :  { %v17282_v46 = vpop.f32.mrb[193].mxu0  ;;  %v17288_v11 = vadd.f32 %v19956_v51, %v18172_v52 }
0x57b9   :  { %v17283_v16 = vadd.f32 %v18172_v52, %v17282_v46 }
0x57ba   :  { %v17294_v63 = vadd.f32 %v17288_v11, %v23177_v25 }
0x57bb   :  { %v17293_v4 = vadd.f32 %v17283_v16, %v23172_v44 }
0x57bc   :  { %v17304_v54 = vsel %vm184_vm0, %v17294_v63, 0.0 }
0x57bd   :  { %v17301_v7 = vsel %vm184_vm0, %v17293_v4, 0.0 }
0x57be   :  { %17302 = vadd.xlane.f32.xlu0 %v17301_v7 }
0x57c2   :  { %17305 = vadd.xlane.f32.xlu0 %v17304_v54 }
0x5843   :  { %v17300_v48 = vpop.xlane.xlu1 %17299 }
0x5844   :  { %v17308_v6 = vmul.f32 0.03125, %v17300_v48  ;;  %v17297_v61 = vpop.xlane.xlu0 %17296 }
0x5845   :  { %v17307_v2 = vmul.f32 0.03125, %v17297_v61  ;;  %v18050_v61 = vld [vmem:[%s22687_s13 + $0x78] sm:$0xff] }
0x5846   :  { %v23530_v27 = vsub.f32 %v17292_v3, %v17308_v6  ;;  %v18178_v3 = vld [vmem:[%s22703_s21 + $0x1] ss:$0 sm:$0xff]  ;;  %v18049_v6 = vld [vmem:[%s22687_s13 + $0x70] sm:$0xff] }
0x5847   :  { %v23532_v21 = vsub.f32 %v17291_v22, %v17307_v2  ;;  %v20365_v2 = vpack.c.bf16 %v18050_v61, %v18049_v6 }
0x5848   :  { %v17316_v15 = vmul.f32 %v23530_v27, %v23530_v27 }
0x5849   :  { %v17315_v44 = vmul.f32 %v23532_v21, %v23532_v21  ;;  %20366 = vmatprep.subr.bf16.mxu0 %v20365_v2 }
0x584a   :  { %v17322_v25 = vsel %vm184_vm0, %v17316_v15, 0.0  ;;  %20368 = vmatpush3.bf16.msra.mxu0 %v20365_v2  ;;  %v18189_v2 = vld [vmem:[%s22752_s22 + $0x1] ss:$0 sm:$0xff] }
0x584b   :  { %v17303_v33 = vpop.xlane.xlu0 %17302  ;;  %17323 = vadd.xlane.f32.xlu0 %v17322_v25  ;;  %v17319_v30 = vsel %vm184_vm0, %v17315_v44, 0.0 }
0x584c   :  { %v17309_v37 = vmul.f32 0.03125, %v17303_v33  ;;  %17320 = vadd.xlane.f32.xlu1 %v17319_v30 }
0x584e   :  { %v23540_v24 = vsub.f32 %v17293_v4, %v17309_v37 }
0x584f   :  { %v17306_v50 = vpop.xlane.xlu0 %17305 }
0x5850   :  { %v17310_v55 = vmul.f32 0.03125, %v17306_v50  ;;  %v17317_v32 = vmul.f32 %v23540_v24, %v23540_v24 }
0x5852   :  { %v23544_v57 = vsub.f32 %v17294_v63, %v17310_v55  ;;  %v17325_v35 = vsel %vm184_vm0, %v17317_v32, 0.0 }
0x5853   :  { %17326 = vadd.xlane.f32.xlu1 %v17325_v35  ;;  %v18184_v35 = vld [vmem:[%s22733_s23 + $0x1] ss:$0 sm:$0xff] }
0x5854   :  { %v17318_v13 = vmul.f32 %v23544_v57, %v23544_v57 }
0x5856   :  { %v17328_v26 = vsel %vm184_vm0, %v17318_v13, 0.0 }
0x5857   :  { %17329 = vadd.xlane.f32.xlu0 %v17328_v26 }
0x58d8   :  { %v17324_v12 = vpop.xlane.xlu0 %17323 }
0x58d9   :  { %v17332_v56 = vmul.f32 0.03125, %v17324_v12  ;;  %v17321_v58 = vpop.xlane.xlu1 %17320 }
0x58da   :  { %v17331_v49 = vmul.f32 0.03125, %v17321_v58 }
0x58db   :  { %v17336_v45 = vadd.f32 1e-05, %v17332_v56 }
0x58dc   :  { %v17335_v28 = vadd.f32 1e-05, %v17331_v49 }
0x58dd   :  { %21025 = vrsqrt.f32 %v17336_v45 }
0x58de   :  { %21027 = vrsqrt.f32 %v17335_v28 }
0x58e0   :  { %v17327_v53 = vpop.xlane.xlu1 %17326 }
0x58e1   :  { %v17333_v62 = vmul.f32 0.03125, %v17327_v53 }
0x58e3   :  { %v17337_v9 = vadd.f32 1e-05, %v17333_v62 }
0x58e4   :  { %v17330_v8 = vpop.xlane.xlu0 %17329 }
0x58e5   :  { %21029 = vrsqrt.f32 %v17337_v9  ;;  %v17334_v1 = vmul.f32 0.03125, %v17330_v8 }
0x58e7   :  { %v21026_v5 = vpop.eup %21025  ;;  %v17338_v52 = vadd.f32 1e-05, %v17334_v1 }
0x58e8   :  { %v21028_v34 = vpop.eup %21027  ;;  %v17344_v17 = vmul.f32 %v21026_v5, %v23530_v27  ;;  %v18179_v27 = vld [vmem:[%s22721_s25 + $0x1] ss:$0 sm:$0xff] }
0x58e9   :  { %21031 = vrsqrt.f32 %v17338_v52  ;;  %v17343_v60 = vmul.f32 %v21028_v34, %v23532_v21 }
0x58ea   :  { %v17354_v22 = vmul.f32 %v18177_v36, %v17344_v17 }
0x58eb   :  { %v17353_v47 = vmul.f32 %v18177_v36, %v17343_v60 }
0x58ec   :  { %v17364_v51 = vadd.f32 %v18178_v3, %v17354_v22 }
0x58ed   :  { %v17363_v18 = vadd.f32 %v18178_v3, %v17353_v47 }
0x58ef   :  { %v21030_v46 = vpop.eup %21029  ;;  %19965 = vmatprep.mubr.msk.f32.mxu1 %vm184_vm0, %v17363_v18 }
0x58f0   :  { %19966 = vmatmul.mubr.msk.f32.vlgmr.msra.gmra.mrb[210].mxu1 %vm184_vm0, %v17364_v51  ;;  %v17345_v11 = vmul.f32 %v21030_v46, %v23540_v24 }
0x58f2   :  { %v17355_v16 = vmul.f32 %v18177_v36, %v17345_v11 }
0x58f3   :  { %v21032_v4 = vpop.eup %21031 }
0x58f4   :  { %v17365_v63 = vadd.f32 %v18178_v3, %v17355_v16  ;;  %v17346_v7 = vmul.f32 %v21032_v4, %v23544_v57 }
0x58f6   :  { %19968 = vmatprep.mubr.msk.f32.mxu1 %vm184_vm0, %v17365_v63  ;;  %v17356_v54 = vmul.f32 %v18177_v36, %v17346_v7 }
0x58f8   :  { %v17366_v48 = vadd.f32 %v18178_v3, %v17356_v54 }
0x58fa   :  { %19969 = vmatmul.mubr.msk.f32.gmra.mrb[212].mxu1 %vm184_vm0, %v17366_v48 }
0x59c3   :  { %v19967_v21 = vpop.f32.mrb[210].mxu1 }
0x59c4   :  { %v17457_v15 = vadd.f32 %v19967_v21, %v18179_v27  ;;  %v17451_v44 = vpop.f32.mrb[211].mxu1 }
0x59c5   :  { %v17452_v25 = vadd.f32 %v18179_v27, %v17451_v44 }
0x59c6   :  { %v17471_v30 = vmax.f32 %v17457_v15, 0.0  ;;  %v18190_v15 = vld [vmem:[%s22757_s18 + $0x1] ss:$0 sm:$0xff] }
0x59c7   :  { %v17470_v33 = vmax.f32 %v17452_v25, 0.0 }
0x59c9   :  { %19987 = vmatprep.mubr.msk.f32.mxu0 %vm2250_vm5, %v17470_v33 }
0x59ca   :  { %19988 = vmatmul.mubr.msk.f32.vlgmr.msra.gmra.mrb[194].mxu0 %vm2250_vm5, %v17471_v30 }
0x59cd   :  { %v19970_v37 = vpop.f32.mrb[212].mxu1 }
0x59ce   :  { %v17467_v24 = vadd.f32 %v19970_v37, %v18179_v27  ;;  %v17461_v50 = vpop.f32.mrb[213].mxu1 }
0x59cf   :  { %v17462_v55 = vadd.f32 %v18179_v27, %v17461_v50 }
0x59d0   :  { %v17473_v57 = vmax.f32 %v17467_v24, 0.0 }
0x59d1   :  { %v17472_v32 = vmax.f32 %v17462_v55, 0.0 }
0x59d3   :  { %19990 = vmatprep.mubr.msk.f32.mxu0 %vm2250_vm5, %v17472_v32 }
0x59d4   :  { %19991 = vmatmul.mubr.msk.f32.gmra.mrb[196].mxu0 %vm2250_vm5, %v17473_v57 }
0x5a9d   :  { %v19989_v13 = vpop.f32.mrb[194].mxu0 }
0x5a9e   :  { %v17564_v26 = vadd.f32 %v19989_v13, %v18184_v35  ;;  %v17558_v14 = vpop.f32.mrb[195].mxu0 }
0x5a9f   :  { %v17559_v20 = vadd.f32 %v18184_v35, %v17558_v14 }
0x5aa0   :  { %v17578_v29 = vadd.f32 %v17564_v26, %v17364_v51 }
0x5aa1   :  { %v17577_v39 = vadd.f32 %v17559_v20, %v17363_v18 }
0x5aa2   :  { %v17584_v23 = vsel %vm184_vm0, %v17578_v29, 0.0 }
0x5aa3   :  { %17585 = vadd.xlane.f32.xlu0 %v17584_v23  ;;  %v17581_v40 = vsel %vm184_vm0, %v17577_v39, 0.0 }
0x5aa4   :  { %17582 = vadd.xlane.f32.xlu1 %v17581_v40 }
0x5aa7   :  { %v19992_v41 = vpop.f32.mrb[196].mxu0 }
0x5aa8   :  { %v17574_v10 = vadd.f32 %v19992_v41, %v18184_v35  ;;  %v17568_v42 = vpop.f32.mrb[197].mxu0 }
0x5aa9   :  { %v17569_v19 = vadd.f32 %v18184_v35, %v17568_v42 }
0x5aaa   :  { %v17580_v43 = vadd.f32 %v17574_v10, %v17366_v48 }
0x5aab   :  { %v17579_v0 = vadd.f32 %v17569_v19, %v17365_v63 }
0x5aac   :  { %v17590_v31 = vsel %vm184_vm0, %v17580_v43, 0.0 }
0x5aad   :  { %17591 = vadd.xlane.f32.xlu0 %v17590_v31  ;;  %v17587_v38 = vsel %vm184_vm0, %v17579_v0, 0.0 }
0x5aae   :  { %17588 = vadd.xlane.f32.xlu1 %v17587_v38 }
0x5b30   :  { %v17586_v59 = vpop.xlane.xlu0 %17585 }
0x5b31   :  { %v17594_v12 = vmul.f32 0.03125, %v17586_v59  ;;  %v17583_v56 = vpop.xlane.xlu1 %17582 }
0x5b32   :  { %v17593_v58 = vmul.f32 0.03125, %v17583_v56 }
0x5b33   :  { %v17598_v49 = vsub.f32 %v17578_v29, %v17594_v12 }
0x5b34   :  { %v17597_v45 = vsub.f32 %v17577_v39, %v17593_v58 }
0x5b35   :  { %v17602_v28 = vmul.f32 %v17598_v49, %v17598_v49 }
0x5b36   :  { %v17601_v53 = vmul.f32 %v17597_v45, %v17597_v45 }
0x5b37   :  { %v17608_v62 = vsel %vm184_vm0, %v17602_v28, 0.0 }
0x5b38   :  { %17609 = vadd.xlane.f32.xlu0 %v17608_v62  ;;  %v17605_v9 = vsel %vm184_vm0, %v17601_v53, 0.0 }
0x5b39   :  { %17606 = vadd.xlane.f32.xlu1 %v17605_v9 }
0x5b3a   :  { %v17592_v8 = vpop.xlane.xlu0 %17591 }
0x5b3b   :  { %v17596_v1 = vmul.f32 0.03125, %v17592_v8  ;;  %v17589_v5 = vpop.xlane.xlu1 %17588 }
0x5b3c   :  { %v17595_v52 = vmul.f32 0.03125, %v17589_v5 }
0x5b3d   :  { %v17600_v36 = vsub.f32 %v17580_v43, %v17596_v1 }
0x5b3e   :  { %v17599_v34 = vsub.f32 %v17579_v0, %v17595_v52 }
0x5b3f   :  { %v17604_v17 = vmul.f32 %v17600_v36, %v17600_v36 }
0x5b40   :  { %v17603_v60 = vmul.f32 %v17599_v34, %v17599_v34 }
0x5b41   :  { %v17614_v3 = vsel %vm184_vm0, %v17604_v17, 0.0 }
0x5b42   :  { %17615 = vadd.xlane.f32.xlu0 %v17614_v3  ;;  %v17611_v22 = vsel %vm184_vm0, %v17603_v60, 0.0 }
0x5b43   :  { %17612 = vadd.xlane.f32.xlu1 %v17611_v22 }
0x5bc5   :  { %v17610_v47 = vpop.xlane.xlu0 %17609 }
0x5bc6   :  { %v17618_v18 = vmul.f32 0.03125, %v17610_v47  ;;  %v17607_v51 = vpop.xlane.xlu1 %17606 }
0x5bc7   :  { %v17617_v46 = vmul.f32 0.03125, %v17607_v51 }
0x5bc8   :  { %v17622_v11 = vadd.f32 1e-05, %v17618_v18 }
0x5bc9   :  { %v17621_v16 = vadd.f32 1e-05, %v17617_v46 }
0x5bca   :  { %21033 = vrsqrt.f32 %v17622_v11 }
0x5bcb   :  { %21035 = vrsqrt.f32 %v17621_v16 }
0x5bcf   :  { %v17616_v4 = vpop.xlane.xlu0 %17615 }
0x5bd0   :  { %v17620_v63 = vmul.f32 0.03125, %v17616_v4  ;;  %v17613_v7 = vpop.xlane.xlu1 %17612 }
0x5bd1   :  { %v17619_v54 = vmul.f32 0.03125, %v17613_v7 }
0x5bd2   :  { %v17624_v48 = vadd.f32 1e-05, %v17620_v63 }
0x5bd3   :  { %v17623_v6 = vadd.f32 1e-05, %v17619_v54 }
0x5bd4   :  { %v21034_v61 = vpop.eup %21033  ;;  %21037 = vrsqrt.f32 %v17624_v48 }
0x5bd5   :  { %v21036_v27 = vpop.eup %21035  ;;  %v17630_v21 = vmul.f32 %v21034_v61, %v17598_v49  ;;  %21039 = vrsqrt.f32 %v17623_v6 }
0x5bd6   :  { %v17629_v44 = vmul.f32 %v21036_v27, %v17597_v45 }
0x5bd7   :  { %v17640_v25 = vmul.f32 %v18189_v2, %v17630_v21 }
0x5bd8   :  { %v17639_v33 = vmul.f32 %v18189_v2, %v17629_v44 }
0x5bd9   :  { %v17650_v30 = vadd.f32 %v18190_v15, %v17640_v25 }
0x5bda   :  { %v17649_v37 = vadd.f32 %v18190_v15, %v17639_v33 }
0x5bdb   :  { %17654 = vst.msk [vmem:[%s17695_s27 + $0x8] sm:$0xff] %vm184_vm0, %v17650_v30 }
0x5bdc   :  { %17653 = vst.msk [vmem:[%s17695_s27] sm:$0xff] %vm184_vm0, %v17649_v37 }
0x5bde   :  { %v21038_v24 = vpop.eup %21037 }
0x5bdf   :  { %v21040_v50 = vpop.eup %21039  ;;  %v17632_v55 = vmul.f32 %v21038_v24, %v17600_v36 }
0x5be0   :  { %v17631_v32 = vmul.f32 %v21040_v50, %v17599_v34 }
0x5be1   :  { %v17642_v57 = vmul.f32 %v18189_v2, %v17632_v55 }
0x5be2   :  { %v17641_v35 = vmul.f32 %v18189_v2, %v17631_v32 }
0x5be3   :  { %v17652_v13 = vadd.f32 %v18190_v15, %v17642_v57 }
0x5be4   :  { %v17651_v26 = vadd.f32 %v18190_v15, %v17641_v35 }
0x5be5   :  { %17656 = vst.msk [vmem:[%s17695_s27 + $0x18] sm:$0xff] %vm184_vm0, %v17652_v13 }
0x5be6   :  { %17655 = vst.msk [vmem:[%s17695_s27 + $0x10] sm:$0xff] %vm184_vm0, %v17651_v26 }

</bundles_post_ra>
